<compile_context>
chip_gen: v5e
topology: v5e:2x2
jax: 0.10.0
libtpu: 0.0.40
codegen_flags: <defaults>
</compile_context>

<pallas_src>
import functools

import jax
import jax.numpy as jnp
from jax import lax
from jax.experimental import pallas as pl
from jax.experimental.pallas import tpu as pltpu

N_EMBD = 128
N_HEAD = 4
HEAD_SIZE = N_EMBD // N_HEAD
BLOCK_SIZE = 64            # T (sequence length)
LN_EPS = 1e-5
FF_CHUNKS = 2              # 4*C hidden split into lane-aligned 256-wide chunks
MAX_ROWS_PER_STEP = 256    # cap on (sequences per grid step) * T


def _num_tensorcores():
    """Best-effort TensorCore count per chip (v7x has 2). Defaults to 1."""
    try:
        info = pltpu.get_tpu_info()
    except Exception:
        return 1
    for name in ("num_cores", "num_tensorcores", "tensorcore_count",
                 "cores_per_chip", "num_cores_per_chip", "core_count"):
        n = getattr(info, name, None)
        if n is None:
            continue
        try:
            n = int(n)
        except Exception:
            continue
        if n >= 1:
            return n
    return 1


_NUM_CORES = _num_tensorcores()


def _rows_per_step(B, T, num_cores):
    """Sequences folded into each grid step.

    Prefer a grid of at least `num_cores` steps (so 'parallel' sharding uses all
    TensorCores on v7x), subject to the per-step row cap; otherwise pick the
    largest row block that fits (bigger matmul M on single-TC v5e/v6e).
    """
    divisors = [s for s in range(1, B + 1) if B % s == 0 and s * T <= MAX_ROWS_PER_STEP]
    if not divisors:
        return 1
    core_ok = [s for s in divisors if (B // s) >= num_cores]
    return max(core_ok) if core_ok else max(divisors)


def _layernorm(x, gamma, beta):
    # Elementwise math kept in f32 (v5e VPU has no bf16).
    mu = jnp.mean(x, axis=-1, keepdims=True)
    var = jnp.mean((x - mu) ** 2, axis=-1, keepdims=True)
    return (x - mu) * lax.rsqrt(var + LN_EPS) * gamma + beta


def block_kernel(x_ref,
                 ln1g_ref, ln1b_ref,
                 wqkv_ref, wproj_ref, bproj_ref,
                 ln2g_ref, ln2b_ref,
                 w1_ref, b1_ref, w2_ref, b2_ref,
                 out_ref,
                 *, seqs, seq_len, n_head, head_size, ff_chunks):
    S, T, H, hs = seqs, seq_len, n_head, head_size
    x = x_ref[...]                       # (R, C) f32, R = S*T (batch folded in)
    R, C = x.shape

    # ------------------ attention branch: x + proj(attn(ln1(x))) ------------------
    xn = _layernorm(x, ln1g_ref[...], ln1b_ref[...])
    xn_bf = xn.astype(jnp.bfloat16)

    # Fused QKV: one (R, C) x (C, 3C) matmul, lane-dense (R, 3C) result.
    # Attention scale is pre-folded into the Q columns of wqkv.
    qkv = jnp.dot(xn_bf, wqkv_ref[...],
                  preferred_element_type=jnp.float32).astype(jnp.bfloat16)

    def split_heads(z):
        # (S*T, H*hs) -> (H*S, T, hs): static 32-lane head slices, a free sublane
        # split (T is a multiple of 8) and a leading-(batch-)dim concat only.
        parts = [z[:, h * hs:(h + 1) * hs].reshape(S, T, hs) for h in range(H)]
        return parts[0] if H == 1 else jnp.concatenate(parts, axis=0)

    qh = split_heads(qkv[:, 0:C])          # (H*S, T, hs)
    kh = split_heads(qkv[:, C:2 * C])
    vh = split_heads(qkv[:, 2 * C:3 * C])

    # Causal mask shared across heads and sequences.
    row = lax.broadcasted_iota(jnp.int32, (T, T), 0)
    col = lax.broadcasted_iota(jnp.int32, (T, T), 1)
    causal = (col <= row)[None, :, :]                           # (1, T, T)

    # Head/sequence-batched scores; contraction on the minor dim (no k transpose).
    wei = jnp.einsum('bqd,bkd->bqk', qh, kh,
                     preferred_element_type=jnp.float32)        # (H*S, T, T)
    wei = jnp.where(causal, wei, -jnp.inf)
    m = jnp.max(wei, axis=-1, keepdims=True)
    e = jnp.exp(wei - m)
    p = e * pl.reciprocal(jnp.sum(e, axis=-1, keepdims=True), approx=False)
    ctx = jnp.einsum('bqk,bkd->bqd', p.astype(jnp.bfloat16), vh,
                     preferred_element_type=jnp.float32)        # (H*S, T, hs)

    # Re-pack heads to (R, C) with one lane-axis concat, then a single K=C
    # output-projection matmul (instead of H matmuls with K=hs).
    ctx_full = jnp.concatenate(
        [ctx[h * S:(h + 1) * S].reshape(S * T, hs) for h in range(H)], axis=-1)
    sa = jnp.dot(ctx_full.astype(jnp.bfloat16), wproj_ref[...],
                 preferred_element_type=jnp.float32)            # (R, C)
    x1 = x + sa + bproj_ref[...]                                # residual 1

    # ------------------ feed-forward branch: x1 + ffwd(ln2(x1)) ------------------
    x1n = _layernorm(x1, ln2g_ref[...], ln2b_ref[...]).astype(jnp.bfloat16)
    hidden = w1_ref.shape[-1]
    cw = hidden // ff_chunks                                    # 256: lane-aligned
    ff = None
    for c in range(ff_chunks):                                  # static, short
        c0, c1 = c * cw, (c + 1) * cw
        h1 = jnp.dot(x1n, w1_ref[:, c0:c1],
                     preferred_element_type=jnp.float32) + b1_ref[:, c0:c1]
        h1 = jnp.maximum(h1, 0.0).astype(jnp.bfloat16)          # ReLU
        part = jnp.dot(h1, w2_ref[c0:c1, :], preferred_element_type=jnp.float32)
        ff = (part + b2_ref[...]) if ff is None else (ff + part)

    out_ref[...] = x1 + ff                                      # residual 2
    # Dropout p=0 in the reference module -> identity (omitted on purpose).


def prepare_params(params):
    """One-time weight restructuring; hoist out of the per-call hot path."""
    (ln1g, ln1b, wq, wk, wv, wproj, bproj, ln2g, ln2b, w1, b1, w2, b2) = params
    C = wq.shape[0]
    scale = float(C) ** -0.5
    # Fused QKV weight (C, 3C): [ q (scaled) | k | v ], heads stay as 32-lane
    # column blocks exactly as in the reference (head h = cols h*hs:(h+1)*hs).
    wqkv = jnp.concatenate([wq * scale, wk, wv], axis=1).astype(jnp.bfloat16)
    return (ln1g, ln1b, wqkv, wproj.astype(jnp.bfloat16), bproj,
            ln2g, ln2b, w1.astype(jnp.bfloat16), b1, w2.astype(jnp.bfloat16), b2)


def block_forward_prepped(x, kparams):
    B, T, C = x.shape
    S = _rows_per_step(B, T, _NUM_CORES)     # sequences per grid step
    R = S * T                                # matmul M dimension per step

    x2 = x.reshape(B * T, C)                 # fold batch into rows

    def full_spec(a):
        nd = a.ndim
        return pl.BlockSpec(a.shape, lambda i, _nd=nd: (0,) * _nd)

    in_specs = [pl.BlockSpec((R, C), lambda i: (i, 0))] + [full_spec(a) for a in kparams]

    kernel = functools.partial(
        block_kernel, seqs=S, seq_len=T, n_head=N_HEAD,
        head_size=HEAD_SIZE, ff_chunks=FF_CHUNKS)

    out2 = pl.pallas_call(
        kernel,
        out_shape=jax.ShapeDtypeStruct((B * T, C), jnp.float32),
        grid_spec=pltpu.PrefetchScalarGridSpec(
            num_scalar_prefetch=0,
            grid=(B // S,),
            in_specs=in_specs,
            out_specs=pl.BlockSpec((R, C), lambda i: (i, 0)),
        ),
        compiler_params=pltpu.CompilerParams(
            dimension_semantics=("parallel",)),   # independent row blocks -> multi-TC
    )(x2, *kparams)
    return out2.reshape(B, T, C)


def block_forward(x, params):
    """Convenience wrapper (prep + call). Hoist prepare_params for production use."""
    return block_forward_prepped(x, prepare_params(params))


# --------------------------- test harness ---------------------------
def make_params(key, C=N_EMBD):
    ks = jax.random.split(key, 8)
    s = 0.02
    wq = s * jax.random.normal(ks[0], (C, C), jnp.float32)    # heads on the out dim
    wk = s * jax.random.normal(ks[1], (C, C), jnp.float32)
    wv = s * jax.random.normal(ks[2], (C, C), jnp.float32)
    wproj = s * jax.random.normal(ks[3], (C, C), jnp.float32)
    bproj = s * jax.random.normal(ks[4], (1, C), jnp.float32)
    ln1g = jnp.ones((1, C), jnp.float32)
    ln1b = jnp.zeros((1, C), jnp.float32)
    ln2g = jnp.ones((1, C), jnp.float32)
    ln2b = jnp.zeros((1, C), jnp.float32)
    w1 = s * jax.random.normal(ks[5], (C, 4 * C), jnp.float32)
    b1 = s * jax.random.normal(ks[6], (1, 4 * C), jnp.float32)
    w2 = s * jax.random.normal(ks[7], (4 * C, C), jnp.float32)
    b2 = jnp.zeros((1, C), jnp.float32)
    return (ln1g, ln1b, wq, wk, wv, wproj, bproj, ln2g, ln2b, w1, b1, w2, b2)


def block_reference(x, params):
    (ln1g, ln1b, wq, wk, wv, wproj, bproj, ln2g, ln2b, w1, b1, w2, b2) = params
    B, T, C = x.shape

    def ln(z, g, b):
        mu = jnp.mean(z, -1, keepdims=True)
        var = jnp.mean((z - mu) ** 2, -1, keepdims=True)
        return (z - mu) / jnp.sqrt(var + LN_EPS) * g + b

    xn = ln(x, ln1g[0], ln1b[0])
    q = xn @ wq
    k = xn @ wk
    v = xn @ wv
    qh = q.reshape(B, T, N_HEAD, HEAD_SIZE).transpose(0, 2, 1, 3)
    kh = k.reshape(B, T, N_HEAD, HEAD_SIZE).transpose(0, 2, 1, 3)
    vh = v.reshape(B, T, N_HEAD, HEAD_SIZE).transpose(0, 2, 1, 3)
    wei = jnp.einsum('bhqd,bhkd->bhqk', qh, kh) * C ** (-0.5)
    mask = jnp.tril(jnp.ones((T, T), bool))
    wei = jnp.where(mask, wei, -jnp.inf)
    wei = jax.nn.softmax(wei, axis=-1)
    out = jnp.einsum('bhqk,bhkd->bhqd', wei, vh)
    out = out.transpose(0, 2, 1, 3).reshape(B, T, C)
    x1 = x + out @ wproj + bproj[0]
    x1n = ln(x1, ln2g[0], ln2b[0])
    ff = jnp.maximum(x1n @ w1 + b1[0], 0.0) @ w2 + b2[0]
    return x1 + ff


if __name__ == "__main__":
    key = jax.random.PRNGKey(0)
    kx, kp = jax.random.split(key)
    B, T, C = 2, BLOCK_SIZE, N_EMBD
    x = jax.random.normal(kx, (B, T, C), jnp.float32)
    params = make_params(kp)

    # Prep weights once at init; jit the prepped forward (review item: hoist prep).
    kparams = prepare_params(params)
    fwd = jax.jit(block_forward_prepped)
    out = jax.block_until_ready(fwd(x, kparams))

    ref = block_reference(x, params)
    assert out.shape == (B, T, C)
    # Tolerance relaxed vs pure f32 because matmuls run in bf16 (f32 accumulation).
    err = float(jnp.max(jnp.abs(out - ref)))
    assert jnp.allclose(out, ref, atol=2e-2, rtol=2e-2), f"max abs err {err}"
    print("KERNEL_OK")
</pallas_src>

<mosaic_0001>
module attributes {stable_mosaic.version = 11 : i64} {
  func.func @block_kernel(%arg0: i32, %arg1: memref<128x128xf32, #tpu.memory_space<vmem>>, %arg2: memref<1x128xf32, #tpu.memory_space<vmem>>, %arg3: memref<1x128xf32, #tpu.memory_space<vmem>>, %arg4: memref<128x384xbf16, #tpu.memory_space<vmem>>, %arg5: memref<128x128xbf16, #tpu.memory_space<vmem>>, %arg6: memref<1x128xf32, #tpu.memory_space<vmem>>, %arg7: memref<1x128xf32, #tpu.memory_space<vmem>>, %arg8: memref<1x128xf32, #tpu.memory_space<vmem>>, %arg9: memref<128x512xbf16, #tpu.memory_space<vmem>>, %arg10: memref<1x512xf32, #tpu.memory_space<vmem>>, %arg11: memref<512x128xbf16, #tpu.memory_space<vmem>>, %arg12: memref<1x128xf32, #tpu.memory_space<vmem>>, %arg13: memref<128x128xf32, #tpu.memory_space<vmem>>) attributes {dimension_semantics = [#tpu.dimension_semantics<parallel>], iteration_bounds = array<i64: 1>, scalar_prefetch = 0 : i64, scratch_operands = 0 : i64, tpu.core_type = #tpu.core_type<tc>, window_params = [{transform_indices = @transform_0, window_bounds = array<i64: 128, 128>}, {pipeline_mode = #tpu.pipeline_mode<synchronous>, transform_indices = @transform_1, window_bounds = array<i64: 1, 128>}, {pipeline_mode = #tpu.pipeline_mode<synchronous>, transform_indices = @transform_2, window_bounds = array<i64: 1, 128>}, {pipeline_mode = #tpu.pipeline_mode<synchronous>, transform_indices = @transform_3, window_bounds = array<i64: 128, 384>}, {pipeline_mode = #tpu.pipeline_mode<synchronous>, transform_indices = @transform_4, window_bounds = array<i64: 128, 128>}, {pipeline_mode = #tpu.pipeline_mode<synchronous>, transform_indices = @transform_5, window_bounds = array<i64: 1, 128>}, {pipeline_mode = #tpu.pipeline_mode<synchronous>, transform_indices = @transform_6, window_bounds = array<i64: 1, 128>}, {pipeline_mode = #tpu.pipeline_mode<synchronous>, transform_indices = @transform_7, window_bounds = array<i64: 1, 128>}, {pipeline_mode = #tpu.pipeline_mode<synchronous>, transform_indices = @transform_8, window_bounds = array<i64: 128, 512>}, {pipeline_mode = #tpu.pipeline_mode<synchronous>, transform_indices = @transform_9, window_bounds = array<i64: 1, 512>}, {pipeline_mode = #tpu.pipeline_mode<synchronous>, transform_indices = @transform_10, window_bounds = array<i64: 512, 128>}, {pipeline_mode = #tpu.pipeline_mode<synchronous>, transform_indices = @transform_11, window_bounds = array<i64: 1, 128>}, {transform_indices = @transform_12, window_bounds = array<i64: 128, 128>}]} {
    %c0 = arith.constant 0 : index
    %c0_0 = arith.constant 0 : index
    %0 = vector.load %arg1[%c0, %c0_0] : memref<128x128xf32, #tpu.memory_space<vmem>>, vector<128x128xf32>
    %c0_1 = arith.constant 0 : index
    %c0_2 = arith.constant 0 : index
    %1 = vector.load %arg2[%c0_1, %c0_2] : memref<1x128xf32, #tpu.memory_space<vmem>>, vector<1x128xf32>
    %c0_3 = arith.constant 0 : index
    %c0_4 = arith.constant 0 : index
    %2 = vector.load %arg3[%c0_3, %c0_4] : memref<1x128xf32, #tpu.memory_space<vmem>>, vector<1x128xf32>
    %cst = arith.constant dense<0.000000e+00> : vector<128xf32>
    %3 = vector.multi_reduction <add>, %0, %cst [1] : vector<128x128xf32> to vector<128xf32>
    %4 = vector.shape_cast %3 : vector<128xf32> to vector<128x1xf32>
    %cst_5 = arith.constant 1.280000e+02 : f32
    %5 = vector.broadcast %cst_5 : f32 to vector<128x1xf32>
    %6 = arith.divf %4, %5 : vector<128x1xf32>
    %7 = vector.broadcast %6 : vector<128x1xf32> to vector<128x128xf32>
    %8 = arith.subf %0, %7 : vector<128x128xf32>
    %9 = arith.mulf %8, %8 : vector<128x128xf32>
    %cst_6 = arith.constant dense<0.000000e+00> : vector<128xf32>
    %10 = vector.multi_reduction <add>, %9, %cst_6 [1] : vector<128x128xf32> to vector<128xf32>
    %11 = vector.shape_cast %10 : vector<128xf32> to vector<128x1xf32>
    %cst_7 = arith.constant 1.280000e+02 : f32
    %12 = vector.broadcast %cst_7 : f32 to vector<128x1xf32>
    %13 = arith.divf %11, %12 : vector<128x1xf32>
    %14 = vector.broadcast %6 : vector<128x1xf32> to vector<128x128xf32>
    %15 = arith.subf %0, %14 : vector<128x128xf32>
    %cst_8 = arith.constant 9.99999974E-6 : f32
    %16 = vector.broadcast %cst_8 : f32 to vector<128x1xf32>
    %17 = arith.addf %13, %16 : vector<128x1xf32>
    %18 = math.rsqrt %17 : vector<128x1xf32>
    %19 = vector.broadcast %18 : vector<128x1xf32> to vector<128x128xf32>
    %20 = arith.mulf %15, %19 : vector<128x128xf32>
    %21 = vector.broadcast %1 : vector<1x128xf32> to vector<128x128xf32>
    %22 = arith.mulf %20, %21 : vector<128x128xf32>
    %23 = vector.broadcast %2 : vector<1x128xf32> to vector<128x128xf32>
    %24 = arith.addf %22, %23 : vector<128x128xf32>
    %25 = arith.truncf %24 : vector<128x128xf32> to vector<128x128xbf16>
    %c0_9 = arith.constant 0 : index
    %c0_10 = arith.constant 0 : index
    %26 = vector.load %arg4[%c0_9, %c0_10] : memref<128x384xbf16, #tpu.memory_space<vmem>>, vector<128x384xbf16>
    %cst_11 = arith.constant dense<0.000000e+00> : vector<128x384xf32>
    %27 = tpu.matmul %25, %26, %cst_11 {dimension_numbers = #tpu.dot_dimension_numbers<[1], [0], [0], [1], [0, 0, 1, 1], [], []>} : vector<128x128xbf16>, vector<128x384xbf16>, vector<128x384xf32> -> vector<128x384xf32>
    %28 = arith.truncf %27 : vector<128x384xf32> to vector<128x384xbf16>
    %29 = vector.extract_strided_slice %28 {offsets = [0, 0], sizes = [128, 128], strides = [1, 1]} : vector<128x384xbf16> to vector<128x128xbf16>
    %30 = vector.extract_strided_slice %29 {offsets = [0, 0], sizes = [128, 32], strides = [1, 1]} : vector<128x128xbf16> to vector<128x32xbf16>
    %31 = vector.shape_cast %30 : vector<128x32xbf16> to vector<2x64x32xbf16>
    %32 = vector.extract_strided_slice %29 {offsets = [0, 32], sizes = [128, 32], strides = [1, 1]} : vector<128x128xbf16> to vector<128x32xbf16>
    %33 = vector.shape_cast %32 : vector<128x32xbf16> to vector<2x64x32xbf16>
    %34 = vector.extract_strided_slice %29 {offsets = [0, 64], sizes = [128, 32], strides = [1, 1]} : vector<128x128xbf16> to vector<128x32xbf16>
    %35 = vector.shape_cast %34 : vector<128x32xbf16> to vector<2x64x32xbf16>
    %36 = vector.extract_strided_slice %29 {offsets = [0, 96], sizes = [128, 32], strides = [1, 1]} : vector<128x128xbf16> to vector<128x32xbf16>
    %37 = vector.shape_cast %36 : vector<128x32xbf16> to vector<2x64x32xbf16>
    %38 = tpu.concatenate %31, %33, %35, %37 in 0 : vector<2x64x32xbf16>, vector<2x64x32xbf16>, vector<2x64x32xbf16>, vector<2x64x32xbf16> -> vector<8x64x32xbf16>
    %39 = vector.extract_strided_slice %28 {offsets = [0, 128], sizes = [128, 128], strides = [1, 1]} : vector<128x384xbf16> to vector<128x128xbf16>
    %40 = vector.extract_strided_slice %39 {offsets = [0, 0], sizes = [128, 32], strides = [1, 1]} : vector<128x128xbf16> to vector<128x32xbf16>
    %41 = vector.shape_cast %40 : vector<128x32xbf16> to vector<2x64x32xbf16>
    %42 = vector.extract_strided_slice %39 {offsets = [0, 32], sizes = [128, 32], strides = [1, 1]} : vector<128x128xbf16> to vector<128x32xbf16>
    %43 = vector.shape_cast %42 : vector<128x32xbf16> to vector<2x64x32xbf16>
    %44 = vector.extract_strided_slice %39 {offsets = [0, 64], sizes = [128, 32], strides = [1, 1]} : vector<128x128xbf16> to vector<128x32xbf16>
    %45 = vector.shape_cast %44 : vector<128x32xbf16> to vector<2x64x32xbf16>
    %46 = vector.extract_strided_slice %39 {offsets = [0, 96], sizes = [128, 32], strides = [1, 1]} : vector<128x128xbf16> to vector<128x32xbf16>
    %47 = vector.shape_cast %46 : vector<128x32xbf16> to vector<2x64x32xbf16>
    %48 = tpu.concatenate %41, %43, %45, %47 in 0 : vector<2x64x32xbf16>, vector<2x64x32xbf16>, vector<2x64x32xbf16>, vector<2x64x32xbf16> -> vector<8x64x32xbf16>
    %49 = vector.extract_strided_slice %28 {offsets = [0, 256], sizes = [128, 128], strides = [1, 1]} : vector<128x384xbf16> to vector<128x128xbf16>
    %50 = vector.extract_strided_slice %49 {offsets = [0, 0], sizes = [128, 32], strides = [1, 1]} : vector<128x128xbf16> to vector<128x32xbf16>
    %51 = vector.shape_cast %50 : vector<128x32xbf16> to vector<2x64x32xbf16>
    %52 = vector.extract_strided_slice %49 {offsets = [0, 32], sizes = [128, 32], strides = [1, 1]} : vector<128x128xbf16> to vector<128x32xbf16>
    %53 = vector.shape_cast %52 : vector<128x32xbf16> to vector<2x64x32xbf16>
    %54 = vector.extract_strided_slice %49 {offsets = [0, 64], sizes = [128, 32], strides = [1, 1]} : vector<128x128xbf16> to vector<128x32xbf16>
    %55 = vector.shape_cast %54 : vector<128x32xbf16> to vector<2x64x32xbf16>
    %56 = vector.extract_strided_slice %49 {offsets = [0, 96], sizes = [128, 32], strides = [1, 1]} : vector<128x128xbf16> to vector<128x32xbf16>
    %57 = vector.shape_cast %56 : vector<128x32xbf16> to vector<2x64x32xbf16>
    %58 = tpu.concatenate %51, %53, %55, %57 in 0 : vector<2x64x32xbf16>, vector<2x64x32xbf16>, vector<2x64x32xbf16>, vector<2x64x32xbf16> -> vector<8x64x32xbf16>
    %59 = tpu.iota {dimensions = array<i32: 0>} : vector<64x64xi32>
    %60 = tpu.iota {dimensions = array<i32: 1>} : vector<64x64xi32>
    %61 = arith.cmpi sle, %60, %59 : vector<64x64xi32>
    %62 = vector.shape_cast %61 : vector<64x64xi1> to vector<1x64x64xi1>
    "tpu.trace_start"() <{level = 10 : i32, message = "bqd,bkd->bqk"}> : () -> ()
    %cst_12 = arith.constant dense<0.000000e+00> : vector<8x64x64xf32>
    %63 = tpu.matmul %38, %48, %cst_12 {dimension_numbers = #tpu.dot_dimension_numbers<[2], [2], [1], [1], [0, 0, 0, 1, 1, 1], [0], [0]>} : vector<8x64x32xbf16>, vector<8x64x32xbf16>, vector<8x64x64xf32> -> vector<8x64x64xf32>
    %cst_13 = arith.constant 0xFF800000 : f32
    "tpu.trace_stop"() : () -> ()
    %64 = vector.shape_cast %62 : vector<1x64x64xi1> to vector<1x64x64xi1>
    %65 = vector.broadcast %64 : vector<1x64x64xi1> to vector<8x64x64xi1>
    %66 = vector.broadcast %cst_13 : f32 to vector<8x64x64xf32>
    %67 = arith.select %65, %63, %66 : vector<8x64x64xi1>, vector<8x64x64xf32>
    %cst_14 = arith.constant dense<0xFF800000> : vector<8x64xf32>
    %68 = vector.multi_reduction <maximumf>, %67, %cst_14 [2] : vector<8x64x64xf32> to vector<8x64xf32>
    %69 = vector.shape_cast %68 : vector<8x64xf32> to vector<8x64x1xf32>
    %70 = vector.broadcast %69 : vector<8x64x1xf32> to vector<8x64x64xf32>
    %71 = arith.subf %67, %70 : vector<8x64x64xf32>
    %72 = math.exp %71 : vector<8x64x64xf32>
    %cst_15 = arith.constant dense<0.000000e+00> : vector<8x64xf32>
    %73 = vector.multi_reduction <add>, %72, %cst_15 [2] : vector<8x64x64xf32> to vector<8x64xf32>
    %74 = vector.shape_cast %73 : vector<8x64xf32> to vector<8x64x1xf32>
    %75 = tpu.reciprocal %74 : vector<8x64x1xf32> -> vector<8x64x1xf32>
    %76 = vector.broadcast %75 : vector<8x64x1xf32> to vector<8x64x64xf32>
    %77 = arith.mulf %72, %76 : vector<8x64x64xf32>
    %78 = arith.truncf %77 : vector<8x64x64xf32> to vector<8x64x64xbf16>
    "tpu.trace_start"() <{level = 10 : i32, message = "bqk,bkd->bqd"}> : () -> ()
    %cst_16 = arith.constant dense<0.000000e+00> : vector<8x64x32xf32>
    %79 = tpu.matmul %78, %58, %cst_16 {dimension_numbers = #tpu.dot_dimension_numbers<[2], [1], [1], [2], [0, 0, 0, 1, 1, 2], [0], [0]>} : vector<8x64x64xbf16>, vector<8x64x32xbf16>, vector<8x64x32xf32> -> vector<8x64x32xf32>
    "tpu.trace_stop"() : () -> ()
    %80 = vector.extract_strided_slice %79 {offsets = [0, 0, 0], sizes = [2, 64, 32], strides = [1, 1, 1]} : vector<8x64x32xf32> to vector<2x64x32xf32>
    %81 = vector.shape_cast %80 : vector<2x64x32xf32> to vector<128x32xf32>
    %82 = vector.extract_strided_slice %79 {offsets = [2, 0, 0], sizes = [2, 64, 32], strides = [1, 1, 1]} : vector<8x64x32xf32> to vector<2x64x32xf32>
    %83 = vector.shape_cast %82 : vector<2x64x32xf32> to vector<128x32xf32>
    %84 = vector.extract_strided_slice %79 {offsets = [4, 0, 0], sizes = [2, 64, 32], strides = [1, 1, 1]} : vector<8x64x32xf32> to vector<2x64x32xf32>
    %85 = vector.shape_cast %84 : vector<2x64x32xf32> to vector<128x32xf32>
    %86 = vector.extract_strided_slice %79 {offsets = [6, 0, 0], sizes = [2, 64, 32], strides = [1, 1, 1]} : vector<8x64x32xf32> to vector<2x64x32xf32>
    %87 = vector.shape_cast %86 : vector<2x64x32xf32> to vector<128x32xf32>
    %88 = tpu.concatenate %81, %83, %85, %87 in 1 : vector<128x32xf32>, vector<128x32xf32>, vector<128x32xf32>, vector<128x32xf32> -> vector<128x128xf32>
    %89 = arith.truncf %88 : vector<128x128xf32> to vector<128x128xbf16>
    %c0_17 = arith.constant 0 : index
    %c0_18 = arith.constant 0 : index
    %90 = vector.load %arg5[%c0_17, %c0_18] : memref<128x128xbf16, #tpu.memory_space<vmem>>, vector<128x128xbf16>
    %cst_19 = arith.constant dense<0.000000e+00> : vector<128x128xf32>
    %91 = tpu.matmul %89, %90, %cst_19 {dimension_numbers = #tpu.dot_dimension_numbers<[1], [0], [0], [1], [0, 0, 1, 1], [], []>} : vector<128x128xbf16>, vector<128x128xbf16>, vector<128x128xf32> -> vector<128x128xf32>
    %92 = arith.addf %0, %91 : vector<128x128xf32>
    %c0_20 = arith.constant 0 : index
    %c0_21 = arith.constant 0 : index
    %93 = vector.load %arg6[%c0_20, %c0_21] : memref<1x128xf32, #tpu.memory_space<vmem>>, vector<1x128xf32>
    %94 = vector.broadcast %93 : vector<1x128xf32> to vector<128x128xf32>
    %95 = arith.addf %92, %94 : vector<128x128xf32>
    %c0_22 = arith.constant 0 : index
    %c0_23 = arith.constant 0 : index
    %96 = vector.load %arg7[%c0_22, %c0_23] : memref<1x128xf32, #tpu.memory_space<vmem>>, vector<1x128xf32>
    %c0_24 = arith.constant 0 : index
    %c0_25 = arith.constant 0 : index
    %97 = vector.load %arg8[%c0_24, %c0_25] : memref<1x128xf32, #tpu.memory_space<vmem>>, vector<1x128xf32>
    %cst_26 = arith.constant dense<0.000000e+00> : vector<128xf32>
    %98 = vector.multi_reduction <add>, %95, %cst_26 [1] : vector<128x128xf32> to vector<128xf32>
    %99 = vector.shape_cast %98 : vector<128xf32> to vector<128x1xf32>
    %cst_27 = arith.constant 1.280000e+02 : f32
    %100 = vector.broadcast %cst_27 : f32 to vector<128x1xf32>
    %101 = arith.divf %99, %100 : vector<128x1xf32>
    %102 = vector.broadcast %101 : vector<128x1xf32> to vector<128x128xf32>
    %103 = arith.subf %95, %102 : vector<128x128xf32>
    %104 = arith.mulf %103, %103 : vector<128x128xf32>
    %cst_28 = arith.constant dense<0.000000e+00> : vector<128xf32>
    %105 = vector.multi_reduction <add>, %104, %cst_28 [1] : vector<128x128xf32> to vector<128xf32>
    %106 = vector.shape_cast %105 : vector<128xf32> to vector<128x1xf32>
    %cst_29 = arith.constant 1.280000e+02 : f32
    %107 = vector.broadcast %cst_29 : f32 to vector<128x1xf32>
    %108 = arith.divf %106, %107 : vector<128x1xf32>
    %109 = vector.broadcast %101 : vector<128x1xf32> to vector<128x128xf32>
    %110 = arith.subf %95, %109 : vector<128x128xf32>
    %cst_30 = arith.constant 9.99999974E-6 : f32
    %111 = vector.broadcast %cst_30 : f32 to vector<128x1xf32>
    %112 = arith.addf %108, %111 : vector<128x1xf32>
    %113 = math.rsqrt %112 : vector<128x1xf32>
    %114 = vector.broadcast %113 : vector<128x1xf32> to vector<128x128xf32>
    %115 = arith.mulf %110, %114 : vector<128x128xf32>
    %116 = vector.broadcast %96 : vector<1x128xf32> to vector<128x128xf32>
    %117 = arith.mulf %115, %116 : vector<128x128xf32>
    %118 = vector.broadcast %97 : vector<1x128xf32> to vector<128x128xf32>
    %119 = arith.addf %117, %118 : vector<128x128xf32>
    %120 = arith.truncf %119 : vector<128x128xf32> to vector<128x128xbf16>
    %c0_31 = arith.constant 0 : index
    %c0_32 = arith.constant 0 : index
    %121 = vector.load %arg9[%c0_31, %c0_32] : memref<128x512xbf16, #tpu.memory_space<vmem>>, vector<128x256xbf16>
    %cst_33 = arith.constant dense<0.000000e+00> : vector<128x256xf32>
    %122 = tpu.matmul %120, %121, %cst_33 {dimension_numbers = #tpu.dot_dimension_numbers<[1], [0], [0], [1], [0, 0, 1, 1], [], []>} : vector<128x128xbf16>, vector<128x256xbf16>, vector<128x256xf32> -> vector<128x256xf32>
    %c0_34 = arith.constant 0 : index
    %c0_35 = arith.constant 0 : index
    %123 = vector.load %arg10[%c0_34, %c0_35] : memref<1x512xf32, #tpu.memory_space<vmem>>, vector<1x256xf32>
    %124 = vector.broadcast %123 : vector<1x256xf32> to vector<128x256xf32>
    %125 = arith.addf %122, %124 : vector<128x256xf32>
    %cst_36 = arith.constant 0.000000e+00 : f32
    %126 = vector.broadcast %cst_36 : f32 to vector<128x256xf32>
    %127 = arith.maximumf %125, %126 : vector<128x256xf32>
    %128 = arith.truncf %127 : vector<128x256xf32> to vector<128x256xbf16>
    %c0_37 = arith.constant 0 : index
    %c0_38 = arith.constant 0 : index
    %129 = vector.load %arg11[%c0_37, %c0_38] : memref<512x128xbf16, #tpu.memory_space<vmem>>, vector<256x128xbf16>
    %cst_39 = arith.constant dense<0.000000e+00> : vector<128x128xf32>
    %130 = tpu.matmul %128, %129, %cst_39 {dimension_numbers = #tpu.dot_dimension_numbers<[1], [0], [0], [1], [0, 0, 1, 1], [], []>} : vector<128x256xbf16>, vector<256x128xbf16>, vector<128x128xf32> -> vector<128x128xf32>
    %c0_40 = arith.constant 0 : index
    %c0_41 = arith.constant 0 : index
    %131 = vector.load %arg12[%c0_40, %c0_41] : memref<1x128xf32, #tpu.memory_space<vmem>>, vector<1x128xf32>
    %132 = vector.broadcast %131 : vector<1x128xf32> to vector<128x128xf32>
    %133 = arith.addf %130, %132 : vector<128x128xf32>
    %c0_42 = arith.constant 0 : index
    %c256 = arith.constant 256 : index
    %134 = vector.load %arg9[%c0_42, %c256] : memref<128x512xbf16, #tpu.memory_space<vmem>>, vector<128x256xbf16>
    %cst_43 = arith.constant dense<0.000000e+00> : vector<128x256xf32>
    %135 = tpu.matmul %120, %134, %cst_43 {dimension_numbers = #tpu.dot_dimension_numbers<[1], [0], [0], [1], [0, 0, 1, 1], [], []>} : vector<128x128xbf16>, vector<128x256xbf16>, vector<128x256xf32> -> vector<128x256xf32>
    %c0_44 = arith.constant 0 : index
    %c256_45 = arith.constant 256 : index
    %136 = vector.load %arg10[%c0_44, %c256_45] : memref<1x512xf32, #tpu.memory_space<vmem>>, vector<1x256xf32>
    %137 = vector.broadcast %136 : vector<1x256xf32> to vector<128x256xf32>
    %138 = arith.addf %135, %137 : vector<128x256xf32>
    %cst_46 = arith.constant 0.000000e+00 : f32
    %139 = vector.broadcast %cst_46 : f32 to vector<128x256xf32>
    %140 = arith.maximumf %138, %139 : vector<128x256xf32>
    %141 = arith.truncf %140 : vector<128x256xf32> to vector<128x256xbf16>
    %c256_47 = arith.constant 256 : index
    %c0_48 = arith.constant 0 : index
    %142 = vector.load %arg11[%c256_47, %c0_48] : memref<512x128xbf16, #tpu.memory_space<vmem>>, vector<256x128xbf16>
    %cst_49 = arith.constant dense<0.000000e+00> : vector<128x128xf32>
    %143 = tpu.matmul %141, %142, %cst_49 {dimension_numbers = #tpu.dot_dimension_numbers<[1], [0], [0], [1], [0, 0, 1, 1], [], []>} : vector<128x256xbf16>, vector<256x128xbf16>, vector<128x128xf32> -> vector<128x128xf32>
    %144 = arith.addf %133, %143 : vector<128x128xf32>
    %145 = arith.addf %95, %144 : vector<128x128xf32>
    %c0_50 = arith.constant 0 : index
    %c0_51 = arith.constant 0 : index
    %146 = vector.load %arg13[%c0_50, %c0_51] : memref<128x128xf32, #tpu.memory_space<vmem>>, vector<128x128xf32>
    tpu.vector_store %arg13[%c0_50, %c0_51], %145 {strides = array<i32>} : memref<128x128xf32, #tpu.memory_space<vmem>>, vector<128x128xf32>,
    return
  }
  func.func @transform_0(%arg0: i32) -> (i32, i32) {
    %c0_i32 = arith.constant 0 : i32
    %c0_i32_0 = arith.constant 0 : i32
    return %arg0, %c0_i32 : i32, i32
  }
  func.func @transform_1(%arg0: i32) -> (i32, i32) {
    %c0_i32 = arith.constant 0 : i32
    %c0_i32_0 = arith.constant 0 : i32
    %c0_i32_1 = arith.constant 0 : i32
    return %c0_i32, %c0_i32_0 : i32, i32
  }
  func.func @transform_2(%arg0: i32) -> (i32, i32) {
    %c0_i32 = arith.constant 0 : i32
    %c0_i32_0 = arith.constant 0 : i32
    %c0_i32_1 = arith.constant 0 : i32
    return %c0_i32, %c0_i32_0 : i32, i32
  }
  func.func @transform_3(%arg0: i32) -> (i32, i32) {
    %c0_i32 = arith.constant 0 : i32
    %c0_i32_0 = arith.constant 0 : i32
    %c0_i32_1 = arith.constant 0 : i32
    return %c0_i32, %c0_i32_0 : i32, i32
  }
  func.func @transform_4(%arg0: i32) -> (i32, i32) {
    %c0_i32 = arith.constant 0 : i32
    %c0_i32_0 = arith.constant 0 : i32
    %c0_i32_1 = arith.constant 0 : i32
    return %c0_i32, %c0_i32_0 : i32, i32
  }
  func.func @transform_5(%arg0: i32) -> (i32, i32) {
    %c0_i32 = arith.constant 0 : i32
    %c0_i32_0 = arith.constant 0 : i32
    %c0_i32_1 = arith.constant 0 : i32
    return %c0_i32, %c0_i32_0 : i32, i32
  }
  func.func @transform_6(%arg0: i32) -> (i32, i32) {
    %c0_i32 = arith.constant 0 : i32
    %c0_i32_0 = arith.constant 0 : i32
    %c0_i32_1 = arith.constant 0 : i32
    return %c0_i32, %c0_i32_0 : i32, i32
  }
  func.func @transform_7(%arg0: i32) -> (i32, i32) {
    %c0_i32 = arith.constant 0 : i32
    %c0_i32_0 = arith.constant 0 : i32
    %c0_i32_1 = arith.constant 0 : i32
    return %c0_i32, %c0_i32_0 : i32, i32
  }
  func.func @transform_8(%arg0: i32) -> (i32, i32) {
    %c0_i32 = arith.constant 0 : i32
    %c0_i32_0 = arith.constant 0 : i32
    %c0_i32_1 = arith.constant 0 : i32
    return %c0_i32, %c0_i32_0 : i32, i32
  }
  func.func @transform_9(%arg0: i32) -> (i32, i32) {
    %c0_i32 = arith.constant 0 : i32
    %c0_i32_0 = arith.constant 0 : i32
    %c0_i32_1 = arith.constant 0 : i32
    return %c0_i32, %c0_i32_0 : i32, i32
  }
  func.func @transform_10(%arg0: i32) -> (i32, i32) {
    %c0_i32 = arith.constant 0 : i32
    %c0_i32_0 = arith.constant 0 : i32
    %c0_i32_1 = arith.constant 0 : i32
    return %c0_i32, %c0_i32_0 : i32, i32
  }
  func.func @transform_11(%arg0: i32) -> (i32, i32) {
    %c0_i32 = arith.constant 0 : i32
    %c0_i32_0 = arith.constant 0 : i32
    %c0_i32_1 = arith.constant 0 : i32
    return %c0_i32, %c0_i32_0 : i32, i32
  }
  func.func @transform_12(%arg0: i32) -> (i32, i32) {
    %c0_i32 = arith.constant 0 : i32
    %c0_i32_0 = arith.constant 0 : i32
    return %arg0, %c0_i32 : i32, i32
  }
}

</mosaic_0001>

<bundles_post_ra>
// kernel: block_forward_prepped.1
= control target key start
LH: loop header
LB: loop body
LE: loop exit
PB: predicated region body
PF: predicated region fallthrough
CT: control target
= control target key end

     0   :  { %17 = vsyncpa [#allocation3], 0  ;;  %s11029_s0 = inlined_call_operand.hbm [shape: f32[128,128], index: 0, kind: input, shape index: {}]   ;;  %s11030_s1 = inlined_call_operand.vmem [shape: f32[1,128], index: 1, kind: input, shape index: {}]   ;;  %s11031_s2 = inlined_call_operand.vmem [shape: f32[1,128], index: 2, kind: input, shape index: {}]   ;;  %s11032_s3 = inlined_call_operand.hbm [shape: bf16[128,384], index: 3, kind: input, shape index: {}]   ;;  %s11033_s4 = inlined_call_operand.hbm [shape: bf16[128,128], index: 4, kind: input, shape index: {}]   ;;  %s11034_s5 = inlined_call_operand.vmem [shape: f32[1,128], index: 5, kind: input, shape index: {}]   ;;  %s11035_s6 = inlined_call_operand.hbm [shape: f32[1,128], index: 6, kind: input, shape index: {}]   ;;  %s11036_s7 = inlined_call_operand.hbm [shape: f32[1,128], index: 7, kind: input, shape index: {}]   ;;  %s11037_s8 = inlined_call_operand.hbm [shape: bf16[128,512], index: 8, kind: input, shape index: {}]   ;;  %s11038_s9 = inlined_call_operand.vmem [shape: f32[1,512], index: 9, kind: input, shape index: {}]   ;;  %s11039_s10 = inlined_call_operand.hbm [shape: bf16[512,128], index: 10, kind: input, shape index: {}]   ;;  %s11040_s11 = inlined_call_operand.vmem [shape: f32[1,128], index: 11, kind: input, shape index: {}]   ;;  %s11041_s12 = inlined_call_operand.hbm [shape: f32[128,128], index: 12, kind: output, shape index: {}]  }
   0x1   :  { %18 = vsyncpa [#allocation6], 0 }
   0x2   :  { %19 = vsyncpa [#allocation9], 0 }
   0x3   :  { %20 = vsyncpa [#allocation12], 0  ;;  %s43_s23 = sshll.u32 %s11032_s3, 4  ;;  %s44_s23 = int_to_ptr.hbm [resolvable:$true] %s43_s23 }
   0x4   :  { %21 = vsyncpa [#allocation4], 0  ;;  %s7124_s24 = smov [#allocation5]   ;;  %s72_s28 = sshll.u32 %s11035_s6, 4  ;;  %s73_s28 = int_to_ptr.hbm [resolvable:$true] %s72_s28 }
   0x5   :  { %s45_s25 = sshll.u32 %s7124_s24, 4  ;;  %s7125_s29 = smov 192   ;;  %s46_s25 = int_to_ptr.vmem [resolvable:$true] %s45_s25 }
   0x6   :  { %s7126_s30 = smov 12   ;;  %s7127_s13 = smov [#allocation8]  }
   0x7   :  { %51 = dma.hbm_to_vmem [thread:$0]  %s44_s23, 3072, %s46_s25, [#allocation6], %s7125_s29, %s7125_s29, %s7126_s30  }
   0x8   :  { %s74_s14 = sshll.u32 %s7127_s13, 4  ;;  %s93_s17 = sshll.u32 %s11037_s8, 4  ;;  %s75_s14 = int_to_ptr.vmem [resolvable:$true] %s74_s14  ;;  %s94_s17 = int_to_ptr.hbm [resolvable:$true] %s93_s17 }
   0x9   :  { %77 = dma.hbm_to_vmem [thread:$0]  %s73_s28, 16, %s75_s14, [#allocation9]  }
   0xa   :  { %s7128_s3 = smov [#allocation11]   ;;  %s26_s6 = sshll.u32 %s11029_s0, 4  ;;  %s27_s6 = int_to_ptr.hbm [resolvable:$true] %s26_s6 }
   0xb   :  { %s95_s18 = sshll.u32 %s7128_s3, 4  ;;  %s7129_s21 = smov 256   ;;  %s96_s18 = int_to_ptr.vmem [resolvable:$true] %s95_s18 }
   0xc   :  { %s7130_s22 = smov 16   ;;  %s7131_s23 = smov [#allocation2]  }
   0xd   :  { %101 = dma.hbm_to_vmem [thread:$0]  %s94_s17, 4096, %s96_s18, [#allocation12], %s7129_s21, %s7129_s21, %s7130_s22  }
   0xe   :  { %s28_s24 = sshll.u32 %s7131_s23, 4  ;;  %s7132_s25 = smov 128   ;;  %s29_s24 = int_to_ptr.vmem [resolvable:$true] %s28_s24 }
   0xf   :  { %s7133_s26 = smov 8   ;;  %s56_s28 = sshll.u32 %s11033_s4, 4  ;;  %s57_s28 = int_to_ptr.hbm [resolvable:$true] %s56_s28 }
  0x10   :  { %34 = dma.hbm_to_vmem [thread:$0]  %s27_s6, 2048, %s29_s24, [#allocation3], %s7132_s25, %s7132_s25, %s7133_s26  }
  0x11   :  { %s7134_s29 = smov [#allocation7]   ;;  %s83_s14 = sshll.u32 %s11036_s7, 4  ;;  %s84_s14 = int_to_ptr.hbm [resolvable:$true] %s83_s14 }
  0x12   :  { %s58_s0 = sshll.u32 %s7134_s29, 4  ;;  %s7135_s15 = smov 64   ;;  %s59_s0 = int_to_ptr.vmem [resolvable:$true] %s58_s0 }
  0x13   :  { %s7136_s16 = smov 4   ;;  %s7137_s17 = smov [#allocation10]  }
  0x14   :  { %64 = dma.hbm_to_vmem [thread:$0]  %s57_s28, 1024, %s59_s0, [#allocation6], %s7135_s15, %s7135_s15, %s7136_s16  }
  0x15   :  { %s85_s3 = sshll.u32 %s7137_s17, 4  ;;  %s108_s4 = sshll.u32 %s11039_s10, 4  ;;  %s86_s3 = int_to_ptr.vmem [resolvable:$true] %s85_s3  ;;  %s109_s4 = int_to_ptr.hbm [resolvable:$true] %s108_s4 }
  0x16   :  { %88 = dma.hbm_to_vmem [thread:$0]  %s84_s14, 16, %s86_s3, [#allocation9]  }
  0x17   :  { %s7138_s20 = smov [#allocation13]  }
  0x18   :  { %s110_s6 = sshll.u32 %s7138_s20, 4  ;;  %s111_s6 = int_to_ptr.vmem [resolvable:$true] %s110_s6 }
  0x19   :  { %116 = dma.hbm_to_vmem [thread:$0]  %s109_s4, 4096, %s111_s6, [#allocation12], %s7135_s15, %s7135_s15, %s7136_s16  }
  0x1a   :  { %7114 = dma.done.wait [#allocation3], 2048  }
  0x1b   :  { %7115 = vsyncadd [#allocation3], 4294965248 }
  0x1c   :  { %7116 = dma.done.wait [#allocation6], 4096  }
  0x1d   :  { %7117 = vsyncadd [#allocation6], 4294963200 }
  0x1e   :  { %7118 = dma.done.wait [#allocation9], 32  }
  0x1f   :  { %7119 = vsyncadd [#allocation9], 4294967264 }
  0x20   :  { %7120 = dma.done.wait [#allocation12], 8192  }
  0x21   :  { %7121 = vsyncadd [#allocation12], 4294959104  ;;  %v7236_v0 = vld [vmem:[#allocation2 + $0x20] sm:$0xff]  ;;  %v7238_v1 = vld [vmem:[#allocation2 + $0x10] sm:$0xff]  ;;  %v7139_v16 = vmov 128.0   ;;  %s7141_s22 = smov 32  }
  0x22   :  { %v148_v2 = vld [vmem:[#allocation2] sm:$0xff]  ;;  %174 = vadd.xlane.f32.xlu2 %v7236_v0  ;;  %170 = vadd.xlane.f32.xlu1 %v7238_v1  ;;  %v153_v3 = vld [vmem:[#allocation2 + $0x28] sm:$0xff]  ;;  %v151_v4 = vld [vmem:[#allocation2 + $0x18] sm:$0xff]  ;;  %6584 = vrcp.f32 %v7139_v16  ;;  %s5871_s14 = sshll.u32 %s11041_s12, 4  ;;  %s5872_s14 = int_to_ptr.hbm [resolvable:$true] %s5871_s14 }
  0x23   :  { %166 = vadd.xlane.f32.xlu0 %v148_v2  ;;  %v149_v5 = vld [vmem:[#allocation2 + $0x8] sm:$0xff]  ;;  %v154_v6 = vld [vmem:[#allocation2 + $0x30] sm:$0xff]  ;;  %v7244_v8 = vld [vmem:[#allocation2 + $0x38] sm:$0xff] }
  0x24   :  { %v7242_v7 = vld [vmem:[#allocation2 + $0x48] sm:$0xff]  ;;  %v7248_v9 = vld [vmem:[#allocation2 + $0x58] sm:$0xff]  ;;  %v7250_v10 = vld [vmem:[#allocation2 + $0x50] sm:$0xff] }
  0x25   :  { %v7252_v11 = vld [vmem:[#allocation2 + $0x40] sm:$0xff]  ;;  %v7259_v13 = vld [vmem:[#allocation2 + $0x78] sm:$0xff]  ;;  %v7261_v14 = vld [vmem:[#allocation2 + $0x68] sm:$0xff] }
  0x26   :  { %v7257_v12 = vld [vmem:[#allocation2 + $0x60] sm:$0xff]  ;;  %v7266_v15 = vld [vmem:[#allocation2 + $0x70] sm:$0xff] }
  0x28   :  { %v6585_v17 = vpop.eup %6584 }
  0x29   :  { %v199_v18 = vmul.f32 128.0, %v6585_v17  ;;  %vm203_vm0 = vweird.f32 %v6585_v17 }
  0x2a   :  { %176 = vadd.xlane.f32.xlu2 %v153_v3  ;;  %172 = vadd.xlane.f32.xlu1 %v151_v4 }
  0x2b   :  { %168 = vadd.xlane.f32.xlu0 %v149_v5  ;;  %v200_v19 = vsub.f32 1.0, %v199_v18 }
  0x2d   :  { %v201_v20 = vmul.f32 %v6585_v17, %v200_v19 }
  0x2f   :  { %v202_v21 = vadd.f32 %v6585_v17, %v201_v20 }
  0x31   :  { %v7269_v22 = vsel %vm203_vm0, %v6585_v17, %v202_v21 }
  0x32   :  { %178 = vadd.xlane.f32.xlu2 %v154_v6  ;;  %184 = vadd.xlane.f32.xlu1 %v7242_v7  ;;  %11123 = vst [vmem:[#allocation20_spill] sm:$0xff] %v7269_v22 }
  0x33   :  { %180 = vadd.xlane.f32.xlu0 %v7244_v8 }
  0x3a   :  { %188 = vadd.xlane.f32.xlu2 %v7248_v9  ;;  %186 = vadd.xlane.f32.xlu1 %v7250_v10 }
  0x3b   :  { %182 = vadd.xlane.f32.xlu0 %v7252_v11 }
  0x42   :  { %190 = vadd.xlane.f32.xlu2 %v7257_v12  ;;  %196 = vadd.xlane.f32.xlu1 %v7259_v13 }
  0x43   :  { %192 = vadd.xlane.f32.xlu0 %v7261_v14 }
  0x4b   :  { %194 = vadd.xlane.f32.xlu0 %v7266_v15 }
  0x95   :  { %v175_v23 = vpop.xlane.xlu2 %174  ;;  %v171_v24 = vpop.xlane.xlu1 %170 }
  0x96   :  { %v167_v25 = vpop.xlane.xlu0 %166  ;;  %v209_v35 = vmul.f32 %v7269_v22, %v175_v23  ;;  %v207_v38 = vmul.f32 %v7269_v22, %v171_v24 }
  0x97   :  { %v205_v26 = vmul.f32 %v7269_v22, %v167_v25 }
  0x98   :  { %v7294_v43 = vsub.f32 %v7236_v0, %v209_v35  ;;  %v7297_v45 = vsub.f32 %v7238_v1, %v207_v38  ;;  %v5961_v35 = vld [vmem:[#allocation5 + $0x90] sm:$0xf]  ;;  %v6354_v38 = vld [vmem:[#allocation5 + $0x98] sm:$0xf0] }
  0x99   :  { %v7272_v27 = vsub.f32 %v148_v2, %v205_v26  ;;  %v5973_v26 = vld [vmem:[#allocation5 + $0xa8] sm:$0xf] }
  0x9a   :  { %v241_v49 = vmul.f32 %v7294_v43, %v7294_v43  ;;  %v239_v53 = vmul.f32 %v7297_v45, %v7297_v45 }
  0x9b   :  { %v237_v28 = vmul.f32 %v7272_v27, %v7272_v27 }
  0x9d   :  { %253 = vadd.xlane.f32.xlu0 %v237_v28  ;;  %v177_v29 = vpop.xlane.xlu2 %176  ;;  %v173_v30 = vpop.xlane.xlu1 %172  ;;  %v6357_v28 = vld [vmem:[#allocation5 + $0xb0] sm:$0xf0] }
  0x9e   :  { %v210_v31 = vmul.f32 %v7269_v22, %v177_v29  ;;  %v208_v32 = vmul.f32 %v7269_v22, %v173_v30  ;;  %v169_v33 = vpop.xlane.xlu0 %168  ;;  %v6356_v29 = vld [vmem:[#allocation5 + $0xac] sm:$0xf]  ;;  %v5975_v30 = vld [vmem:[#allocation5 + $0xb4] sm:$0xf0] }
  0x9f   :  { %v206_v34 = vmul.f32 %v7269_v22, %v169_v33  ;;  %v5978_v33 = vor.u32 %v6356_v29, %v5975_v30  ;;  %v5915_v29 = vld [vmem:[#allocation5 + $0x3c] sm:$0xf0]  ;;  %v6343_v30 = vld [vmem:[#allocation5 + $0x40] sm:$0xf0] }
  0xa0   :  { %v7280_v36 = vsub.f32 %v151_v4, %v208_v32  ;;  %v7282_v37 = vsub.f32 %v153_v3, %v210_v31  ;;  %v5981_v31 = vld [vmem:[#allocation5 + $0xb0] sm:$0xf]  ;;  %v6358_v32 = vld [vmem:[#allocation5 + $0xb8] sm:$0xf0] }
  0xa1   :  { %v7285_v39 = vsub.f32 %v149_v5, %v206_v34  ;;  %v5982_v34 = vor.u32 %v6358_v32, %v5981_v31  ;;  %748 = vmatpush.bf16.msra.mxu1 %v5978_v33 }
  0xa2   :  { %v240_v40 = vmul.f32 %v7280_v36, %v7280_v36  ;;  %v242_v41 = vmul.f32 %v7282_v37, %v7282_v37 }
  0xa3   :  { %v238_v42 = vmul.f32 %v7285_v39, %v7285_v39  ;;  %797 = vmatpush.bf16.msra.mxu2 %v5982_v34  ;;  %6431 = vmatpush.bf16.msra.mxu3 %v5982_v34 }
  0xa4   :  { %259 = vadd.xlane.f32.xlu2 %v240_v40  ;;  %v5962_v40 = vor.u32 %v6354_v38, %v5961_v35  ;;  %v5901_v35 = vld [vmem:[#allocation5 + $0x18] sm:$0xf]  ;;  %v6339_v38 = vld [vmem:[#allocation5 + $0x20] sm:$0xf0] }
  0xa5   :  { %263 = vadd.xlane.f32.xlu0 %v242_v41  ;;  %255 = vadd.xlane.f32.xlu1 %v238_v42  ;;  %v179_v44 = vpop.xlane.xlu2 %178  ;;  %v185_v46 = vpop.xlane.xlu1 %184  ;;  %v5963_v41 = vld [vmem:[#allocation5 + $0x9c] sm:$0xf0]  ;;  %v5969_v42 = vld [vmem:[#allocation5 + $0x98] sm:$0xf] }
  0xa6   :  { %v211_v47 = vmul.f32 %v7269_v22, %v179_v44  ;;  %v181_v48 = vpop.xlane.xlu0 %180  ;;  %v214_v51 = vmul.f32 %v7269_v22, %v185_v46  ;;  %v6355_v44 = vld [vmem:[#allocation5 + $0xa0] sm:$0xf0] }
  0xa7   :  { %v212_v52 = vmul.f32 %v7269_v22, %v181_v48  ;;  %v5949_v48 = vld [vmem:[#allocation5 + $0x78] sm:$0xf] }
  0xa8   :  { %v7302_v50 = vsub.f32 %v154_v6, %v211_v47  ;;  %v7311_v55 = vsub.f32 %v7242_v7, %v214_v51  ;;  %v5970_v47 = vor.u32 %v6355_v44, %v5969_v42  ;;  %v6350_v51 = vld [vmem:[#allocation5 + $0x7c] sm:$0xf]  ;;  %v5903_v42 = vld [vmem:[#allocation5 + $0x24] sm:$0xf0]  ;;  %v5909_v44 = vld [vmem:[#allocation5 + $0x20] sm:$0xf] }
  0xa9   :  { %v7314_v57 = vsub.f32 %v7244_v8, %v212_v52 }
  0xaa   :  { %v243_v54 = vmul.f32 %v7302_v50, %v7302_v50  ;;  %v246_v61 = vmul.f32 %v7311_v55, %v7311_v55  ;;  %798 = vmatpush.bf16.msra.mxu2 %v5970_v47  ;;  %6432 = vmatpush.bf16.msra.mxu3 %v5970_v47  ;;  %v6340_v47 = vld [vmem:[#allocation5 + $0x28] sm:$0xf0] }
  0xab   :  { %v244_v1 = vmul.f32 %v7314_v57, %v7314_v57 }
  0xac   :  { %261 = vadd.xlane.f32.xlu2 %v241_v49  ;;  %v6351_v49 = vld [vmem:[#allocation5 + $0x80] sm:$0xf0] }
  0xad   :  { %265 = vadd.xlane.f32.xlu0 %v243_v54  ;;  %257 = vadd.xlane.f32.xlu1 %v239_v53  ;;  %v189_v56 = vpop.xlane.xlu2 %188  ;;  %v187_v58 = vpop.xlane.xlu1 %186  ;;  %v5950_v52 = vor.u32 %v6351_v49, %v5949_v48  ;;  %v5951_v53 = vld [vmem:[#allocation5 + $0x84] sm:$0xf0]  ;;  %v5957_v54 = vld [vmem:[#allocation5 + $0x80] sm:$0xf]  ;;  %v5910_v48 = vor.u32 %v6340_v47, %v5909_v44 }
  0xae   :  { %v216_v59 = vmul.f32 %v7269_v22, %v189_v56  ;;  %v183_v60 = vpop.xlane.xlu0 %182  ;;  %v215_v63 = vmul.f32 %v7269_v22, %v187_v58  ;;  %v6352_v56 = vld [vmem:[#allocation5 + $0x88] sm:$0xf0]  ;;  %v5954_v58 = vor.u32 %v6350_v51, %v5951_v53  ;;  %v5889_v49 = vld [vmem:[#allocation5] sm:$0xf] }
  0xaf   :  { %v213_v0 = vmul.f32 %v7269_v22, %v183_v60  ;;  %v5937_v60 = vld [vmem:[#allocation5 + $0x60] sm:$0xf]  ;;  %v6336_v51 = vld [vmem:[#allocation5 + $0x8] sm:$0xf0] }
  0xb0   :  { %v7320_v62 = vsub.f32 %v7248_v9, %v216_v59  ;;  %v7329_v3 = vsub.f32 %v7250_v10, %v215_v63  ;;  %v5958_v59 = vor.u32 %v6352_v56, %v5957_v54  ;;  %v6347_v63 = vld [vmem:[#allocation5 + $0x64] sm:$0xf]  ;;  %v5890_v54 = vor.u32 %v6336_v51, %v5889_v49  ;;  %v5891_v56 = vld [vmem:[#allocation5 + $0xc] sm:$0xf0] }
  0xb1   :  { %v7332_v4 = vsub.f32 %v7252_v11, %v213_v0 }
  0xb2   :  { %v248_v2 = vmul.f32 %v7320_v62, %v7320_v62  ;;  %v247_v8 = vmul.f32 %v7329_v3, %v7329_v3  ;;  %799 = vmatpush.bf16.msra.mxu2 %v5958_v59  ;;  %6433 = vmatpush.bf16.msra.mxu3 %v5958_v59  ;;  %v6337_v59 = vld [vmem:[#allocation5 + $0x10] sm:$0xf0] }
  0xb3   :  { %v245_v9 = vmul.f32 %v7332_v4, %v7332_v4 }
  0xb4   :  { %271 = vadd.xlane.f32.xlu2 %v246_v61  ;;  %v6348_v61 = vld [vmem:[#allocation5 + $0x68] sm:$0xf0] }
  0xb5   :  { %275 = vadd.xlane.f32.xlu0 %v248_v2  ;;  %267 = vadd.xlane.f32.xlu1 %v244_v1  ;;  %v191_v6 = vpop.xlane.xlu2 %190  ;;  %v197_v18 = vpop.xlane.xlu1 %196  ;;  %v5938_v0 = vor.u32 %v6348_v61, %v5937_v60  ;;  %v5939_v1 = vld [vmem:[#allocation5 + $0x6c] sm:$0xf0]  ;;  %v5945_v2 = vld [vmem:[#allocation5 + $0x68] sm:$0xf] }
  0xb6   :  { %v193_v5 = vpop.xlane.xlu0 %192  ;;  %v217_v16 = vmul.f32 %v7269_v22, %v191_v6  ;;  %v5942_v6 = vor.u32 %v6347_v63, %v5939_v1 }
  0xb7   :  { %v218_v7 = vmul.f32 %v7269_v22, %v193_v5  ;;  %v6349_v5 = vld [vmem:[#allocation5 + $0x70] sm:$0xf0] }
  0xb8   :  { %v7344_v11 = vsub.f32 %v7257_v12, %v217_v16  ;;  %v6344_v16 = vld [vmem:[#allocation5 + $0x4c] sm:$0xf] }
  0xb9   :  { %v7341_v10 = vsub.f32 %v7261_v14, %v218_v7  ;;  %v220_v14 = vmul.f32 %v7269_v22, %v197_v18  ;;  %v5946_v7 = vor.u32 %v6349_v5, %v5945_v2  ;;  %v5927_v18 = vld [vmem:[#allocation5 + $0x54] sm:$0xf0] }
  0xba   :  { %v249_v21 = vmul.f32 %v7344_v11, %v7344_v11 }
  0xbb   :  { %v250_v20 = vmul.f32 %v7341_v10, %v7341_v10  ;;  %v7358_v12 = vsub.f32 %v7259_v13, %v220_v14  ;;  %v6353_v13 = vld [vmem:[#allocation5 + $0x94] sm:$0xf]  ;;  %800 = vmatpush.bf16.msra.mxu2 %v5946_v7  ;;  %6434 = vmatpush.bf16.msra.mxu3 %v5946_v7 }
  0xbc   :  { %273 = vadd.xlane.f32.xlu2 %v247_v8  ;;  %v5966_v46 = vor.u32 %v6353_v13, %v5963_v41  ;;  %v5925_v8 = vld [vmem:[#allocation5 + $0x48] sm:$0xf]  ;;  %v6338_v13 = vld [vmem:[#allocation5 + $0x1c] sm:$0xf]  ;;  %v5902_v41 = vor.u32 %v6339_v38, %v5901_v35 }
  0xbd   :  { %269 = vadd.xlane.f32.xlu1 %v245_v9  ;;  %v252_v25 = vmul.f32 %v7358_v12, %v7358_v12  ;;  %v6345_v9 = vld [vmem:[#allocation5 + $0x50] sm:$0xf0] }
  0xbe   :  { %v195_v17 = vpop.xlane.xlu0 %194  ;;  %749 = vmatpush.bf16.msra.mxu1 %v5966_v46  ;;  %v5906_v46 = vor.u32 %v6338_v13, %v5903_v42 }
  0xbf   :  { %v219_v19 = vmul.f32 %v7269_v22, %v195_v17  ;;  %v5926_v17 = vor.u32 %v6345_v9, %v5925_v8 }
  0xc1   :  { %v7352_v23 = vsub.f32 %v7266_v15, %v219_v19  ;;  %v5974_v15 = vor.u32 %v6357_v28, %v5973_v26  ;;  %v5933_v19 = vld [vmem:[#allocation5 + $0x50] sm:$0xf]  ;;  %v6341_v26 = vld [vmem:[#allocation5 + $0x34] sm:$0xf] }
  0xc2   :  { %750 = vmatpush.bf16.msra.mxu1 %v5954_v58  ;;  %v5918_v32 = vor.u32 %v6341_v26, %v5915_v29  ;;  %v5897_v58 = vld [vmem:[#allocation5 + $0x8] sm:$0xf] }
  0xc3   :  { %v251_v24 = vmul.f32 %v7352_v23, %v7352_v23  ;;  %699 = vmatpush.bf16.msra.mxu0 %v5974_v15  ;;  %v5921_v15 = vld [vmem:[#allocation5 + $0x38] sm:$0xf]  ;;  %v5898_v1 = vor.u32 %v6337_v59, %v5897_v58 }
  0xc4   :  { %279 = vadd.xlane.f32.xlu2 %v250_v20  ;;  %v6346_v20 = vld [vmem:[#allocation5 + $0x58] sm:$0xf0]  ;;  %v5922_v33 = vor.u32 %v6343_v30, %v5921_v15 }
  0xc5   :  { %277 = vadd.xlane.f32.xlu1 %v249_v21  ;;  %281 = vadd.xlane.f32.xlu0 %v251_v24  ;;  %v5930_v21 = vor.u32 %v6344_v16, %v5927_v18  ;;  %v5934_v14 = vor.u32 %v6346_v20, %v5933_v19  ;;  %v5913_v24 = vld [vmem:[#allocation5 + $0x30] sm:$0xf] }
  0xc6   :  { %751 = vmatpush.bf16.msra.mxu1 %v5942_v6 }
  0xc7   :  { %700 = vmatpush.bf16.msra.mxu0 %v5962_v40  ;;  %801 = vmatpush.bf16.msra.mxu2 %v5934_v14 }
  0xc8   :  { %6435 = vmatpush.bf16.msra.mxu3 %v5934_v14 }
  0xca   :  { %752 = vmatpush.bf16.msra.mxu1 %v5930_v21 }
  0xcb   :  { %701 = vmatpush.bf16.msra.mxu0 %v5950_v52  ;;  %802 = vmatpush.bf16.msra.mxu2 %v5922_v33  ;;  %v6335_v52 = vld [vmem:[#allocation5 + $0x4] sm:$0xf] }
  0xcc   :  { %6436 = vmatpush.bf16.msra.mxu3 %v5922_v33 }
  0xcd   :  { %283 = vadd.xlane.f32.xlu1 %v252_v25  ;;  %v6342_v25 = vld [vmem:[#allocation5 + $0x38] sm:$0xf0] }
  0xce   :  { %v5914_v28 = vor.u32 %v6342_v25, %v5913_v24  ;;  %753 = vmatpush.bf16.msra.mxu1 %v5918_v32 }
  0xcf   :  { %702 = vmatpush.bf16.msra.mxu0 %v5938_v0  ;;  %803 = vmatpush.bf16.msra.mxu2 %v5910_v48  ;;  %v5894_v0 = vor.u32 %v6335_v52, %v5891_v56 }
  0xd0   :  { %6437 = vmatpush.bf16.msra.mxu3 %v5910_v48 }
  0xd2   :  { %754 = vmatpush.bf16.msra.mxu1 %v5906_v46 }
  0xd3   :  { %703 = vmatpush.bf16.msra.mxu0 %v5926_v17  ;;  %804 = vmatpush.bf16.msra.mxu2 %v5898_v1 }
  0xd4   :  { %6438 = vmatpush.bf16.msra.mxu3 %v5898_v1 }
  0xd6   :  { %755 = vmatpush.bf16.msra.mxu1 %v5894_v0 }
  0xd7   :  { %704 = vmatpush.bf16.msra.mxu0 %v5914_v28 }
  0xdb   :  { %705 = vmatpush.bf16.msra.mxu0 %v5902_v41 }
  0xdf   :  { %706 = vmatpush.bf16.msra.mxu0 %v5890_v54 }
 0x110   :  { %v254_v31 = vpop.xlane.xlu0 %253 }
 0x111   :  { %v285_v34 = vmul.f32 %v254_v31, %v7269_v22 }
 0x113   :  { %v7363_v40 = vadd.f32 1e-05, %v285_v34 }
 0x115   :  { %6586 = vrsqrt.f32 %v7363_v40  ;;  %vm323_vm3 = vweird.f32 %v7363_v40 }
 0x117   :  { %v260_v53 = vpop.xlane.xlu2 %259 }
 0x118   :  { %v288_v60 = vmul.f32 %v260_v53, %v7269_v22  ;;  %v256_v61 = vpop.xlane.xlu1 %255  ;;  %v264_v63 = vpop.xlane.xlu0 %263 }
 0x119   :  { %v286_v2 = vmul.f32 %v256_v61, %v7269_v22  ;;  %v290_v17 = vmul.f32 %v264_v63, %v7269_v22 }
 0x11a   :  { %v7369_v8 = vadd.f32 1e-05, %v288_v60 }
 0x11b   :  { %v6587_v5 = vpop.eup %6586  ;;  %v302_v6 = vadd.f32 1e-05, %v286_v2  ;;  %v7377_v28 = vadd.f32 1e-05, %v290_v17 }
 0x11c   :  { %v318_v7 = vmul.f32 %v6587_v5, %v7363_v40  ;;  %vm324_vm1 = vweird.f32 %v6587_v5  ;;  %vm353_vm7 = vweird.f32 %v7369_v8 }
 0x11d   :  { %6588 = vrsqrt.f32 %v302_v6  ;;  %vm7394_vm4 = vmor %vm323_vm3, %vm324_vm1  ;;  %vm333_vm5 = vweird.f32 %v302_v6  ;;  %vm373_vm0 = vweird.f32 %v7377_v28 }
 0x11e   :  { %v319_v9 = vmul.f32 %v6587_v5, %v318_v7  ;;  %6590 = vrsqrt.f32 %v7369_v8 }
 0x11f   :  { %v262_v16 = vpop.xlane.xlu2 %261 }
 0x120   :  { %v258_v18 = vpop.xlane.xlu1 %257  ;;  %v266_v19 = vpop.xlane.xlu0 %265  ;;  %v320_v20 = vmul.f32 0.5, %v319_v9  ;;  %v289_v21 = vmul.f32 %v262_v16, %v7269_v22 }
 0x121   :  { %v287_v14 = vmul.f32 %v258_v18, %v7269_v22  ;;  %v291_v60 = vmul.f32 %v266_v19, %v7269_v22 }
 0x122   :  { %v321_v29 = vsub.f32 1.5, %v320_v20  ;;  %v7379_v15 = vadd.f32 1e-05, %v289_v21 }
 0x123   :  { %v6589_v24 = vpop.eup %6588  ;;  %v7375_v25 = vadd.f32 1e-05, %v287_v14  ;;  %v7436_v20 = vadd.f32 1e-05, %v291_v60 }
 0x124   :  { %v328_v26 = vmul.f32 %v6589_v24, %v302_v6  ;;  %v7381_v30 = vpop.eup %6590  ;;  %v322_v38 = vmul.f32 %v6587_v5, %v321_v29  ;;  %vm334_vm2 = vweird.f32 %v6589_v24  ;;  %vm363_vm3 = vweird.f32 %v7379_v15 }
 0x125   :  { %6592 = vrsqrt.f32 %v7375_v25  ;;  %v348_v13 = vmul.f32 %v7381_v30, %v7369_v8  ;;  %vm7403_vm6 = vmor %vm333_vm5, %vm334_vm2  ;;  %vm354_vm8 = vweird.f32 %v7381_v30  ;;  %vm343_vm9 = vweird.f32 %v7375_v25 }
 0x126   :  { %v329_v31 = vmul.f32 %v6589_v24, %v328_v26  ;;  %6594 = vrsqrt.f32 %v7377_v28  ;;  %v326_v51 = vsel %vm7394_vm4, %v6587_v5, %v322_v38  ;;  %v7424_v5 = vld [vmem:[%s11030_s1] ss:$0 sm:$0xff]  ;;  %vm7476_vm11 = vmor %vm353_vm7, %vm354_vm8 }
 0x127   :  { %v272_v32 = vpop.xlane.xlu2 %271  ;;  %6596 = vrsqrt.f32 %v7379_v15  ;;  %v349_v52 = vmul.f32 %v7381_v30, %v348_v13  ;;  %v477_v2 = vmul.f32 %v326_v51, %v7272_v27  ;;  %v7449_v26 = vld [vmem:[%s11031_s2] ss:$0 sm:$0xff]  ;;  %s7140_s2 = smov 96  }
 0x128   :  { %v330_v33 = vmul.f32 0.5, %v329_v31  ;;  %v294_v34 = vmul.f32 %v272_v32, %v7269_v22  ;;  %v268_v35 = vpop.xlane.xlu1 %267  ;;  %v276_v41 = vpop.xlane.xlu0 %275 }
 0x129   :  { %v296_v49 = vmul.f32 %v276_v41, %v7269_v22  ;;  %v350_v6 = vmul.f32 0.5, %v349_v52  ;;  %v292_v14 = vmul.f32 %v268_v35, %v7269_v22 }
 0x12a   :  { %v331_v42 = vsub.f32 1.5, %v330_v33  ;;  %v7389_v44 = vadd.f32 1e-05, %v294_v34 }
 0x12b   :  { %v7392_v46 = vpop.eup %6592  ;;  %v7417_v63 = vadd.f32 1e-05, %v296_v49  ;;  %v351_v29 = vsub.f32 1.5, %v350_v6  ;;  %v7460_v41 = vadd.f32 1e-05, %v292_v14 }
 0x12c   :  { %v332_v48 = vmul.f32 %v6589_v24, %v331_v42  ;;  %6598 = vrsqrt.f32 %v7389_v44  ;;  %v338_v40 = vmul.f32 %v7392_v46, %v7375_v25  ;;  %v7409_v54 = vpop.eup %6594  ;;  %vm344_vm10 = vweird.f32 %v7392_v46 }
 0x12d   :  { %v7413_v58 = vpop.eup %6596  ;;  %v368_v18 = vmul.f32 %v7409_v54, %v7377_v28  ;;  %6600 = vrsqrt.f32 %v7417_v63  ;;  %v352_v53 = vmul.f32 %v7381_v30, %v351_v29  ;;  %vm413_vm12 = vweird.f32 %v7389_v44  ;;  %vm7490_vm14 = vmor %vm343_vm9, %vm344_vm10 }
 0x12e   :  { %v336_v56 = vsel %vm7403_vm6, %v6589_v24, %v332_v48  ;;  %v339_v59 = vmul.f32 %v7392_v46, %v338_v40  ;;  %v358_v19 = vmul.f32 %v7413_v58, %v7379_v15  ;;  %v496_v24 = vmul.f32 %v7424_v5, %v477_v2 }
 0x12f   :  { %v274_v61 = vpop.xlane.xlu2 %273  ;;  %v478_v16 = vmul.f32 %v336_v56, %v7285_v39  ;;  %v369_v34 = vmul.f32 %v7409_v54, %v368_v18  ;;  %vm364_vm4 = vweird.f32 %v7413_v58  ;;  %vm374_vm5 = vweird.f32 %v7409_v54 }
 0x130   :  { %v295_v0 = vmul.f32 %v274_v61, %v7269_v22  ;;  %v270_v1 = vpop.xlane.xlu1 %269  ;;  %v340_v7 = vmul.f32 0.5, %v339_v59  ;;  %v359_v35 = vmul.f32 %v7413_v58, %v358_v19  ;;  %v515_v42 = vadd.f32 %v7449_v26, %v496_v24  ;;  %vm7564_vm7 = vmor %vm363_vm3, %vm364_vm4 }
 0x131   :  { %v293_v9 = vmul.f32 %v270_v1, %v7269_v22  ;;  %v497_v33 = vmul.f32 %v7424_v5, %v478_v16  ;;  %v370_v61 = vmul.f32 0.5, %v369_v34  ;;  %vm433_vm8 = vweird.f32 %v7417_v63 }
 0x132   :  { %v7428_v17 = vpop.eup %6598  ;;  %v7434_v27 = vadd.f32 1e-05, %v295_v0  ;;  %v341_v31 = vsub.f32 1.5, %v340_v7  ;;  %v360_v0 = vmul.f32 0.5, %v359_v35 }
 0x133   :  { %v408_v21 = vmul.f32 %v7428_v17, %v7389_v44  ;;  %v7443_v39 = vadd.f32 1e-05, %v293_v9  ;;  %v516_v47 = vadd.f32 %v7449_v26, %v497_v33  ;;  %v7465_v52 = vpop.eup %6600  ;;  %vm414_vm13 = vweird.f32 %v7428_v17 }
 0x134   :  { %6602 = vrsqrt.f32 %v7434_v27  ;;  %v342_v40 = vmul.f32 %v7392_v46, %v341_v31  ;;  %v428_v16 = vmul.f32 %v7465_v52, %v7417_v63  ;;  %v371_v29 = vsub.f32 1.5, %v370_v61  ;;  %vm7514_vm15 = vmor %vm413_vm12, %vm414_vm13 }
 0x135   :  { %v409_v32 = vmul.f32 %v7428_v17, %v408_v21  ;;  %6604 = vrsqrt.f32 %v7443_v39  ;;  %v531_v1 = vpack.c.bf16 %v516_v47, %v515_v42  ;;  %v356_v21 = vsel %vm7476_vm11, %v7381_v30, %v352_v53  ;;  %vm7591_vm11 = vmor %vm373_vm0, %vm374_vm5 }
 0x136   :  { %6606 = vrsqrt.f32 %v7436_v20  ;;  %v346_v25 = vsel %vm7490_vm14, %v7392_v46, %v342_v40  ;;  %v361_v31 = vsub.f32 1.5, %v360_v0  ;;  %vm403_vm1 = vweird.f32 %v7443_v39 }
 0x137   :  { %v410_v38 = vmul.f32 0.5, %v409_v32  ;;  %v280_v13 = vpop.xlane.xlu2 %279  ;;  %6608 = vrsqrt.f32 %v7460_v41  ;;  %707 = vmatmul.bf16.vlgmr.msra.gmra.mxu0 %v531_v1  ;;  %756 = vmatmul.bf16.vlgmr.msra.gmra.mxu1 %v531_v1  ;;  %v429_v35 = vmul.f32 %v7465_v52, %v428_v16  ;;  %vm423_vm9 = vweird.f32 %v7434_v27 }
 0x138   :  { %v278_v48 = vpop.xlane.xlu1 %277  ;;  %v298_v49 = vmul.f32 %v280_v13, %v7269_v22  ;;  %v282_v51 = vpop.xlane.xlu0 %281  ;;  %805 = vmatmul.bf16.vlgmr.msra.gmra.mxu2 %v531_v1  ;;  %v480_v13 = vmul.f32 %v356_v21, %v7280_v36  ;;  %v362_v61 = vmul.f32 %v7413_v58, %v361_v31  ;;  %vm434_vm12 = vweird.f32 %v7465_v52 }
 0x139   :  { %v411_v56 = vsub.f32 1.5, %v410_v38  ;;  %v297_v2 = vmul.f32 %v278_v48, %v7269_v22  ;;  %v299_v7 = vmul.f32 %v282_v51, %v7269_v22  ;;  %v479_v38 = vmul.f32 %v346_v25, %v7297_v45  ;;  %vm7620_vm0 = vmor %vm433_vm8, %vm434_vm12 }
 0x13a   :  { %v7470_v59 = vpop.eup %6602  ;;  %v7497_v18 = vadd.f32 1e-05, %v298_v49  ;;  %v430_v1 = vmul.f32 0.5, %v429_v35  ;;  %v366_v32 = vsel %vm7564_vm7, %v7413_v58, %v362_v61 }
 0x13b   :  { %v418_v6 = vmul.f32 %v7470_v59, %v7434_v27  ;;  %v7486_v9 = vpop.eup %6604  ;;  %v412_v14 = vmul.f32 %v7428_v17, %v411_v56  ;;  %v7518_v30 = vadd.f32 1e-05, %v297_v2  ;;  %v7524_v34 = vadd.f32 1e-05, %v299_v7 }
 0x13c   :  { %v7499_v19 = vpop.eup %6606  ;;  %v398_v24 = vmul.f32 %v7486_v9, %v7443_v39  ;;  %6610 = vrsqrt.f32 %v7497_v18  ;;  %vm404_vm2 = vweird.f32 %v7486_v9  ;;  %v498_v36 = vmul.f32 %v7424_v5, %v479_v38 }
 0x13d   :  { %v419_v46 = vmul.f32 %v7470_v59, %v418_v6  ;;  %v416_v42 = vsel %vm7514_vm15, %v7428_v17, %v412_v14  ;;  %6612 = vrsqrt.f32 %v7524_v34  ;;  %v7535_v48 = vpop.eup %6608  ;;  %v378_v49 = vmul.f32 %v7499_v19, %v7436_v20  ;;  %vm7547_vm6 = vmor %vm403_vm1, %vm404_vm2 }
 0x13e   :  { %v399_v33 = vmul.f32 %v7486_v9, %v398_v24  ;;  %6614 = vrsqrt.f32 %v7518_v30  ;;  %v499_v56 = vmul.f32 %v7424_v5, %v480_v13  ;;  %v486_v60 = vmul.f32 %v416_v42, %v7311_v55 }
 0x13f   :  { %v420_v17 = vmul.f32 0.5, %v419_v46  ;;  %v388_v0 = vmul.f32 %v7535_v48, %v7460_v41  ;;  %v372_v39 = vmul.f32 %v7409_v54, %v371_v29  ;;  %v379_v55 = vmul.f32 %v7499_v19, %v378_v49 }
 0x140   :  { %v284_v44 = vpop.xlane.xlu1 %283  ;;  %v400_v47 = vmul.f32 0.5, %v399_v33  ;;  %v517_v8 = vadd.f32 %v7449_v26, %v498_v36  ;;  %v518_v24 = vadd.f32 %v7449_v26, %v499_v56  ;;  %v505_v31 = vmul.f32 %v7424_v5, %v486_v60 }
 0x141   :  { %v300_v45 = vmul.f32 %v284_v44, %v7269_v22  ;;  %v421_v21 = vsub.f32 1.5, %v420_v17  ;;  %v389_v46 = vmul.f32 %v7535_v48, %v388_v0  ;;  %v431_v33 = vsub.f32 1.5, %v430_v1 }
 0x142   :  { %v401_v51 = vsub.f32 1.5, %v400_v47  ;;  %v7559_v6 = vpop.eup %6610  ;;  %vm424_vm10 = vweird.f32 %v7470_v59  ;;  %v532_v35 = vpack.c.bf16 %v518_v24, %v517_v8  ;;  %vm463_vm13 = vweird.f32 %v7524_v34 }
 0x143   :  { %v7551_v40 = vadd.f32 1e-05, %v300_v45  ;;  %v6613_v16 = vpop.eup %6612  ;;  %v422_v58 = vmul.f32 %v7470_v59, %v421_v21  ;;  %v448_v13 = vmul.f32 %v7559_v6, %v7497_v18  ;;  %vm7605_vm14 = vmor %vm423_vm9, %vm424_vm10  ;;  %v524_v45 = vadd.f32 %v7449_v26, %v505_v31 }
 0x144   :  { %v402_v2 = vmul.f32 %v7486_v9, %v401_v51  ;;  %v7576_v25 = vpop.eup %6614  ;;  %v458_v14 = vmul.f32 %v6613_v16, %v7524_v34  ;;  %vm464_vm15 = vweird.f32 %v6613_v16  ;;  %v376_v36 = vsel %vm7591_vm11, %v7409_v54, %v372_v39 }
 0x145   :  { %6616 = vrsqrt.f32 %v7551_v40  ;;  %v438_v38 = vmul.f32 %v7576_v25, %v7518_v30  ;;  %v432_v17 = vmul.f32 %v7465_v52, %v431_v33  ;;  %v390_v51 = vmul.f32 0.5, %v389_v46  ;;  %vm7635_vm1 = vmor %vm463_vm13, %vm464_vm15 }
 0x146   :  { %v406_v15 = vsel %vm7547_vm6, %v7486_v9, %v402_v2  ;;  %v481_v61 = vmul.f32 %v366_v32, %v7294_v43  ;;  %v426_v54 = vsel %vm7605_vm14, %v7470_v59, %v422_v58  ;;  %v449_v1 = vmul.f32 %v7559_v6, %v448_v13 }
 0x147   :  { %v485_v29 = vmul.f32 %v406_v15, %v7332_v4  ;;  %v459_v4 = vmul.f32 %v6613_v16, %v458_v14  ;;  %712 = vmatmul.bf16.gmra.mxu0 %v532_v35  ;;  %761 = vmatmul.bf16.gmra.mxu1 %v532_v35  ;;  %v439_v0 = vmul.f32 %v7576_v25, %v438_v38  ;;  %v380_v39 = vmul.f32 0.5, %v379_v55 }
 0x148   :  { %810 = vmatmul.bf16.gmra.mxu2 %v532_v35  ;;  %vm383_vm2 = vweird.f32 %v7436_v20  ;;  %v482_v59 = vmul.f32 %v376_v36, %v7282_v37  ;;  %v436_v7 = vsel %vm7620_vm0, %v7465_v52, %v432_v17  ;;  %vm473_vm3 = vweird.f32 %v7551_v40 }
 0x149   :  { %v504_v44 = vmul.f32 %v7424_v5, %v485_v29  ;;  %v460_v47 = vmul.f32 0.5, %v459_v4  ;;  %v391_v34 = vsub.f32 1.5, %v390_v51  ;;  %v500_v55 = vmul.f32 %v7424_v5, %v481_v61 }
 0x14a   :  { %v487_v15 = vmul.f32 %v426_v54, %v7329_v3  ;;  %v440_v14 = vmul.f32 0.5, %v439_v0  ;;  %v450_v24 = vmul.f32 0.5, %v449_v1  ;;  %vm384_vm5 = vweird.f32 %v7499_v19 }
 0x14b   :  { %v6617_v28 = vpop.eup %6616  ;;  %v523_v49 = vadd.f32 %v7449_v26, %v504_v44  ;;  %v461_v56 = vsub.f32 1.5, %v460_v47  ;;  %vm393_vm6 = vweird.f32 %v7460_v41  ;;  %v381_v31 = vsub.f32 1.5, %v380_v39  ;;  %vm7685_vm14 = vmor %vm383_vm2, %vm384_vm5 }
 0x14c   :  { %v468_v27 = vmul.f32 %v6617_v28, %v7551_v40  ;;  %vm474_vm4 = vweird.f32 %v6617_v28  ;;  %v501_v40 = vmul.f32 %v7424_v5, %v482_v59  ;;  %vm394_vm8 = vweird.f32 %v7535_v48 }
 0x14d   :  { %v7624_v60 = vpack.c.bf16 %v524_v45, %v523_v49  ;;  %v462_v43 = vmul.f32 %v6613_v16, %v461_v56  ;;  %vm7653_vm7 = vmor %vm473_vm3, %vm474_vm4  ;;  %vm453_vm9 = vweird.f32 %v7497_v18  ;;  %v519_v46 = vadd.f32 %v7449_v26, %v500_v55 }
 0x14e   :  { %v469_v2 = vmul.f32 %v6617_v28, %v468_v27  ;;  %v506_v33 = vmul.f32 %v7424_v5, %v487_v15  ;;  %v441_v9 = vsub.f32 1.5, %v440_v14  ;;  %v451_v4 = vsub.f32 1.5, %v450_v24  ;;  %vm7670_vm10 = vmor %vm393_vm6, %vm394_vm8 }
 0x14f   :  { %825 = vmatmul.bf16.vlgmr.msra.gmra.mxu3 %v7624_v60  ;;  %v466_v21 = vsel %vm7635_vm1, %v6613_v16, %v462_v43  ;;  %v488_v16 = vmul.f32 %v436_v7, %v7320_v62  ;;  %vm454_vm11 = vweird.f32 %v7559_v6  ;;  %v520_v58 = vadd.f32 %v7449_v26, %v501_v40 }
 0x150   :  { %v470_v8 = vmul.f32 0.5, %v469_v2  ;;  %v491_v37 = vmul.f32 %v466_v21, %v7352_v23  ;;  %v392_v23 = vmul.f32 %v7535_v48, %v391_v34  ;;  %v382_v42 = vmul.f32 %v7499_v19, %v381_v31  ;;  %vm7698_vm15 = vmor %vm453_vm9, %vm454_vm11 }
 0x151   :  { %v507_v38 = vmul.f32 %v7424_v5, %v488_v16  ;;  %vm443_vm12 = vweird.f32 %v7518_v30  ;;  %vm444_vm13 = vweird.f32 %v7576_v25  ;;  %v525_v47 = vadd.f32 %v7449_v26, %v506_v33 }
 0x152   :  { %v471_v29 = vsub.f32 1.5, %v470_v8  ;;  %v510_v32 = vmul.f32 %v7424_v5, %v491_v37  ;;  %v442_v30 = vmul.f32 %v7576_v25, %v441_v9  ;;  %v452_v45 = vmul.f32 %v7559_v6, %v451_v4  ;;  %vm445_vm0 = vmor %vm443_vm12, %vm444_vm13 }
 0x153   :  { %v526_v36 = vadd.f32 %v7449_v26, %v507_v38  ;;  %vm1209_vm1 = vcmask 261120   ;;  %vm1882_vm3 = vcmask 523264  }
 0x154   :  { %v472_v3 = vmul.f32 %v6617_v28, %v471_v29  ;;  %v529_v62 = vadd.f32 %v7449_v26, %v510_v32  ;;  %v446_v53 = vsel %vm445_vm0, %v7576_v25, %v442_v30  ;;  %v456_v56 = vsel %vm7698_vm15, %v7559_v6, %v452_v45 }
 0x155   :  { %v536_v27 = vpack.c.bf16 %v526_v36, %v525_v47  ;;  %v489_v0 = vmul.f32 %v446_v53, %v7344_v11 }
 0x156   :  { %v476_v35 = vsel %vm7653_vm7, %v6617_v28, %v472_v3  ;;  %v533_v28 = vpack.c.bf16 %v520_v58, %v519_v46 }
 0x157   :  { %v492_v13 = vmul.f32 %v476_v35, %v7358_v12  ;;  %v396_v12 = vsel %vm7670_vm10, %v7535_v48, %v392_v23  ;;  %v386_v48 = vsel %vm7685_vm14, %v7499_v19, %v382_v42  ;;  %v490_v19 = vmul.f32 %v456_v56, %v7341_v10 }
 0x158   :  { %717 = vmatmul.bf16.gmra.mxu0 %v533_v28  ;;  %766 = vmatmul.bf16.gmra.mxu1 %v533_v28  ;;  %v484_v51 = vmul.f32 %v396_v12, %v7314_v57  ;;  %v483_v61 = vmul.f32 %v386_v48, %v7302_v50  ;;  %v508_v63 = vmul.f32 %v7424_v5, %v489_v0 }
 0x159   :  { %v511_v49 = vmul.f32 %v7424_v5, %v492_v13  ;;  %815 = vmatmul.bf16.gmra.mxu2 %v533_v28  ;;  %v509_v25 = vmul.f32 %v7424_v5, %v490_v19 }
 0x15a   :  { %v503_v54 = vmul.f32 %v7424_v5, %v484_v51  ;;  %v502_v1 = vmul.f32 %v7424_v5, %v483_v61  ;;  %v527_v39 = vadd.f32 %v7449_v26, %v508_v63 }
 0x15b   :  { %v530_v17 = vadd.f32 %v7449_v26, %v511_v49  ;;  %v528_v50 = vadd.f32 %v7449_v26, %v509_v25 }
 0x15c   :  { %v522_v57 = vadd.f32 %v7449_v26, %v503_v54  ;;  %v521_v2 = vadd.f32 %v7449_v26, %v502_v1 }
 0x15d   :  { %v538_v18 = vpack.c.bf16 %v530_v17, %v529_v62  ;;  %v537_v11 = vpack.c.bf16 %v528_v50, %v527_v39 }
 0x15e   :  { %v534_v6 = vpack.c.bf16 %v522_v57, %v521_v2 }
 0x15f   :  { %830 = vmatmul.bf16.gmra.mxu3 %v536_v27 }
 0x168   :  { %722 = vmatmul.bf16.gmra.mxu0 %v534_v6  ;;  %771 = vmatmul.bf16.gmra.mxu1 %v534_v6 }
 0x169   :  { %820 = vmatmul.bf16.gmra.mxu2 %v534_v6 }
 0x16f   :  { %835 = vmatmul.bf16.gmra.mxu3 %v537_v11 }
 0x178   :  { %727 = vmatmul.bf16.gmra.mxu0 %v7624_v60  ;;  %776 = vmatmul.bf16.gmra.mxu1 %v7624_v60 }
 0x17f   :  { %840 = vmatmul.bf16.gmra.mxu3 %v538_v18 }
 0x188   :  { %732 = vmatmul.bf16.gmra.mxu0 %v536_v27  ;;  %781 = vmatmul.bf16.gmra.mxu1 %v536_v27 }
 0x198   :  { %737 = vmatmul.bf16.gmra.mxu0 %v537_v11  ;;  %786 = vmatmul.bf16.gmra.mxu1 %v537_v11 }
 0x1a8   :  { %742 = vmatmul.bf16.gmra.mxu0 %v538_v18  ;;  %791 = vmatmul.bf16.gmra.mxu1 %v538_v18 }
 0x1b4   :  { %v708_v10 = vpop.f32.mrf.mxu0  ;;  %v757_v5 = vpop.f32.mrf.mxu1 }
 0x1b5   :  { %v846_v43 = vpack.c.bf16 %v757_v5, %v708_v10 }
 0x1b7   :  { %926 = vrot.lane.b32.xlu0 %v846_v43, %s7135_s15  ;;  %894 = vrot.lane.b32.xlu1 %v846_v43, %s7140_s2  ;;  %v990_v34 = vrot.slane %v846_v43, 4  ;;  %v1185_v55 = vunpack.c.l.b16 %v846_v43 }
 0x1b9   :  { %v7730_v14 = vunpack.c.l.b16 %v990_v34 }
 0x1bb   :  { %v806_v26 = vpop.f32.mrf.mxu2 }
 0x1bc   :  { %v847_v59 = vpack.c.bf16 %v806_v26, %v806_v26  ;;  %v710_v7 = vpop.f32.mrf.mxu0  ;;  %v759_v8 = vpop.f32.mrf.mxu1 }
 0x1bd   :  { %v848_v60 = vpack.c.bf16 %v759_v8, %v710_v7 }
 0x1be   :  { %1070 = vrot.lane.b32.xlu2 %v847_v59, %s7140_s2  ;;  %v3503_v3 = vunpack.c.l.b16 %v847_v59 }
 0x1bf   :  { %958 = vrot.lane.b32.xlu1 %v846_v43, %s7141_s22  ;;  %896 = vrot.lane.b32.xlu0 %v848_v60, %s7140_s2  ;;  %v991_v21 = vrot.slane %v848_v60, 4  ;;  %v1186_v15 = vunpack.c.l.b16 %v848_v60 }
 0x1c1   :  { %v7732_v24 = vunpack.c.l.b16 %v991_v21  ;;  %v7734_v29 = vpack.c.b16 %v1186_v15, %v1185_v55 }
 0x1c3   :  { %v808_v37 = vpop.f32.mrf.mxu2  ;;  %v1205_v52 = vpack.c.b16 %v7732_v24, %v7730_v14 }
 0x1c4   :  { %v849_v40 = vpack.c.bf16 %v808_v37, %v808_v37  ;;  %v713_v16 = vpop.f32.mrf.mxu0  ;;  %v762_v31 = vpop.f32.mrf.mxu1 }
 0x1c5   :  { %v7754_v42 = vpack.c.bf16 %v762_v31, %v713_v16 }
 0x1c6   :  { %928 = vrot.lane.b32.xlu2 %v848_v60, %s7135_s15  ;;  %v3504_v32 = vunpack.c.l.b16 %v849_v40 }
 0x1c7   :  { %1102 = vrot.lane.b32.xlu1 %v847_v59, %s7135_s15  ;;  %960 = vrot.lane.b32.xlu0 %v848_v60, %s7141_s22  ;;  %v992_v26 = vrot.slane %v7754_v42, 4 }
 0x1c8   :  { %v7741_v23 = vpack.c.b16 %v3504_v32, %v3503_v3 }
 0x1c9   :  { %v1199_v21 = vunpack.c.l.b16 %v992_v26 }
 0x1cb   :  { %v811_v41 = vpop.f32.mrf.mxu2 }
 0x1cc   :  { %v715_v46 = vpop.f32.mrf.mxu0  ;;  %v764_v33 = vpop.f32.mrf.mxu1  ;;  %v7761_v49 = vpack.c.bf16 %v811_v41, %v811_v41 }
 0x1cd   :  { %v7763_v12 = vpack.c.bf16 %v764_v33, %v715_v46 }
 0x1cf   :  { %1104 = vrot.lane.b32.xlu0 %v849_v40, %s7135_s15  ;;  %v993_v5 = vrot.slane %v7763_v12, 4 }
 0x1d1   :  { %v1200_v60 = vunpack.c.l.b16 %v993_v5 }
 0x1d2   :  { %v826_v9 = vpop.f32.mrf.mxu3 }
 0x1d3   :  { %v7744_v4 = vpack.c.bf16 %v826_v9, %v826_v9  ;;  %v813_v45 = vpop.f32.mrf.mxu2  ;;  %v1206_v15 = vpack.c.b16 %v1200_v60, %v1199_v21  ;;  %v1223_v9 = vsel %vm1209_vm1, %v1205_v52, 0 }
 0x1d4   :  { %v7778_v18 = vpack.c.bf16 %v813_v45, %v813_v45 }
 0x1d5   :  { %11154 = vst [vmem:[#allocation21_spill] sm:$0xff] %v7744_v4  ;;  %1086 = vrot.lane.b32.xlu1 %v7744_v4, %s7140_s2  ;;  %v718_v35 = vpop.f32.mrf.mxu0  ;;  %v767_v62 = vpop.f32.mrf.mxu1  ;;  %v1226_v16 = vsel %vm1209_vm1, %v1206_v15, 0 }
 0x1d6   :  { %v7780_v53 = vpack.c.bf16 %v767_v62, %v718_v35 }
 0x1d7   :  { %1136 = vrot.lane.b32.xlu0 %v849_v40, %s7141_s22 }
 0x1d8   :  { %v994_v1 = vrot.slane %v7780_v53, 4 }
 0x1da   :  { %v828_v44 = vpop.f32.mrf.mxu3  ;;  %v1201_v11 = vunpack.c.l.b16 %v994_v1 }
 0x1db   :  { %v7749_v58 = vpack.c.bf16 %v828_v44, %v828_v44 }
 0x1dc   :  { %v816_v43 = vpop.f32.mrf.mxu2 }
 0x1dd   :  { %11155 = vst [vmem:[#allocation22_spill] sm:$0xff] %v7749_v58  ;;  %1134 = vrot.lane.b32.xlu1 %v847_v59, %s7141_s22  ;;  %1088 = vrot.lane.b32.xlu2 %v7749_v58, %s7140_s2  ;;  %v720_v38 = vpop.f32.mrf.mxu0  ;;  %v769_v13 = vpop.f32.mrf.mxu1  ;;  %v7809_v34 = vpack.c.bf16 %v816_v43, %v816_v43 }
 0x1de   :  { %v7773_v17 = vpack.c.bf16 %v769_v13, %v720_v38  ;;  %v1188_v13 = vunpack.c.l.b16 %v7763_v12 }
 0x1df   :  { %898 = vrot.lane.b32.xlu0 %v7754_v42, %s7140_s2 }
 0x1e0   :  { %v995_v0 = vrot.slane %v7773_v17, 4 }
 0x1e2   :  { %v831_v48 = vpop.f32.mrf.mxu3  ;;  %v1202_v39 = vunpack.c.l.b16 %v995_v0 }
 0x1e3   :  { %v7791_v25 = vpack.c.bf16 %v831_v48, %v831_v48 }
 0x1e4   :  { %v1207_v10 = vpack.c.b16 %v1202_v39, %v1201_v11  ;;  %v818_v31 = vpop.f32.mrf.mxu2  ;;  %v1189_v11 = vunpack.c.l.b16 %v7780_v53 }
 0x1e5   :  { %1072 = vrot.lane.b32.xlu1 %v849_v40, %s7140_s2  ;;  %962 = vrot.lane.b32.xlu2 %v7754_v42, %s7141_s22  ;;  %v723_v28 = vpop.f32.mrf.mxu0  ;;  %v772_v47 = vpop.f32.mrf.mxu1  ;;  %11156 = vst [vmem:[#allocation23_spill] sm:$0xff] %v7791_v25 }
 0x1e6   :  { %v7767_v30 = vpack.c.bf16 %v772_v47, %v723_v28  ;;  %v1229_v8 = vsel %vm1209_vm1, %v1207_v10, 0 }
 0x1e7   :  { %930 = vrot.lane.b32.xlu0 %v7754_v42, %s7135_s15 }
 0x1e8   :  { %v996_v51 = vrot.slane %v7767_v30, 4 }
 0x1ea   :  { %v1203_v61 = vunpack.c.l.b16 %v996_v51  ;;  %v833_v50 = vpop.f32.mrf.mxu3 }
 0x1eb   :  { %v7828_v33 = vpack.c.bf16 %v833_v50, %v833_v50 }
 0x1ec   :  { %v821_v62 = vpop.f32.mrf.mxu2 }
 0x1ed   :  { %1106 = vrot.lane.b32.xlu2 %v7761_v49, %s7135_s15  ;;  %964 = vrot.lane.b32.xlu1 %v7763_v12, %s7141_s22  ;;  %v725_v20 = vpop.f32.mrf.mxu0  ;;  %v774_v36 = vpop.f32.mrf.mxu1  ;;  %11157 = vst [vmem:[#allocation24_spill] sm:$0xff] %v7828_v33  ;;  %v7844_v14 = vpack.c.bf16 %v821_v62, %v821_v62 }
 0x1ee   :  { %v7775_v27 = vpack.c.bf16 %v774_v36, %v725_v20  ;;  %v7865_v36 = vpack.c.bf16 %v818_v31, %v818_v31 }
 0x1ef   :  { %1074 = vrot.lane.b32.xlu0 %v7761_v49, %s7140_s2 }
 0x1f0   :  { %v997_v56 = vrot.slane %v7775_v27, 4 }
 0x1f2   :  { %v1204_v54 = vunpack.c.l.b16 %v997_v56  ;;  %v836_v55 = vpop.f32.mrf.mxu3 }
 0x1f3   :  { %v7862_v20 = vpack.c.bf16 %v836_v55, %v836_v55 }
 0x1f4   :  { %v1208_v19 = vpack.c.b16 %v1204_v54, %v1203_v61 }
 0x1f5   :  { %1076 = vrot.lane.b32.xlu1 %v7778_v18, %s7140_s2  ;;  %900 = vrot.lane.b32.xlu2 %v7763_v12, %s7140_s2  ;;  %v728_v57 = vpop.f32.mrf.mxu0  ;;  %v777_v63 = vpop.f32.mrf.mxu1  ;;  %11159 = vst [vmem:[#allocation26_spill] sm:$0xff] %v7862_v20 }
 0x1f6   :  { %v7793_v2 = vpack.c.bf16 %v777_v63, %v728_v57  ;;  %v1232_v6 = vsel %vm1209_vm1, %v1208_v19, 0  ;;  %v1190_v63 = vunpack.c.l.b16 %v7773_v17 }
 0x1f7   :  { %1238 = vmatpush.bf16.xpose.msrb.mxu3 %v1232_v6  ;;  %1090 = vrot.lane.b32.xlu0 %v7791_v25, %s7140_s2 }
 0x1f8   :  { %v1195_v26 = vpack.c.b16 %v1190_v63, %v1189_v11 }
 0x1fa   :  { %v838_v3 = vpop.f32.mrf.mxu3 }
 0x1fb   :  { %v7834_v35 = vpack.c.bf16 %v838_v3, %v838_v3 }
 0x1fd   :  { %932 = vrot.lane.b32.xlu2 %v7763_v12, %s7135_s15  ;;  %902 = vrot.lane.b32.xlu1 %v7780_v53, %s7140_s2  ;;  %v7804_v59 = vpop.f32.mrf.mxu0  ;;  %v7806_v7 = vpop.f32.mrf.mxu1  ;;  %11158 = vst [vmem:[#allocation25_spill] sm:$0xff] %v7834_v35 }
 0x1ff   :  { %1239 = vmatpush.bf16.xpose.msrb.mxu3 %v1229_v8  ;;  %1138 = vrot.lane.b32.xlu0 %v7761_v49, %s7141_s22 }
 0x205   :  { %966 = vrot.lane.b32.xlu2 %v7780_v53, %s7141_s22  ;;  %1110 = vrot.lane.b32.xlu1 %v7809_v34, %s7135_s15  ;;  %v7817_v37 = vpop.f32.mrf.mxu0  ;;  %v7819_v40 = vpop.f32.mrf.mxu1 }
 0x207   :  { %1240 = vmatpush.bf16.xpose.msrb.mxu3 %v1226_v16  ;;  %1108 = vrot.lane.b32.xlu0 %v7778_v18, %s7135_s15 }
 0x20d   :  { %1078 = vrot.lane.b32.xlu2 %v7809_v34, %s7140_s2  ;;  %968 = vrot.lane.b32.xlu1 %v7773_v17, %s7141_s22  ;;  %v735_v32 = vpop.f32.mrf.mxu0  ;;  %v784_v46 = vpop.f32.mrf.mxu1 }
 0x20e   :  { %v7905_v55 = vpack.c.bf16 %v784_v46, %v735_v32 }
 0x20f   :  { %1241 = vmatpush.bf16.xpose.msrb.mxu3 %v1223_v9  ;;  %1092 = vrot.lane.b32.xlu0 %v7828_v33, %s7140_s2 }
 0x210   :  { %v1001_v46 = vrot.slane %v7905_v55, 4 }
 0x215   :  { %1142 = vrot.lane.b32.xlu2 %v7809_v34, %s7141_s22  ;;  %1096 = vrot.lane.b32.xlu1 %v7834_v35, %s7140_s2  ;;  %v738_v44 = vpop.f32.mrf.mxu0  ;;  %v787_v38 = vpop.f32.mrf.mxu1 }
 0x216   :  { %5983 = vmatmul.msk.bf16.vlgmr.msrb.gmra.mxu3 %vm1209_vm1, %v7734_v29  ;;  %v1187_v29 = vunpack.c.l.b16 %v7754_v42  ;;  %v841_v42 = vpop.f32.mrf.mxu3  ;;  %v7886_v57 = vpack.c.bf16 %v787_v38, %v738_v44  ;;  %v7931_v44 = vpack.c.bf16 %v7806_v7, %v7804_v59  ;;  %v1191_v59 = vunpack.c.l.b16 %v7767_v30 }
 0x217   :  { %1140 = vrot.lane.b32.xlu0 %v7778_v18, %s7141_s22  ;;  %v7933_v38 = vpack.c.bf16 %v841_v42, %v841_v42 }
 0x218   :  { %v7855_v41 = vpop.permute.xlu2 %1070  ;;  %v1194_v28 = vpack.c.b16 %v1188_v13, %v1187_v29  ;;  %v1002_v60 = vrot.slane %v7886_v57, 4  ;;  %v1192_v13 = vunpack.c.l.b16 %v7775_v27 }
 0x219   :  { %11162 = vst [vmem:[#allocation29_spill] sm:$0xff] %v7933_v38 }
 0x21a   :  { %v1279_v3 = vunpack.c.l.b16 %v1002_v60 }
 0x21d   :  { %904 = vrot.lane.b32.xlu2 %v7773_v17, %s7140_s2  ;;  %1082 = vrot.lane.b32.xlu1 %v7844_v14, %s7140_s2  ;;  %v740_v24 = vpop.f32.mrf.mxu0  ;;  %v789_v52 = vpop.f32.mrf.mxu1 }
 0x21e   :  { %v7881_v0 = vpack.c.bf16 %v789_v52, %v740_v24  ;;  %v843_v21 = vpop.f32.mrf.mxu3  ;;  %v1278_v52 = vunpack.c.l.b16 %v1001_v46 }
 0x21f   :  { %934 = vrot.lane.b32.xlu0 %v7780_v53, %s7135_s15  ;;  %v7911_v53 = vpack.c.bf16 %v7819_v40, %v7817_v37  ;;  %v7913_v31 = vpack.c.bf16 %v843_v21, %v843_v21  ;;  %v823_v21 = vpop.f32.mrf.mxu2 }
 0x220   :  { %v7879_v56 = vpop.permute.xlu2 %928  ;;  %v1003_v43 = vrot.slane %v7881_v0, 4 }
 0x221   :  { %11161 = vst [vmem:[#allocation28_spill] sm:$0xff] %v7913_v31  ;;  %v1000_v40 = vrot.slane %v7911_v53, 4 }
 0x222   :  { %v1280_v16 = vunpack.c.l.b16 %v1003_v43 }
 0x223   :  { %v1277_v29 = vunpack.c.l.b16 %v1000_v40 }
 0x224   :  { %v1285_v32 = vpack.c.b16 %v1280_v16, %v1279_v3 }
 0x225   :  { %936 = vrot.lane.b32.xlu2 %v7773_v17, %s7135_s15  ;;  %1114 = vrot.lane.b32.xlu1 %v7844_v14, %s7135_s15  ;;  %v743_v47 = vpop.f32.mrf.mxu0  ;;  %v792_v45 = vpop.f32.mrf.mxu1  ;;  %v1284_v7 = vpack.c.b16 %v1278_v52, %v1277_v29 }
 0x226   :  { %5984 = vmatmul.msk.bf16.gmra.mxu3 %vm1209_vm1, %v1194_v28  ;;  %v7869_v12 = vpack.c.bf16 %v792_v45, %v743_v47  ;;  %v1306_v24 = vsel %vm1209_vm1, %v1285_v32, 0  ;;  %v999_v47 = vrot.slane %v7931_v44, 4  ;;  %v1196_v45 = vpack.c.b16 %v1192_v13, %v1191_v59 }
 0x227   :  { %1094 = vrot.lane.b32.xlu0 %v7862_v20, %s7140_s2  ;;  %v7981_v32 = vpack.c.bf16 %v823_v21, %v823_v21  ;;  %v1265_v13 = vunpack.c.l.b16 %v7911_v53 }
 0x228   :  { %v1004_v1 = vrot.slane %v7869_v12, 4  ;;  %v1276_v63 = vunpack.c.l.b16 %v999_v47 }
 0x229   :  { %v7871_v48 = vpop.permute.xlu1 %894  ;;  %v7873_v51 = vpop.permute.xlu0 %926 }
 0x22a   :  { %v1281_v10 = vunpack.c.l.b16 %v1004_v1  ;;  %v1303_v1 = vsel %vm1209_vm1, %v1284_v7, 0 }
 0x22d   :  { %1112 = vrot.lane.b32.xlu2 %v7865_v36, %s7135_s15  ;;  %940 = vrot.lane.b32.xlu1 %v7775_v27, %s7135_s15  ;;  %v745_v61 = vpop.f32.mrf.mxu0  ;;  %v794_v54 = vpop.f32.mrf.mxu1 }
 0x22e   :  { %v7883_v19 = vpack.c.bf16 %v794_v54, %v745_v61  ;;  %v998_v54 = vrot.slane %v7793_v2, 4 }
 0x22f   :  { %1080 = vrot.lane.b32.xlu0 %v7865_v36, %s7140_s2 }
 0x230   :  { %v1005_v6 = vrot.slane %v7883_v19, 4 }
 0x231   :  { %v7892_v39 = vpop.permute.xlu1 %958  ;;  %v7894_v50 = vpop.permute.xlu0 %896 }
 0x232   :  { %v1282_v5 = vunpack.c.l.b16 %v1005_v6 }
 0x234   :  { %v1286_v17 = vpack.c.b16 %v1282_v5, %v1281_v10 }
 0x235   :  { %906 = vrot.lane.b32.xlu2 %v7767_v30, %s7140_s2  ;;  %972 = vrot.lane.b32.xlu1 %v7775_v27, %s7141_s22 }
 0x236   :  { %5985 = vmatmul.msk.bf16.gmra.mxu3 %vm1209_vm1, %v1195_v26  ;;  %v1309_v15 = vsel %vm1209_vm1, %v1286_v17, 0  ;;  %v1264_v26 = vunpack.c.l.b16 %v7931_v44  ;;  %v1263_v17 = vunpack.c.l.b16 %v7793_v2 }
 0x237   :  { %v7902_v8 = vpop.permute.xlu2 %1088  ;;  %1315 = vmatpush.bf16.xpose.msra.mxu3 %v1309_v15  ;;  %1144 = vrot.lane.b32.xlu0 %v7865_v36, %s7141_s22 }
 0x238   :  { %11160 = vst [vmem:[#allocation27_spill] sm:$0xff] %v7902_v8  ;;  %v1271_v15 = vpack.c.b16 %v1264_v26, %v1263_v17 }
 0x239   :  { %v7917_v9 = vpop.permute.xlu0 %960  ;;  %v7924_v62 = vpop.permute.xlu1 %1102 }
 0x23d   :  { %938 = vrot.lane.b32.xlu2 %v7767_v30, %s7135_s15  ;;  %1100 = vrot.lane.b32.xlu1 %v7913_v31, %s7140_s2 }
 0x23f   :  { %v7926_v37 = vpop.permute.xlu2 %962  ;;  %1316 = vmatpush.bf16.xpose.msra.mxu3 %v1306_v24  ;;  %1098 = vrot.lane.b32.xlu0 %v7933_v38, %s7140_s2  ;;  %v1266_v24 = vunpack.c.l.b16 %v7905_v55 }
 0x241   :  { %v7939_v28 = vpop.permute.xlu0 %1104  ;;  %v1272_v29 = vpack.c.b16 %v1266_v24, %v1265_v13 }
 0x245   :  { %970 = vrot.lane.b32.xlu2 %v7767_v30, %s7141_s22  ;;  %942 = vrot.lane.b32.xlu1 %v7793_v2, %s7135_s15  ;;  %v1275_v30 = vunpack.c.l.b16 %v998_v54  ;;  %v1268_v54 = vunpack.c.l.b16 %v7881_v0 }
 0x246   :  { %5986 = vmatmul.msk.bf16.gmra.mxu3 %vm1209_vm1, %v1196_v45 }
 0x247   :  { %v7947_v42 = vpop.permute.xlu1 %1086  ;;  %v7949_v61 = vpop.permute.xlu2 %1106  ;;  %1317 = vmatpush.bf16.xpose.msra.mxu3 %v1303_v1  ;;  %1146 = vrot.lane.b32.xlu0 %v7844_v14, %s7141_s22  ;;  %v1283_v11 = vpack.c.b16 %v1276_v63, %v1275_v30  ;;  %v1267_v63 = vunpack.c.l.b16 %v7886_v57 }
 0x248   :  { %11163 = vst [vmem:[#allocation30_spill] sm:$0xff] %v7947_v42 }
 0x249   :  { %v7956_v6 = vpop.permute.xlu0 %1136  ;;  %v1300_v43 = vsel %vm1209_vm1, %v1283_v11, 0  ;;  %v1273_v30 = vpack.c.b16 %v1268_v54, %v1267_v63 }
 0x24a   :  { %11164 = vst [vmem:[#allocation31_spill] sm:$0xff] %v7956_v6 }
 0x24d   :  { %912 = vrot.lane.b32.xlu2 %v7931_v44, %s7140_s2  ;;  %914 = vrot.lane.b32.xlu1 %v7911_v53, %s7140_s2 }
 0x24f   :  { %v7962_v10 = vpop.permute.xlu1 %1134  ;;  %v7964_v5 = vpop.permute.xlu2 %900  ;;  %1318 = vmatpush.bf16.xpose.msra.mxu3 %v1300_v43  ;;  %908 = vrot.lane.b32.xlu0 %v7775_v27, %s7140_s2 }
 0x250   :  { %11165 = vst [vmem:[#allocation32_spill] sm:$0xff] %v7962_v10 }
 0x251   :  { %v7971_v60 = vpop.permute.xlu0 %898 }
 0x255   :  { %976 = vrot.lane.b32.xlu2 %v7931_v44, %s7141_s22  ;;  %948 = vrot.lane.b32.xlu1 %v7905_v55, %s7135_s15 }
 0x256   :  { %5987 = vmatmul.msk.bf16.vlgmr.msra.gmra.mxu3 %vm1209_vm1, %v1271_v15  ;;  %v1270_v15 = vunpack.c.l.b16 %v7883_v19 }
 0x257   :  { %v7977_v16 = vpop.permute.xlu1 %1072  ;;  %v7979_v3 = vpop.permute.xlu2 %932  ;;  %1084 = vrot.lane.b32.xlu0 %v7981_v32, %s7140_s2 }
 0x259   :  { %v7986_v27 = vpop.permute.xlu0 %930 }
 0x25a   :  { %v1024_v33 = vrot.slane %v7986_v27, 4 }
 0x25d   :  { %946 = vrot.lane.b32.xlu2 %v7911_v53, %s7135_s15  ;;  %980 = vrot.lane.b32.xlu1 %v7905_v55, %s7141_s22 }
 0x25f   :  { %v7992_v46 = vpop.permute.xlu1 %964  ;;  %v7994_v40 = vpop.permute.xlu2 %966  ;;  %1116 = vrot.lane.b32.xlu0 %v7981_v32, %s7135_s15 }
 0x261   :  { %v7999_v52 = vpop.permute.xlu0 %1074 }
 0x265   :  { %978 = vrot.lane.b32.xlu2 %v7911_v53, %s7141_s22  ;;  %918 = vrot.lane.b32.xlu1 %v7886_v57, %s7140_s2 }
 0x266   :  { %5988 = vmatmul.msk.bf16.gmra.mxu3 %vm1209_vm1, %v1272_v29 }
 0x267   :  { %v8006_v59 = vpop.permute.xlu1 %1076  ;;  %v8008_v7 = vpop.permute.xlu2 %1078  ;;  %1148 = vrot.lane.b32.xlu0 %v7981_v32, %s7141_s22 }
 0x269   :  { %v8013_v47 = vpop.permute.xlu0 %1090 }
 0x26a   :  { %11166 = vst [vmem:[#allocation33_spill] sm:$0xff] %v8013_v47 }
 0x26d   :  { %952 = vrot.lane.b32.xlu2 %v7881_v0, %s7135_s15  ;;  %922 = vrot.lane.b32.xlu1 %v7869_v12, %s7140_s2 }
 0x26f   :  { %v8019_v45 = vpop.permute.xlu2 %1142  ;;  %v8021_v53 = vpop.permute.xlu1 %902  ;;  %910 = vrot.lane.b32.xlu0 %v7793_v2, %s7140_s2 }
 0x270   :  { %11167 = vst [vmem:[#allocation34_spill] sm:$0xff] %v8019_v45 }
 0x271   :  { %v8026_v1 = vpop.permute.xlu0 %1138 }
 0x272   :  { %11168 = vst [vmem:[#allocation35_spill] sm:$0xff] %v8026_v1 }
 0x275   :  { %984 = vrot.lane.b32.xlu2 %v7881_v0, %s7141_s22  ;;  %986 = vrot.lane.b32.xlu1 %v7869_v12, %s7141_s22 }
 0x276   :  { %5989 = vmatmul.msk.bf16.gmra.mxu3 %vm1209_vm1, %v1273_v30 }
 0x277   :  { %v8033_v11 = vpop.permute.xlu1 %1110  ;;  %v8035_v43 = vpop.permute.xlu2 %904  ;;  %974 = vrot.lane.b32.xlu0 %v7793_v2, %s7141_s22  ;;  %v1269_v2 = vunpack.c.l.b16 %v7869_v12 }
 0x279   :  { %v8040_v26 = vpop.permute.xlu0 %1108  ;;  %v1274_v13 = vpack.c.b16 %v1270_v15, %v1269_v2  ;;  %v1166_v2 = vlaneseq }
 0x27d   :  { %954 = vrot.lane.b32.xlu2 %v7869_v12, %s7135_s15  ;;  %956 = vrot.lane.b32.xlu1 %v7883_v19, %s7135_s15 }
 0x27f   :  { %v8046_v17 = vpop.permute.xlu1 %968  ;;  %v8048_v21 = vpop.permute.xlu2 %936  ;;  %944 = vrot.lane.b32.xlu0 %v7931_v44, %s7135_s15 }
 0x281   :  { %v8053_v24 = vpop.permute.xlu0 %1092 }
 0x282   :  { %11169 = vst [vmem:[#allocation36_spill] sm:$0xff] %v8053_v24 }
 0x286   :  { %5990 = vmatmul.msk.bf16.gmra.mxu3 %vm1209_vm1, %v1274_v13  ;;  %v8081_v13 = vand.u32 127, %v1166_v2 }
 0x287   :  { %v8056_v29 = vpop.permute.xlu2 %1112  ;;  %v8058_v54 = vpop.permute.xlu1 %1096  ;;  %916 = vrot.lane.b32.xlu0 %v7905_v55, %s7140_s2  ;;  %v8079_v55 = vshrl.u32 %v1166_v2, 7 }
 0x288   :  { %11170 = vst [vmem:[#allocation37_spill] sm:$0xff] %v8058_v54 }
 0x289   :  { %v8063_v63 = vpop.permute.xlu0 %1140  ;;  %vm8090_vm2 = vcmp.le.s32.totalorder %v8081_v13, %v8079_v55 }
 0x28a   :  { %11171 = vst [vmem:[#allocation38_spill] sm:$0xff] %v8063_v63 }
 0x28f   :  { %v8065_v30 = vpop.permute.xlu1 %1082  ;;  %v8067_v44 = vpop.permute.xlu2 %906  ;;  %950 = vrot.lane.b32.xlu0 %v7886_v57, %s7135_s15 }
 0x290   :  { %11172 = vst [vmem:[#allocation39_spill] sm:$0xff] %v8067_v44 }
 0x291   :  { %v8071_v12 = vpop.permute.xlu0 %934 }
 0x297   :  { %v8073_v15 = vpop.permute.xlu1 %1114  ;;  %v8075_v22 = vpop.permute.xlu2 %938  ;;  %982 = vrot.lane.b32.xlu0 %v7886_v57, %s7141_s22  ;;  %v1026_v57 = vrot.slane %v8071_v12, 4 }
 0x298   :  { %v1028_v47 = vrot.slane %v8075_v22, 4 }
 0x299   :  { %v1243_v8 = vpop.f32.mrf.mxu3  ;;  %v8083_v42 = vpop.permute.xlu0 %1094  ;;  %v1510_v25 = vunpack.c.l.b16 %v1026_v57 }
 0x29a   :  { %11173 = vst [vmem:[#allocation40_spill] sm:$0xff] %v8083_v42  ;;  %v1512_v10 = vunpack.c.l.b16 %v1028_v47  ;;  %v8098_v1 = vsel %vm8090_vm2, %v1243_v8, -inf  ;;  %v1027_v42 = vrot.slane %v8048_v21, 4 }
 0x29b   :  { %11176 = vst [vmem:[#allocation41_spill] sm:$0xff] %v8098_v1  ;;  %v1883_v8 = vsel %vm1882_vm3, %v8098_v1, -inf }
 0x29f   :  { %v8086_v24 = vpop.permute.xlu1 %940  ;;  %920 = vrot.lane.b32.xlu0 %v7881_v0, %s7140_s2  ;;  %v8105_v4 = vpop.permute.xlu2 %970  ;;  %v1511_v0 = vunpack.c.l.b16 %v1027_v42 }
 0x2a0   :  { %v1029_v6 = vrot.slane %v8086_v24, 4 }
 0x2a1   :  { %v8103_v63 = vpop.f32.mrf.mxu3  ;;  %v8107_v58 = vpop.permute.xlu0 %1080  ;;  %v1516_v20 = vpack.c.b16 %v1511_v0, %v1510_v25 }
 0x2a2   :  { %v1513_v2 = vunpack.c.l.b16 %v1029_v6 }
 0x2a3   :  { %v1537_v1 = vsel %vm1209_vm1, %v1516_v20, 0 }
 0x2a4   :  { %v1517_v45 = vpack.c.b16 %v1513_v2, %v1512_v10  ;;  %v1025_v10 = vrot.slane %v7979_v3, 4 }
 0x2a6   :  { %v1540_v6 = vsel %vm1209_vm1, %v1517_v45, 0  ;;  %v1508_v45 = vunpack.c.l.b16 %v1024_v33  ;;  %v1509_v25 = vunpack.c.l.b16 %v1025_v10  ;;  %v1023_v33 = vrot.slane %v7879_v56, 4 }
 0x2a7   :  { %1546 = vmatpush.bf16.xpose.msrb.mxu2 %v1540_v6  ;;  %v8112_v47 = vpop.permute.xlu1 %972  ;;  %1884 = vmax.xlane.f32.xlu1 %v1883_v8  ;;  %v1170_v6 = vadd.s32 24, %v8079_v55  ;;  %v8124_v35 = vpop.permute.xlu2 %912  ;;  %v1022_v8 = vrot.slane %v7873_v51, 4 }
 0x2a8   :  { %11177 = vst [vmem:[#allocation42_spill] sm:$0xff] %v8112_v47  ;;  %924 = vrot.lane.b32.xlu0 %v7883_v19, %s7140_s2  ;;  %v1515_v38 = vpack.c.b16 %v1509_v25, %v1508_v45  ;;  %v1171_v45 = vadd.s32 32, %v8079_v55 }
 0x2a9   :  { %v8118_v2 = vpop.f32.mrf.mxu3  ;;  %v8120_v57 = vpop.permute.xlu0 %1144  ;;  %11179 = vst [vmem:[#allocation44_spill] sm:$0xff] %v8124_v35  ;;  %vm8130_vm4 = vcmp.le.s32.totalorder %v8081_v13, %v1170_v6  ;;  %v1506_v10 = vunpack.c.l.b16 %v1022_v8 }
 0x2aa   :  { %11178 = vst [vmem:[#allocation43_spill] sm:$0xff] %v8120_v57  ;;  %vm8152_vm5 = vcmp.le.s32.totalorder %v8081_v13, %v1171_v45 }
 0x2af   :  { %v8126_v42 = vpop.permute.xlu1 %1100  ;;  %1547 = vmatpush.bf16.xpose.msrb.mxu2 %v1537_v1  ;;  %v8149_v35 = vpop.permute.xlu2 %976 }
 0x2b0   :  { %11180 = vst [vmem:[#allocation45_spill] sm:$0xff] %v8126_v42  ;;  %988 = vrot.lane.b32.xlu0 %v7883_v19, %s7141_s22  ;;  %v1534_v42 = vsel %vm1209_vm1, %v1515_v38, 0  ;;  %v1507_v19 = vunpack.c.l.b16 %v1023_v33 }
 0x2b1   :  { %v1250_v20 = vpop.f32.mrf.mxu3  ;;  %v8137_v57 = vpop.permute.xlu0 %1098  ;;  %11185 = vst [vmem:[#allocation48_spill] sm:$0xff] %v8149_v35 }
 0x2b2   :  { %11183 = vst [vmem:[#allocation46_spill] sm:$0xff] %v8137_v57  ;;  %v8141_v1 = vsel %vm8130_vm4, %v1250_v20, -inf  ;;  %v1514_v8 = vpack.c.b16 %v1507_v19, %v1506_v10  ;;  %v3510_v20 = vunpack.c.l.b16 %v7981_v32  ;;  %v1172_v10 = vadd.s32 40, %v8079_v55 }
 0x2b3   :  { %11184 = vst [vmem:[#allocation47_spill] sm:$0xff] %v8141_v1  ;;  %v1892_v6 = vsel %vm1882_vm3, %v8141_v1, -inf  ;;  %v3509_v1 = vunpack.c.l.b16 %v7844_v14  ;;  %v1494_v14 = vunpack.c.l.b16 %v7873_v51  ;;  %v3507_v19 = vunpack.c.l.b16 %v7809_v34 }
 0x2b4   :  { %1893 = vmax.xlane.f32.xlu2 %v1892_v6  ;;  %v1531_v45 = vsel %vm1209_vm1, %v1514_v8, 0  ;;  %vm8175_vm6 = vcmp.le.s32.totalorder %v8081_v13, %v1172_v10 }
 0x2b5   :  { %v3514_v35 = vpack.c.b16 %v3510_v20, %v3509_v1  ;;  %v3506_v1 = vunpack.c.l.b16 %v7778_v18 }
 0x2b7   :  { %v8147_v25 = vpop.permute.xlu1 %942  ;;  %1548 = vmatpush.bf16.xpose.msrb.mxu2 %v1534_v42  ;;  %v3508_v42 = vunpack.c.l.b16 %v7865_v36  ;;  %v8180_v20 = vpop.permute.xlu2 %946 }
 0x2b9   :  { %v1253_v38 = vpop.f32.mrf.mxu3  ;;  %v8162_v31 = vpop.permute.xlu0 %1146  ;;  %v3513_v8 = vpack.c.b16 %v3508_v42, %v3507_v19  ;;  %v1173_v42 = vadd.s32 48, %v8079_v55 }
 0x2ba   :  { %v8160_v6 = vsel %vm8152_vm5, %v1253_v38, -inf  ;;  %11189 = vst [vmem:[#allocation50_spill] sm:$0xff] %v8162_v31  ;;  %v1495_v38 = vunpack.c.l.b16 %v7879_v56  ;;  %v3817_v31 = vunpack.c.l.b16 %v8073_v15  ;;  %v1045_v15 = vrot.slane %v8112_v47, 4 }
 0x2bb   :  { %11188 = vst [vmem:[#allocation49_spill] sm:$0xff] %v8160_v6  ;;  %v1895_v33 = vsel %vm1882_vm3, %v8160_v6, -inf  ;;  %vm8200_vm7 = vcmp.le.s32.totalorder %v8081_v13, %v1173_v42 }
 0x2bc   :  { %1896 = vmax.xlane.f32.xlu2 %v1895_v33  ;;  %v1502_v33 = vpack.c.b16 %v1495_v38, %v1494_v14 }
 0x2bf   :  { %v8169_v32 = vpop.permute.xlu1 %914  ;;  %1549 = vmatpush.bf16.xpose.msrb.mxu2 %v1531_v45  ;;  %v1012_v45 = vrot.slane %v8067_v44, 4 }
 0x2c0   :  { %11190 = vst [vmem:[#allocation51_spill] sm:$0xff] %v8169_v32 }
 0x2c1   :  { %v1255_v6 = vpop.f32.mrf.mxu3  ;;  %v8184_v34 = vpop.permute.xlu0 %908  ;;  %v1358_v19 = vunpack.c.l.b16 %v1012_v45 }
 0x2c2   :  { %v8188_v51 = vsel %vm8175_vm6, %v1255_v6, -inf  ;;  %v1013_v56 = vrot.slane %v8184_v34, 4  ;;  %v1010_v6 = vrot.slane %v8021_v53, 4 }
 0x2c3   :  { %11193 = vst [vmem:[#allocation52_spill] sm:$0xff] %v8188_v51  ;;  %v1898_v18 = vsel %vm1882_vm3, %v8188_v51, -inf }
 0x2c4   :  { %1899 = vmax.xlane.f32.xlu1 %v1898_v18  ;;  %v1359_v38 = vunpack.c.l.b16 %v1013_v56  ;;  %v1356_v18 = vunpack.c.l.b16 %v1010_v6 }
 0x2c6   :  { %5999 = vmatmul.msk.bf16.vlgmr.msrb.gmra.mxu2 %vm1209_vm1, %v1502_v33  ;;  %v1363_v51 = vpack.c.b16 %v1359_v38, %v1358_v19  ;;  %v1009_v19 = vrot.slane %v7964_v5, 4  ;;  %v1168_v38 = vadd.s32 8, %v8079_v55 }
 0x2c7   :  { %3535 = vmatpush.bf16.msra.mxu2 %v3514_v35  ;;  %v3505_v35 = vunpack.c.l.b16 %v7761_v49  ;;  %v8195_v14 = vpop.permute.xlu1 %948  ;;  %v1011_v49 = vrot.slane %v8035_v43, 4 }
 0x2c8   :  { %vm8229_vm8 = vcmp.le.s32.totalorder %v8081_v13, %v1168_v38  ;;  %v1169_v38 = vadd.s32 16, %v8079_v55 }
 0x2c9   :  { %v3512_v10 = vpack.c.b16 %v3506_v1, %v3505_v35  ;;  %v1357_v33 = vunpack.c.l.b16 %v1011_v49  ;;  %v1258_v32 = vpop.f32.mrf.mxu3  ;;  %v1386_v1 = vsel %vm1209_vm1, %v1363_v51, 0  ;;  %v8206_v35 = vpop.permute.xlu2 %978  ;;  %v1008_v51 = vrot.slane %v7971_v60, 4 }
 0x2ca   :  { %11196 = vst [vmem:[#allocation53_spill] sm:$0xff] %v8206_v35  ;;  %v8210_v45 = vsel %vm8200_vm7, %v1258_v32, -inf  ;;  %1392 = vmatpush.bf16.xpose.msrb.mxu0 %v1386_v1  ;;  %v8212_v56 = vpop.permute.xlu0 %1084  ;;  %v1497_v32 = vunpack.c.l.b16 %v7979_v3  ;;  %v1007_v3 = vrot.slane %v7894_v50, 4  ;;  %vm8261_vm9 = vcmp.le.s32.totalorder %v8081_v13, %v1169_v38 }
 0x2cb   :  { %3536 = vmatpush.bf16.msra.mxu2 %v3513_v8  ;;  %11197 = vst [vmem:[#allocation54_spill] sm:$0xff] %v8210_v45  ;;  %v1901_v42 = vsel %vm1882_vm3, %v8210_v45, -inf  ;;  %v1362_v49 = vpack.c.b16 %v1357_v33, %v1356_v18  ;;  %v1354_v1 = vunpack.c.l.b16 %v1008_v51  ;;  %v3816_v51 = vunpack.c.l.b16 %v8056_v29 }
 0x2cc   :  { %1902 = vmax.xlane.f32.xlu1 %v1901_v42  ;;  %v8275_v38 = vsel %vm8261_vm9, %v8118_v2, -inf }
 0x2cd   :  { %v1383_v6 = vsel %vm1209_vm1, %v1362_v49, 0 }
 0x2cf   :  { %3537 = vmatpush.bf16.msra.mxu2 %v3512_v10  ;;  %v8216_v10 = vpop.permute.xlu1 %980 }
 0x2d0   :  { %11198 = vst [vmem:[#allocation55_spill] sm:$0xff] %v8216_v10  ;;  %v1355_v10 = vunpack.c.l.b16 %v1009_v19  ;;  %v1006_v19 = vrot.slane %v7871_v48, 4 }
 0x2d1   :  { %v8223_v35 = vpop.f32.mrf.mxu3  ;;  %v8234_v33 = vpop.permute.xlu2 %952 }
 0x2d2   :  { %1393 = vmatpush.bf16.xpose.msrb.mxu0 %v1383_v6  ;;  %v1117_v42 = vpop.permute.xlu0 %1116  ;;  %v1361_v49 = vpack.c.b16 %v1355_v10, %v1354_v1  ;;  %v1353_v6 = vunpack.c.l.b16 %v1007_v3  ;;  %v1667_v1 = vunpack.c.l.b16 %v1045_v15  ;;  %v1352_v3 = vunpack.c.l.b16 %v1006_v19 }
 0x2d3   :  { %3538 = vmatpush.bf16.msra.mxu2 %v7741_v23  ;;  %v1496_v23 = vunpack.c.l.b16 %v7986_v27  ;;  %v3818_v44 = vunpack.c.l.b16 %v1117_v42  ;;  %v1044_v42 = vrot.slane %v8105_v4, 4  ;;  %v1043_v19 = vrot.slane %v8046_v17, 4 }
 0x2d5   :  { %v1503_v45 = vpack.c.b16 %v1497_v32, %v1496_v23  ;;  %v3822_v23 = vpack.c.b16 %v3818_v44, %v3817_v31  ;;  %v3815_v32 = vunpack.c.l.b16 %v8033_v11  ;;  %v3814_v31 = vunpack.c.l.b16 %v8040_v26 }
 0x2d7   :  { %6000 = vmatmul.msk.bf16.gmra.mxu2 %vm1209_vm1, %v1503_v45  ;;  %v8236_v18 = vpop.permute.xlu1 %918  ;;  %v8243_v45 = vsel %vm8229_vm8, %v8103_v63, -inf  ;;  %v3821_v29 = vpack.c.b16 %v3816_v51, %v3815_v32  ;;  %v1380_v63 = vsel %vm1209_vm1, %v1361_v49, 0  ;;  %v1666_v49 = vunpack.c.l.b16 %v1044_v42 }
 0x2d8   :  { %3843 = vmatpush.bf16.msrb.mxu2 %v3822_v23  ;;  %v1886_v10 = vsel %vm1882_vm3, %v8243_v45, -inf  ;;  %v3813_v23 = vunpack.c.l.b16 %v7949_v61  ;;  %v3812_v32 = vunpack.c.l.b16 %v7939_v28  ;;  %v1498_v61 = vunpack.c.l.b16 %v8071_v12 }
 0x2d9   :  { %v1320_v44 = vpop.f32.mrf.mxu3  ;;  %v3811_v42 = vunpack.c.l.b16 %v7924_v62  ;;  %v1042_v28 = vrot.slane %v7994_v40, 4  ;;  %v1889_v12 = vsel %vm1882_vm3, %v8275_v38, -inf }
 0x2da   :  { %v8255_v47 = vsel %vm8090_vm2, %v1320_v44, -inf  ;;  %1887 = vmax.xlane.f32.xlu0 %v1886_v10  ;;  %1394 = vmatpush.bf16.xpose.msrb.mxu0 %v1380_v63  ;;  %v8257_v11 = vpop.permute.xlu0 %1148  ;;  %v3820_v44 = vpack.c.b16 %v3814_v31, %v3813_v23  ;;  %v1360_v10 = vpack.c.b16 %v1353_v6, %v1352_v3  ;;  %v1671_v63 = vpack.c.b16 %v1667_v1, %v1666_v49 }
 0x2db   :  { %11201 = vst [vmem:[#allocation56_spill] sm:$0xff] %v8255_v47  ;;  %v1907_v51 = vsel %vm1882_vm3, %v8255_v47, -inf  ;;  %v1499_v6 = vunpack.c.l.b16 %v8048_v21  ;;  %v3819_v31 = vpack.c.b16 %v3812_v32, %v3811_v42  ;;  %v1665_v23 = vunpack.c.l.b16 %v1043_v19 }
 0x2dc   :  { %3844 = vmatpush.bf16.msrb.mxu2 %v3821_v29  ;;  %1908 = vmax.xlane.f32.xlu2 %v1907_v51  ;;  %v8277_v29 = vpop.permute.xlu2 %984  ;;  %v1174_v51 = vadd.s32 56, %v8079_v55  ;;  %v1377_v2 = vsel %vm1209_vm1, %v1360_v10, 0  ;;  %v1694_v62 = vsel %vm1209_vm1, %v1671_v63, 0  ;;  %v1341_v21 = vunpack.c.l.b16 %v7894_v50 }
 0x2dd   :  { %v1504_v49 = vpack.c.b16 %v1499_v6, %v1498_v61  ;;  %v1664_v10 = vunpack.c.l.b16 %v1042_v28  ;;  %v1340_v61 = vunpack.c.l.b16 %v7871_v48  ;;  %v1041_v50 = vrot.slane %v7992_v46, 4 }
 0x2de   :  { %vm8297_vm10 = vcmp.le.s32.totalorder %v8081_v13, %v1174_v51  ;;  %v1040_v51 = vrot.slane %v7926_v37, 4 }
 0x2df   :  { %v8267_v15 = vpop.permute.xlu1 %922  ;;  %v8309_v63 = vsel %vm8297_vm10, %v8223_v35, -inf  ;;  %v1670_v42 = vpack.c.b16 %v1665_v23, %v1664_v10  ;;  %v1348_v13 = vpack.c.b16 %v1341_v21, %v1340_v61  ;;  %v1663_v48 = vunpack.c.l.b16 %v1041_v50 }
 0x2e0   :  { %3845 = vmatpush.bf16.msrb.mxu2 %v3820_v44  ;;  %v1501_v10 = vunpack.c.l.b16 %v8086_v24  ;;  %v1342_v24 = vunpack.c.l.b16 %v7971_v60 }
 0x2e1   :  { %v1322_v3 = vpop.f32.mrf.mxu3 }
 0x2e2   :  { %1890 = vmax.xlane.f32.xlu0 %v1889_v12  ;;  %1395 = vmatpush.bf16.xpose.msrb.mxu0 %v1377_v2  ;;  %v8286_v1 = vpop.permute.xlu0 %910  ;;  %v8291_v55 = vsel %vm8229_vm8, %v1322_v3, -inf  ;;  %v1691_v12 = vsel %vm1209_vm1, %v1670_v42, 0  ;;  %v1038_v42 = vrot.slane %v7892_v39, 4 }
 0x2e3   :  { %11204 = vst [vmem:[#allocation57_spill] sm:$0xff] %v8291_v55  ;;  %v1910_v32 = vsel %vm1882_vm3, %v8291_v55, -inf }
 0x2e4   :  { %3846 = vmatpush.bf16.msrb.mxu2 %v3819_v31  ;;  %1911 = vmax.xlane.f32.xlu1 %v1910_v32  ;;  %v8312_v6 = vpop.permute.xlu2 %954  ;;  %v1904_v31 = vsel %vm1882_vm3, %v8309_v63, -inf  ;;  %v1039_v32 = vrot.slane %v7917_v9, 4 }
 0x2e5   :  { %v1036_v2 = vrot.slane %v8312_v6, 4 }
 0x2e7   :  { %6001 = vmatmul.msk.bf16.gmra.mxu2 %vm1209_vm1, %v1504_v49  ;;  %v8302_v19 = vpop.permute.xlu1 %986  ;;  %v1589_v50 = vunpack.c.l.b16 %v1036_v2  ;;  %v1660_v2 = vunpack.c.l.b16 %v1038_v42 }
 0x2e9   :  { %v1325_v28 = vpop.f32.mrf.mxu3  ;;  %5991 = vmatmul.msk.bf16.vlgmr.msrb.gmra.mxu0 %vm1209_vm1, %v1348_v13 }
 0x2ea   :  { %1700 = vmatpush.bf16.xpose.msra.mxu0 %v1694_v62  ;;  %v8319_v3 = vsel %vm8261_vm9, %v1325_v28, -inf  ;;  %1905 = vmax.xlane.f32.xlu0 %v1904_v31  ;;  %v8321_v35 = vpop.permute.xlu0 %974  ;;  %v1662_v62 = vunpack.c.l.b16 %v1040_v51  ;;  %v1500_v28 = vunpack.c.l.b16 %v8075_v22 }
 0x2eb   :  { %11207 = vst [vmem:[#allocation58_spill] sm:$0xff] %v8319_v3  ;;  %v1913_v23 = vsel %vm1882_vm3, %v8319_v3, -inf  ;;  %v1661_v3 = vunpack.c.l.b16 %v1039_v32 }
 0x2ec   :  { %1914 = vmax.xlane.f32.xlu1 %v1913_v23  ;;  %v1669_v61 = vpack.c.b16 %v1663_v48, %v1662_v62  ;;  %v1505_v47 = vpack.c.b16 %v1501_v10, %v1500_v28  ;;  %v1343_v62 = vunpack.c.l.b16 %v7964_v5  ;;  %v3663_v10 = vunpack.c.l.b16 %v8065_v30 }
 0x2ed   :  { %v1668_v32 = vpack.c.b16 %v1661_v3, %v1660_v2  ;;  %v3661_v30 = vunpack.c.l.b16 %v8008_v7  ;;  %v3660_v3 = vunpack.c.l.b16 %v8006_v59  ;;  %v3659_v28 = vunpack.c.l.b16 %v7999_v52 }
 0x2ee   :  { %v1688_v23 = vsel %vm1209_vm1, %v1669_v61, 0  ;;  %v1349_v61 = vpack.c.b16 %v1343_v62, %v1342_v24  ;;  %v1345_v7 = vunpack.c.l.b16 %v8035_v43  ;;  %v3657_v2 = vunpack.c.l.b16 %v7855_v41 }
 0x2ef   :  { %v8327_v49 = vpop.permute.xlu1 %956  ;;  %v1685_v5 = vsel %vm1209_vm1, %v1668_v32, 0  ;;  %v3666_v24 = vpack.c.b16 %v3660_v3, %v3659_v28  ;;  %v1030_v28 = vrot.slane %v8147_v25, 4 }
 0x2f0   :  { %v1037_v21 = vrot.slane %v8327_v49, 4 }
 0x2f1   :  { %v1327_v31 = vpop.f32.mrf.mxu3 }
 0x2f2   :  { %1701 = vmatpush.bf16.xpose.msra.mxu0 %v1691_v12  ;;  %v1590_v13 = vunpack.c.l.b16 %v1037_v21  ;;  %v8334_v51 = vpop.permute.xlu0 %944  ;;  %v8339_v55 = vsel %vm8130_vm4, %v1327_v31, -inf  ;;  %v3664_v21 = vunpack.c.l.b16 %v8212_v56  ;;  %v1035_v31 = vrot.slane %v8234_v33, 4 }
 0x2f3   :  { %v1916_v48 = vsel %vm1882_vm3, %v8339_v55, -inf  ;;  %v1031_v3 = vrot.slane %v8334_v51, 4 }
 0x2f4   :  { %v1594_v12 = vpack.c.b16 %v1590_v13, %v1589_v50  ;;  %1917 = vmax.xlane.f32.xlu2 %v1916_v48  ;;  %v3662_v50 = vunpack.c.l.b16 %v8107_v58  ;;  %v3668_v13 = vpack.c.b16 %v3664_v21, %v3663_v10  ;;  %v1588_v62 = vunpack.c.l.b16 %v1035_v31 }
 0x2f5   :  { %v1033_v21 = vrot.slane %v8195_v14, 4  ;;  %v1032_v10 = vrot.slane %v8180_v20, 4  ;;  %v1584_v31 = vunpack.c.l.b16 %v1031_v3 }
 0x2f6   :  { %v1617_v22 = vsel %vm1209_vm1, %v1594_v12, 0  ;;  %v3667_v58 = vpack.c.b16 %v3662_v50, %v3661_v30 }
 0x2f7   :  { %6002 = vmatmul.msk.bf16.gmra.mxu2 %vm1209_vm1, %v1505_v47  ;;  %1623 = vmatpush.bf16.xpose.msrb.mxu3 %v1617_v22  ;;  %v1586_v50 = vunpack.c.l.b16 %v1033_v21  ;;  %v11210_v21 = vld [vmem:[#allocation29_spill] sm:$0xff] }
 0x2f9   :  { %v1330_v60 = vpop.f32.mrf.mxu3  ;;  %5992 = vmatmul.msk.bf16.gmra.mxu0 %vm1209_vm1, %v1349_v61 }
 0x2fa   :  { %1702 = vmatpush.bf16.xpose.msra.mxu0 %v1688_v23  ;;  %v8353_v42 = vsel %vm8152_vm5, %v1330_v60, -inf  ;;  %v8355_v47 = vpop.permute.xlu0 %916  ;;  %v3658_v23 = vunpack.c.l.b16 %v7977_v16  ;;  %v1344_v16 = vunpack.c.l.b16 %v8021_v53 }
 0x2fb   :  { %v1919_v56 = vsel %vm1882_vm3, %v8353_v42, -inf }
 0x2fc   :  { %1920 = vmax.xlane.f32.xlu1 %v1919_v56  ;;  %v3665_v61 = vpack.c.b16 %v3658_v23, %v3657_v2  ;;  %v1350_v60 = vpack.c.b16 %v1345_v7, %v1344_v16  ;;  %v1585_v56 = vunpack.c.l.b16 %v1032_v10  ;;  %v1347_v7 = vunpack.c.l.b16 %v8184_v34  ;;  %v11209_v16 = vld [vmem:[#allocation28_spill] sm:$0xff]  ;;  %v11211_v10 = vld [vmem:[#allocation25_spill] sm:$0xff]  ;;  %v11212_v34 = vld [vmem:[#allocation26_spill] sm:$0xff] }
 0x301   :  { %v1332_v12 = vpop.f32.mrf.mxu3 }
 0x302   :  { %1703 = vmatpush.bf16.xpose.msra.mxu0 %v1685_v5  ;;  %v8365_v48 = vpop.permute.xlu0 %950  ;;  %v8369_v22 = vsel %vm8175_vm6, %v1332_v12, -inf }
 0x303   :  { %v1034_v59 = vrot.slane %v8365_v48, 4  ;;  %v1922_v52 = vsel %vm1882_vm3, %v8369_v22, -inf }
 0x304   :  { %1923 = vmax.xlane.f32.xlu0 %v1922_v52 }
 0x305   :  { %v1587_v32 = vunpack.c.l.b16 %v1034_v59  ;;  %v11208_v59 = vld [vmem:[#allocation39_spill] sm:$0xff] }
 0x306   :  { %v1346_v52 = vunpack.c.l.b16 %v11208_v59 }
 0x307   :  { %v1593_v43 = vpack.c.b16 %v1588_v62, %v1587_v32  ;;  %v3587_v62 = vunpack.c.l.b16 %v11209_v16  ;;  %v3586_v32 = vunpack.c.l.b16 %v11210_v21 }
 0x309   :  { %5993 = vmatmul.msk.bf16.gmra.mxu0 %vm1209_vm1, %v1350_v60  ;;  %v1614_v41 = vsel %vm1209_vm1, %v1593_v43, 0  ;;  %v3585_v60 = vunpack.c.l.b16 %v11211_v10  ;;  %v1020_v43 = vrot.slane %v8267_v15, 4 }
 0x30a   :  { %3689 = vmatpush.bf16.msrb.mxu0 %v3668_v13  ;;  %v1335_v13 = vpop.f32.mrf.mxu3  ;;  %1624 = vmatpush.bf16.xpose.msrb.mxu3 %v1614_v41  ;;  %v8385_v53 = vpop.permute.xlu0 %982 }
 0x30b   :  { %v8383_v5 = vsel %vm8200_vm7, %v1335_v13, -inf  ;;  %v3591_v13 = vpack.c.b16 %v3587_v62, %v3586_v32  ;;  %v11214_v32 = vld [vmem:[#allocation23_spill] sm:$0xff] }
 0x30c   :  { %v1925_v30 = vsel %vm1882_vm3, %v8383_v5, -inf }
 0x30d   :  { %1926 = vmax.xlane.f32.xlu1 %v1925_v30  ;;  %v1572_v30 = vunpack.c.l.b16 %v8334_v51 }
 0x30e   :  { %3690 = vmatpush.bf16.msrb.mxu0 %v3667_v58  ;;  %v1592_v58 = vpack.c.b16 %v1586_v50, %v1585_v56  ;;  %v3584_v56 = vunpack.c.l.b16 %v11212_v34 }
 0x310   :  { %v1611_v12 = vsel %vm1209_vm1, %v1592_v58, 0  ;;  %v3590_v58 = vpack.c.b16 %v3585_v60, %v3584_v56 }
 0x312   :  { %3691 = vmatpush.bf16.msrb.mxu0 %v3666_v24  ;;  %1625 = vmatpush.bf16.xpose.msrb.mxu3 %v1611_v12  ;;  %v8392_v23 = vpop.permute.xlu0 %920  ;;  %v1583_v24 = vunpack.c.l.b16 %v1030_v28  ;;  %v11213_v28 = vld [vmem:[#allocation24_spill] sm:$0xff]  ;;  %v1571_v12 = vunpack.c.l.b16 %v8147_v25  ;;  %v1649_v25 = vunpack.c.l.b16 %v7917_v9 }
 0x314   :  { %v1591_v2 = vpack.c.b16 %v1584_v31, %v1583_v24  ;;  %v3583_v31 = vunpack.c.l.b16 %v11213_v28  ;;  %v1435_v24 = vunpack.c.l.b16 %v1020_v43 }
 0x316   :  { %3692 = vmatpush.bf16.msrb.mxu0 %v3665_v61  ;;  %v1351_v61 = vpack.c.b16 %v1347_v7, %v1346_v52  ;;  %v1608_v50 = vsel %vm1209_vm1, %v1591_v2, 0  ;;  %v1019_v7 = vrot.slane %v8392_v23, 4  ;;  %v1018_v52 = vrot.slane %v8236_v18, 4 }
 0x317   :  { %v1579_v2 = vpack.c.b16 %v1572_v30, %v1571_v12  ;;  %v3972_v30 = vunpack.c.l.b16 %v8257_v11  ;;  %v1017_v12 = vrot.slane %v8355_v47, 4 }
 0x318   :  { %v1434_v51 = vunpack.c.l.b16 %v1019_v7  ;;  %v1433_v43 = vunpack.c.l.b16 %v1018_v52 }
 0x319   :  { %5994 = vmatmul.msk.bf16.gmra.mxu0 %vm1209_vm1, %v1351_v61  ;;  %v3582_v61 = vunpack.c.l.b16 %v11214_v32 }
 0x31a   :  { %1626 = vmatpush.bf16.xpose.msrb.mxu3 %v1608_v50  ;;  %v8402_v41 = vpop.permute.xlu0 %924  ;;  %v1439_v7 = vpack.c.b16 %v1434_v51, %v1433_v43  ;;  %v1574_v51 = vunpack.c.l.b16 %v8195_v14 }
 0x31b   :  { %v1021_v3 = vrot.slane %v8402_v41, 4  ;;  %v3589_v50 = vpack.c.b16 %v3583_v31, %v3582_v61 }
 0x31c   :  { %v1460_v11 = vsel %vm1209_vm1, %v1439_v7, 0 }
 0x31d   :  { %v1436_v59 = vunpack.c.l.b16 %v1021_v3  ;;  %v11216_v3 = vld [vmem:[#allocation21_spill] sm:$0xff] }
 0x31e   :  { %v3580_v10 = vunpack.c.l.b16 %v11216_v3  ;;  %v11220_v3 = vld [vmem:[#allocation34_spill] sm:$0xff] }
 0x31f   :  { %v1440_v62 = vpack.c.b16 %v1436_v59, %v1435_v24  ;;  %v11217_v59 = vld [vmem:[#allocation50_spill] sm:$0xff] }
 0x321   :  { %6003 = vmatmul.msk.bf16.vlgmr.msrb.gmra.mxu3 %vm1209_vm1, %v1579_v2  ;;  %v1463_v60 = vsel %vm1209_vm1, %v1440_v62, 0  ;;  %v3971_v2 = vunpack.c.l.b16 %v11217_v59  ;;  %v11218_v62 = vld [vmem:[#allocation51_spill] sm:$0xff] }
 0x322   :  { %3612 = vmatpush.bf16.msra.mxu3 %v3591_v13  ;;  %v11215_v13 = vld [vmem:[#allocation22_spill] sm:$0xff]  ;;  %1469 = vmatpush.bf16.xpose.msrb.mxu1 %v1463_v60  ;;  %v1016_v61 = vrot.slane %v11218_v62, 4  ;;  %v11219_v60 = vld [vmem:[#allocation43_spill] sm:$0xff] }
 0x323   :  { %v3581_v56 = vunpack.c.l.b16 %v11215_v13  ;;  %v3970_v9 = vunpack.c.l.b16 %v11219_v60  ;;  %v3976_v52 = vpack.c.b16 %v3972_v30, %v3971_v2  ;;  %v1014_v30 = vrot.slane %v8286_v1, 4  ;;  %v11222_v59 = vld [vmem:[#allocation35_spill] sm:$0xff]  ;;  %v11224_v60 = vld [vmem:[#allocation32_spill] sm:$0xff] }
 0x324   :  { %v3967_v2 = vunpack.c.l.b16 %v11222_v59  ;;  %v3965_v14 = vunpack.c.l.b16 %v11224_v60 }
 0x325   :  { %v3588_v24 = vpack.c.b16 %v3581_v56, %v3580_v10  ;;  %v1431_v10 = vunpack.c.l.b16 %v1016_v61  ;;  %v8427_v56 = vpop.permute.xlu0 %988 }
 0x326   :  { %3613 = vmatpush.bf16.msra.mxu3 %v3590_v58  ;;  %v1648_v58 = vunpack.c.l.b16 %v7892_v39  ;;  %v3969_v39 = vunpack.c.l.b16 %v11220_v3  ;;  %v1053_v7 = vrot.slane %v8427_v56, 4  ;;  %v11223_v3 = vld [vmem:[#allocation44_spill] sm:$0xff] }
 0x328   :  { %v1656_v31 = vpack.c.b16 %v1649_v25, %v1648_v58  ;;  %v11221_v25 = vld [vmem:[#allocation38_spill] sm:$0xff]  ;;  %v3975_v58 = vpack.c.b16 %v3970_v9, %v3969_v39  ;;  %v11225_v9 = vld [vmem:[#allocation31_spill] sm:$0xff]  ;;  %v1744_v39 = vunpack.c.l.b16 %v1053_v7 }
 0x329   :  { %v3968_v43 = vunpack.c.l.b16 %v11221_v25  ;;  %v1429_v25 = vunpack.c.l.b16 %v1014_v30 }
 0x32a   :  { %3614 = vmatpush.bf16.msra.mxu3 %v3589_v50  ;;  %v1432_v50 = vunpack.c.l.b16 %v1017_v12  ;;  %6007 = vmatmul.msk.bf16.vlgmr.msra.gmra.mxu0 %vm1209_vm1, %v1656_v31  ;;  %v1015_v31 = vrot.slane %v11223_v3, 4 }
 0x32b   :  { %3997 = vmatpush.bf16.msra.mxu0 %v3976_v52  ;;  %1470 = vmatpush.bf16.xpose.msrb.mxu1 %v1460_v11  ;;  %v3974_v52 = vpack.c.b16 %v3968_v43, %v3967_v2  ;;  %v1052_v11 = vrot.slane %v8302_v19, 4  ;;  %v1050_v2 = vrot.slane %v8385_v53, 4 }
 0x32c   :  { %v1438_v12 = vpack.c.b16 %v1432_v50, %v1431_v10  ;;  %v3966_v50 = vunpack.c.l.b16 %v11225_v9  ;;  %v1651_v10 = vunpack.c.l.b16 %v7992_v46 }
 0x32d   :  { %v1741_v60 = vunpack.c.l.b16 %v1050_v2 }
 0x32e   :  { %3615 = vmatpush.bf16.msra.mxu3 %v3588_v24  ;;  %v1573_v24 = vunpack.c.l.b16 %v8180_v20  ;;  %v1457_v20 = vsel %vm1209_vm1, %v1438_v12, 0  ;;  %v3973_v59 = vpack.c.b16 %v3966_v50, %v3965_v14  ;;  %v1051_v12 = vrot.slane %v8277_v29, 4 }
 0x32f   :  { %3998 = vmatpush.bf16.msra.mxu0 %v3975_v58  ;;  %v1430_v58 = vunpack.c.l.b16 %v1015_v31  ;;  %v1417_v31 = vunpack.c.l.b16 %v8286_v1 }
 0x330   :  { %v1580_v61 = vpack.c.b16 %v1574_v51, %v1573_v24  ;;  %v1743_v51 = vunpack.c.l.b16 %v1052_v11  ;;  %v1650_v24 = vunpack.c.l.b16 %v7926_v37  ;;  %v1575_v37 = vunpack.c.l.b16 %v8365_v48 }
 0x331   :  { %v1437_v43 = vpack.c.b16 %v1430_v58, %v1429_v25  ;;  %v1742_v14 = vunpack.c.l.b16 %v1051_v12  ;;  %v1576_v11 = vunpack.c.l.b16 %v8234_v33  ;;  %v11226_v25 = vld [vmem:[#allocation55_spill] sm:$0xff]  ;;  %v1652_v33 = vunpack.c.l.b16 %v7994_v40 }
 0x332   :  { %6004 = vmatmul.msk.bf16.gmra.mxu3 %vm1209_vm1, %v1580_v61  ;;  %v1748_v30 = vpack.c.b16 %v1744_v39, %v1743_v51  ;;  %v1657_v61 = vpack.c.b16 %v1651_v10, %v1650_v24  ;;  %v11227_v10 = vld [vmem:[#allocation53_spill] sm:$0xff]  ;;  %v1046_v51 = vrot.slane %v8321_v35, 4 }
 0x333   :  { %3999 = vmatpush.bf16.msra.mxu0 %v3974_v52  ;;  %1471 = vmatpush.bf16.xpose.msrb.mxu1 %v1457_v20  ;;  %v1454_v7 = vsel %vm1209_vm1, %v1437_v43, 0  ;;  %v1418_v52 = vunpack.c.l.b16 %v11223_v3  ;;  %v1049_v20 = vrot.slane %v11226_v25, 4  ;;  %v1747_v9 = vpack.c.b16 %v1742_v14, %v1741_v60 }
 0x334   :  { %v1771_v46 = vsel %vm1209_vm1, %v1748_v30, 0  ;;  %v1581_v39 = vpack.c.b16 %v1576_v11, %v1575_v37  ;;  %v1048_v58 = vrot.slane %v11227_v10, 4  ;;  %v1578_v60 = vunpack.c.l.b16 %v8327_v49  ;;  %v11229_v11 = vld [vmem:[#allocation46_spill] sm:$0xff]  ;;  %v11230_v49 = vld [vmem:[#allocation45_spill] sm:$0xff] }
 0x335   :  { %v1425_v50 = vpack.c.b16 %v1418_v52, %v1417_v31  ;;  %v1740_v1 = vunpack.c.l.b16 %v1049_v20  ;;  %v1768_v48 = vsel %vm1209_vm1, %v1747_v9, 0  ;;  %v1337_v31 = vpop.f32.mrf.mxu3  ;;  %v1419_v14 = vunpack.c.l.b16 %v11218_v62 }
 0x336   :  { %v1739_v3 = vunpack.c.l.b16 %v1048_v58  ;;  %v1577_v52 = vunpack.c.l.b16 %v8312_v6  ;;  %v3740_v20 = vunpack.c.l.b16 %v11229_v11  ;;  %v11231_v6 = vld [vmem:[#allocation40_spill] sm:$0xff] }
 0x337   :  { %4000 = vmatpush.bf16.msra.mxu0 %v3973_v59  ;;  %v1653_v59 = vunpack.c.l.b16 %v8046_v17  ;;  %v1737_v17 = vunpack.c.l.b16 %v1046_v51  ;;  %v3738_v62 = vunpack.c.l.b16 %v11231_v6  ;;  %v1885_v6 = vpop.xlane.xlu1 %1884 }
 0x338   :  { %v1746_v43 = vpack.c.b16 %v1740_v1, %v1739_v3  ;;  %v1582_v58 = vpack.c.b16 %v1578_v60, %v1577_v52  ;;  %v11236_v52 = vld [vmem:[#allocation30_spill] sm:$0xff] }
 0x339   :  { %v1658_v2 = vpack.c.b16 %v1653_v59, %v1652_v33  ;;  %v11232_v33 = vld [vmem:[#allocation42_spill] sm:$0xff]  ;;  %v3734_v11 = vunpack.c.l.b16 %v11236_v52 }
 0x33a   :  { %6008 = vmatmul.msk.bf16.gmra.mxu0 %vm1209_vm1, %v1657_v61  ;;  %v11228_v61 = vld [vmem:[#allocation48_spill] sm:$0xff]  ;;  %v1765_v40 = vsel %vm1209_vm1, %v1746_v43, 0  ;;  %v1655_v51 = vunpack.c.l.b16 %v11232_v33 }
 0x33b   :  { %1472 = vmatpush.bf16.xpose.msrb.mxu1 %v1454_v7  ;;  %v1047_v12 = vrot.slane %v11228_v61, 4 }
 0x33d   :  { %v1738_v37 = vunpack.c.l.b16 %v1047_v12  ;;  %v11234_v12 = vld [vmem:[#allocation36_spill] sm:$0xff] }
 0x342   :  { %5995 = vmatmul.msk.bf16.vlgmr.msrb.gmra.mxu1 %vm1209_vm1, %v1425_v50  ;;  %6005 = vmatmul.msk.bf16.gmra.mxu3 %vm1209_vm1, %v1581_v39  ;;  %v1745_v50 = vpack.c.b16 %v1738_v37, %v1737_v17  ;;  %v8475_v39 = vsel %vm8297_vm10, %v1337_v31, -inf  ;;  %v11235_v31 = vld [vmem:[#allocation33_spill] sm:$0xff] }
 0x343   :  { %1777 = vmatpush.bf16.xpose.msra.mxu1 %v1771_v46  ;;  %v1420_v46 = vunpack.c.l.b16 %v8355_v47  ;;  %v1928_v47 = vsel %vm1882_vm3, %v8475_v39, -inf  ;;  %v3736_v37 = vunpack.c.l.b16 %v11235_v31 }
 0x344   :  { %v1762_v3 = vsel %vm1209_vm1, %v1745_v50, 0  ;;  %v11237_v50 = vld [vmem:[#allocation27_spill] sm:$0xff] }
 0x345   :  { %v1426_v1 = vpack.c.b16 %v1420_v46, %v1419_v14 }
 0x349   :  { %v1551_v24 = vpop.f32.mrf.mxu2 }
 0x34a   :  { %v8461_v30 = vsel %vm8090_vm2, %v1551_v24, -inf  ;;  %6009 = vmatmul.msk.bf16.gmra.mxu0 %vm1209_vm1, %v1658_v2  ;;  %v11233_v24 = vld [vmem:[#allocation37_spill] sm:$0xff]  ;;  %v1654_v2 = vunpack.c.l.b16 %v8105_v4 }
 0x34b   :  { %1778 = vmatpush.bf16.xpose.msra.mxu1 %v1768_v48  ;;  %v1979_v7 = vsel %vm1882_vm3, %v8461_v30, -inf  ;;  %v3741_v48 = vunpack.c.l.b16 %v11230_v49  ;;  %v3739_v43 = vunpack.c.l.b16 %v11233_v24  ;;  %v1424_v24 = vunpack.c.l.b16 %v8402_v41 }
 0x34c   :  { %1980 = vmax.xlane.f32.xlu0 %v1979_v7  ;;  %v3737_v7 = vunpack.c.l.b16 %v11234_v12  ;;  %v1659_v60 = vpack.c.b16 %v1655_v51, %v1654_v2  ;;  %v1423_v12 = vunpack.c.l.b16 %v8267_v15  ;;  %v1894_v15 = vpop.xlane.xlu2 %1893 }
 0x34d   :  { %v3745_v59 = vpack.c.b16 %v3741_v48, %v3740_v20  ;;  %v3744_v17 = vpack.c.b16 %v3739_v43, %v3738_v62  ;;  %v1422_v20 = vunpack.c.l.b16 %v8392_v23 }
 0x34e   :  { %v3743_v4 = vpack.c.b16 %v3737_v7, %v3736_v37 }
 0x351   :  { %v1553_v9 = vpop.f32.mrf.mxu2 }
 0x352   :  { %5996 = vmatmul.msk.bf16.gmra.mxu1 %vm1209_vm1, %v1426_v1  ;;  %6006 = vmatmul.msk.bf16.gmra.mxu3 %vm1209_vm1, %v1582_v58  ;;  %v3735_v58 = vunpack.c.l.b16 %v11237_v50  ;;  %v1421_v1 = vunpack.c.l.b16 %v8236_v18  ;;  %v8511_v2 = vsel %vm8229_vm8, %v1553_v9, -inf  ;;  %v1428_v9 = vpack.c.b16 %v1424_v24, %v1423_v12 }
 0x353   :  { %1779 = vmatpush.bf16.xpose.msra.mxu1 %v1765_v40  ;;  %v1982_v41 = vsel %vm1882_vm3, %v8511_v2, -inf  ;;  %v1725_v50 = vunpack.c.l.b16 %v8321_v35 }
 0x354   :  { %1929 = vmax.xlane.f32.xlu0 %v1928_v47  ;;  %v3742_v49 = vpack.c.b16 %v3735_v58, %v3734_v11  ;;  %v1427_v48 = vpack.c.b16 %v1422_v20, %v1421_v1  ;;  %v1888_v47 = vpop.xlane.xlu0 %1887  ;;  %v1897_v58 = vpop.xlane.xlu2 %1896 }
 0x35a   :  { %v1556_v40 = vpop.f32.mrf.mxu2  ;;  %6010 = vmatmul.msk.bf16.gmra.mxu0 %vm1209_vm1, %v1659_v60 }
 0x35b   :  { %1780 = vmatpush.bf16.xpose.msra.mxu1 %v1762_v3  ;;  %v8490_v46 = vsel %vm8261_vm9, %v1556_v40, -inf }
 0x35c   :  { %v1985_v14 = vsel %vm1882_vm3, %v8490_v46, -inf  ;;  %v1891_v43 = vpop.xlane.xlu0 %1890 }
 0x35d   :  { %1986 = vmax.xlane.f32.xlu0 %v1985_v14  ;;  %v2077_v60 = vsub.f32 %v8275_v38, %v1891_v43 }
 0x362   :  { %5997 = vmatmul.msk.bf16.gmra.mxu1 %vm1209_vm1, %v1427_v48  ;;  %v1558_v51 = vpop.f32.mrf.mxu2  ;;  %v1726_v48 = vunpack.c.l.b16 %v11228_v61 }
 0x363   :  { %3766 = vmatpush.bf16.msrb.mxu1 %v3745_v59  ;;  %v11238_v59 = vld [vmem:[#allocation41_spill] sm:$0xff]  ;;  %v8555_v43 = vsel %vm8130_vm4, %v1558_v51, -inf }
 0x364   :  { %v2075_v3 = vsub.f32 %v11238_v59, %v1885_v6 }
 0x366   :  { %v1397_v62 = vpop.f32.mrf.mxu0  ;;  %v2139_v18 = vmul.f32 1.442695, %v2075_v3 }
 0x367   :  { %3767 = vmatpush.bf16.msrb.mxu1 %v3744_v17  ;;  %v8504_v33 = vsel %vm8090_vm2, %v1397_v62, -inf  ;;  %v2076_v17 = vsub.f32 %v8243_v45, %v1888_v47  ;;  %v2143_v45 = vmul.f32 1.442695, %v2077_v60  ;;  %v11239_v62 = vld [vmem:[#allocation49_spill] sm:$0xff]  ;;  %v11241_v60 = vld [vmem:[#allocation47_spill] sm:$0xff] }
 0x368   :  { %v1931_v23 = vsel %vm1882_vm3, %v8504_v33, -inf  ;;  %6618 = vpow2.f32 %v2139_v18  ;;  %v2079_v59 = vsub.f32 %v11239_v62, %v1897_v58 }
 0x369   :  { %1932 = vmax.xlane.f32.xlu2 %v1931_v23  ;;  %v2141_v37 = vmul.f32 1.442695, %v2076_v17  ;;  %v1733_v23 = vpack.c.b16 %v1726_v48, %v1725_v50  ;;  %v11242_v48 = vld [vmem:[#allocation52_spill] sm:$0xff] }
 0x36a   :  { %v1561_v14 = vpop.f32.mrf.mxu2  ;;  %v2147_v24 = vmul.f32 1.442695, %v2079_v59 }
 0x36b   :  { %3768 = vmatpush.bf16.msrb.mxu1 %v3743_v4  ;;  %6620 = vpow2.f32 %v2141_v37 }
 0x36c   :  { %6622 = vpow2.f32 %v2143_v45  ;;  %v1900_v45 = vpop.xlane.xlu1 %1899 }
 0x36d   :  { %6624 = vpow2.f32 %v2147_v24 }
 0x36e   :  { %v1399_v7 = vpop.f32.mrf.mxu0  ;;  %v8525_v52 = vpop.eup %6618 }
 0x36f   :  { %3769 = vmatpush.bf16.msrb.mxu1 %v3742_v49  ;;  %v8517_v40 = vsel %vm8229_vm8, %v1399_v7, -inf  ;;  %v2267_v4 = vsel %vm1882_vm3, %v8525_v52, 0.0  ;;  %v8563_v7 = vsel %vm8152_vm5, %v1561_v14, -inf  ;;  %v1728_v14 = vunpack.c.l.b16 %v11226_v25 }
 0x370   :  { %v1934_v31 = vsel %vm1882_vm3, %v8517_v40, -inf  ;;  %v1991_v37 = vsel %vm1882_vm3, %v8563_v7, -inf }
 0x371   :  { %1983 = vmax.xlane.f32.xlu2 %v1982_v41  ;;  %1935 = vmax.xlane.f32.xlu1 %v1934_v31  ;;  %v8536_v1 = vpop.eup %6620  ;;  %v2078_v41 = vsub.f32 %v11241_v60, %v1894_v15  ;;  %v1727_v15 = vunpack.c.l.b16 %v11227_v10 }
 0x372   :  { %5998 = vmatmul.msk.bf16.gmra.mxu1 %vm1209_vm1, %v1428_v9  ;;  %v8538_v49 = vpop.eup %6622  ;;  %v1563_v47 = vpop.f32.mrf.mxu2  ;;  %v2270_v35 = vsel %vm1882_vm3, %v8536_v1, 0.0  ;;  %v1988_v9 = vsel %vm1882_vm3, %v8555_v43, -inf }
 0x373   :  { %v2273_v61 = vsel %vm1882_vm3, %v8538_v49, 0.0  ;;  %v8559_v12 = vsel %vm8175_vm6, %v1563_v47, -inf  ;;  %v1734_v58 = vpack.c.b16 %v1728_v14, %v1727_v15  ;;  %v2080_v47 = vsub.f32 %v11242_v48, %v1900_v45 }
 0x374   :  { %11240 = vst [vmem:[#allocation39_spill] sm:$0xff] %v8559_v12  ;;  %v1994_v51 = vsel %vm1882_vm3, %v8559_v12, -inf  ;;  %v1729_v14 = vunpack.c.l.b16 %v8385_v53  ;;  %v1730_v15 = vunpack.c.l.b16 %v8277_v29  ;;  %v1906_v29 = vpop.xlane.xlu0 %1905 }
 0x376   :  { %v1402_v11 = vpop.f32.mrf.mxu0 }
 0x377   :  { %v8529_v38 = vsel %vm8261_vm9, %v1402_v11, -inf  ;;  %v2145_v11 = vmul.f32 1.442695, %v2078_v41 }
 0x378   :  { %v1937_v20 = vsel %vm1882_vm3, %v8529_v38, -inf }
 0x379   :  { %2268 = vadd.xlane.f32.xlu2 %v2267_v4  ;;  %1938 = vmax.xlane.f32.xlu1 %v1937_v20  ;;  %v8573_v4 = vpop.eup %6624  ;;  %6626 = vpow2.f32 %v2145_v11 }
 0x37a   :  { %v1566_v31 = vpop.f32.mrf.mxu2  ;;  %v2279_v62 = vsel %vm1882_vm3, %v8573_v4, 0.0 }
 0x37e   :  { %v1404_v6 = vpop.f32.mrf.mxu0 }
 0x37f   :  { %v8544_v3 = vsel %vm8130_vm4, %v1404_v6, -inf }
 0x380   :  { %v1940_v18 = vsel %vm1882_vm3, %v8544_v3, -inf }
 0x381   :  { %1941 = vmax.xlane.f32.xlu0 %v1940_v18  ;;  %2271 = vadd.xlane.f32.xlu1 %v2270_v35  ;;  %v1903_v18 = vpop.xlane.xlu1 %1902 }
 0x382   :  { %6011 = vmatmul.msk.bf16.vlgmr.msra.gmra.mxu1 %vm1209_vm1, %v1733_v23  ;;  %2274 = vadd.xlane.f32.xlu2 %v2273_v61  ;;  %v1568_v59 = vpop.f32.mrf.mxu2  ;;  %v2149_v23 = vmul.f32 1.442695, %v2080_v47  ;;  %v8596_v61 = vpop.eup %6626 }
 0x383   :  { %v8594_v35 = vsel %vm8297_vm10, %v1568_v59, -inf }
 0x384   :  { %11243 = vst [vmem:[#allocation28_spill] sm:$0xff] %v8594_v35  ;;  %6628 = vpow2.f32 %v2149_v23 }
 0x386   :  { %v1407_v17 = vpop.f32.mrf.mxu0 }
 0x387   :  { %v8578_v20 = vsel %vm8152_vm5, %v1407_v17, -inf  ;;  %v11244_v17 = vld [vmem:[#allocation54_spill] sm:$0xff] }
 0x388   :  { %v1943_v25 = vsel %vm1882_vm3, %v8578_v20, -inf  ;;  %v2081_v60 = vsub.f32 %v11244_v17, %v1903_v18  ;;  %v1732_v18 = vunpack.c.l.b16 %v8427_v56  ;;  %v1731_v17 = vunpack.c.l.b16 %v8302_v19 }
 0x389   :  { %1989 = vmax.xlane.f32.xlu0 %v1988_v9  ;;  %1995 = vmax.xlane.f32.xlu1 %v1994_v51  ;;  %v2000_v51 = vsel %vm1882_vm3, %v8594_v35, -inf }
 0x38a   :  { %1992 = vmax.xlane.f32.xlu2 %v1991_v37  ;;  %v2276_v37 = vsel %vm1882_vm3, %v8596_v61, 0.0  ;;  %v2151_v45 = vmul.f32 1.442695, %v2081_v60  ;;  %v8610_v11 = vpop.eup %6628 }
 0x38b   :  { %v2282_v48 = vsel %vm1882_vm3, %v8610_v11, 0.0 }
 0x38c   :  { %6630 = vpow2.f32 %v2151_v45 }
 0x38e   :  { %v1409_v50 = vpop.f32.mrf.mxu0 }
 0x38f   :  { %v8583_v6 = vsel %vm8175_vm6, %v1409_v50, -inf  ;;  %v8615_v50 = vsel %vm8200_vm7, %v1566_v31, -inf }
 0x390   :  { %v1946_v10 = vsel %vm1882_vm3, %v8583_v6, -inf  ;;  %11245 = vst [vmem:[#allocation26_spill] sm:$0xff] %v8615_v50 }
 0x391   :  { %1944 = vmax.xlane.f32.xlu0 %v1943_v25  ;;  %2280 = vadd.xlane.f32.xlu1 %v2279_v62  ;;  %v1997_v25 = vsel %vm1882_vm3, %v8615_v50, -inf  ;;  %v2082_v62 = vsub.f32 %v8309_v63, %v1906_v29 }
 0x392   :  { %6012 = vmatmul.msk.bf16.gmra.mxu1 %vm1209_vm1, %v1734_v58  ;;  %1947 = vmax.xlane.f32.xlu2 %v1946_v10  ;;  %v1735_v58 = vpack.c.b16 %v1730_v15, %v1729_v14  ;;  %v8622_v53 = vpop.eup %6630  ;;  %v1909_v14 = vpop.xlane.xlu2 %1908 }
 0x393   :  { %v2285_v10 = vsel %vm1882_vm3, %v8622_v53, 0.0 }
 0x396   :  { %v1412_v24 = vpop.f32.mrf.mxu0 }
 0x397   :  { %v8601_v41 = vsel %vm8200_vm7, %v1412_v24, -inf  ;;  %v2153_v24 = vmul.f32 1.442695, %v2082_v62 }
 0x398   :  { %v1949_v9 = vsel %vm1882_vm3, %v8601_v41, -inf }
 0x399   :  { %1950 = vmax.xlane.f32.xlu0 %v1949_v9  ;;  %2001 = vmax.xlane.f32.xlu1 %v2000_v51  ;;  %v1736_v9 = vpack.c.b16 %v1732_v18, %v1731_v17  ;;  %6632 = vpow2.f32 %v2153_v24 }
 0x39a   :  { %2277 = vadd.xlane.f32.xlu2 %v2276_v37 }
 0x39e   :  { %v1414_v47 = vpop.f32.mrf.mxu0 }
 0x39f   :  { %v8626_v31 = vsel %vm8297_vm10, %v1414_v47, -inf  ;;  %v8642_v37 = vpop.eup %6632 }
 0x3a0   :  { %11246 = vst [vmem:[#allocation50_spill] sm:$0xff] %v8626_v31  ;;  %v1952_v59 = vsel %vm1882_vm3, %v8626_v31, -inf  ;;  %v2288_v56 = vsel %vm1882_vm3, %v8642_v37, 0.0 }
 0x3a1   :  { %2283 = vadd.xlane.f32.xlu0 %v2282_v48  ;;  %v11249_v48 = vld [vmem:[#allocation56_spill] sm:$0xff] }
 0x3a2   :  { %6013 = vmatmul.msk.bf16.gmra.mxu1 %vm1209_vm1, %v1735_v58  ;;  %1998 = vmax.xlane.f32.xlu2 %v1997_v25  ;;  %v2083_v47 = vsub.f32 %v11249_v48, %v1909_v14 }
 0x3a4   :  { %v1628_v63 = vpop.f32.mrf.mxu3 }
 0x3a5   :  { %v8661_v18 = vsel %vm8090_vm2, %v1628_v63, -inf }
 0x3a6   :  { %11251 = vst [vmem:[#allocation38_spill] sm:$0xff] %v8661_v18  ;;  %v2003_v14 = vsel %vm1882_vm3, %v8661_v18, -inf }
 0x3a7   :  { %v1705_v23 = vpop.f32.mrf.mxu0 }
 0x3a8   :  { %v8637_v60 = vsel %vm8090_vm2, %v1705_v23, -inf  ;;  %v2155_v23 = vmul.f32 1.442695, %v2083_v47 }
 0x3a9   :  { %2286 = vadd.xlane.f32.xlu0 %v2285_v10  ;;  %11247 = vst [vmem:[#allocation51_spill] sm:$0xff] %v8637_v60  ;;  %v2027_v51 = vsel %vm1882_vm3, %v8637_v60, -inf }
 0x3aa   :  { %1953 = vmax.xlane.f32.xlu2 %v1952_v59  ;;  %v1912_v59 = vpop.xlane.xlu1 %1911  ;;  %6634 = vpow2.f32 %v2155_v23 }
 0x3ac   :  { %v1630_v19 = vpop.f32.mrf.mxu3 }
 0x3ad   :  { %v8648_v58 = vsel %vm8229_vm8, %v1630_v19, -inf }
 0x3ae   :  { %11248 = vst [vmem:[#allocation43_spill] sm:$0xff] %v8648_v58  ;;  %v2006_v10 = vsel %vm1882_vm3, %v8648_v58, -inf }
 0x3af   :  { %v1707_v45 = vpop.f32.mrf.mxu0 }
 0x3b2   :  { %6014 = vmatmul.msk.bf16.gmra.mxu1 %vm1209_vm1, %v1736_v9  ;;  %2028 = vmax.xlane.f32.xlu2 %v2027_v51 }
 0x3b5   :  { %v1633_v24 = vpop.f32.mrf.mxu3 }
 0x3b7   :  { %v1710_v62 = vpop.f32.mrf.mxu0 }
 0x3b8   :  { %v8665_v17 = vsel %vm8261_vm9, %v1710_v62, -inf  ;;  %v8678_v62 = vpop.eup %6634 }
 0x3b9   :  { %11252 = vst [vmem:[#allocation35_spill] sm:$0xff] %v8665_v17 }
 0x3ba   :  { %2289 = vadd.xlane.f32.xlu2 %v2288_v56  ;;  %v11254_v56 = vld [vmem:[#allocation57_spill] sm:$0xff]  ;;  %11255 = vst [vmem:[#allocation32_spill] sm:$0xff] %v8678_v62 }
 0x3bb   :  { %v2084_v19 = vsub.f32 %v11254_v56, %v1912_v59  ;;  %v8686_v59 = vsel %vm8261_vm9, %v1633_v24, -inf }
 0x3bc   :  { %11257 = vst [vmem:[#allocation55_spill] sm:$0xff] %v8686_v59 }
 0x3bd   :  { %v2157_v47 = vmul.f32 1.442695, %v2084_v19  ;;  %v1635_v56 = vpop.f32.mrf.mxu3 }
 0x3bf   :  { %v1474_v15 = vpop.f32.mrf.mxu1  ;;  %v1712_v48 = vpop.f32.mrf.mxu0  ;;  %6636 = vpow2.f32 %v2157_v47 }
 0x3c0   :  { %v8653_v25 = vsel %vm8090_vm2, %v1474_v15, -inf  ;;  %v2033_v15 = vsel %vm1882_vm3, %v8665_v17, -inf }
 0x3c1   :  { %11250 = vst [vmem:[#allocation34_spill] sm:$0xff] %v8653_v25  ;;  %v1955_v29 = vsel %vm1882_vm3, %v8653_v25, -inf }
 0x3c2   :  { %1956 = vmax.xlane.f32.xlu1 %v1955_v29  ;;  %2007 = vmax.xlane.f32.xlu2 %v2006_v10  ;;  %v1915_v29 = vpop.xlane.xlu1 %1914  ;;  %v8682_v10 = vsel %vm8229_vm8, %v1707_v45, -inf  ;;  %v1918_v45 = vpop.xlane.xlu2 %1917 }
 0x3c3   :  { %11256 = vst [vmem:[#allocation31_spill] sm:$0xff] %v8682_v10  ;;  %v2030_v19 = vsel %vm1882_vm3, %v8682_v10, -inf }
 0x3c5   :  { %v8700_v47 = vpop.eup %6636 }
 0x3c6   :  { %11259 = vst [vmem:[#allocation48_spill] sm:$0xff] %v8700_v47 }
 0x3c7   :  { %v1476_v9 = vpop.f32.mrf.mxu1 }
 0x3c8   :  { %v8669_v51 = vsel %vm8229_vm8, %v1476_v9, -inf  ;;  %v8688_v9 = vpop.xlane.xlu0 %1923 }
 0x3c9   :  { %11253 = vst [vmem:[#allocation44_spill] sm:$0xff] %v8669_v51  ;;  %v1958_v63 = vsel %vm1882_vm3, %v8669_v51, -inf }
 0x3ca   :  { %1959 = vmax.xlane.f32.xlu0 %v1958_v63  ;;  %2004 = vmax.xlane.f32.xlu1 %v2003_v14  ;;  %v2291_v14 = vsel %vm1882_vm3, %v8678_v62, 0.0  ;;  %v2009_v63 = vsel %vm1882_vm3, %v8686_v59, -inf  ;;  %v1921_v24 = vpop.xlane.xlu1 %1920 }
 0x3cb   :  { %2034 = vmax.xlane.f32.xlu2 %v2033_v15  ;;  %v1715_v15 = vpop.f32.mrf.mxu0 }
 0x3cc   :  { %v8726_v58 = vsel %vm8152_vm5, %v1715_v15, -inf }
 0x3cd   :  { %11262 = vst [vmem:[#allocation40_spill] sm:$0xff] %v8726_v58  ;;  %v2039_v25 = vsel %vm1882_vm3, %v8726_v58, -inf }
 0x3cf   :  { %v1479_v23 = vpop.f32.mrf.mxu1 }
 0x3d0   :  { %v8698_v13 = vsel %vm8261_vm9, %v1479_v23, -inf  ;;  %v8702_v28 = vpop.xlane.xlu0 %1980  ;;  %v2294_v23 = vsel %vm1882_vm3, %v8700_v47, 0.0 }
 0x3d1   :  { %11258 = vst [vmem:[#allocation53_spill] sm:$0xff] %v8698_v13 }
 0x3d2   :  { %2292 = vadd.xlane.f32.xlu0 %v2291_v14  ;;  %2031 = vmax.xlane.f32.xlu1 %v2030_v19  ;;  %v1961_v14 = vsel %vm1882_vm3, %v8698_v13, -inf  ;;  %v8716_v59 = vpop.xlane.xlu1 %1926 }
 0x3d3   :  { %2010 = vmax.xlane.f32.xlu2 %v2009_v63  ;;  %v8712_v63 = vpop.f32.mrf.mxu3 }
 0x3d7   :  { %v1481_v32 = vpop.f32.mrf.mxu1 }
 0x3d8   :  { %v8706_v51 = vsel %vm8130_vm4, %v1481_v32, -inf  ;;  %v8722_v32 = vsel %vm8130_vm4, %v1712_v48, -inf  ;;  %v8735_v60 = vpop.xlane.xlu0 %1929 }
 0x3d9   :  { %11260 = vst [vmem:[#allocation46_spill] sm:$0xff] %v8706_v51  ;;  %v1964_v19 = vsel %vm1882_vm3, %v8706_v51, -inf }
 0x3da   :  { %1965 = vmax.xlane.f32.xlu0 %v1964_v19  ;;  %1962 = vmax.xlane.f32.xlu1 %v1961_v14  ;;  %11261 = vst [vmem:[#allocation45_spill] sm:$0xff] %v8722_v32  ;;  %v2086_v19 = vsub.f32 %v8339_v55, %v1918_v45  ;;  %v8729_v14 = vpop.f32.mrf.mxu0  ;;  %v8743_v55 = vsel %vm8130_vm4, %v1635_v56, -inf  ;;  %v11264_v45 = vld [vmem:[#allocation58_spill] sm:$0xff] }
 0x3db   :  { %2295 = vadd.xlane.f32.xlu2 %v2294_v23  ;;  %v2036_v23 = vsel %vm1882_vm3, %v8722_v32, -inf  ;;  %v1640_v13 = vpop.f32.mrf.mxu3  ;;  %11263 = vst [vmem:[#allocation42_spill] sm:$0xff] %v8743_v55  ;;  %v2085_v50 = vsub.f32 %v11264_v45, %v1915_v29 }
 0x3dc   :  { %v8718_v17 = vpop.xlane.xlu2 %1932  ;;  %v2161_v48 = vmul.f32 1.442695, %v2086_v19  ;;  %v8748_v32 = vsel %vm8175_vm6, %v1640_v13, -inf }
 0x3dd   :  { %11265 = vst [vmem:[#allocation37_spill] sm:$0xff] %v8748_v32  ;;  %v2018_v29 = vsel %vm1882_vm3, %v8748_v32, -inf  ;;  %v2159_v13 = vmul.f32 1.442695, %v2085_v50  ;;  %v2088_v50 = vsub.f32 %v8369_v22, %v8688_v9 }
 0x3de   :  { %6638 = vpow2.f32 %v2161_v48  ;;  %v2087_v48 = vsub.f32 %v8353_v42, %v1921_v24 }
 0x3df   :  { %v1484_v51 = vpop.f32.mrf.mxu1  ;;  %v2165_v22 = vmul.f32 1.442695, %v2088_v50 }
 0x3e0   :  { %v8761_v45 = vpop.xlane.xlu0 %1986 }
 0x3e2   :  { %2037 = vmax.xlane.f32.xlu1 %v2036_v23  ;;  %v2012_v23 = vsel %vm1882_vm3, %v8743_v55, -inf  ;;  %v1720_v56 = vpop.f32.mrf.mxu0  ;;  %v8769_v55 = vsel %vm8152_vm5, %v1484_v51, -inf }
 0x3e3   :  { %2040 = vmax.xlane.f32.xlu2 %v2039_v25  ;;  %11268 = vst [vmem:[#allocation30_spill] sm:$0xff] %v8769_v55  ;;  %v1967_v42 = vsel %vm1882_vm3, %v8769_v55, -inf }
 0x3e4   :  { %v8737_v31 = vpop.xlane.xlu2 %1983  ;;  %v8739_v15 = vpop.xlane.xlu1 %1935 }
 0x3e5   :  { %v8765_v21 = vpop.eup %6638 }
 0x3e6   :  { %11267 = vst [vmem:[#allocation33_spill] sm:$0xff] %v8765_v21 }
 0x3e7   :  { %v1486_v58 = vpop.f32.mrf.mxu1 }
 0x3e8   :  { %v8752_v25 = vsel %vm8175_vm6, %v1486_v58, -inf }
 0x3e9   :  { %11266 = vst [vmem:[#allocation36_spill] sm:$0xff] %v8752_v25  ;;  %v1970_v19 = vsel %vm1882_vm3, %v8752_v25, -inf }
 0x3ea   :  { %1971 = vmax.xlane.f32.xlu0 %v1970_v19  ;;  %2013 = vmax.xlane.f32.xlu1 %v2012_v23  ;;  %v2163_v19 = vmul.f32 1.442695, %v2087_v48  ;;  %v1722_v48 = vpop.f32.mrf.mxu0 }
 0x3eb   :  { %2019 = vmax.xlane.f32.xlu2 %v2018_v29  ;;  %v2300_v29 = vsel %vm1882_vm3, %v8765_v21, 0.0 }
 0x3ec   :  { %v2269_v58 = vpop.xlane.xlu2 %2268  ;;  %v8763_v10 = vpop.xlane.xlu1 %1938 }
 0x3ed   :  { %6640 = vrcp.f32 %v2269_v58  ;;  %v2470_v18 = vand.u32 2147483648, %v2269_v58  ;;  %vm2464_vm12 = vweird.f32 %v2269_v58 }
 0x3ee   :  { %6642 = vpow2.f32 %v2159_v13 }
 0x3ef   :  { %v1489_v23 = vpop.f32.mrf.mxu1  ;;  %6644 = vpow2.f32 %v2163_v19  ;;  %v2089_v19 = vsub.f32 %v8383_v5, %v8716_v59  ;;  %v2468_v59 = vand.u32 2147483647, %v2269_v58 }
 0x3f0   :  { %v8777_v24 = vsel %vm8200_vm7, %v1489_v23, -inf  ;;  %v8789_v23 = vsel %vm8200_vm7, %v1720_v56, -inf }
 0x3f1   :  { %11269 = vst [vmem:[#allocation27_spill] sm:$0xff] %v8777_v24  ;;  %v1973_v51 = vsel %vm1882_vm3, %v8777_v24, -inf  ;;  %v8803_v24 = vpop.f32.mrf.mxu3  ;;  %vm2469_vm14 = vcmp.eq.f32.partialorder %v2468_v59, 8.507059e+37 }
 0x3f2   :  { %2301 = vadd.xlane.f32.xlu0 %v2300_v29  ;;  %1968 = vmax.xlane.f32.xlu1 %v1967_v42  ;;  %11271 = vst [vmem:[#allocation49_spill] sm:$0xff] %v8789_v23  ;;  %v8795_v42 = vsel %vm8297_vm10, %v1722_v48, -inf }
 0x3f3   :  { %1974 = vmax.xlane.f32.xlu2 %v1973_v51  ;;  %v6641_v13 = vpop.eup %6640  ;;  %11272 = vst [vmem:[#allocation47_spill] sm:$0xff] %v8795_v42  ;;  %v2045_v51 = vsel %vm1882_vm3, %v8789_v23, -inf  ;;  %v2048_v48 = vsel %vm1882_vm3, %v8795_v42, -inf  ;;  %v2092_v23 = vsub.f32 %v8517_v40, %v8739_v15 }
 0x3f4   :  { %v8783_v32 = vpop.eup %6642  ;;  %v2460_v9 = vmul.f32 %v6641_v13, %v2269_v58  ;;  %v2272_v25 = vpop.xlane.xlu1 %2271  ;;  %vm2465_vm11 = vweird.f32 %v6641_v13  ;;  %v8823_v58 = vsel %vm8152_vm5, %v8712_v63, -inf }
 0x3f5   :  { %11270 = vst [vmem:[#allocation41_spill] sm:$0xff] %v8783_v32  ;;  %v8785_v55 = vpop.xlane.xlu0 %1941  ;;  %6646 = vrcp.f32 %v2272_v25  ;;  %v8791_v21 = vpop.xlane.xlu2 %2274  ;;  %v2297_v50 = vsel %vm1882_vm3, %v8783_v32, 0.0  ;;  %v2167_v32 = vmul.f32 1.442695, %v2089_v19  ;;  %vm8809_vm13 = vmor %vm2464_vm12, %vm2465_vm11  ;;  %v2471_v19 = vor.u32 1.1754944e-38, %v2470_v18 }
 0x3f6   :  { %v2461_v29 = vsub.f32 1.0, %v2460_v9  ;;  %6648 = vpow2.f32 %v2165_v22  ;;  %v8807_v9 = vpop.eup %6644  ;;  %11275 = vst [vmem:[#allocation52_spill] sm:$0xff] %v8823_v58  ;;  %v2484_v35 = vand.u32 2147483648, %v2272_v25  ;;  %v2015_v18 = vsel %vm1882_vm3, %v8823_v58, -inf }
 0x3f7   :  { %6650 = vrcp.f32 %v8791_v21  ;;  %v2482_v62 = vand.u32 2147483647, %v2272_v25  ;;  %vm2478_vm0 = vweird.f32 %v2272_v25 }
 0x3f8   :  { %v2462_v56 = vmul.f32 %v6641_v13, %v2461_v29  ;;  %v8813_v29 = vpop.f32.mrf.mxu1  ;;  %6652 = vpow2.f32 %v2167_v32 }
 0x3f9   :  { %v1645_v15 = vpop.f32.mrf.mxu3  ;;  %vm2483_vm12 = vcmp.eq.f32.partialorder %v2482_v62, 8.507059e+37 }
 0x3fa   :  { %2046 = vmax.xlane.f32.xlu0 %v2045_v51  ;;  %2298 = vadd.xlane.f32.xlu1 %v2297_v50  ;;  %v2463_v5 = vadd.f32 %v6641_v13, %v2462_v56  ;;  %v8859_v62 = vsel %vm8297_vm10, %v1645_v15, -inf }
 0x3fb   :  { %2049 = vmax.xlane.f32.xlu2 %v2048_v48  ;;  %v6647_v22 = vpop.eup %6646  ;;  %11276 = vst [vmem:[#allocation54_spill] sm:$0xff] %v8859_v62 }
 0x3fc   :  { %v2467_v50 = vsel %vm8809_vm13, %v6641_v13, %v2463_v5  ;;  %v2474_v51 = vmul.f32 %v6647_v22, %v2272_v25  ;;  %v8827_v48 = vpop.eup %6648  ;;  %v2303_v13 = vsel %vm1882_vm3, %v8807_v9, 0.0  ;;  %v8833_v47 = vpop.xlane.xlu1 %1995  ;;  %vm2479_vm15 = vweird.f32 %v6647_v22 }
 0x3fd   :  { %v8818_v42 = vpop.xlane.xlu0 %1989  ;;  %v8825_v56 = vpop.xlane.xlu2 %1992  ;;  %v2472_v5 = vsel %vm2469_vm14, %v2471_v19, %v2467_v50  ;;  %v2306_v59 = vsel %vm1882_vm3, %v8827_v48, 0.0  ;;  %v2173_v50 = vmul.f32 1.442695, %v2092_v23  ;;  %vm2480_vm11 = vmor %vm2478_vm0, %vm2479_vm15  ;;  %v2485_v19 = vor.u32 1.1754944e-38, %v2484_v35 }
 0x3fe   :  { %v2475_v12 = vsub.f32 1.0, %v2474_v51  ;;  %v8839_v51 = vpop.eup %6650  ;;  %v3355_v40 = vmul.f32 %v8525_v52, %v2472_v5  ;;  %v2108_v25 = vsub.f32 %v8511_v2, %v8737_v31  ;;  %vm2492_vm13 = vweird.f32 %v8791_v21 }
 0x3ff   :  { %v2488_v52 = vmul.f32 %v8839_v51, %v8791_v21  ;;  %6654 = vpow2.f32 %v2173_v50 }
 0x400   :  { %v2476_v63 = vmul.f32 %v6647_v22, %v2475_v12  ;;  %v1782_v23 = vpop.f32.mrf.mxu1  ;;  %v3419_v5 = vpack.c.bf16 %v3355_v40, %v3355_v40 }
 0x402   :  { %2304 = vadd.xlane.f32.xlu0 %v2303_v13  ;;  %2016 = vmax.xlane.f32.xlu1 %v2015_v18  ;;  %v2477_v32 = vadd.f32 %v6647_v22, %v2476_v63  ;;  %v8844_v13 = vpop.eup %6652  ;;  %v8849_v18 = vsel %vm8175_vm6, %v8729_v14, -inf  ;;  %v2093_v14 = vsub.f32 %v8529_v38, %v8763_v10  ;;  %v3491_v40 = vunpack.c.l.b16 %v3419_v5 }
 0x403   :  { %2307 = vadd.xlane.f32.xlu2 %v2306_v59  ;;  %v2309_v2 = vsel %vm1882_vm3, %v8844_v13, 0.0  ;;  %v2042_v31 = vsel %vm1882_vm3, %v8849_v18, -inf  ;;  %v2205_v59 = vmul.f32 1.442695, %v2108_v25  ;;  %v2109_v10 = vsub.f32 %v8490_v46, %v8761_v45 }
 0x404   :  { %v2481_v58 = vsel %vm2480_vm11, %v6647_v22, %v2477_v32  ;;  %v2489_v32 = vsub.f32 1.0, %v2488_v52  ;;  %v2175_v38 = vmul.f32 1.442695, %v2093_v14  ;;  %v8882_v52 = vsel %vm8200_vm7, %v8803_v24, -inf }
 0x405   :  { %v8842_v12 = vpop.xlane.xlu0 %1944  ;;  %v2486_v63 = vsel %vm2483_vm12, %v2485_v19, %v2481_v58  ;;  %v8855_v35 = vpop.xlane.xlu2 %1947  ;;  %11277 = vst [vmem:[#allocation56_spill] sm:$0xff] %v8882_v52  ;;  %v2091_v46 = vsub.f32 %v8504_v33, %v8718_v17  ;;  %v8891_v45 = vsel %vm8090_vm2, %v1782_v23, -inf  ;;  %v2094_v24 = vsub.f32 %v8544_v3, %v8785_v55 }
 0x406   :  { %v3356_v22 = vmul.f32 %v8536_v1, %v2486_v63  ;;  %v8868_v19 = vpop.xlane.xlu1 %2280  ;;  %v2024_v1 = vsel %vm1882_vm3, %v8859_v62, -inf  ;;  %v8877_v63 = vpop.eup %6654  ;;  %v2051_v54 = vsel %vm1882_vm3, %v8891_v45, -inf  ;;  %vm2493_vm2 = vweird.f32 %v8839_v51 }
 0x407   :  { %6656 = vrcp.f32 %v8868_v19  ;;  %v2318_v33 = vsel %vm1882_vm3, %v8877_v63, 0.0  ;;  %v2171_v3 = vmul.f32 1.442695, %v2091_v46  ;;  %v2498_v55 = vand.u32 2147483648, %v8791_v21  ;;  %vm8921_vm14 = vmor %vm2492_vm13, %vm2493_vm2 }
 0x408   :  { %v3420_v58 = vpack.c.bf16 %v3356_v22, %v3356_v22  ;;  %6658 = vpow2.f32 %v2205_v59  ;;  %v2490_v22 = vmul.f32 %v8839_v51, %v2489_v32  ;;  %v8897_v14 = vpop.f32.mrf.mxu1  ;;  %v2177_v59 = vmul.f32 1.442695, %v2094_v24 }
 0x409   :  { %v2496_v32 = vand.u32 2147483647, %v8791_v21  ;;  %v2107_v46 = vsub.f32 %v8461_v30, %v8702_v28  ;;  %v2499_v24 = vor.u32 1.1754944e-38, %v2498_v55 }
 0x40a   :  { %2310 = vadd.xlane.f32.xlu0 %v2309_v2  ;;  %2043 = vmax.xlane.f32.xlu1 %v2042_v31  ;;  %v3492_v15 = vunpack.c.l.b16 %v3420_v58  ;;  %v2207_v2 = vmul.f32 1.442695, %v2109_v10  ;;  %v2021_v31 = vsel %vm1882_vm3, %v8882_v52, -inf  ;;  %v2491_v17 = vadd.f32 %v8839_v51, %v2490_v22 }
 0x40b   :  { %2025 = vmax.xlane.f32.xlu2 %v2024_v1  ;;  %vm2497_vm15 = vcmp.eq.f32.partialorder %v2496_v32, 8.507059e+37  ;;  %v2203_v55 = vmul.f32 1.442695, %v2107_v46 }
 0x40c   :  { %v3499_v25 = vpack.c.b16 %v3492_v15, %v3491_v40  ;;  %v8917_v40 = vsel %vm8297_vm10, %v8813_v29, -inf  ;;  %v2495_v29 = vsel %vm8921_vm14, %v8839_v51, %v2491_v17 }
 0x40d   :  { %v8875_v50 = vpop.xlane.xlu0 %1950  ;;  %v8885_v5 = vpop.xlane.xlu2 %2277  ;;  %v2500_v28 = vsel %vm2497_vm15, %v2499_v24, %v2495_v29 }
 0x40e   :  { %6660 = vrcp.f32 %v8885_v5  ;;  %6015 = vmatmul.msk.bf16.vlgmr.msra.gmra.mxu2 %vm1882_vm3, %v3499_v25  ;;  %v8907_v23 = vpop.eup %6656  ;;  %vm2506_vm11 = vweird.f32 %v8885_v5  ;;  %v3357_v29 = vmul.f32 %v8538_v49, %v2500_v28  ;;  %v2097_v57 = vsub.f32 %v8601_v41, %v8875_v50 }
 0x40f   :  { %6662 = vpow2.f32 %v2175_v38  ;;  %v8910_v58 = vpop.eup %6658  ;;  %v2516_v25 = vmul.f32 %v8907_v23, %v8868_v19  ;;  %v1976_v38 = vsel %vm1882_vm3, %v8917_v40, -inf  ;;  %vm2521_vm14 = vweird.f32 %v8907_v23 }
 0x410   :  { %6664 = vpow2.f32 %v2207_v2  ;;  %v2366_v2 = vsel %vm1882_vm3, %v8910_v58, 0.0  ;;  %v3421_v62 = vpack.c.bf16 %v3357_v29, %v3357_v29 }
 0x411   :  { %v2517_v30 = vsub.f32 1.0, %v2516_v25 }
 0x412   :  { %2319 = vadd.xlane.f32.xlu0 %v2318_v33  ;;  %2022 = vmax.xlane.f32.xlu1 %v2021_v31  ;;  %v2095_v31 = vsub.f32 %v8578_v20, %v8842_v12  ;;  %v2510_v20 = vand.u32 2147483647, %v8885_v5 }
 0x413   :  { %2052 = vmax.xlane.f32.xlu2 %v2051_v54  ;;  %v2512_v54 = vand.u32 2147483648, %v8885_v5  ;;  %v2518_v46 = vmul.f32 %v8907_v23, %v2517_v30 }
 0x414   :  { %v6661_v1 = vpop.eup %6660  ;;  %v2179_v32 = vmul.f32 1.442695, %v2095_v31  ;;  %vm2511_vm2 = vcmp.eq.f32.partialorder %v2510_v20, 8.507059e+37 }
 0x415   :  { %v8919_v15 = vpop.xlane.xlu0 %2283  ;;  %v8925_v10 = vpop.eup %6662  ;;  %v2502_v21 = vmul.f32 %v6661_v1, %v8885_v5  ;;  %vm2507_vm0 = vweird.f32 %v6661_v1  ;;  %v2513_v24 = vor.u32 1.1754944e-38, %v2512_v54 }
 0x416   :  { %v8930_v22 = vpop.xlane.xlu2 %1998  ;;  %6666 = vrcp.f32 %v8919_v15  ;;  %v2321_v51 = vsel %vm1882_vm3, %v8925_v10, 0.0  ;;  %v8950_v12 = vpop.eup %6664  ;;  %vm2508_vm12 = vmor %vm2506_vm11, %vm2507_vm0  ;;  %v2540_v52 = vand.u32 2147483648, %v8919_v15  ;;  %vm2534_vm15 = vweird.f32 %v8919_v15 }
 0x417   :  { %6668 = vpow2.f32 %v2171_v3  ;;  %v2503_v33 = vsub.f32 1.0, %v2502_v21  ;;  %v8947_v3 = vpop.f32.mrf.mxu1  ;;  %v2369_v31 = vsel %vm1882_vm3, %v8950_v12, 0.0  ;;  %vm2520_vm0 = vweird.f32 %v8868_v19 }
 0x418   :  { %6670 = vpow2.f32 %v2177_v59 }
 0x419   :  { %v2504_v17 = vmul.f32 %v6661_v1, %v2503_v33 }
 0x41a   :  { %2367 = vadd.xlane.f32.xlu0 %v2366_v2  ;;  %1977 = vmax.xlane.f32.xlu1 %v1976_v38 }
 0x41b   :  { %2322 = vadd.xlane.f32.xlu2 %v2321_v51  ;;  %v2505_v21 = vadd.f32 %v6661_v1, %v2504_v17 }
 0x41c   :  { %v6667_v59 = vpop.eup %6666 }
 0x41d   :  { %v8954_v25 = vpop.eup %6668  ;;  %v2530_v2 = vmul.f32 %v6667_v59, %v8919_v15  ;;  %v8957_v33 = vpop.xlane.xlu0 %2286  ;;  %v2509_v5 = vsel %vm2508_vm12, %v6661_v1, %v2505_v21  ;;  %vm2535_vm13 = vweird.f32 %v6667_v59  ;;  %v2526_v21 = vand.u32 2147483648, %v8868_v19  ;;  %vm8987_vm12 = vmor %vm2520_vm0, %vm2521_vm14 }
 0x41e   :  { %v8959_v38 = vpop.eup %6670  ;;  %v8962_v51 = vpop.xlane.xlu2 %1953  ;;  %6672 = vrcp.f32 %v8957_v33  ;;  %v2514_v54 = vsel %vm2511_vm2, %v2513_v24, %v2509_v5  ;;  %v2315_v28 = vsel %vm1882_vm3, %v8954_v25, 0.0  ;;  %vm2536_vm11 = vmor %vm2534_vm15, %vm2535_vm13  ;;  %v2554_v27 = vand.u32 2147483648, %v8957_v33 }
 0x41f   :  { %6674 = vpow2.f32 %v2203_v55  ;;  %v2531_v49 = vsub.f32 1.0, %v2530_v2  ;;  %v3358_v17 = vmul.f32 %v8596_v61, %v2514_v54  ;;  %v2324_v1 = vsel %vm1882_vm3, %v8959_v38, 0.0  ;;  %v1789_v24 = vpop.f32.mrf.mxu1 }
 0x420   :  { %6676 = vpow2.f32 %v2179_v32  ;;  %v2519_v55 = vadd.f32 %v8907_v23, %v2518_v46  ;;  %v2538_v32 = vand.u32 2147483647, %v8919_v15  ;;  %v3493_v2 = vunpack.c.l.b16 %v3421_v62 }
 0x421   :  { %v2532_v30 = vmul.f32 %v6667_v59, %v2531_v49  ;;  %v3422_v20 = vpack.c.bf16 %v3358_v17, %v3358_v17  ;;  %v2524_v49 = vand.u32 2147483647, %v8868_v19  ;;  %v2541_v54 = vor.u32 1.1754944e-38, %v2540_v52 }
 0x422   :  { %2316 = vadd.xlane.f32.xlu1 %v2315_v28  ;;  %2325 = vadd.xlane.f32.xlu0 %v2324_v1  ;;  %v2523_v19 = vsel %vm8987_vm12, %v8907_v23, %v2519_v55  ;;  %vm2539_vm2 = vcmp.eq.f32.partialorder %v2538_v32, 8.507059e+37  ;;  %v9000_v52 = vsel %vm8130_vm4, %v1789_v24, -inf  ;;  %v9015_v24 = vpop.xlane.xlu1 %2001 }
 0x423   :  { %2370 = vadd.xlane.f32.xlu2 %v2369_v31  ;;  %v2533_v61 = vadd.f32 %v6667_v59, %v2532_v30  ;;  %v3494_v5 = vunpack.c.l.b16 %v3422_v20  ;;  %v2527_v30 = vor.u32 1.1754944e-38, %v2526_v21  ;;  %11282 = vst [vmem:[#allocation57_spill] sm:$0xff] %v9000_v52  ;;  %vm2525_vm13 = vcmp.eq.f32.partialorder %v2524_v49, 8.507059e+37 }
 0x424   :  { %v8978_v29 = vpop.eup %6672  ;;  %v2060_v0 = vsel %vm1882_vm3, %v9000_v52, -inf }
 0x425   :  { %v8983_v46 = vpop.eup %6674  ;;  %v2537_v31 = vsel %vm2536_vm11, %v6667_v59, %v2533_v61  ;;  %v3500_v62 = vpack.c.b16 %v3494_v5, %v3493_v2  ;;  %v2544_v1 = vmul.f32 %v8978_v29, %v8957_v33  ;;  %v2090_v59 = vsub.f32 %v8475_v39, %v8735_v60 }
 0x426   :  { %v8991_v28 = vpop.eup %6676  ;;  %v8993_v17 = vpop.xlane.xlu2 %2028  ;;  %v2542_v20 = vsel %vm2539_vm2, %v2541_v54, %v2537_v31  ;;  %v2363_v61 = vsel %vm1882_vm3, %v8983_v46, 0.0  ;;  %v2528_v55 = vsel %vm2525_vm13, %v2527_v30, %v2523_v19  ;;  %v9020_v2 = vsel %vm8229_vm8, %v8897_v14, -inf }
 0x427   :  { %6016 = vmatmul.msk.bf16.gmra.mxu2 %vm1882_vm3, %v3500_v62  ;;  %v2327_v23 = vsel %vm1882_vm3, %v8991_v28, 0.0  ;;  %v3360_v32 = vmul.f32 %v8610_v11, %v2542_v20  ;;  %v2545_v21 = vsub.f32 1.0, %v2544_v1  ;;  %v2169_v39 = vmul.f32 1.442695, %v2090_v59  ;;  %11283 = vst [vmem:[#allocation58_spill] sm:$0xff] %v9020_v2 }
 0x428   :  { %v3359_v60 = vmul.f32 %v8573_v4, %v2528_v55  ;;  %v2054_v11 = vsel %vm1882_vm3, %v9020_v2, -inf  ;;  %vm2549_vm4 = vweird.f32 %v8978_v29  ;;  %vm2548_vm8 = vweird.f32 %v8957_v33 }
 0x429   :  { %v3424_v49 = vpack.c.bf16 %v3360_v32, %v3360_v32  ;;  %v2546_v54 = vmul.f32 %v8978_v29, %v2545_v21  ;;  %v2552_v30 = vand.u32 2147483647, %v8957_v33  ;;  %vm2550_vm14 = vmor %vm2548_vm8, %vm2549_vm4  ;;  %v2110_v55 = vsub.f32 %v8555_v43, %v8818_v42 }
 0x42a   :  { %2364 = vadd.xlane.f32.xlu1 %v2363_v61  ;;  %2328 = vadd.xlane.f32.xlu0 %v2327_v23  ;;  %v3423_v15 = vpack.c.bf16 %v3359_v60, %v3359_v60 }
 0x42b   :  { %2061 = vmax.xlane.f32.xlu2 %v2060_v0  ;;  %v3496_v31 = vunpack.c.l.b16 %v3424_v49  ;;  %v2547_v4 = vadd.f32 %v8978_v29, %v2546_v54  ;;  %v2555_v0 = vor.u32 1.1754944e-38, %v2554_v27  ;;  %vm2553_vm15 = vcmp.eq.f32.partialorder %v2552_v30, 8.507059e+37 }
 0x42c   :  { %v3495_v14 = vunpack.c.l.b16 %v3423_v15  ;;  %v2209_v54 = vmul.f32 1.442695, %v2110_v55 }
 0x42d   :  { %v2551_v23 = vsel %vm2550_vm14, %v8978_v29, %v2547_v4 }
 0x42e   :  { %v2290_v5 = vpop.xlane.xlu2 %2289  ;;  %v3501_v61 = vpack.c.b16 %v3496_v31, %v3495_v14  ;;  %v2556_v60 = vsel %vm2553_vm15, %v2555_v0, %v2551_v23  ;;  %v9050_v31 = vsel %vm8261_vm9, %v8947_v3, -inf  ;;  %v2111_v0 = vsub.f32 %v8563_v7, %v8825_v56 }
 0x42f   :  { %6678 = vrcp.f32 %v2290_v5  ;;  %v2568_v21 = vand.u32 2147483648, %v2290_v5  ;;  %v2566_v49 = vand.u32 2147483647, %v2290_v5  ;;  %vm2562_vm11 = vweird.f32 %v2290_v5  ;;  %11284 = vst [vmem:[#allocation59_spill] sm:$0xff] %v9050_v31 }
 0x430   :  { %6680 = vpow2.f32 %v2169_v39  ;;  %v3361_v42 = vmul.f32 %v8622_v53, %v2556_v60  ;;  %v2057_v30 = vsel %vm1882_vm3, %v9050_v31, -inf }
 0x431   :  { %v2569_v15 = vor.u32 1.1754944e-38, %v2568_v21  ;;  %vm2567_vm2 = vcmp.eq.f32.partialorder %v2566_v49, 8.507059e+37  ;;  %6682 = vpow2.f32 %v2209_v54  ;;  %v1792_v21 = vpop.f32.mrf.mxu1 }
 0x432   :  { %2055 = vmax.xlane.f32.xlu1 %v2054_v11  ;;  %v3425_v53 = vpack.c.bf16 %v3361_v42, %v3361_v42  ;;  %v9076_v54 = vsel %vm8152_vm5, %v1792_v21, -inf }
 0x433   :  { %11285 = vst [vmem:[#allocation60_spill] sm:$0xff] %v9076_v54  ;;  %v2063_v7 = vsel %vm1882_vm3, %v9076_v54, -inf  ;;  %v11286_v54 = vld [vmem:[#allocation32_spill] sm:$0xff] }
 0x434   :  { %v3497_v23 = vunpack.c.l.b16 %v3425_v53 }
 0x435   :  { %v6679_v62 = vpop.eup %6678  ;;  %v9029_v19 = vpop.xlane.xlu1 %1956 }
 0x436   :  { %v9032_v1 = vpop.eup %6680  ;;  %v2558_v20 = vmul.f32 %v6679_v62, %v2290_v5  ;;  %v9034_v59 = vpop.xlane.xlu2 %2007  ;;  %vm2563_vm0 = vweird.f32 %v6679_v62 }
 0x437   :  { %6017 = vmatmul.msk.bf16.gmra.mxu2 %vm1882_vm3, %v3501_v61  ;;  %v2312_v33 = vsel %vm1882_vm3, %v9032_v1, 0.0  ;;  %vm2564_vm12 = vmor %vm2562_vm11, %vm2563_vm0 }
 0x438   :  { %v2559_v32 = vsub.f32 1.0, %v2558_v20 }
 0x43a   :  { %v2560_v39 = vmul.f32 %v6679_v62, %v2559_v32  ;;  %2313 = vadd.xlane.f32.xlu1 %v2312_v33 }
 0x43c   :  { %v2561_v29 = vadd.f32 %v6679_v62, %v2560_v39  ;;  %v2211_v39 = vmul.f32 1.442695, %v2111_v0 }
 0x43d   :  { %v9042_v11 = vpop.xlane.xlu1 %2004  ;;  %v9044_v43 = vpop.xlane.xlu0 %1959 }
 0x43e   :  { %v9052_v4 = vpop.xlane.xlu2 %2034  ;;  %1126 = vrot.lane.b32.xlu0 %v11212_v34, %s7135_s15  ;;  %v2565_v5 = vsel %vm2564_vm12, %v6679_v62, %v2561_v29  ;;  %v9063_v62 = vpop.eup %6682 }
 0x43f   :  { %v2570_v27 = vsel %vm2567_vm2, %v2569_v15, %v2565_v5  ;;  %v2372_v32 = vsel %vm1882_vm3, %v9063_v62, 0.0  ;;  %v9080_v5 = vpop.f32.mrf.mxu1 }
 0x440   :  { %v3362_v14 = vmul.f32 %v8642_v37, %v2570_v27  ;;  %v9138_v44 = vsel %vm8175_vm6, %v9080_v5, -inf }
 0x442   :  { %2058 = vmax.xlane.f32.xlu1 %v2057_v30  ;;  %v3426_v20 = vpack.c.bf16 %v3362_v14, %v3362_v14 }
 0x443   :  { %1132 = vrot.lane.b32.xlu2 %v11209_v16, %s7135_s15 }
 0x444   :  { %v3498_v26 = vunpack.c.l.b16 %v3426_v20 }
 0x445   :  { %v9061_v3 = vpop.xlane.xlu1 %2031  ;;  %v2293_v61 = vpop.xlane.xlu0 %2292 }
 0x446   :  { %v9065_v55 = vpop.xlane.xlu2 %2010  ;;  %6684 = vrcp.f32 %v2293_v61  ;;  %v3502_v37 = vpack.c.b16 %v3498_v26, %v3497_v23  ;;  %v2582_v27 = vand.u32 2147483648, %v2293_v61  ;;  %vm2576_vm5 = vweird.f32 %v2293_v61 }
 0x447   :  { %v2580_v30 = vand.u32 2147483647, %v2293_v61 }
 0x448   :  { %6018 = vmatmul.msk.bf16.gmra.mxu2 %vm1882_vm3, %v3502_v37  ;;  %v2583_v21 = vor.u32 1.1754944e-38, %v2582_v27 }
 0x449   :  { %vm2581_vm4 = vcmp.eq.f32.partialorder %v2580_v30, 8.507059e+37 }
 0x44a   :  { %2373 = vadd.xlane.f32.xlu1 %v2372_v32  ;;  %v2096_v32 = vsub.f32 %v8583_v6, %v8855_v35 }
 0x44c   :  { %v6685_v33 = vpop.eup %6684  ;;  %v2181_v27 = vmul.f32 1.442695, %v2096_v32 }
 0x44d   :  { %v2572_v60 = vmul.f32 %v6685_v33, %v2293_v61  ;;  %v9072_v49 = vpop.xlane.xlu1 %1962  ;;  %vm2577_vm9 = vweird.f32 %v6685_v33  ;;  %v9084_v53 = vpop.xlane.xlu0 %1965 }
 0x44e   :  { %v2296_v29 = vpop.xlane.xlu2 %2295  ;;  %vm2578_vm13 = vmor %vm2576_vm5, %vm2577_vm9 }
 0x44f   :  { %v2573_v15 = vsub.f32 1.0, %v2572_v60  ;;  %6686 = vrcp.f32 %v2296_v29  ;;  %v2183_v60 = vmul.f32 1.442695, %v2097_v57  ;;  %v2596_v41 = vand.u32 2147483648, %v2296_v29 }
 0x450   :  { %6688 = vpow2.f32 %v2211_v39  ;;  %vm2590_vm14 = vweird.f32 %v2296_v29 }
 0x451   :  { %v2574_v56 = vmul.f32 %v6685_v33, %v2573_v15  ;;  %6690 = vpow2.f32 %v2183_v60 }
 0x452   :  { %2064 = vmax.xlane.f32.xlu1 %v2063_v7  ;;  %v2594_v7 = vand.u32 2147483647, %v2296_v29  ;;  %6692 = vpow2.f32 %v2181_v27 }
 0x453   :  { %v2575_v42 = vadd.f32 %v6685_v33, %v2574_v56 }
 0x454   :  { %vm2595_vm0 = vcmp.eq.f32.partialorder %v2594_v7, 8.507059e+37 }
 0x455   :  { %v6687_v14 = vpop.eup %6686  ;;  %v9086_v20 = vpop.xlane.xlu1 %2037  ;;  %v2579_v0 = vsel %vm2578_vm13, %v6685_v33, %v2575_v42  ;;  %v2597_v42 = vor.u32 1.1754944e-38, %v2596_v41 }
 0x456   :  { %v9088_v26 = vpop.eup %6688  ;;  %v2586_v23 = vmul.f32 %v6687_v14, %v2296_v29  ;;  %v9090_v37 = vpop.xlane.xlu2 %2040  ;;  %v2584_v61 = vsel %vm2581_vm4, %v2583_v21, %v2579_v0  ;;  %vm2591_vm8 = vweird.f32 %v6687_v14  ;;  %v11289_v21 = vld [vmem:[#allocation48_spill] sm:$0xff] }
 0x457   :  { %v2375_v50 = vsel %vm1882_vm3, %v9088_v26, 0.0  ;;  %v3363_v33 = vmul.f32 %v11286_v54, %v2584_v61  ;;  %vm2592_vm15 = vmor %vm2590_vm14, %vm2591_vm8  ;;  %v11291_v61 = vld [vmem:[#allocation28_spill] sm:$0xff] }
 0x458   :  { %v2587_v39 = vsub.f32 1.0, %v2586_v23  ;;  %v9103_v23 = vpop.f32.mrf.mxu1 }
 0x459   :  { %v3427_v29 = vpack.c.bf16 %v3363_v33, %v3363_v33 }
 0x45a   :  { %v2588_v15 = vmul.f32 %v6687_v14, %v2587_v39  ;;  %2376 = vadd.xlane.f32.xlu1 %v2375_v50  ;;  %v9106_v50 = vpop.eup %6690 }
 0x45b   :  { %11290 = vst [vmem:[#allocation48_spill] sm:$0xff] %v9106_v50  ;;  %v3568_v32 = vunpack.c.l.b16 %v3427_v29  ;;  %v9116_v33 = vpop.eup %6692 }
 0x45c   :  { %v2589_v56 = vadd.f32 %v6687_v14, %v2588_v15  ;;  %v2114_v15 = vsub.f32 %v11291_v61, %v9015_v24  ;;  %v11292_v24 = vld [vmem:[#allocation39_spill] sm:$0xff] }
 0x45d   :  { %v9097_v6 = vpop.xlane.xlu1 %2013  ;;  %v9099_v35 = vpop.xlane.xlu0 %1971 }
 0x45e   :  { %11287 = vst [vmem:[#allocation32_spill] sm:$0xff] %v9097_v6  ;;  %v2593_v57 = vsel %vm2592_vm15, %v6687_v14, %v2589_v56  ;;  %v9101_v30 = vpop.xlane.xlu2 %2019  ;;  %v2217_v27 = vmul.f32 1.442695, %v2114_v15 }
 0x45f   :  { %11288 = vst [vmem:[#allocation61_spill] sm:$0xff] %v9101_v30  ;;  %v2598_v0 = vsel %vm2595_vm0, %v2597_v42, %v2593_v57  ;;  %v2333_v42 = vsel %vm1882_vm3, %v9106_v50, 0.0 }
 0x460   :  { %v3364_v39 = vmul.f32 %v11289_v21, %v2598_v0  ;;  %v1799_v57 = vpop.f32.mrf.mxu1  ;;  %v2112_v0 = vsub.f32 %v11292_v24, %v8833_v47  ;;  %v2330_v21 = vsel %vm1882_vm3, %v9116_v33, 0.0 }
 0x461   :  { %v9125_v29 = vsel %vm8297_vm10, %v1799_v57, -inf }
 0x462   :  { %v3428_v54 = vpack.c.bf16 %v3364_v39, %v3364_v39  ;;  %11293 = vst [vmem:[#allocation28_spill] sm:$0xff] %v9125_v29  ;;  %v2072_v24 = vsel %vm1882_vm3, %v9125_v29, -inf }
 0x464   :  { %v3569_v41 = vunpack.c.l.b16 %v3428_v54  ;;  %v11294_v54 = vld [vmem:[#allocation38_spill] sm:$0xff] }
 0x465   :  { %v9110_v60 = vpop.xlane.xlu1 %1968  ;;  %v2302_v14 = vpop.xlane.xlu0 %2301  ;;  %11296 = vst [vmem:[#allocation38_spill] sm:$0xff] %v9138_v44 }
 0x466   :  { %v9112_v7 = vpop.xlane.xlu2 %1974  ;;  %6694 = vrcp.f32 %v2302_v14  ;;  %v3576_v56 = vpack.c.b16 %v3569_v41, %v3568_v32  ;;  %v2115_v41 = vsub.f32 %v11294_v54, %v9042_v11  ;;  %vm2618_vm10 = vweird.f32 %v2302_v14 }
 0x467   :  { %6696 = vpow2.f32 %v2217_v27  ;;  %v2622_v29 = vand.u32 2147483647, %v2302_v14 }
 0x468   :  { %2334 = vadd.xlane.f32.xlu0 %v2333_v42  ;;  %6019 = vmatmul.msk.bf16.vlgmr.msra.gmra.mxu3 %vm1882_vm3, %v3576_v56  ;;  %v2213_v56 = vmul.f32 1.442695, %v2112_v0  ;;  %v2219_v27 = vmul.f32 1.442695, %v2115_v41  ;;  %v2066_v0 = vsel %vm1882_vm3, %v9138_v44, -inf }
 0x469   :  { %vm2623_vm2 = vcmp.eq.f32.partialorder %v2622_v29, 8.507059e+37 }
 0x46c   :  { %v6695_v39 = vpop.eup %6694  ;;  %2331 = vadd.xlane.f32.xlu2 %v2330_v21  ;;  %v11298_v21 = vld [vmem:[#allocation29_spill] sm:$0xff] }
 0x46d   :  { %v2614_v61 = vmul.f32 %v6695_v39, %v2302_v14  ;;  %v2299_v15 = vpop.xlane.xlu1 %2298  ;;  %v9129_v32 = vpop.xlane.xlu0 %2046  ;;  %vm2619_vm6 = vweird.f32 %v6695_v39 }
 0x46e   :  { %11295 = vst [vmem:[#allocation39_spill] sm:$0xff] %v9129_v32  ;;  %6698 = vrcp.f32 %v2299_v15  ;;  %v9131_v47 = vpop.xlane.xlu2 %2049  ;;  %v9140_v57 = vpop.eup %6696  ;;  %vm9163_vm11 = vmor %vm2618_vm10, %vm2619_vm6  ;;  %v2610_v31 = vand.u32 2147483648, %v2299_v15  ;;  %v2608_v6 = vand.u32 2147483647, %v2299_v15  ;;  %vm2604_vm9 = vweird.f32 %v2299_v15 }
 0x46f   :  { %v2615_v42 = vsub.f32 1.0, %v2614_v61  ;;  %6700 = vpow2.f32 %v2213_v56  ;;  %11297 = vst [vmem:[#allocation62_spill] sm:$0xff] %v9140_v57  ;;  %v11299_v61 = vld [vmem:[#allocation31_spill] sm:$0xff]  ;;  %v2384_v44 = vsel %vm1882_vm3, %v9140_v57, 0.0 }
 0x470   :  { %2073 = vmax.xlane.f32.xlu0 %v2072_v24  ;;  %v2124_v52 = vsub.f32 %v11299_v61, %v9061_v3  ;;  %6702 = vpow2.f32 %v2219_v27  ;;  %v2611_v2 = vor.u32 1.1754944e-38, %v2610_v31  ;;  %vm2609_vm13 = vcmp.eq.f32.partialorder %v2608_v6, 8.507059e+37 }
 0x471   :  { %v2616_v11 = vmul.f32 %v6695_v39, %v2615_v42  ;;  %v2624_v42 = vand.u32 2147483648, %v2302_v14  ;;  %v9194_v6 = vsel %vm8200_vm7, %v9103_v23, -inf }
 0x472   :  { %v2237_v61 = vmul.f32 1.442695, %v2124_v52  ;;  %v2069_v8 = vsel %vm1882_vm3, %v9194_v6, -inf }
 0x473   :  { %1130 = vrot.lane.b32.xlu1 %v11298_v21, %s7135_s15  ;;  %v2617_v36 = vadd.f32 %v6695_v39, %v2616_v11  ;;  %v11301_v11 = vld [vmem:[#allocation26_spill] sm:$0xff] }
 0x474   :  { %v6699_v54 = vpop.eup %6698  ;;  %2067 = vmax.xlane.f32.xlu2 %v2066_v0  ;;  %v2113_v0 = vsub.f32 %v11301_v11, %v8930_v22 }
 0x475   :  { %v2600_v5 = vmul.f32 %v6699_v54, %v2299_v15  ;;  %v9148_v41 = vpop.xlane.xlu1 %2016  ;;  %v9150_v56 = vpop.xlane.xlu0 %2304  ;;  %vm2605_vm12 = vweird.f32 %v6699_v54  ;;  %v2621_v14 = vsel %vm9163_vm11, %v6695_v39, %v2617_v36 }
 0x476   :  { %11300 = vst [vmem:[#allocation29_spill] sm:$0xff] %v9148_v41  ;;  %v9152_v24 = vpop.xlane.xlu2 %2307  ;;  %6704 = vrcp.f32 %v9150_v56  ;;  %v9158_v27 = vpop.eup %6700  ;;  %v2215_v11 = vmul.f32 1.442695, %v2113_v0  ;;  %vm2606_vm5 = vmor %vm2604_vm9, %vm2605_vm12  ;;  %vm2632_vm8 = vweird.f32 %v9150_v56 }
 0x477   :  { %v2601_v3 = vsub.f32 1.0, %v2600_v5  ;;  %6706 = vrcp.f32 %v9152_v24  ;;  %v2625_v5 = vor.u32 1.1754944e-38, %v2624_v42  ;;  %v9169_v32 = vpop.eup %6702  ;;  %v2378_v22 = vsel %vm1882_vm3, %v9158_v27, 0.0  ;;  %v11306_v42 = vld [vmem:[#allocation53_spill] sm:$0xff] }
 0x478   :  { %2385 = vadd.xlane.f32.xlu0 %v2384_v44  ;;  %11304 = vst [vmem:[#allocation31_spill] sm:$0xff] %v9169_v32  ;;  %v11305_v44 = vld [vmem:[#allocation50_spill] sm:$0xff]  ;;  %6708 = vpow2.f32 %v2237_v61  ;;  %v2101_v0 = vsub.f32 %v11306_v42, %v9072_v49  ;;  %v11309_v61 = vld [vmem:[#allocation33_spill] sm:$0xff]  ;;  %v11310_v49 = vld [vmem:[#allocation51_spill] sm:$0xff]  ;;  %vm2646_vm14 = vweird.f32 %v9152_v24 }
 0x479   :  { %v2602_v30 = vmul.f32 %v6699_v54, %v2601_v3  ;;  %v2098_v3 = vsub.f32 %v11305_v44, %v8962_v51  ;;  %v2626_v41 = vsel %vm2623_vm2, %v2625_v5, %v2621_v14  ;;  %11308 = vst [vmem:[#allocation50_spill] sm:$0xff] %v9194_v6  ;;  %6710 = vpow2.f32 %v2215_v11  ;;  %v11311_v42 = vld [vmem:[#allocation41_spill] sm:$0xff] }
 0x47a   :  { %v3366_v5 = vmul.f32 %v11309_v61, %v2626_v41  ;;  %v2123_v44 = vsub.f32 %v11310_v49, %v8993_v17  ;;  %v2191_v23 = vmul.f32 1.442695, %v2101_v0  ;;  %v2638_v0 = vand.u32 2147483648, %v9150_v56 }
 0x47b   :  { %v2603_v57 = vadd.f32 %v6699_v54, %v2602_v30 }
 0x47c   :  { %v9173_v52 = vpop.eup %6704  ;;  %2379 = vadd.xlane.f32.xlu2 %v2378_v22  ;;  %v3430_v17 = vpack.c.bf16 %v3366_v5, %v3366_v5  ;;  %6712 = vpow2.f32 %v2191_v23 }
 0x47d   :  { %v9177_v39 = vpop.eup %6706  ;;  %v2607_v36 = vsel %vm2606_vm5, %v6699_v54, %v2603_v57  ;;  %v2628_v30 = vmul.f32 %v9173_v52, %v9150_v56  ;;  %v9181_v29 = vpop.xlane.xlu1 %2043  ;;  %v2387_v54 = vsel %vm1882_vm3, %v9169_v32, 0.0  ;;  %vm2633_vm7 = vweird.f32 %v9173_v52 }
 0x47e   :  { %v9183_v15 = vpop.xlane.xlu0 %2310  ;;  %v2612_v51 = vsel %vm2609_vm13, %v2611_v2, %v2607_v36  ;;  %v2642_v31 = vmul.f32 %v9177_v39, %v9152_v24  ;;  %v9189_v14 = vpop.xlane.xlu2 %2025  ;;  %v2185_v2 = vmul.f32 1.442695, %v2098_v3  ;;  %vm2647_vm4 = vweird.f32 %v9177_v39  ;;  %vm9217_vm15 = vmor %vm2632_vm8, %vm2633_vm7 }
 0x47f   :  { %11307 = vst [vmem:[#allocation26_spill] sm:$0xff] %v9189_v14  ;;  %v2629_v57 = vsub.f32 1.0, %v2628_v30  ;;  %v3365_v14 = vmul.f32 %v11311_v42, %v2612_v51  ;;  %v9207_v41 = vpop.eup %6708  ;;  %v2652_v51 = vand.u32 2147483648, %v9152_v24  ;;  %vm9234_vm0 = vmor %vm2646_vm14, %vm2647_vm4 }
 0x480   :  { %v2643_v22 = vsub.f32 1.0, %v2642_v31  ;;  %2388 = vadd.xlane.f32.xlu0 %v2387_v54  ;;  %11312 = vst [vmem:[#allocation53_spill] sm:$0xff] %v9207_v41  ;;  %v9226_v49 = vpop.eup %6710 }
 0x481   :  { %v2630_v36 = vmul.f32 %v9173_v52, %v2629_v57  ;;  %v3429_v3 = vpack.c.bf16 %v3365_v14, %v3365_v14  ;;  %v2650_v57 = vand.u32 2147483647, %v9152_v24  ;;  %v2636_v14 = vand.u32 2147483647, %v9150_v56 }
 0x482   :  { %v2644_v30 = vmul.f32 %v9177_v39, %v2643_v22  ;;  %v2653_v23 = vor.u32 1.1754944e-38, %v2652_v51 }
 0x483   :  { %v2631_v11 = vadd.f32 %v9173_v52, %v2630_v36  ;;  %v3570_v22 = vunpack.c.l.b16 %v3429_v3  ;;  %v11316_v36 = vld [vmem:[#allocation34_spill] sm:$0xff]  ;;  %v2414_v3 = vsel %vm1882_vm3, %v9207_v41, 0.0  ;;  %vm2651_vm6 = vcmp.eq.f32.partialorder %v2650_v57, 8.507059e+37  ;;  %v11320_v41 = vld [vmem:[#allocation43_spill] sm:$0xff] }
 0x484   :  { %v2645_v31 = vadd.f32 %v9177_v39, %v2644_v30  ;;  %2070 = vmax.xlane.f32.xlu2 %v2069_v8  ;;  %v2099_v42 = vsub.f32 %v11316_v36, %v9029_v19  ;;  %v11317_v8 = vld [vmem:[#allocation30_spill] sm:$0xff]  ;;  %v2639_v36 = vor.u32 1.1754944e-38, %v2638_v0  ;;  %vm2637_vm10 = vcmp.eq.f32.partialorder %v2636_v14, 8.507059e+37 }
 0x485   :  { %v9222_v61 = vpop.xlane.xlu1 %2022  ;;  %v2103_v24 = vsub.f32 %v11317_v8, %v9110_v60  ;;  %v2635_v19 = vsel %vm9217_vm15, %v9173_v52, %v2631_v11  ;;  %v3571_v60 = vunpack.c.l.b16 %v3430_v17  ;;  %v2235_v8 = vmul.f32 1.442695, %v2123_v44  ;;  %v11322_v11 = vld [vmem:[#allocation35_spill] sm:$0xff] }
 0x486   :  { %11315 = vst [vmem:[#allocation33_spill] sm:$0xff] %v9222_v61  ;;  %v9224_v5 = vpop.xlane.xlu0 %2319  ;;  %v9238_v56 = vpop.xlane.xlu2 %2052  ;;  %v2649_v61 = vsel %vm9234_vm0, %v9177_v39, %v2645_v31  ;;  %v2116_v32 = vsub.f32 %v11320_v41, %v9034_v59  ;;  %v2640_v31 = vsel %vm2637_vm10, %v2639_v36, %v2635_v19  ;;  %v2187_v50 = vmul.f32 1.442695, %v2099_v42  ;;  %v11323_v59 = vld [vmem:[#allocation44_spill] sm:$0xff] }
 0x487   :  { %6714 = vrcp.f32 %v9224_v5  ;;  %v3577_v6 = vpack.c.b16 %v3571_v60, %v3570_v22  ;;  %v2195_v30 = vmul.f32 1.442695, %v2103_v24  ;;  %v2654_v39 = vsel %vm2651_vm6, %v2653_v23, %v2649_v61 }
 0x488   :  { %6716 = vpow2.f32 %v2185_v2  ;;  %2415 = vadd.xlane.f32.xlu0 %v2414_v3  ;;  %v2381_v52 = vsel %vm1882_vm3, %v9226_v49, 0.0  ;;  %v9254_v2 = vpop.eup %6712  ;;  %v2125_v44 = vsub.f32 %v11322_v11, %v9052_v4  ;;  %v2100_v41 = vsub.f32 %v11323_v59, %v9044_v43 }
 0x489   :  { %6020 = vmatmul.msk.bf16.gmra.mxu3 %vm1882_vm3, %v3577_v6  ;;  %11321 = vst [vmem:[#allocation51_spill] sm:$0xff] %v9254_v2  ;;  %6718 = vpow2.f32 %v2235_v8  ;;  %v3367_v6 = vmul.f32 %v8807_v9, %v2640_v31  ;;  %v3368_v57 = vmul.f32 %v8827_v48, %v2654_v39  ;;  %v2221_v14 = vmul.f32 1.442695, %v2116_v32 }
 0x48a   :  { %6720 = vpow2.f32 %v2195_v30  ;;  %v2345_v43 = vsel %vm1882_vm3, %v9254_v2, 0.0  ;;  %v2239_v22 = vmul.f32 1.442695, %v2125_v44  ;;  %v2189_v9 = vmul.f32 1.442695, %v2100_v41 }
 0x48b   :  { %6722 = vpow2.f32 %v2187_v50  ;;  %v3431_v48 = vpack.c.bf16 %v3367_v6, %v3367_v6  ;;  %v3432_v32 = vpack.c.bf16 %v3368_v57, %v3368_v57  ;;  %vm2702_vm12 = vweird.f32 %v9224_v5 }
 0x48c   :  { %2382 = vadd.xlane.f32.xlu2 %v2381_v52  ;;  %v2708_v52 = vand.u32 2147483648, %v9224_v5  ;;  %v2706_v41 = vand.u32 2147483647, %v9224_v5 }
 0x48d   :  { %v9258_v17 = vpop.eup %6714  ;;  %v9262_v51 = vpop.xlane.xlu1 %1977  ;;  %v3572_v36 = vunpack.c.l.b16 %v3431_v48  ;;  %v3573_v8 = vunpack.c.l.b16 %v3432_v32 }
 0x48e   :  { %v9264_v0 = vpop.xlane.xlu0 %2367  ;;  %v9268_v54 = vpop.eup %6716  ;;  %v2698_v4 = vmul.f32 %v9258_v17, %v9224_v5  ;;  %vm2703_vm11 = vweird.f32 %v9258_v17  ;;  %v2709_v48 = vor.u32 1.1754944e-38, %v2708_v52  ;;  %vm2707_vm9 = vcmp.eq.f32.partialorder %v2706_v41, 8.507059e+37 }
 0x48f   :  { %v9272_v61 = vpop.xlane.xlu2 %2322  ;;  %6724 = vrcp.f32 %v9264_v0  ;;  %v9279_v3 = vpop.eup %6718  ;;  %v2336_v50 = vsel %vm1882_vm3, %v9268_v54, 0.0  ;;  %vm9310_vm2 = vmor %vm2702_vm12, %vm2703_vm11  ;;  %vm2926_vm4 = vweird.f32 %v9264_v0 }
 0x490   :  { %v2699_v42 = vsub.f32 1.0, %v2698_v4  ;;  %2346 = vadd.xlane.f32.xlu0 %v2345_v43  ;;  %6726 = vrcp.f32 %v9272_v61  ;;  %11324 = vst [vmem:[#allocation41_spill] sm:$0xff] %v9279_v3  ;;  %v9284_v19 = vpop.eup %6720  ;;  %v3578_v43 = vpack.c.b16 %v3573_v8, %v3572_v36  ;;  %vm2716_vm7 = vweird.f32 %v9272_v61 }
 0x491   :  { %6728 = vpow2.f32 %v2221_v14  ;;  %11325 = vst [vmem:[#allocation34_spill] sm:$0xff] %v9284_v19  ;;  %v9286_v60 = vpop.eup %6722  ;;  %v2351_v44 = vsel %vm1882_vm3, %v9284_v19, 0.0  ;;  %v2930_v14 = vand.u32 2147483647, %v9264_v0 }
 0x492   :  { %v2700_v24 = vmul.f32 %v9258_v17, %v2699_v42  ;;  %6730 = vrcp.f32 %v9183_v15  ;;  %11326 = vst [vmem:[#allocation30_spill] sm:$0xff] %v9286_v60  ;;  %v2339_v32 = vsel %vm1882_vm3, %v9286_v60, 0.0 }
 0x493   :  { %6732 = vpow2.f32 %v2239_v22  ;;  %vm9366_vm14 = vcmp.eq.f32.partialorder %v2930_v14, 8.507059e+37 }
 0x494   :  { %2337 = vadd.xlane.f32.xlu2 %v2336_v50  ;;  %6734 = vpow2.f32 %v2189_v9  ;;  %v2701_v39 = vadd.f32 %v9258_v17, %v2700_v24 }
 0x495   :  { %v9288_v23 = vpop.xlane.xlu1 %2316  ;;  %v9290_v30 = vpop.eup %6724 }
 0x496   :  { %6736 = vrcp.f32 %v9288_v23  ;;  %v9295_v31 = vpop.eup %6726  ;;  %v2922_v11 = vmul.f32 %v9290_v30, %v9264_v0  ;;  %v9306_v6 = vpop.xlane.xlu0 %2325  ;;  %v2705_v42 = vsel %vm9310_vm2, %v9258_v17, %v2701_v39  ;;  %vm2927_vm5 = vweird.f32 %v9290_v30 }
 0x497   :  { %v9302_v59 = vpop.eup %6728  ;;  %v2712_v5 = vmul.f32 %v9295_v31, %v9272_v61  ;;  %6738 = vrcp.f32 %v9306_v6  ;;  %v2710_v36 = vsel %vm2707_vm9, %v2709_v48, %v2705_v42  ;;  %vm9362_vm8 = vmor %vm2926_vm4, %vm2927_vm5  ;;  %vm2688_vm15 = vweird.f32 %v9288_v23 }
 0x498   :  { %11327 = vst [vmem:[#allocation43_spill] sm:$0xff] %v9302_v59  ;;  %2352 = vadd.xlane.f32.xlu0 %v2351_v44  ;;  %v9308_v57 = vpop.eup %6730  ;;  %v2923_v4 = vsub.f32 1.0, %v2922_v11  ;;  %v2390_v17 = vsel %vm1882_vm3, %v9302_v59, 0.0  ;;  %v2411_v44 = vsel %vm1882_vm3, %v9279_v3, 0.0  ;;  %vm2717_vm0 = vweird.f32 %v9295_v31 }
 0x499   :  { %v9314_v22 = vpop.eup %6732  ;;  %6021 = vmatmul.msk.bf16.gmra.mxu3 %vm1882_vm3, %v3578_v43  ;;  %v9329_v50 = vmul.f32 %v9308_v57, %v9183_v15  ;;  %v2713_v11 = vsub.f32 1.0, %v2712_v5  ;;  %v2932_v43 = vand.u32 2147483648, %v9264_v0  ;;  %v3372_v5 = vmul.f32 %v8877_v63, %v2710_v36 }
 0x49a   :  { %11330 = vst [vmem:[#allocation35_spill] sm:$0xff] %v9314_v22  ;;  %v9321_v9 = vpop.eup %6734  ;;  %v2924_v8 = vmul.f32 %v9290_v30, %v2923_v4  ;;  %v2417_v41 = vsel %vm1882_vm3, %v9314_v22, 0.0  ;;  %vm2730_vm11 = vweird.f32 %v9306_v6 }
 0x49b   :  { %11331 = vst [vmem:[#allocation44_spill] sm:$0xff] %v9321_v9  ;;  %v9346_v4 = vsel %vm1882_vm3, %v9321_v9, 0.0  ;;  %v2657_v48 = vsub.f32 1.0, %v9329_v50  ;;  %v2714_v2 = vmul.f32 %v9295_v31, %v2713_v11  ;;  %v3436_v60 = vpack.c.bf16 %v3372_v5, %v3372_v5 }
 0x49c   :  { %v6737_v24 = vpop.eup %6736  ;;  %2340 = vadd.xlane.f32.xlu2 %v2339_v32  ;;  %v2694_v32 = vand.u32 2147483648, %v9288_v23  ;;  %v2925_v19 = vadd.f32 %v9290_v30, %v2924_v8 }
 0x49d   :  { %v2684_v39 = vmul.f32 %v6737_v24, %v9288_v23  ;;  %v9335_v52 = vpop.xlane.xlu1 %2364  ;;  %2391 = vadd.xlane.f32.xlu1 %v2390_v17  ;;  %v9352_v17 = vpop.eup %6738  ;;  %vm2689_vm13 = vweird.f32 %v6737_v24 }
 0x49e   :  { %6740 = vrcp.f32 %v9335_v52  ;;  %v2726_v63 = vmul.f32 %v9352_v17, %v9306_v6  ;;  %vm2690_vm6 = vmor %vm2688_vm15, %vm2689_vm13  ;;  %v2695_v0 = vor.u32 1.1754944e-38, %v2694_v32  ;;  %v2929_v14 = vsel %vm9362_vm8, %v9290_v30, %v2925_v19  ;;  %v9383_v32 = vpop.xlane.xlu2 %2370 }
 0x49f   :  { %v2685_v42 = vsub.f32 1.0, %v2684_v39  ;;  %v2692_v39 = vand.u32 2147483647, %v9288_v23  ;;  %v2715_v23 = vadd.f32 %v9295_v31, %v2714_v2  ;;  %vm2731_vm12 = vweird.f32 %v9352_v17  ;;  %vm9406_vm13 = vmor %vm2716_vm7, %vm2717_vm0 }
 0x4a0   :  { %v2727_v50 = vsub.f32 1.0, %v2726_v63  ;;  %v2734_v19 = vand.u32 2147483647, %v9306_v6  ;;  %v2736_v2 = vand.u32 2147483648, %v9306_v6  ;;  %v2722_v63 = vand.u32 2147483648, %v9272_v61  ;;  %vm9397_vm9 = vmor %vm2730_vm11, %vm2731_vm12 }
 0x4a1   :  { %v2686_v22 = vmul.f32 %v6737_v24, %v2685_v42  ;;  %v2933_v42 = vor.u32 1.1754944e-38, %v2932_v43  ;;  %vm2693_vm10 = vcmp.eq.f32.partialorder %v2692_v39, 8.507059e+37  ;;  %6742 = vrcp.f32 %v9383_v32 }
 0x4a2   :  { %v2728_v59 = vmul.f32 %v9352_v17, %v2727_v50  ;;  %v3646_v50 = vunpack.c.l.b16 %v3436_v60  ;;  %vm2912_vm5 = vweird.f32 %v9335_v52  ;;  %vm2735_vm4 = vcmp.eq.f32.partialorder %v2734_v19, 8.507059e+37 }
 0x4a3   :  { %v2687_v9 = vadd.f32 %v6737_v24, %v2686_v22  ;;  %vm2661_vm15 = vweird.f32 %v9308_v57  ;;  %vm2660_vm0 = vweird.f32 %v9183_v15 }
 0x4a4   :  { %v6741_v11 = vpop.eup %6740  ;;  %2412 = vadd.xlane.f32.xlu2 %v2411_v44 }
 0x4a5   :  { %v2691_v3 = vsel %vm2690_vm6, %v6737_v24, %v2687_v9  ;;  %v2908_v43 = vmul.f32 %v6741_v11, %v9335_v52  ;;  %v9377_v22 = vpop.xlane.xlu1 %2055  ;;  %2418 = vadd.xlane.f32.xlu1 %v2417_v41  ;;  %v2934_v9 = vsel %vm9366_vm14, %v2933_v42, %v2929_v14  ;;  %v2729_v24 = vadd.f32 %v9352_v17, %v2728_v59  ;;  %vm2662_vm6 = vmor %vm2660_vm0, %vm2661_vm15 }
 0x4a6   :  { %v2696_v5 = vsel %vm2693_vm10, %v2695_v0, %v2691_v3  ;;  %v2918_v3 = vand.u32 2147483648, %v9335_v52  ;;  %vm2913_vm2 = vweird.f32 %v6741_v11  ;;  %v3388_v60 = vmul.f32 %v8910_v58, %v2934_v9  ;;  %v11340_v58 = vld [vmem:[#allocation24_spill] sm:$0xff] }
 0x4a7   :  { %v3371_v44 = vmul.f32 %v8954_v25, %v2696_v5  ;;  %v2909_v30 = vsub.f32 1.0, %v2908_v43  ;;  %v2916_v25 = vand.u32 2147483647, %v9335_v52  ;;  %v2733_v6 = vsel %vm9397_vm9, %v9352_v17, %v2729_v24  ;;  %vm2914_vm7 = vmor %vm2912_vm5, %vm2913_vm2 }
 0x4a8   :  { %v2658_v0 = vmul.f32 %v9308_v57, %v2657_v48  ;;  %v2719_v52 = vsel %vm9406_vm13, %v9295_v31, %v2715_v23  ;;  %v2737_v14 = vor.u32 1.1754944e-38, %v2736_v2  ;;  %v2919_v43 = vor.u32 1.1754944e-38, %v2918_v3 }
 0x4a9   :  { %v3435_v41 = vpack.c.bf16 %v3371_v44, %v3371_v44  ;;  %v2910_v39 = vmul.f32 %v6741_v11, %v2909_v30  ;;  %vm2917_vm8 = vcmp.eq.f32.partialorder %v2916_v25, 8.507059e+37  ;;  %v2723_v30 = vor.u32 1.1754944e-38, %v2722_v63 }
 0x4aa   :  { %v2738_v48 = vsel %vm2735_vm4, %v2737_v14, %v2733_v6  ;;  %v11341_v31 = vand.u32 2147483647, %v9272_v61  ;;  %v3452_v23 = vpack.c.bf16 %v3388_v60, %v3388_v60  ;;  %v2659_v19 = vadd.f32 %v9308_v57, %v2658_v0 }
 0x4ab   :  { %v3645_v8 = vunpack.c.l.b16 %v3435_v41  ;;  %v2911_v42 = vadd.f32 %v6741_v11, %v2910_v39  ;;  %v3374_v3 = vmul.f32 %v8959_v38, %v2738_v48  ;;  %v2666_v61 = vand.u32 2147483648, %v9183_v15 }
 0x4ac   :  { %2343 = vadd.xlane.f32.xlu2 %v9346_v4  ;;  %1124 = vrot.lane.b32.xlu0 %v11340_v58, %s7135_s15  ;;  %vm2721_vm14 = vcmp.eq.f32.partialorder %v11341_v31, 8.507059e+37  ;;  %v9426_v4 = vpop.eup %6742  ;;  %v2664_v41 = vand.u32 2147483647, %v9183_v15  ;;  %v3800_v39 = vunpack.c.l.b16 %v3452_v23  ;;  %v2663_v36 = vsel %vm2662_vm6, %v9308_v57, %v2659_v19  ;;  %v11342_v19 = vld [vmem:[#allocation25_spill] sm:$0xff] }
 0x4ad   :  { %v3653_v5 = vpack.c.b16 %v3646_v50, %v3645_v8  ;;  %v2915_v44 = vsel %vm2914_vm7, %v6741_v11, %v2911_v42  ;;  %v2314_v17 = vpop.xlane.xlu1 %2313  ;;  %v2724_v2 = vsel %vm2721_vm14, %v2723_v30, %v2719_v52  ;;  %v2936_v63 = vmul.f32 %v9426_v4, %v9383_v32 }
 0x4ae   :  { %v2920_v9 = vsel %vm2917_vm8, %v2919_v43, %v2915_v44  ;;  %6744 = vrcp.f32 %v2314_v17  ;;  %v3373_v25 = vmul.f32 %v8925_v10, %v2724_v2  ;;  %v3438_v8 = vpack.c.bf16 %v3374_v3, %v3374_v3 }
 0x4af   :  { %v3387_v24 = vmul.f32 %v8983_v46, %v2920_v9  ;;  %6023 = vmatmul.msk.bf16.vlgmr.msrb.gmra.mxu0 %vm1882_vm3, %v3653_v5  ;;  %v2667_v6 = vor.u32 1.1754944e-38, %v2666_v61  ;;  %vm2665_vm10 = vcmp.eq.f32.partialorder %v2664_v41, 8.507059e+37  ;;  %v2937_v10 = vsub.f32 1.0, %v2936_v63 }
 0x4b0   :  { %v3437_v15 = vpack.c.bf16 %v3373_v25, %v3373_v25  ;;  %v2680_v52 = vand.u32 2147483648, %v2314_v17  ;;  %v2678_v43 = vand.u32 2147483647, %v2314_v17  ;;  %v3648_v5 = vunpack.c.l.b16 %v3438_v8 }
 0x4b1   :  { %v3451_v11 = vpack.c.bf16 %v3387_v24, %v3387_v24  ;;  %v2668_v0 = vsel %vm2665_vm10, %v2667_v6, %v2663_v36  ;;  %vm2674_vm12 = vweird.f32 %v2314_v17  ;;  %v2938_v9 = vmul.f32 %v9426_v4, %v2937_v10  ;;  %v9465_v10 = vpop.xlane.xlu2 %2061 }
 0x4b2   :  { %v3647_v57 = vunpack.c.l.b16 %v3437_v15  ;;  %v3369_v30 = vmul.f32 %v8844_v13, %v2668_v0  ;;  %v2681_v48 = vor.u32 1.1754944e-38, %v2680_v52  ;;  %vm2679_vm9 = vcmp.eq.f32.partialorder %v2678_v43, 8.507059e+37  ;;  %v11343_v15 = vld [vmem:[#allocation27_spill] sm:$0xff] }
 0x4b3   :  { %v3799_v46 = vunpack.c.l.b16 %v3451_v11  ;;  %v2939_v13 = vadd.f32 %v9426_v4, %v2938_v9  ;;  %vm2941_vm5 = vweird.f32 %v9426_v4  ;;  %v2946_v61 = vand.u32 2147483648, %v9383_v32 }
 0x4b4   :  { %v6745_v50 = vpop.eup %6744  ;;  %v3654_v24 = vpack.c.b16 %v3648_v5, %v3647_v57  ;;  %v3433_v11 = vpack.c.bf16 %v3369_v30, %v3369_v30  ;;  %vm2940_vm13 = vweird.f32 %v9383_v32  ;;  %v2944_v41 = vand.u32 2147483647, %v9383_v32 }
 0x4b5   :  { %v3807_v59 = vpack.c.b16 %v3800_v39, %v3799_v46  ;;  %v2670_v60 = vmul.f32 %v6745_v50, %v2314_v17  ;;  %v9438_v38 = vpop.xlane.xlu1 %2058  ;;  %vm2675_vm11 = vweird.f32 %v6745_v50  ;;  %vm2942_vm7 = vmor %vm2940_vm13, %vm2941_vm5  ;;  %v2105_v0 = vsub.f32 %v11343_v15, %v9112_v7 }
 0x4b6   :  { %vm2676_vm2 = vmor %vm2674_vm12, %vm2675_vm11  ;;  %v3574_v39 = vunpack.c.l.b16 %v3433_v11  ;;  %vm2945_vm4 = vcmp.eq.f32.partialorder %v2944_v41, 8.507059e+37  ;;  %v11344_v11 = vld [vmem:[#allocation46_spill] sm:$0xff] }
 0x4b7   :  { %v2671_v42 = vsub.f32 1.0, %v2670_v60  ;;  %6031 = vmatmul.msk.bf16.vlgmr.msrb.gmra.mxu2 %vm1882_vm3, %v3807_v59  ;;  %v2947_v59 = vor.u32 1.1754944e-38, %v2946_v61 }
 0x4b9   :  { %v2672_v14 = vmul.f32 %v6745_v50, %v2671_v42  ;;  %v9460_v42 = vpop.xlane.xlu0 %2328 }
 0x4ba   :  { %vm2744_vm10 = vweird.f32 %v9460_v42 }
 0x4bb   :  { %v2673_v44 = vadd.f32 %v6745_v50, %v2672_v14 }
 0x4bd   :  { %v2677_v31 = vsel %vm2676_vm2, %v6745_v50, %v2673_v44  ;;  %v2374_v23 = vpop.xlane.xlu1 %2373  ;;  %v2128_v50 = vsub.f32 %v8849_v18, %v9181_v29  ;;  %v2199_v44 = vmul.f32 1.442695, %v2105_v0 }
 0x4be   :  { %v2682_v2 = vsel %vm2679_vm9, %v2681_v48, %v2677_v31  ;;  %6746 = vrcp.f32 %v2374_v23  ;;  %1128 = vrot.lane.b32.xlu1 %v11342_v19, %s7135_s15  ;;  %v2960_v6 = vand.u32 2147483648, %v2374_v23  ;;  %v2958_v29 = vand.u32 2147483647, %v2374_v23 }
 0x4bf   :  { %6024 = vmatmul.msk.bf16.gmra.mxu0 %vm1882_vm3, %v3654_v24  ;;  %v3370_v17 = vmul.f32 %v9032_v1, %v2682_v2  ;;  %v2943_v1 = vsel %vm2942_vm7, %v9426_v4, %v2939_v13  ;;  %v2245_v60 = vmul.f32 1.442695, %v2128_v50  ;;  %vm2954_vm14 = vweird.f32 %v2374_v23  ;;  %v1133_v2 = vpop.permute.xlu2 %1132 }
 0x4c0   :  { %v2948_v8 = vsel %vm2945_vm4, %v2947_v59, %v2943_v1  ;;  %vm2959_vm0 = vcmp.eq.f32.partialorder %v2958_v29, 8.507059e+37  ;;  %v2102_v13 = vsub.f32 %v11344_v11, %v9084_v53  ;;  %v11346_v53 = vld [vmem:[#allocation45_spill] sm:$0xff]  ;;  %v2106_v29 = vsub.f32 %v8917_v40, %v9262_v51  ;;  %v11349_v40 = vld [vmem:[#allocation40_spill] sm:$0xff] }
 0x4c1   :  { %v3434_v3 = vpack.c.bf16 %v3370_v17, %v3370_v17  ;;  %v3389_v4 = vmul.f32 %v8950_v12, %v2948_v8  ;;  %6748 = vpow2.f32 %v2245_v60  ;;  %v9471_v12 = vpop.permute.xlu0 %1126  ;;  %v2126_v59 = vsub.f32 %v11346_v53, %v9086_v20 }
 0x4c2   :  { %6750 = vrcp.f32 %v9460_v42  ;;  %v2193_v50 = vmul.f32 1.442695, %v2102_v13  ;;  %v2750_v60 = vand.u32 2147483648, %v9460_v42  ;;  %v3895_v20 = vunpack.c.l.b16 %v1133_v2 }
 0x4c3   :  { %v3575_v46 = vunpack.c.l.b16 %v3434_v3  ;;  %v3453_v5 = vpack.c.bf16 %v3389_v4, %v3389_v4  ;;  %6752 = vpow2.f32 %v2199_v44  ;;  %v2241_v0 = vmul.f32 1.442695, %v2126_v59 }
 0x4c4   :  { %v6747_v25 = vpop.eup %6746  ;;  %1162 = vrot.lane.b32.xlu2 %v11298_v21, %s7141_s22  ;;  %v2127_v51 = vsub.f32 %v11349_v40, %v9090_v37  ;;  %v11350_v37 = vld [vmem:[#allocation55_spill] sm:$0xff] }
 0x4c5   :  { %v2950_v63 = vmul.f32 %v6747_v25, %v2374_v23  ;;  %v3579_v36 = vpack.c.b16 %v3575_v46, %v3574_v39  ;;  %vm2955_vm8 = vweird.f32 %v6747_v25  ;;  %v9473_v7 = vpop.xlane.xlu1 %2064  ;;  %v3801_v48 = vunpack.c.l.b16 %v3453_v5  ;;  %v11345_v46 = vld [vmem:[#allocation36_spill] sm:$0xff] }
 0x4c6   :  { %1164 = vrot.lane.b32.xlu1 %v11209_v16, %s7141_s22  ;;  %vm2956_vm15 = vmor %vm2954_vm14, %vm2955_vm8  ;;  %v2961_v16 = vor.u32 1.1754944e-38, %v2960_v6  ;;  %v2117_v11 = vsub.f32 %v11350_v37, %v9065_v55 }
 0x4c7   :  { %v2951_v32 = vsub.f32 1.0, %v2950_v63  ;;  %6022 = vmatmul.msk.bf16.gmra.mxu3 %vm1882_vm3, %v3579_v36  ;;  %v9469_v30 = vpop.eup %6748 }
 0x4c8   :  { %v6751_v31 = vpop.eup %6750  ;;  %v2426_v23 = vsel %vm1882_vm3, %v9469_v30, 0.0 }
 0x4c9   :  { %v2952_v18 = vmul.f32 %v6747_v25, %v2951_v32  ;;  %v9479_v17 = vpop.eup %6752  ;;  %vm2745_vm6 = vweird.f32 %v6751_v31 }
 0x4ca   :  { %v2357_v39 = vsel %vm1882_vm3, %v9479_v17, 0.0  ;;  %vm9501_vm11 = vmor %vm2744_vm10, %vm2745_vm6 }
 0x4cb   :  { %v2953_v21 = vadd.f32 %v6747_v25, %v2952_v18 }
 0x4cd   :  { %v2957_v52 = vsel %vm2956_vm15, %v6747_v25, %v2953_v21  ;;  %v9485_v41 = vpop.xlane.xlu1 %2376  ;;  %v2104_v25 = vsub.f32 %v11345_v46, %v9099_v35  ;;  %v2748_v35 = vand.u32 2147483647, %v9460_v42 }
 0x4ce   :  { %v2962_v14 = vsel %vm2959_vm0, %v2961_v16, %v2957_v52  ;;  %vm2968_vm4 = vweird.f32 %v9485_v41 }
 0x4cf   :  { %v3390_v43 = vmul.f32 %v9063_v62, %v2962_v14  ;;  %v2740_v62 = vmul.f32 %v6751_v31, %v9460_v42  ;;  %v2197_v36 = vmul.f32 1.442695, %v2104_v25  ;;  %v2751_v14 = vor.u32 1.1754944e-38, %v2750_v60 }
 0x4d0   :  { %vm2749_vm12 = vcmp.eq.f32.partialorder %v2748_v35, 8.507059e+37 }
 0x4d1   :  { %v3454_v57 = vpack.c.bf16 %v3390_v43, %v3390_v43  ;;  %v2741_v3 = vsub.f32 1.0, %v2740_v62 }
 0x4d3   :  { %v3802_v9 = vunpack.c.l.b16 %v3454_v57  ;;  %v2742_v1 = vmul.f32 %v6751_v31, %v2741_v3  ;;  %v2201_v57 = vmul.f32 1.442695, %v2106_v29 }
 0x4d5   :  { %v3808_v24 = vpack.c.b16 %v3802_v9, %v3801_v48  ;;  %v2743_v32 = vadd.f32 %v6751_v31, %v2742_v1 }
 0x4d6   :  { %2427 = vadd.xlane.f32.xlu0 %v2426_v23 }
 0x4d7   :  { %6032 = vmatmul.msk.bf16.gmra.mxu2 %vm1882_vm3, %v3808_v24  ;;  %v2747_v16 = vsel %vm9501_vm11, %v6751_v31, %v2743_v32 }
 0x4d8   :  { %v2752_v48 = vsel %vm2749_vm12, %v2751_v14, %v2747_v16  ;;  %v2972_v14 = vand.u32 2147483647, %v9485_v41 }
 0x4d9   :  { %v3375_v3 = vmul.f32 %v8991_v28, %v2752_v48  ;;  %v2223_v28 = vmul.f32 1.442695, %v2117_v11 }
 0x4da   :  { %vm2973_vm15 = vcmp.eq.f32.partialorder %v2972_v14, 8.507059e+37 }
 0x4db   :  { %v9483_v61 = vpop.xlane.xlu0 %2334  ;;  %v3439_v32 = vpack.c.bf16 %v3375_v3, %v3375_v3 }
 0x4dc   :  { %vm2772_vm12 = vweird.f32 %v9483_v61 }
 0x4dd   :  { %v3649_v21 = vunpack.c.l.b16 %v3439_v32 }
 0x4de   :  { %2358 = vadd.xlane.f32.xlu0 %v2357_v39  ;;  %v2243_v39 = vmul.f32 1.442695, %v2127_v51 }
 0x4df   :  { %v2332_v63 = vpop.xlane.xlu2 %2331 }
 0x4e0   :  { %6754 = vrcp.f32 %v2332_v63  ;;  %v2764_v23 = vand.u32 2147483648, %v2332_v63  ;;  %v2762_v24 = vand.u32 2147483647, %v2332_v63  ;;  %vm2758_vm9 = vweird.f32 %v2332_v63 }
 0x4e1   :  { %6756 = vrcp.f32 %v9485_v41 }
 0x4e2   :  { %6758 = vpow2.f32 %v2193_v50  ;;  %v2765_v25 = vor.u32 1.1754944e-38, %v2764_v23  ;;  %vm2763_vm13 = vcmp.eq.f32.partialorder %v2762_v24, 8.507059e+37 }
 0x4e3   :  { %v9495_v8 = vpop.xlane.xlu0 %2073  ;;  %6760 = vpow2.f32 %v2197_v36 }
 0x4e4   :  { %6762 = vpow2.f32 %v2241_v0 }
 0x4e5   :  { %v1131_v6 = vpop.permute.xlu1 %1130  ;;  %6764 = vpow2.f32 %v2201_v57 }
 0x4e6   :  { %v6755_v18 = vpop.eup %6754  ;;  %v3894_v4 = vunpack.c.l.b16 %v1131_v6  ;;  %6766 = vrcp.f32 %v9483_v61 }
 0x4e7   :  { %v9505_v15 = vpop.eup %6756  ;;  %v2754_v52 = vmul.f32 %v6755_v18, %v2332_v63  ;;  %v9509_v42 = vpop.xlane.xlu2 %2067  ;;  %vm2759_vm2 = vweird.f32 %v6755_v18 }
 0x4e8   :  { %v3899_v43 = vpack.c.b16 %v3895_v20, %v3894_v4  ;;  %v9511_v5 = vpop.eup %6758  ;;  %v2964_v9 = vmul.f32 %v9505_v15, %v9485_v41  ;;  %vm2760_vm5 = vmor %vm2758_vm9, %vm2759_vm2  ;;  %vm2969_vm7 = vweird.f32 %v9505_v15 }
 0x4e9   :  { %v2755_v44 = vsub.f32 1.0, %v2754_v52  ;;  %v9517_v62 = vpop.eup %6760  ;;  %v2348_v2 = vsel %vm1882_vm3, %v9511_v5, 0.0  ;;  %vm9557_vm8 = vmor %vm2968_vm4, %vm2969_vm7 }
 0x4ea   :  { %3920 = vmatpush.bf16.msrb.mxu3 %v3899_v43  ;;  %v2965_v46 = vsub.f32 1.0, %v2964_v9  ;;  %v2354_v55 = vsel %vm1882_vm3, %v9517_v62, 0.0  ;;  %v9529_v63 = vpop.eup %6762 }
 0x4eb   :  { %v2756_v31 = vmul.f32 %v6755_v18, %v2755_v44  ;;  %v9524_v50 = vpop.xlane.xlu0 %2385  ;;  %v9535_v6 = vpop.eup %6764 }
 0x4ec   :  { %v2966_v60 = vmul.f32 %v9505_v15, %v2965_v46  ;;  %v9539_v29 = vpop.eup %6766  ;;  %v2360_v52 = vsel %vm1882_vm3, %v9535_v6, 0.0  ;;  %v11353_v46 = vld [vmem:[#allocation47_spill] sm:$0xff] }
 0x4ed   :  { %v2757_v13 = vadd.f32 %v6755_v18, %v2756_v31  ;;  %2349 = vadd.xlane.f32.xlu2 %v2348_v2  ;;  %v2768_v43 = vmul.f32 %v9539_v29, %v9483_v61  ;;  %vm2773_vm11 = vweird.f32 %v9539_v29 }
 0x4ee   :  { %v2967_v4 = vadd.f32 %v9505_v15, %v2966_v60  ;;  %vm9599_vm2 = vmor %vm2772_vm12, %vm2773_vm11 }
 0x4ef   :  { %v2761_v1 = vsel %vm2760_vm5, %v6755_v18, %v2757_v13  ;;  %v2380_v36 = vpop.xlane.xlu2 %2379  ;;  %v2420_v18 = vsel %vm1882_vm3, %v9529_v63, 0.0  ;;  %v2769_v11 = vsub.f32 1.0, %v2768_v43 }
 0x4f0   :  { %v2766_v53 = vsel %vm2763_vm13, %v2765_v25, %v2761_v1  ;;  %6768 = vrcp.f32 %v2380_v36  ;;  %2355 = vadd.xlane.f32.xlu1 %v2354_v55  ;;  %v2971_v9 = vsel %vm9557_vm8, %v9505_v15, %v2967_v4  ;;  %v2986_v2 = vand.u32 2147483647, %v2380_v36 }
 0x4f1   :  { %v3376_v59 = vmul.f32 %v9116_v33, %v2766_v53  ;;  %6770 = vpow2.f32 %v2243_v39  ;;  %vm2982_vm0 = vweird.f32 %v2380_v36  ;;  %v2130_v25 = vsub.f32 %v11353_v46, %v9131_v47 }
 0x4f2   :  { %1158 = vrot.lane.b32.xlu0 %v11212_v34, %s7141_s22  ;;  %6772 = vpow2.f32 %v2223_v28  ;;  %v2974_v34 = vand.u32 2147483648, %v9485_v41  ;;  %v2988_v41 = vand.u32 2147483648, %v2380_v36  ;;  %vm2987_vm10 = vcmp.eq.f32.partialorder %v2986_v2, 8.507059e+37 }
 0x4f3   :  { %v3440_v35 = vpack.c.bf16 %v3376_v59, %v3376_v59  ;;  %6774 = vrcp.f32 %v9524_v50  ;;  %v9553_v40 = vpop.xlane.xlu0 %2388  ;;  %v2770_v28 = vmul.f32 %v9539_v29, %v2769_v11  ;;  %v2249_v47 = vmul.f32 1.442695, %v2130_v25 }
 0x4f4   :  { %v2975_v23 = vor.u32 1.1754944e-38, %v2974_v34  ;;  %6776 = vrcp.f32 %v9553_v40  ;;  %v2778_v4 = vand.u32 2147483648, %v9483_v61  ;;  %vm3010_vm13 = vweird.f32 %v9524_v50 }
 0x4f5   :  { %2421 = vadd.xlane.f32.xlu2 %v2420_v18  ;;  %v3650_v20 = vunpack.c.l.b16 %v3440_v35 }
 0x4f6   :  { %v6769_v33 = vpop.eup %6768  ;;  %v2976_v13 = vsel %vm2973_vm15, %v2975_v23, %v2971_v9  ;;  %v2779_v9 = vor.u32 1.1754944e-38, %v2778_v4 }
 0x4f7   :  { %v2978_v0 = vmul.f32 %v6769_v33, %v2380_v36  ;;  %v9545_v16 = vpop.xlane.xlu2 %2070  ;;  %v3655_v51 = vpack.c.b16 %v3650_v20, %v3649_v21  ;;  %v9555_v44 = vpop.eup %6770  ;;  %vm2983_vm14 = vweird.f32 %v6769_v33  ;;  %v3391_v36 = vmul.f32 %v9088_v26, %v2976_v13 }
 0x4f8   :  { %2361 = vadd.xlane.f32.xlu1 %v2360_v52  ;;  %v9567_v31 = vpop.eup %6772  ;;  %v2423_v15 = vsel %vm1882_vm3, %v9555_v44, 0.0  ;;  %vm2984_vm6 = vmor %vm2982_vm0, %vm2983_vm14  ;;  %v2771_v21 = vadd.f32 %v9539_v29, %v2770_v28  ;;  %v2776_v26 = vand.u32 2147483647, %v9483_v61  ;;  %v11360_v28 = vld [vmem:[#allocation48_spill] sm:$0xff]  ;;  %vm3024_vm0 = vweird.f32 %v9553_v40 }
 0x4f9   :  { %v2979_v48 = vsub.f32 1.0, %v2978_v0  ;;  %6025 = vmatmul.msk.bf16.gmra.mxu0 %vm1882_vm3, %v3655_v51  ;;  %v9570_v37 = vpop.eup %6774  ;;  %v2393_v39 = vsel %vm1882_vm3, %v9567_v31, 0.0 }
 0x4fa   :  { %1160 = vrot.lane.b32.xlu0 %v11342_v19, %s7141_s22  ;;  %v2989_v19 = vor.u32 1.1754944e-38, %v2988_v41  ;;  %v3006_v1 = vmul.f32 %v9570_v37, %v9524_v50  ;;  %v9585_v32 = vpop.eup %6776  ;;  %v2775_v57 = vsel %vm9599_vm2, %v9539_v29, %v2771_v21  ;;  %vm2777_vm9 = vcmp.eq.f32.partialorder %v2776_v26, 8.507059e+37 }
 0x4fb   :  { %v2980_v24 = vmul.f32 %v6769_v33, %v2979_v48  ;;  %v3020_v20 = vmul.f32 %v9585_v32, %v9553_v40  ;;  %v3014_v41 = vand.u32 2147483647, %v9524_v50  ;;  %v2780_v11 = vsel %vm2777_vm9, %v2779_v9, %v2775_v57 }
 0x4fc   :  { %v3007_v35 = vsub.f32 1.0, %v3006_v1  ;;  %vm3011_vm5 = vweird.f32 %v9570_v37  ;;  %vm3025_vm14 = vweird.f32 %v9585_v32 }
 0x4fd   :  { %v2981_v3 = vadd.f32 %v6769_v33, %v2980_v24  ;;  %2424 = vadd.xlane.f32.xlu2 %v2423_v15  ;;  %v3021_v61 = vsub.f32 1.0, %v3020_v20  ;;  %v3016_v24 = vand.u32 2147483648, %v9524_v50  ;;  %vm9627_vm7 = vmor %vm3010_vm13, %vm3011_vm5  ;;  %vm9631_vm4 = vcmp.eq.f32.partialorder %v3014_v41, 8.507059e+37  ;;  %v11367_v41 = vld [vmem:[#allocation62_spill] sm:$0xff] }
 0x4fe   :  { %v3008_v14 = vmul.f32 %v9570_v37, %v3007_v35  ;;  %v3030_v35 = vand.u32 2147483648, %v9553_v40 }
 0x4ff   :  { %v2985_v55 = vsel %vm2984_vm6, %v6769_v33, %v2981_v3  ;;  %v9580_v53 = vpop.xlane.xlu2 %2382  ;;  %v3455_v33 = vpack.c.bf16 %v3391_v36, %v3391_v36  ;;  %v3022_v13 = vmul.f32 %v9585_v32, %v3021_v61  ;;  %v3017_v1 = vor.u32 1.1754944e-38, %v3016_v24 }
 0x500   :  { %v2990_v59 = vsel %vm2987_vm10, %v2989_v19, %v2985_v55  ;;  %6778 = vrcp.f32 %v9580_v53  ;;  %2394 = vadd.xlane.f32.xlu1 %v2393_v39  ;;  %v3009_v15 = vadd.f32 %v9570_v37, %v3008_v14  ;;  %v2131_v19 = vsub.f32 %v8891_v45, %v9238_v56  ;;  %vm9669_vm10 = vmor %vm3024_vm0, %vm3025_vm14 }
 0x501   :  { %v3392_v60 = vmul.f32 %v9158_v27, %v2990_v59  ;;  %v9597_v27 = vpop.xlane.xlu0 %2415  ;;  %6780 = vpow2.f32 %v2249_v47  ;;  %v3803_v48 = vunpack.c.l.b16 %v3455_v33  ;;  %v3028_v55 = vand.u32 2147483647, %v9553_v40 }
 0x502   :  { %v3377_v59 = vmul.f32 %v11360_v28, %v2780_v11  ;;  %v3013_v45 = vsel %vm9627_vm7, %v9570_v37, %v3009_v15  ;;  %v3023_v47 = vadd.f32 %v9585_v32, %v3022_v13  ;;  %vm2996_vm15 = vweird.f32 %v9580_v53 }
 0x503   :  { %v3456_v18 = vpack.c.bf16 %v3392_v60, %v3392_v60  ;;  %v3000_v37 = vand.u32 2147483647, %v9580_v53  ;;  %v3018_v33 = vsel %vm9631_vm4, %v3017_v1, %v3013_v45  ;;  %vm3029_vm11 = vcmp.eq.f32.partialorder %v3028_v55, 8.507059e+37 }
 0x504   :  { %v3027_v61 = vsel %vm9669_vm10, %v9585_v32, %v3023_v47  ;;  %v3441_v9 = vpack.c.bf16 %v3377_v59, %v3377_v59  ;;  %v3394_v24 = vmul.f32 %v11367_v41, %v3018_v33  ;;  %vm3150_vm13 = vweird.f32 %v9597_v27 }
 0x505   :  { %v3804_v0 = vunpack.c.l.b16 %v3456_v18  ;;  %v3002_v18 = vand.u32 2147483648, %v9580_v53  ;;  %vm3001_vm12 = vcmp.eq.f32.partialorder %v3000_v37, 8.507059e+37  ;;  %v3154_v37 = vand.u32 2147483647, %v9597_v27 }
 0x506   :  { %v9593_v34 = vpop.eup %6778 }
 0x507   :  { %v2992_v43 = vmul.f32 %v9593_v34, %v9580_v53  ;;  %v9606_v51 = vpop.xlane.xlu2 %2337  ;;  %v3809_v2 = vpack.c.b16 %v3804_v0, %v3803_v48  ;;  %v9620_v3 = vpop.eup %6780  ;;  %vm2997_vm8 = vweird.f32 %v9593_v34  ;;  %v2251_v53 = vmul.f32 1.442695, %v2131_v19 }
 0x508   :  { %6782 = vrcp.f32 %v9606_v51  ;;  %vm9664_vm6 = vmor %vm2996_vm15, %vm2997_vm8  ;;  %v9679_v14 = vsel %vm1882_vm3, %v9620_v3, 0.0  ;;  %v3003_v48 = vor.u32 1.1754944e-38, %v3002_v18  ;;  %v2792_v13 = vand.u32 2147483648, %v9606_v51 }
 0x509   :  { %6784 = vrcp.f32 %v9597_v27  ;;  %v2993_v23 = vsub.f32 1.0, %v2992_v43  ;;  %6033 = vmatmul.msk.bf16.gmra.mxu2 %vm1882_vm3, %v3809_v2  ;;  %v11365_v43 = vld [vmem:[#allocation58_spill] sm:$0xff]  ;;  %vm2786_vm9 = vweird.f32 %v9606_v51  ;;  %v2790_v25 = vand.u32 2147483647, %v9606_v51 }
 0x50a   :  { %v2132_v57 = vsub.f32 %v11365_v43, %v9377_v22  ;;  %v3458_v18 = vpack.c.bf16 %v3394_v24, %v3394_v24 }
 0x50b   :  { %v2994_v29 = vmul.f32 %v9593_v34, %v2993_v23  ;;  %v3031_v23 = vor.u32 1.1754944e-38, %v3030_v35  ;;  %vm2791_vm7 = vcmp.eq.f32.partialorder %v2790_v25, 8.507059e+37 }
 0x50c   :  { %v9702_v55 = vmul.f32 1.442695, %v2132_v57 }
 0x50d   :  { %v2995_v56 = vadd.f32 %v9593_v34, %v2994_v29  ;;  %v3032_v32 = vsel %vm3029_vm11, %v3031_v23, %v3027_v61  ;;  %v3156_v29 = vand.u32 2147483648, %v9597_v27  ;;  %v3806_v61 = vunpack.c.l.b16 %v3458_v18 }
 0x50e   :  { %v9625_v39 = vpop.eup %6782 }
 0x50f   :  { %v9637_v36 = vpop.eup %6784  ;;  %v2782_v50 = vmul.f32 %v9625_v39, %v9606_v51  ;;  %v9646_v60 = vpop.xlane.xlu2 %2340  ;;  %v2999_v40 = vsel %vm9664_vm6, %v9593_v34, %v2995_v56  ;;  %v11366_v34 = vld [vmem:[#allocation23_spill] sm:$0xff]  ;;  %vm2787_vm2 = vweird.f32 %v9625_v39  ;;  %v9712_v56 = vunpack.c.l.b16 %v3441_v9 }
 0x510   :  { %v9652_v21 = vpop.xlane.xlu1 %2391  ;;  %6786 = vrcp.f32 %v9646_v60  ;;  %v3146_v4 = vmul.f32 %v9637_v36, %v9597_v27  ;;  %v3004_v11 = vsel %vm3001_vm12, %v3003_v48, %v2999_v40  ;;  %vm9704_vm5 = vmor %vm2786_vm9, %vm2787_vm2  ;;  %v11370_v51 = vld [vmem:[#allocation31_spill] sm:$0xff]  ;;  %vm3151_vm8 = vweird.f32 %v9637_v36 }
 0x511   :  { %v2783_v20 = vsub.f32 1.0, %v2782_v50  ;;  %6788 = vrcp.f32 %v9652_v21  ;;  %v3393_v45 = vmul.f32 %v9226_v49, %v3004_v11  ;;  %v3395_v50 = vmul.f32 %v11370_v51, %v3032_v32  ;;  %vm9749_vm11 = vmor %vm3150_vm13, %vm3151_vm8 }
 0x512   :  { %v3147_v2 = vsub.f32 1.0, %v3146_v4  ;;  %6790 = vpow2.f32 %v2251_v53  ;;  %v9721_v4 = vor.u32 1.1754944e-38, %v3156_v29  ;;  %v3044_v26 = vand.u32 2147483648, %v9652_v21  ;;  %v11371_v29 = vld [vmem:[#allocation22_spill] sm:$0xff] }
 0x513   :  { %v2784_v52 = vmul.f32 %v9625_v39, %v2783_v20  ;;  %v2793_v20 = vor.u32 1.1754944e-38, %v2792_v13  ;;  %v3459_v43 = vpack.c.bf16 %v3395_v50, %v3395_v50  ;;  %vm3038_vm14 = vweird.f32 %v9652_v21 }
 0x514   :  { %v3148_v47 = vmul.f32 %v9637_v36, %v3147_v2  ;;  %v3045_v24 = vor.u32 1.1754944e-38, %v3044_v26  ;;  %vm2800_vm12 = vweird.f32 %v9646_v60  ;;  %v2806_v50 = vand.u32 2147483648, %v9646_v60 }
 0x515   :  { %1122 = vrot.lane.b32.xlu2 %v11366_v34, %s7135_s15  ;;  %v2785_v15 = vadd.f32 %v9625_v39, %v2784_v52  ;;  %v2804_v18 = vand.u32 2147483647, %v9646_v60 }
 0x516   :  { %v9691_v22 = vpop.eup %6786  ;;  %v3149_v57 = vadd.f32 %v9637_v36, %v3148_v47 }
 0x517   :  { %v9695_v19 = vpop.xlane.xlu2 %2412  ;;  %v6789_v46 = vpop.eup %6788  ;;  %v2796_v1 = vmul.f32 %v9691_v22, %v9646_v60  ;;  %v2789_v35 = vsel %vm9704_vm5, %v9625_v39, %v2785_v15  ;;  %v3457_v39 = vpack.c.bf16 %v3393_v45, %v3393_v45  ;;  %vm2801_vm0 = vweird.f32 %v9691_v22 }
 0x518   :  { %6792 = vrcp.f32 %v9695_v19  ;;  %v3034_v59 = vmul.f32 %v6789_v46, %v9652_v21  ;;  %v9725_v53 = vpop.eup %6790  ;;  %v2794_v0 = vsel %vm2791_vm7, %v2793_v20, %v2789_v35  ;;  %vm3039_vm4 = vweird.f32 %v6789_v46  ;;  %vm9759_vm2 = vmor %vm2800_vm12, %vm2801_vm0 }
 0x519   :  { %1156 = vrot.lane.b32.xlu1 %v11340_v58, %s7141_s22  ;;  %v2797_v49 = vsub.f32 1.0, %v2796_v1  ;;  %v3042_v58 = vand.u32 2147483647, %v9652_v21  ;;  %vm3040_vm15 = vmor %vm3038_vm14, %vm3039_vm4  ;;  %v3805_v2 = vunpack.c.l.b16 %v3457_v39  ;;  %v3378_v11 = vmul.f32 %v9268_v54, %v2794_v0 }
 0x51a   :  { %v3035_v33 = vsub.f32 1.0, %v3034_v59  ;;  %v3140_v13 = vand.u32 2147483647, %v9695_v19  ;;  %v3142_v25 = vand.u32 2147483648, %v9695_v19  ;;  %v11372_v59 = vld [vmem:[#allocation43_spill] sm:$0xff]  ;;  %v9743_v54 = vunpack.c.l.b16 %v3459_v43 }
 0x51b   :  { %v2798_v48 = vmul.f32 %v9691_v22, %v2797_v49  ;;  %vm3043_vm6 = vcmp.eq.f32.partialorder %v3042_v58, 8.507059e+37  ;;  %v3810_v1 = vpack.c.b16 %v3806_v61, %v3805_v2  ;;  %v3442_v47 = vpack.c.bf16 %v3378_v11, %v3378_v11  ;;  %v11379_v2 = vld [vmem:[#allocation49_spill] sm:$0xff] }
 0x51c   :  { %v3036_v40 = vmul.f32 %v6789_v46, %v3035_v33  ;;  %vm3136_vm9 = vweird.f32 %v9695_v19  ;;  %v3153_v58 = vsel %vm9749_vm11, %v9637_v36, %v3149_v57  ;;  %vm3141_vm13 = vcmp.eq.f32.partialorder %v3140_v13, 8.507059e+37  ;;  %v9777_v36 = vpop.xlane.xlu1 %2418 }
 0x51d   :  { %v2799_v28 = vadd.f32 %v9691_v22, %v2798_v48  ;;  %6034 = vmatmul.msk.bf16.gmra.mxu2 %vm1882_vm3, %v3810_v1  ;;  %v3652_v26 = vunpack.c.l.b16 %v3442_v47  ;;  %vm3155_vm7 = vcmp.eq.f32.partialorder %v3154_v37, 8.507059e+37  ;;  %vm2805_vm4 = vcmp.eq.f32.partialorder %v2804_v18, 8.507059e+37  ;;  %v11382_v18 = vld [vmem:[#allocation44_spill] sm:$0xff] }
 0x51e   :  { %v6793_v52 = vpop.eup %6792  ;;  %v3037_v9 = vadd.f32 %v6789_v46, %v3036_v40  ;;  %v3158_v61 = vsel %vm3155_vm7, %v9721_v4, %v3153_v58  ;;  %v2435_v4 = vsel %vm1882_vm3, %v9725_v53, 0.0  ;;  %v3892_v47 = vunpack.c.l.b16 %v9471_v12  ;;  %v9799_v58 = vpop.f32.mrf.mxu2 }
 0x51f   :  { %v3132_v23 = vmul.f32 %v6793_v52, %v9695_v19  ;;  %v9732_v41 = vpop.xlane.xlu2 %2343  ;;  %vm3137_vm10 = vweird.f32 %v6793_v52  ;;  %v2803_v0 = vsel %vm9759_vm2, %v9691_v22, %v2799_v28  ;;  %v2807_v19 = vor.u32 1.1754944e-38, %v2806_v50 }
 0x520   :  { %6794 = vrcp.f32 %v9732_v41  ;;  %v3041_v15 = vsel %vm3040_vm15, %v6789_v46, %v3037_v9  ;;  %vm3138_vm5 = vmor %vm3136_vm9, %vm3137_vm10  ;;  %v3656_v57 = vpack.c.b16 %v3652_v26, %v9712_v56  ;;  %v11377_v9 = vld [vmem:[#allocation41_spill] sm:$0xff]  ;;  %v2820_v27 = vand.u32 2147483648, %v9732_v41 }
 0x521   :  { %v3133_v32 = vsub.f32 1.0, %v3132_v23  ;;  %1152 = vrot.lane.b32.xlu1 %v11371_v29, %s7141_s22  ;;  %v3046_v21 = vsel %vm3043_vm6, %v3045_v24, %v3041_v15  ;;  %6796 = vpow2.f32 %v9702_v55  ;;  %v2818_v56 = vand.u32 2147483647, %v9732_v41  ;;  %v11378_v24 = vld [vmem:[#allocation39_spill] sm:$0xff]  ;;  %v11380_v15 = vld [vmem:[#allocation53_spill] sm:$0xff]  ;;  %v11381_v55 = vld [vmem:[#allocation30_spill] sm:$0xff] }
 0x522   :  { %v3396_v45 = vmul.f32 %v11372_v59, %v3046_v21  ;;  %6026 = vmatmul.msk.bf16.gmra.mxu0 %vm1882_vm3, %v3656_v57  ;;  %v2129_v11 = vsub.f32 %v11379_v2, %v11378_v24  ;;  %vm2814_vm14 = vweird.f32 %v9732_v41  ;;  %v2821_v1 = vor.u32 1.1754944e-38, %v2820_v27  ;;  %v11385_v27 = vld [vmem:[#allocation61_spill] sm:$0xff] }
 0x523   :  { %v3134_v51 = vmul.f32 %v6793_v52, %v3133_v32  ;;  %v3404_v32 = vmul.f32 %v11380_v15, %v3158_v61  ;;  %vm2819_vm0 = vcmp.eq.f32.partialorder %v2818_v56, 8.507059e+37 }
 0x524   :  { %2433 = vadd.xlane.f32.xlu0 %v9679_v14  ;;  %v3460_v20 = vpack.c.bf16 %v3396_v45, %v3396_v45  ;;  %v3143_v14 = vor.u32 1.1754944e-38, %v3142_v25  ;;  %v2247_v45 = vmul.f32 1.442695, %v2129_v11 }
 0x525   :  { %v3135_v49 = vadd.f32 %v6793_v52, %v3134_v51  ;;  %v3468_v51 = vpack.c.bf16 %v3404_v32, %v3404_v32  ;;  %v11387_v32 = vld [vmem:[#allocation59_spill] sm:$0xff] }
 0x526   :  { %v6795_v33 = vpop.eup %6794  ;;  %v9772_v40 = vunpack.c.l.b16 %v3460_v20  ;;  %6798 = vpow2.f32 %v2247_v45  ;;  %v9813_v15 = vpop.f32.mrf.mxu2 }
 0x527   :  { %v3139_v60 = vsel %vm3138_vm5, %v6793_v52, %v3135_v49  ;;  %v2810_v39 = vmul.f32 %v6795_v33, %v9732_v41  ;;  %v2808_v52 = vsel %vm2805_vm4, %v2807_v19, %v2803_v0  ;;  %vm2815_vm8 = vweird.f32 %v6795_v33  ;;  %v9795_v59 = vpop.eup %6796  ;;  %v11383_v0 = vld [vmem:[#allocation32_spill] sm:$0xff]  ;;  %v1163_v61 = vpop.permute.xlu2 %1162 }
 0x528   :  { %v3144_v43 = vsel %vm3141_vm13, %v3143_v14, %v3139_v60  ;;  %v3379_v21 = vmul.f32 %v11381_v55, %v2808_v52  ;;  %vm2816_vm15 = vmor %vm2814_vm14, %vm2815_vm8  ;;  %v11384_v60 = vld [vmem:[#allocation42_spill] sm:$0xff]  ;;  %v3954_v19 = vunpack.c.l.b16 %v3468_v51  ;;  %v2133_v55 = vsub.f32 %v11387_v32, %v9438_v38  ;;  %v11394_v32 = vld [vmem:[#allocation52_spill] sm:$0xff] }
 0x529   :  { %v2811_v48 = vsub.f32 1.0, %v2810_v39  ;;  %v3403_v23 = vmul.f32 %v11377_v9, %v3144_v43  ;;  %v2118_v39 = vsub.f32 %v11384_v60, %v11383_v0  ;;  %v9805_v9 = vpop.xlane.xlu0 %2346  ;;  %vm3164_vm5 = vweird.f32 %v9777_v36 }
 0x52a   :  { %v3443_v35 = vpack.c.bf16 %v3379_v21, %v3379_v21  ;;  %vm2828_vm10 = vweird.f32 %v9805_v9 }
 0x52b   :  { %v2812_v37 = vmul.f32 %v6795_v33, %v2811_v48  ;;  %v3467_v25 = vpack.c.bf16 %v3403_v23, %v3403_v23  ;;  %v2225_v52 = vmul.f32 1.442695, %v2118_v39  ;;  %v11390_v39 = vld [vmem:[#allocation57_spill] sm:$0xff] }
 0x52c   :  { %2436 = vadd.xlane.f32.xlu0 %v2435_v4  ;;  %v3722_v43 = vunpack.c.l.b16 %v3443_v35  ;;  %v4048_v4 = vunpack.c.l.b16 %v1163_v61  ;;  %v9810_v2 = vpop.eup %6798  ;;  %v11389_v35 = vld [vmem:[#allocation21_spill] sm:$0xff]  ;;  %v9955_v22 = vpop.f32.mrf.mxu0 }
 0x52d   :  { %v2813_v13 = vadd.f32 %v6795_v33, %v2812_v37  ;;  %v3953_v41 = vunpack.c.l.b16 %v3467_v25  ;;  %v11386_v37 = vld [vmem:[#allocation37_spill] sm:$0xff]  ;;  %6800 = vpow2.f32 %v2225_v52  ;;  %v2255_v25 = vmul.f32 1.442695, %v2133_v55 }
 0x52e   :  { %v2120_v56 = vsub.f32 %v11386_v37, %v11385_v27  ;;  %v11392_v27 = vld [vmem:[#allocation60_spill] sm:$0xff] }
 0x52f   :  { %v2817_v28 = vsel %vm2816_vm15, %v6795_v33, %v2813_v13  ;;  %v2438_v33 = vsel %vm1882_vm3, %v9795_v59, 0.0  ;;  %v3961_v57 = vpack.c.b16 %v3954_v19, %v3953_v41  ;;  %v2429_v13 = vsel %vm1882_vm3, %v9810_v2, 0.0 }
 0x530   :  { %v2822_v46 = vsel %vm2819_vm0, %v2821_v1, %v2817_v28  ;;  %v1129_v50 = vpop.permute.xlu1 %1128  ;;  %v2229_v21 = vmul.f32 1.442695, %v2120_v56  ;;  %v11388_v1 = vld [vmem:[#allocation28_spill] sm:$0xff]  ;;  %v2134_v19 = vsub.f32 %v11390_v39, %v9465_v10  ;;  %v2135_v37 = vsub.f32 %v11392_v27, %v9473_v7 }
 0x531   :  { %v3380_v20 = vmul.f32 %v11382_v18, %v2822_v46  ;;  %v3893_v49 = vunpack.c.l.b16 %v1129_v50  ;;  %v2138_v28 = vsub.f32 %v11388_v1, %v9495_v8  ;;  %v9823_v51 = vpop.xlane.xlu0 %2352  ;;  %v9825_v46 = vpop.f32.mrf.mxu2 }
 0x532   :  { %6039 = vmatmul.msk.bf16.vlgmr.msra.gmra.mxu0 %vm1882_vm3, %v3961_v57  ;;  %6802 = vpow2.f32 %v2229_v21  ;;  %v2257_v57 = vmul.f32 1.442695, %v2134_v19  ;;  %v2259_v1 = vmul.f32 1.442695, %v2135_v37  ;;  %vm2856_vm9 = vweird.f32 %v9823_v51 }
 0x533   :  { %v3444_v14 = vpack.c.bf16 %v3380_v20, %v3380_v20  ;;  %v3898_v26 = vpack.c.b16 %v3893_v49, %v3892_v47  ;;  %v9821_v45 = vpop.eup %6800  ;;  %6804 = vpow2.f32 %v2255_v25  ;;  %v2265_v50 = vmul.f32 1.442695, %v2138_v28 }
 0x534   :  { %2439 = vadd.xlane.f32.xlu0 %v2438_v33  ;;  %v2396_v38 = vsel %vm1882_vm3, %v9821_v45, 0.0  ;;  %v2860_v37 = vand.u32 2147483647, %v9823_v51 }
 0x535   :  { %v3723_v12 = vunpack.c.l.b16 %v3444_v14  ;;  %3921 = vmatpush.bf16.msrb.mxu3 %v3898_v26  ;;  %6806 = vpow2.f32 %v2265_v50 }
 0x536   :  { %6808 = vrcp.f32 %v9805_v9 }
 0x537   :  { %v3730_v48 = vpack.c.b16 %v3723_v12, %v3722_v43  ;;  %6810 = vrcp.f32 %v9777_v36 }
 0x538   :  { %v1165_v23 = vpop.permute.xlu1 %1164  ;;  %v9829_v47 = vpop.eup %6802  ;;  %6812 = vrcp.f32 %v9823_v51 }
 0x539   :  { %v4049_v24 = vunpack.c.l.b16 %v1165_v23  ;;  %6027 = vmatmul.msk.bf16.vlgmr.msrb.gmra.mxu1 %vm1882_vm3, %v3730_v48  ;;  %v9833_v18 = vpop.eup %6804  ;;  %v9835_v8 = vpop.permute.xlu0 %1124  ;;  %v2402_v20 = vsel %vm1882_vm3, %v9829_v47, 0.0  ;;  %6814 = vpow2.f32 %v2257_v57 }
 0x53a   :  { %v2441_v49 = vsel %vm1882_vm3, %v9833_v18, 0.0  ;;  %v9842_v41 = vpop.f32.mrf.mxu2 }
 0x53b   :  { %v4053_v11 = vpack.c.b16 %v4049_v24, %v4048_v4  ;;  %v9844_v14 = vpop.eup %6806  ;;  %v2834_v24 = vand.u32 2147483648, %v9805_v9 }
 0x53c   :  { %v6809_v26 = vpop.eup %6808  ;;  %v2456_v0 = vsel %vm1882_vm3, %v9844_v14, 0.0 }
 0x53d   :  { %4074 = vmatpush.bf16.msra.mxu1 %v4053_v11  ;;  %v2824_v60 = vmul.f32 %v6809_v26, %v9805_v9  ;;  %v9857_v43 = vpop.eup %6810  ;;  %vm2829_vm6 = vweird.f32 %v6809_v26  ;;  %v11393_v11 = vld [vmem:[#allocation29_spill] sm:$0xff] }
 0x53e   :  { %2430 = vadd.xlane.f32.xlu2 %v2429_v13  ;;  %v9863_v61 = vpop.eup %6812  ;;  %v3160_v48 = vmul.f32 %v9857_v43, %v9777_v36  ;;  %v2119_v55 = vsub.f32 %v11394_v32, %v11393_v11  ;;  %v2832_v13 = vand.u32 2147483647, %v9805_v9  ;;  %vm9885_vm11 = vmor %vm2828_vm10, %vm2829_vm6  ;;  %vm3165_vm2 = vweird.f32 %v9857_v43 }
 0x53f   :  { %v2852_v10 = vmul.f32 %v9863_v61, %v9823_v51  ;;  %v9883_v7 = vpop.eup %6814  ;;  %vm2857_vm13 = vweird.f32 %v9863_v61  ;;  %vm9923_vm7 = vmor %vm3164_vm5, %vm3165_vm2  ;;  %vm2861_vm10 = vcmp.eq.f32.partialorder %v2860_v37, 8.507059e+37 }
 0x540   :  { %v3161_v56 = vsub.f32 1.0, %v3160_v48  ;;  %vm2833_vm12 = vcmp.eq.f32.partialorder %v2832_v13, 8.507059e+37  ;;  %v9904_v19 = vsel %vm1882_vm3, %v9883_v7, 0.0  ;;  %v3168_v48 = vand.u32 2147483647, %v9777_v36  ;;  %vm9943_vm14 = vmor %vm2856_vm9, %vm2857_vm13 }
 0x541   :  { %v2853_v25 = vsub.f32 1.0, %v2852_v10 }
 0x542   :  { %v9859_v12 = vpop.f32.mrf.mxu2  ;;  %v3162_v50 = vmul.f32 %v9857_v43, %v3161_v56  ;;  %vm3169_vm4 = vcmp.eq.f32.partialorder %v3168_v48, 8.507059e+37 }
 0x543   :  { %11391 = vst [vmem:[#allocation24_spill] sm:$0xff] %v9859_v12  ;;  %v2854_v39 = vmul.f32 %v9863_v61, %v2853_v25 }
 0x544   :  { %v3163_v57 = vadd.f32 %v9857_v43, %v3162_v50 }
 0x546   :  { %2397 = vadd.xlane.f32.xlu2 %v2396_v38  ;;  %v3167_v25 = vsel %vm9923_vm7, %v9857_v43, %v3163_v57 }
 0x548   :  { %1118 = vrot.lane.b32.xlu0 %v11389_v35, %s7135_s15 }
 0x549   :  { %v9849_v33 = vpop.xlane.xlu0 %2427 }
 0x54a   :  { %v9879_v21 = vpop.f32.mrf.mxu2  ;;  %vm3206_vm13 = vweird.f32 %v9849_v33 }
 0x54b   :  { %2403 = vadd.xlane.f32.xlu1 %v2402_v20  ;;  %11395 = vst [vmem:[#allocation25_spill] sm:$0xff] %v9879_v21 }
 0x54e   :  { %2442 = vadd.xlane.f32.xlu2 %v2441_v49  ;;  %v2835_v49 = vor.u32 1.1754944e-38, %v2834_v24  ;;  %v2855_v24 = vadd.f32 %v9863_v61, %v2854_v39 }
 0x550   :  { %1120 = vrot.lane.b32.xlu0 %v11371_v29, %s7135_s15  ;;  %v2825_v29 = vsub.f32 1.0, %v2824_v60  ;;  %v9897_v60 = vmul.f32 1.442695, %v2119_v55  ;;  %v11400_v55 = vld [vmem:[#allocation51_spill] sm:$0xff]  ;;  %v2859_v11 = vsel %vm9943_vm14, %v9863_v61, %v2855_v24 }
 0x551   :  { %v9867_v23 = vpop.xlane.xlu0 %2358 }
 0x552   :  { %v2826_v52 = vmul.f32 %v6809_v26, %v2825_v29  ;;  %v9935_v50 = vpop.f32.mrf.mxu2 }
 0x553   :  { %2457 = vadd.xlane.f32.xlu1 %v2456_v0  ;;  %v2862_v0 = vand.u32 2147483648, %v9823_v51  ;;  %11401 = vst [vmem:[#allocation27_spill] sm:$0xff] %v9935_v50 }
 0x554   :  { %v2827_v4 = vadd.f32 %v6809_v26, %v2826_v52  ;;  %v3170_v52 = vand.u32 2147483648, %v9777_v36 }
 0x555   :  { %v2863_v56 = vor.u32 1.1754944e-38, %v2862_v0 }
 0x556   :  { %v2831_v20 = vsel %vm9885_vm11, %v6809_v26, %v2827_v4 }
 0x557   :  { %v2836_v26 = vsel %vm2833_vm12, %v2835_v49, %v2831_v20  ;;  %v3171_v20 = vor.u32 1.1754944e-38, %v3170_v52 }
 0x558   :  { %1154 = vrot.lane.b32.xlu0 %v11366_v34, %s7141_s22  ;;  %v3381_v13 = vmul.f32 %v11400_v55, %v2836_v26 }
 0x560   :  { %v9873_v34 = vpop.xlane.xlu2 %2349 }
 0x561   :  { %6816 = vrcp.f32 %v9873_v34  ;;  %v2846_v36 = vand.u32 2147483647, %v9873_v34  ;;  %vm2842_vm15 = vweird.f32 %v9873_v34 }
 0x562   :  { %6818 = vrcp.f32 %v9849_v33 }
 0x563   :  { %v9891_v38 = vpop.xlane.xlu1 %2355  ;;  %vm2847_vm6 = vcmp.eq.f32.partialorder %v2846_v36, 8.507059e+37  ;;  %v9969_v36 = vsel %vm2861_vm10, %v2863_v56, %v2859_v11 }
 0x564   :  { %6820 = vrcp.f32 %v9891_v38  ;;  %v1159_v9 = vpop.permute.xlu0 %1158  ;;  %vm2870_vm2 = vweird.f32 %v9891_v38 }
 0x565   :  { %6822 = vpow2.f32 %v2259_v1  ;;  %v2848_v1 = vand.u32 2147483648, %v9873_v34 }
 0x566   :  { %1150 = vrot.lane.b32.xlu2 %v11389_v35, %s7141_s22 }
 0x567   :  { %v6817_v29 = vpop.eup %6816  ;;  %v2849_v50 = vor.u32 1.1754944e-38, %v2848_v1  ;;  %v3891_v1 = vunpack.c.l.b16 %v9835_v8  ;;  %v9982_v8 = vpop.f32.mrf.mxu2 }
 0x568   :  { %v2838_v10 = vmul.f32 %v6817_v29, %v9873_v34  ;;  %v9912_v35 = vpop.xlane.xlu2 %2421  ;;  %v9914_v27 = vpop.eup %6818  ;;  %vm2843_vm8 = vweird.f32 %v6817_v29 }
 0x569   :  { %6824 = vrcp.f32 %v9912_v35  ;;  %v3202_v26 = vmul.f32 %v9914_v27, %v9849_v33  ;;  %vm2844_vm0 = vmor %vm2842_vm15, %vm2843_vm8  ;;  %v3182_v43 = vand.u32 2147483647, %v9912_v35  ;;  %vm3178_vm5 = vweird.f32 %v9912_v35 }
 0x56a   :  { %v9919_v4 = vpop.eup %6820  ;;  %v2839_v32 = vsub.f32 1.0, %v2838_v10  ;;  %v4046_v10 = vunpack.c.l.b16 %v1159_v9  ;;  %v3445_v9 = vpack.c.bf16 %v3381_v13, %v3381_v13  ;;  %vm3207_vm7 = vweird.f32 %v9914_v27 }
 0x56b   :  { %v2866_v28 = vmul.f32 %v9919_v4, %v9891_v38  ;;  %v9937_v39 = vpop.eup %6822  ;;  %v9949_v48 = vpop.xlane.xlu1 %2361  ;;  %v3203_v24 = vsub.f32 1.0, %v3202_v26  ;;  %vm2871_vm11 = vweird.f32 %v9919_v4  ;;  %vm3183_vm8 = vcmp.eq.f32.partialorder %v3182_v43, 8.507059e+37 }
 0x56c   :  { %v2840_v49 = vmul.f32 %v6817_v29, %v2839_v32  ;;  %v1161_v0 = vpop.permute.xlu0 %1160  ;;  %v3172_v32 = vsel %vm3169_vm4, %v3171_v20, %v3167_v25  ;;  %6826 = vrcp.f32 %v9949_v48  ;;  %v11404_v25 = vld [vmem:[#allocation35_spill] sm:$0xff]  ;;  %vm9984_vm9 = vmor %vm2870_vm2, %vm2871_vm11 }
 0x56d   :  { %v2867_v57 = vsub.f32 1.0, %v2866_v28  ;;  %v4047_v52 = vunpack.c.l.b16 %v1161_v0  ;;  %v9965_v20 = vmul.f32 %v11404_v25, %v3172_v32  ;;  %v3204_v37 = vmul.f32 %v9914_v27, %v3203_v24 }
 0x56e   :  { %v2841_v55 = vadd.f32 %v6817_v29, %v2840_v49  ;;  %v2874_v32 = vand.u32 2147483647, %v9891_v38 }
 0x56f   :  { %v6825_v51 = vpop.eup %6824  ;;  %v4052_v28 = vpack.c.b16 %v4047_v52, %v4046_v10  ;;  %v2868_v0 = vmul.f32 %v9919_v4, %v2867_v57  ;;  %v2876_v57 = vand.u32 2147483648, %v9891_v38 }
 0x570   :  { %v2845_v12 = vsel %vm2844_vm0, %v6817_v29, %v2841_v55  ;;  %v3174_v21 = vmul.f32 %v6825_v51, %v9912_v35  ;;  %v9961_v61 = vpop.xlane.xlu2 %2424  ;;  %vm3179_vm12 = vweird.f32 %v6825_v51  ;;  %vm2875_vm14 = vcmp.eq.f32.partialorder %v2874_v32, 8.507059e+37  ;;  %v10014_v32 = vpop.f32.mrf.mxu2  ;;  %vm10020_vm0 = vmor %vm3206_vm13, %vm3207_vm7 }
 0x571   :  { %v2850_v34 = vsel %vm2847_vm6, %v2849_v50, %v2845_v12  ;;  %6828 = vrcp.f32 %v9961_v61  ;;  %4075 = vmatpush.bf16.msra.mxu1 %v4052_v28  ;;  %v3184_v12 = vand.u32 2147483648, %v9912_v35  ;;  %v2869_v50 = vadd.f32 %v9919_v4, %v2868_v0  ;;  %vm3180_vm4 = vmor %vm3178_vm5, %vm3179_vm12 }
 0x572   :  { %6830 = vrcp.f32 %v9867_v23  ;;  %v3175_v29 = vsub.f32 1.0, %v3174_v21  ;;  %v3382_v13 = vmul.f32 %v9511_v5, %v2850_v34  ;;  %v3724_v21 = vunpack.c.l.b16 %v3445_v9  ;;  %v9980_v56 = vpop.eup %6826  ;;  %v10000_v34 = vpop.f32.mrf.mxu0 }
 0x573   :  { %v3469_v5 = vpack.c.bf16 %v9965_v20, %v9965_v20  ;;  %v3185_v55 = vor.u32 1.1754944e-38, %v3184_v12  ;;  %v2873_v9 = vsel %vm9984_vm9, %v9919_v4, %v2869_v50  ;;  %v2894_v38 = vmul.f32 %v9980_v56, %v9949_v48 }
 0x574   :  { %v3176_v49 = vmul.f32 %v6825_v51, %v3175_v29  ;;  %v3446_v52 = vpack.c.bf16 %v3382_v13, %v3382_v13  ;;  %v3205_v13 = vadd.f32 %v9914_v27, %v3204_v37  ;;  %v2877_v12 = vor.u32 1.1754944e-38, %v2876_v57  ;;  %v11407_v57 = vld [vmem:[#allocation38_spill] sm:$0xff] }
 0x575   :  { %v3196_v37 = vand.u32 2147483647, %v9961_v61  ;;  %vm3192_vm6 = vweird.f32 %v9961_v61  ;;  %6832 = vpow2.f32 %v9897_v60  ;;  %vm2899_vm2 = vweird.f32 %v9980_v56 }
 0x576   :  { %v3177_v10 = vadd.f32 %v6825_v51, %v3176_v49  ;;  %v3725_v29 = vunpack.c.l.b16 %v3446_v52  ;;  %v2878_v43 = vsel %vm2875_vm14, %v2877_v12, %v2873_v9  ;;  %v2895_v52 = vsub.f32 1.0, %v2894_v38 }
 0x577   :  { %v6829_v11 = vpop.eup %6828  ;;  %v3384_v38 = vmul.f32 %v9517_v62, %v2878_v43  ;;  %vm3197_vm11 = vcmp.eq.f32.partialorder %v3196_v37, 8.507059e+37  ;;  %v2904_v37 = vand.u32 2147483648, %v9949_v48  ;;  %v2447_v60 = vsel %vm1882_vm3, %v9937_v39, 0.0 }
 0x578   :  { %v9994_v28 = vpop.eup %6830  ;;  %v3181_v0 = vsel %vm3180_vm4, %v6825_v51, %v3177_v10  ;;  %v3188_v35 = vmul.f32 %v6829_v11, %v9961_v61  ;;  %v1123_v24 = vpop.permute.xlu2 %1122  ;;  %v3731_v50 = vpack.c.b16 %v3725_v29, %v3724_v21  ;;  %vm3193_vm15 = vweird.f32 %v6829_v11 }
 0x579   :  { %v3186_v25 = vsel %vm3183_vm8, %v3185_v55, %v3181_v0  ;;  %v3890_v20 = vunpack.c.l.b16 %v1123_v24  ;;  %v2880_v4 = vmul.f32 %v9994_v28, %v9867_v23  ;;  %v3198_v55 = vand.u32 2147483648, %v9961_v61  ;;  %vm3194_vm10 = vmor %vm3192_vm6, %vm3193_vm15 }
 0x57a   :  { %v3189_v49 = vsub.f32 1.0, %v3188_v35  ;;  %v3406_v26 = vmul.f32 %v9529_v63, %v3186_v25  ;;  %v3212_v0 = vand.u32 2147483648, %v9849_v33  ;;  %6028 = vmatmul.msk.bf16.gmra.mxu1 %vm1882_vm3, %v3731_v50  ;;  %v2136_v35 = vsub.f32 %v11407_v57, %v9509_v42 }
 0x57b   :  { %v3897_v51 = vpack.c.b16 %v3891_v1, %v3890_v20  ;;  %v3210_v21 = vand.u32 2147483647, %v9849_v33  ;;  %v2881_v24 = vsub.f32 1.0, %v2880_v4  ;;  %v3955_v25 = vunpack.c.l.b16 %v3469_v5  ;;  %v10035_v5 = vpop.f32.mrf.mxu0 }
 0x57c   :  { %v3190_v10 = vmul.f32 %v6829_v11, %v3189_v49  ;;  %v3470_v63 = vpack.c.bf16 %v3406_v26, %v3406_v26  ;;  %v3209_v20 = vsel %vm10020_vm0, %v9914_v27, %v3205_v13  ;;  %v3199_v12 = vor.u32 1.1754944e-38, %v3198_v55  ;;  %v11410_v49 = vld [vmem:[#allocation34_spill] sm:$0xff]  ;;  %v11413_v55 = vld [vmem:[#allocation56_spill] sm:$0xff] }
 0x57d   :  { %3922 = vmatpush.bf16.msrb.mxu3 %v3897_v51  ;;  %v3383_v26 = vmul.f32 %v11410_v49, %v9969_v36  ;;  %v3213_v33 = vor.u32 1.1754944e-38, %v3212_v0  ;;  %v2896_v51 = vmul.f32 %v9980_v56, %v2895_v52  ;;  %vm3211_vm12 = vcmp.eq.f32.partialorder %v3210_v21, 8.507059e+37  ;;  %v10055_v21 = vpop.f32.mrf.mxu2 }
 0x57e   :  { %v3191_v9 = vadd.f32 %v6829_v11, %v3190_v10  ;;  %v3956_v42 = vunpack.c.l.b16 %v3470_v63  ;;  %v2882_v50 = vmul.f32 %v9994_v28, %v2881_v24  ;;  %v3448_v27 = vpack.c.bf16 %v3384_v38, %v3384_v38  ;;  %v11412_v10 = vld [vmem:[#allocation33_spill] sm:$0xff] }
 0x57f   :  { %v3214_v62 = vsel %vm3211_vm12, %v3213_v33, %v3209_v20  ;;  %v2261_v36 = vmul.f32 1.442695, %v2136_v35  ;;  %v3447_v43 = vpack.c.bf16 %v3383_v26, %v3383_v26  ;;  %v2121_v0 = vsub.f32 %v11413_v55, %v11412_v10 }
 0x580   :  { %v3195_v29 = vsel %vm3194_vm10, %v6829_v11, %v3191_v9  ;;  %v3962_v61 = vpack.c.b16 %v3956_v42, %v3955_v25  ;;  %v11411_v11 = vld [vmem:[#allocation50_spill] sm:$0xff]  ;;  %vm2885_vm9 = vweird.f32 %v9994_v28  ;;  %v3408_v63 = vmul.f32 %v9469_v30, %v3214_v62  ;;  %v10067_v42 = vpop.eup %6832 }
 0x581   :  { %v3200_v4 = vsel %vm3197_vm11, %v3199_v12, %v3195_v29  ;;  %v2137_v13 = vsub.f32 %v11411_v11, %v9545_v16  ;;  %v2883_v16 = vadd.f32 %v9994_v28, %v2882_v50  ;;  %vm2898_vm5 = vweird.f32 %v9949_v48 }
 0x582   :  { %2445 = vadd.xlane.f32.xlu0 %v9904_v19  ;;  %6040 = vmatmul.msk.bf16.gmra.mxu0 %vm1882_vm3, %v3962_v61  ;;  %v2897_v19 = vadd.f32 %v9980_v56, %v2896_v51  ;;  %v3407_v52 = vmul.f32 %v9555_v44, %v3200_v4  ;;  %v2902_v57 = vand.u32 2147483647, %v9949_v48  ;;  %v3727_v35 = vunpack.c.l.b16 %v3448_v27  ;;  %vm10058_vm13 = vmor %vm2898_vm5, %vm2899_vm2  ;;  %v11418_v27 = vld [vmem:[#allocation26_spill] sm:$0xff] }
 0x583   :  { %6834 = vpow2.f32 %v2261_v36  ;;  %v2263_v1 = vmul.f32 1.442695, %v2137_v13  ;;  %v2890_v44 = vand.u32 2147483648, %v9867_v23  ;;  %v3726_v24 = vunpack.c.l.b16 %v3447_v43  ;;  %v10078_v33 = vpop.f32.mrf.mxu0  ;;  %v11419_v36 = vld [vmem:[#allocation54_spill] sm:$0xff] }
 0x584   :  { %vm2884_vm7 = vweird.f32 %v9867_v23  ;;  %v2888_v30 = vand.u32 2147483647, %v9867_v23  ;;  %v2901_v48 = vsel %vm10058_vm13, %v9980_v56, %v2897_v19  ;;  %v3471_v25 = vpack.c.bf16 %v3407_v52, %v3407_v52 }
 0x585   :  { %vm10071_vm4 = vmor %vm2884_vm7, %vm2885_vm9  ;;  %v2905_v20 = vor.u32 1.1754944e-38, %v2904_v37  ;;  %vm2903_vm8 = vcmp.eq.f32.partialorder %v2902_v57, 8.507059e+37  ;;  %v3732_v23 = vpack.c.b16 %v3727_v35, %v3726_v24  ;;  %v3472_v12 = vpack.c.bf16 %v3408_v63, %v3408_v63  ;;  %v10088_v13 = vpop.f32.mrf.mxu2 }
 0x586   :  { %v2887_v29 = vsel %vm10071_vm4, %v9994_v28, %v2883_v16  ;;  %v2231_v49 = vmul.f32 1.442695, %v2121_v0  ;;  %v2891_v56 = vor.u32 1.1754944e-38, %v2890_v44  ;;  %6836 = vpow2.f32 %v2263_v1 }
 0x587   :  { %v2906_v26 = vsel %vm2903_vm8, %v2905_v20, %v2901_v48  ;;  %vm2889_vm14 = vcmp.eq.f32.partialorder %v2888_v30, 8.507059e+37  ;;  %v3957_v51 = vunpack.c.l.b16 %v3471_v25  ;;  %v2399_v62 = vsel %vm1882_vm3, %v10067_v42, 0.0  ;;  %v10116_v25 = vpop.xlane.xlu1 %2394 }
 0x588   :  { %v2892_v4 = vsel %vm2889_vm14, %v2891_v56, %v2887_v29  ;;  %v3958_v28 = vunpack.c.l.b16 %v3472_v12  ;;  %v3386_v50 = vmul.f32 %v9535_v6, %v2906_v26  ;;  %v2122_v11 = vsub.f32 %v11419_v36, %v11418_v27 }
 0x589   :  { %v10081_v61 = vpop.eup %6834  ;;  %6838 = vpow2.f32 %v2231_v49  ;;  %v3385_v55 = vmul.f32 %v9479_v17, %v2892_v4  ;;  %v6463_v26 = vpack.i.bf16 %v10055_v21, %v10014_v32  ;;  %v6458_v21 = vpack.i.bf16 %v10000_v34, %v9955_v22 }
 0x58a   :  { %2448 = vadd.xlane.f32.xlu0 %v2447_v60  ;;  %6029 = vmatmul.msk.bf16.gmra.mxu1 %vm1882_vm3, %v3732_v23  ;;  %v3963_v43 = vpack.c.b16 %v3958_v28, %v3957_v51  ;;  %v2450_v10 = vsel %vm1882_vm3, %v10081_v61, 0.0  ;;  %v3450_v19 = vpack.c.bf16 %v3386_v50, %v3386_v50  ;;  %v2233_v52 = vmul.f32 1.442695, %v2122_v11 }
 0x58b   :  { %v10096_v6 = vpop.f32.mrf.mxu0  ;;  %v3449_v37 = vpack.c.bf16 %v3385_v55, %v3385_v55  ;;  %vm3052_vm5 = vweird.f32 %v10116_v25 }
 0x58c   :  { %v10093_v0 = vpop.eup %6836  ;;  %v3729_v57 = vunpack.c.l.b16 %v3450_v19  ;;  %6840 = vpow2.f32 %v2233_v52 }
 0x58d   :  { %v2453_v63 = vsel %vm1882_vm3, %v10093_v0, 0.0  ;;  %v3728_v17 = vunpack.c.l.b16 %v3449_v37  ;;  %v3855_v1 = vpop.f32.mrf.mxu2 }
 0x58f   :  { %2400 = vadd.xlane.f32.xlu2 %v2399_v62  ;;  %v10098_v60 = vpop.eup %6838  ;;  %v3733_v44 = vpack.c.b16 %v3729_v57, %v3728_v17 }
 0x590   :  { %v2405_v35 = vsel %vm1882_vm3, %v10098_v60, 0.0 }
 0x592   :  { %2451 = vadd.xlane.f32.xlu0 %v2450_v10  ;;  %6041 = vmatmul.msk.bf16.gmra.mxu0 %vm1882_vm3, %v3963_v43  ;;  %v10107_v9 = vpop.eup %6840  ;;  %v6478_v10 = vpack.i.bf16 %v3855_v1, %v10088_v13  ;;  %v6473_v13 = vpack.i.bf16 %v10078_v33, %v10035_v5 }
 0x593   :  { %v10109_v24 = vpop.f32.mrf.mxu0  ;;  %v2408_v48 = vsel %vm1882_vm3, %v10107_v9, 0.0 }
 0x595   :  { %v10118_v38 = vpop.f32.mrf.mxu2 }
 0x597   :  { %2454 = vadd.xlane.f32.xlu2 %v2453_v63  ;;  %v10102_v16 = vpop.xlane.xlu0 %2433 }
 0x598   :  { %6842 = vrcp.f32 %v10102_v16  ;;  %v3240_v52 = vand.u32 2147483648, %v10102_v16  ;;  %vm3234_vm0 = vweird.f32 %v10102_v16  ;;  %v3238_v57 = vand.u32 2147483647, %v10102_v16 }
 0x599   :  { %6844 = vrcp.f32 %v10116_v25 }
 0x59a   :  { %2406 = vadd.xlane.f32.xlu0 %v2405_v35  ;;  %6030 = vmatmul.msk.bf16.gmra.mxu1 %vm1882_vm3, %v3733_v44  ;;  %vm3239_vm10 = vcmp.eq.f32.partialorder %v3238_v57, 8.507059e+37 }
 0x59d   :  { %v3860_v56 = vpop.f32.mrf.mxu2 }
 0x59e   :  { %v6843_v20 = vpop.eup %6842 }
 0x59f   :  { %v10111_v30 = vpop.xlane.xlu0 %2436  ;;  %v10121_v29 = vpop.f32.mrf.mxu0  ;;  %v3230_v12 = vmul.f32 %v6843_v20, %v10102_v16  ;;  %vm3235_vm15 = vweird.f32 %v6843_v20 }
 0x5a0   :  { %v10128_v49 = vpop.eup %6844  ;;  %vm10159_vm6 = vmor %vm3234_vm0, %vm3235_vm15  ;;  %vm3248_vm12 = vweird.f32 %v10111_v30  ;;  %v3252_v57 = vand.u32 2147483647, %v10111_v30 }
 0x5a1   :  { %v3231_v51 = vsub.f32 1.0, %v3230_v12  ;;  %v3048_v4 = vmul.f32 %v10128_v49, %v10116_v25  ;;  %v3241_v12 = vor.u32 1.1754944e-38, %v3240_v52  ;;  %vm3053_vm11 = vweird.f32 %v10128_v49 }
 0x5a2   :  { %2409 = vadd.xlane.f32.xlu0 %v2408_v48 }
 0x5a3   :  { %v3232_v27 = vmul.f32 %v6843_v20, %v3231_v51  ;;  %v3049_v11 = vsub.f32 1.0, %v3048_v4  ;;  %v6493_v4 = vpack.i.bf16 %v3860_v56, %v10118_v38 }
 0x5a5   :  { %v3233_v55 = vadd.f32 %v6843_v20, %v3232_v27  ;;  %v3050_v19 = vmul.f32 %v10128_v49, %v3049_v11  ;;  %v10153_v37 = vpop.f32.mrf.mxu2  ;;  %v3254_v27 = vand.u32 2147483648, %v10111_v30 }
 0x5a7   :  { %v10123_v23 = vpop.xlane.xlu0 %2439  ;;  %v10136_v28 = vpop.f32.mrf.mxu0  ;;  %v3237_v1 = vsel %vm10159_vm6, %v6843_v20, %v3233_v55  ;;  %v10171_v16 = vadd.f32 %v10128_v49, %v3050_v19 }
 0x5a8   :  { %6846 = vrcp.f32 %v10123_v23  ;;  %v3242_v20 = vsel %vm3239_vm10, %v3241_v12, %v3237_v1  ;;  %v3266_v56 = vand.u32 2147483647, %v10123_v23  ;;  %vm3262_vm4 = vweird.f32 %v10123_v23 }
 0x5a9   :  { %6848 = vrcp.f32 %v10111_v30  ;;  %v3410_v52 = vmul.f32 %v9620_v3, %v3242_v20  ;;  %v3255_v1 = vor.u32 1.1754944e-38, %v3254_v27 }
 0x5aa   :  { %vm3267_vm6 = vcmp.eq.f32.partialorder %v3266_v56, 8.507059e+37 }
 0x5ab   :  { %v3474_v27 = vpack.c.bf16 %v3410_v52, %v3410_v52  ;;  %v6488_v52 = vpack.i.bf16 %v10109_v24, %v10096_v6 }
 0x5ae   :  { %v10134_v62 = vpop.eup %6846 }
 0x5af   :  { %6464 = vrot.lane.b32.xlu2 %v6463_v26, %s7135_s15  ;;  %v10139_v50 = vpop.eup %6848  ;;  %v3258_v43 = vmul.f32 %v10134_v62, %v10123_v23  ;;  %v4002_v35 = vpop.f32.mrf.mxu0  ;;  %vm3263_vm13 = vweird.f32 %v10134_v62 }
 0x5b0   :  { %v3244_v32 = vmul.f32 %v10139_v50, %v10111_v30  ;;  %vm3249_vm2 = vweird.f32 %v10139_v50  ;;  %vm10198_vm14 = vmor %vm3262_vm4, %vm3263_vm13 }
 0x5b1   :  { %v10141_v36 = vpop.xlane.xlu2 %2430  ;;  %v3259_v63 = vsub.f32 1.0, %v3258_v43  ;;  %vm10209_vm0 = vmor %vm3248_vm12, %vm3249_vm2  ;;  %vm3253_vm12 = vcmp.eq.f32.partialorder %v3252_v57, 8.507059e+37 }
 0x5b2   :  { %6850 = vrcp.f32 %v10141_v36  ;;  %v3245_v17 = vsub.f32 1.0, %v3244_v32  ;;  %v3226_v11 = vand.u32 2147483648, %v10141_v36  ;;  %v3224_v32 = vand.u32 2147483647, %v10141_v36  ;;  %vm10229_vm2 = vmor %vm3052_vm5, %vm3053_vm11 }
 0x5b3   :  { %v3260_v26 = vmul.f32 %v10134_v62, %v3259_v63  ;;  %vm3220_vm7 = vweird.f32 %v10141_v36 }
 0x5b4   :  { %v3246_v5 = vmul.f32 %v10139_v50, %v3245_v17  ;;  %v3865_v17 = vpop.f32.mrf.mxu2  ;;  %v3227_v34 = vor.u32 1.1754944e-38, %v3226_v11  ;;  %vm3225_vm15 = vcmp.eq.f32.partialorder %v3224_v32, 8.507059e+37 }
 0x5b5   :  { %v3261_v38 = vadd.f32 %v10134_v62, %v3260_v26  ;;  %v1157_v26 = vpop.permute.xlu1 %1156  ;;  %v6508_v30 = vpack.i.bf16 %v3865_v17, %v10153_v37 }
 0x5b6   :  { %6459 = vrot.lane.b32.xlu0 %v6458_v21, %s7141_s22  ;;  %v3268_v21 = vand.u32 2147483648, %v10123_v23  ;;  %v4045_v24 = vunpack.c.l.b16 %v1157_v26  ;;  %v11428_v23 = vpack.c.b16 %v9772_v40, %v9743_v54  ;;  %v6503_v54 = vpack.i.bf16 %v10136_v28, %v10121_v29 }
 0x5b7   :  { %6479 = vrot.lane.b32.xlu2 %v6478_v10, %s7135_s15  ;;  %v3247_v10 = vadd.f32 %v10139_v50, %v3246_v5  ;;  %v4004_v19 = vpop.f32.mrf.mxu0 }
 0x5b8   :  { %v6851_v22 = vpop.eup %6850 }
 0x5b9   :  { %v3216_v44 = vmul.f32 %v6851_v22, %v10141_v36  ;;  %v10168_v48 = vpop.xlane.xlu2 %2397  ;;  %vm3221_vm9 = vweird.f32 %v6851_v22 }
 0x5ba   :  { %6852 = vrcp.f32 %v10168_v48  ;;  %v1119_v51 = vpop.permute.xlu0 %1118  ;;  %vm3222_vm8 = vmor %vm3220_vm7, %vm3221_vm9  ;;  %v3072_v11 = vand.u32 2147483648, %v10168_v48  ;;  %vm3066_vm9 = vweird.f32 %v10168_v48 }
 0x5bb   :  { %v3217_v33 = vsub.f32 1.0, %v3216_v44 }
 0x5bc   :  { %v3073_v17 = vor.u32 1.1754944e-38, %v3072_v11 }
 0x5bd   :  { %v3218_v43 = vmul.f32 %v6851_v22, %v3217_v33  ;;  %v3251_v33 = vsel %vm10209_vm0, %v10139_v50, %v3247_v10 }
 0x5be   :  { %6474 = vrot.lane.b32.xlu0 %v6473_v13, %s7141_s22  ;;  %v6468_v13 = vpack.i.bf16 %v4004_v19, %v4002_v35  ;;  %v3265_v35 = vsel %vm10198_vm14, %v10134_v62, %v3261_v38 }
 0x5bf   :  { %v3219_v55 = vadd.f32 %v6851_v22, %v3218_v43  ;;  %6494 = vrot.lane.b32.xlu2 %v6493_v4, %s7135_s15  ;;  %v3888_v43 = vunpack.c.l.b16 %v1119_v51  ;;  %v3256_v51 = vsel %vm3253_vm12, %v3255_v1, %v3251_v33  ;;  %v3960_v1 = vunpack.c.l.b16 %v3474_v27 }
 0x5c0   :  { %v6853_v63 = vpop.eup %6852  ;;  %6469 = vrot.lane.b32.xlu1 %v6468_v13, %s7140_s2  ;;  %v3411_v36 = vmul.f32 %v9725_v53, %v3256_v51 }
 0x5c1   :  { %v3223_v44 = vsel %vm3222_vm8, %v6851_v22, %v3219_v55  ;;  %v3062_v3 = vmul.f32 %v6853_v63, %v10168_v48  ;;  %v10203_v12 = vpop.xlane.xlu2 %2442  ;;  %v3269_v22 = vor.u32 1.1754944e-38, %v3268_v21  ;;  %vm3067_vm10 = vweird.f32 %v6853_v63 }
 0x5c2   :  { %v3228_v4 = vsel %vm3225_vm15, %v3227_v34, %v3223_v44  ;;  %v1121_v5 = vpop.permute.xlu0 %1120  ;;  %v3070_v21 = vand.u32 2147483647, %v10168_v48  ;;  %v3058_v55 = vand.u32 2147483648, %v10116_v25  ;;  %vm3068_vm13 = vmor %vm3066_vm9, %vm3067_vm10  ;;  %v3475_v33 = vpack.c.bf16 %v3411_v36, %v3411_v36 }
 0x5c3   :  { %v3063_v20 = vsub.f32 1.0, %v3062_v3  ;;  %v3889_v32 = vunpack.c.l.b16 %v1121_v5  ;;  %v3409_v62 = vmul.f32 %v9810_v2, %v3228_v4  ;;  %v3270_v38 = vsel %vm3267_vm6, %v3269_v22, %v3265_v35  ;;  %v3771_v3 = vpop.f32.mrf.mxu1  ;;  %v1153_v35 = vpop.permute.xlu1 %1152 }
 0x5c4   :  { %v3056_v2 = vand.u32 2147483647, %v10116_v25  ;;  %v3412_v57 = vmul.f32 %v9795_v59, %v3270_v38  ;;  %v3055_v25 = vsel %vm10229_vm2, %v10128_v49, %v10171_v16  ;;  %vm3071_vm11 = vcmp.eq.f32.partialorder %v3070_v21, 8.507059e+37 }
 0x5c5   :  { %v3064_v56 = vmul.f32 %v6853_v63, %v3063_v20  ;;  %v3896_v19 = vpack.c.b16 %v3889_v32, %v3888_v43  ;;  %v3473_v50 = vpack.c.bf16 %v3409_v62, %v3409_v62  ;;  %v3059_v48 = vor.u32 1.1754944e-38, %v3058_v55 }
 0x5c6   :  { %vm3057_vm5 = vcmp.eq.f32.partialorder %v3056_v2, 8.507059e+37  ;;  %v3476_v22 = vpack.c.bf16 %v3412_v57, %v3412_v57  ;;  %v4030_v11 = vunpack.c.l.b16 %v3475_v33  ;;  %6854 = vrcp.f32 %v10203_v12 }
 0x5c7   :  { %v3065_v10 = vadd.f32 %v6853_v63, %v3064_v56  ;;  %6509 = vrot.lane.b32.xlu2 %v6508_v30, %s7135_s15  ;;  %3923 = vmatpush.bf16.msrb.mxu3 %v3896_v19  ;;  %v3959_v34 = vunpack.c.l.b16 %v3473_v50  ;;  %v4043_v30 = vunpack.c.l.b16 %v1153_v35  ;;  %vm3276_vm4 = vweird.f32 %v10203_v12 }
 0x5c8   :  { %6489 = vrot.lane.b32.xlu1 %v6488_v52, %s7141_s22  ;;  %v4031_v40 = vunpack.c.l.b16 %v3476_v22 }
 0x5c9   :  { %v3069_v13 = vsel %vm3068_vm13, %v6853_v63, %v3065_v10  ;;  %v1151_v6 = vpop.permute.xlu2 %1150  ;;  %v3964_v49 = vpack.c.b16 %v3960_v1, %v3959_v34  ;;  %v3060_v63 = vsel %vm3057_vm5, %v3059_v48, %v3055_v25  ;;  %v3282_v25 = vand.u32 2147483648, %v10203_v12 }
 0x5ca   :  { %v3074_v44 = vsel %vm3071_vm11, %v3073_v17, %v3069_v13  ;;  %v1155_v59 = vpop.permute.xlu0 %1154  ;;  %6035 = vmatmul.msk.bf16.vlgmr.msrb.gmra.mxu3 %vm1882_vm3, %v11428_v23  ;;  %v4042_v4 = vunpack.c.l.b16 %v1151_v6  ;;  %v3397_v26 = vmul.f32 %v9567_v31, %v3060_v63  ;;  %v4038_v32 = vpack.c.b16 %v4031_v40, %v4030_v11 }
 0x5cb   :  { %v4044_v16 = vunpack.c.l.b16 %v1155_v59  ;;  %6042 = vmatmul.msk.bf16.gmra.mxu0 %vm1882_vm3, %v3964_v49  ;;  %v3398_v5 = vmul.f32 %v9821_v45, %v3074_v44  ;;  %v3773_v62 = vpop.f32.mrf.mxu1  ;;  %v10259_v31 = vpop.xlane.xlu1 %2403  ;;  %v3280_v13 = vand.u32 2147483647, %v10203_v12  ;;  %v6366_v44 = vld [vmem:[#allocation7 + $0x38] sm:$0xff] }
 0x5cc   :  { %v4050_v20 = vpack.c.b16 %v4043_v30, %v4042_v4  ;;  %v3461_v43 = vpack.c.bf16 %v3397_v26, %v3397_v26  ;;  %v6518_v56 = vpack.i.bf16 %v3773_v62, %v3771_v3  ;;  %6856 = vrcp.f32 %v10259_v31  ;;  %v6855_v29 = vpop.eup %6854  ;;  %4412 = vmatpush.bf16.msra.mxu2 %v6366_v44 }
 0x5cd   :  { %v4051_v53 = vpack.c.b16 %v4045_v24, %v4044_v16  ;;  %v3462_v27 = vpack.c.bf16 %v3398_v5, %v3398_v5  ;;  %v3272_v28 = vmul.f32 %v6855_v29, %v10203_v12  ;;  %vm3277_vm7 = vweird.f32 %v6855_v29  ;;  %v6365_v16 = vld [vmem:[#allocation7 + $0x30] sm:$0xff] }
 0x5ce   :  { %v3878_v45 = vunpack.c.l.b16 %v3461_v43  ;;  %vm10276_vm8 = vmor %vm3276_vm4, %vm3277_vm7  ;;  %v3100_v6 = vand.u32 2147483648, %v10259_v31  ;;  %v3283_v12 = vor.u32 1.1754944e-38, %v3282_v25  ;;  %vm3281_vm15 = vcmp.eq.f32.partialorder %v3280_v13, 8.507059e+37 }
 0x5cf   :  { %4076 = vmatpush.bf16.msra.mxu1 %v4051_v53  ;;  %v3879_v38 = vunpack.c.l.b16 %v3462_v27  ;;  %v3273_v19 = vsub.f32 1.0, %v3272_v28  ;;  %vm3094_vm6 = vweird.f32 %v10259_v31  ;;  %v3098_v4 = vand.u32 2147483647, %v10259_v31 }
 0x5d0   :  { %6504 = vrot.lane.b32.xlu1 %v6503_v54, %s7141_s22  ;;  %v3101_v11 = vor.u32 1.1754944e-38, %v3100_v6  ;;  %4413 = vmatpush.bf16.msra.mxu2 %v6365_v16 }
 0x5d1   :  { %v3885_v21 = vpack.c.b16 %v3879_v38, %v3878_v45  ;;  %v3274_v2 = vmul.f32 %v6855_v29, %v3273_v19  ;;  %vm3099_vm13 = vcmp.eq.f32.partialorder %v3098_v4, 8.507059e+37 }
 0x5d2   :  { %v10263_v55 = vpop.eup %6856 }
 0x5d3   :  { %4077 = vmatpush.bf16.msra.mxu1 %v4050_v20  ;;  %v3090_v50 = vmul.f32 %v10263_v55, %v10259_v31  ;;  %v10267_v10 = vpop.xlane.xlu1 %2457  ;;  %v3275_v57 = vadd.f32 %v6855_v29, %v3274_v2  ;;  %vm3095_vm14 = vweird.f32 %v10263_v55  ;;  %v10301_v20 = vpop.f32.mrf.mxu3  ;;  %v6364_v31 = vld [vmem:[#allocation7 + $0x28] sm:$0xff] }
 0x5d4   :  { %vm10294_vm10 = vmor %vm3094_vm6, %vm3095_vm14  ;;  %4414 = vmatpush.bf16.msra.mxu2 %v6364_v31 }
 0x5d5   :  { %v3091_v51 = vsub.f32 1.0, %v3090_v50  ;;  %v3279_v59 = vsel %vm10276_vm8, %v6855_v29, %v3275_v57  ;;  %v6363_v50 = vld [vmem:[#allocation7 + $0x20] sm:$0xff] }
 0x5d6   :  { %6043 = vmatmul.msk.bf16.vlgmr.msra.gmra.mxu1 %vm1882_vm3, %v4038_v32  ;;  %v3284_v53 = vsel %vm3281_vm15, %v3283_v12, %v3279_v59 }
 0x5d7   :  { %v3092_v34 = vmul.f32 %v10263_v55, %v3091_v51 }
 0x5d8   :  { %6519 = vrot.lane.b32.xlu1 %v6518_v56, %s7141_s22  ;;  %v3413_v56 = vmul.f32 %v9833_v18, %v3284_v53  ;;  %4415 = vmatpush.bf16.msra.mxu2 %v6363_v50 }
 0x5d9   :  { %v3093_v3 = vadd.f32 %v10263_v55, %v3092_v34 }
 0x5da   :  { %6036 = vmatmul.msk.bf16.gmra.mxu3 %vm1882_vm3, %v3885_v21  ;;  %v3477_v57 = vpack.c.bf16 %v3413_v56, %v3413_v56 }
 0x5db   :  { %v3097_v27 = vsel %vm10294_vm10, %v10263_v55, %v3093_v3 }
 0x5dc   :  { %v3102_v29 = vsel %vm3099_vm13, %v3101_v11, %v3097_v27 }
 0x5dd   :  { %v10325_v13 = vmul.f32 %v9829_v47, %v3102_v29  ;;  %v6362_v47 = vld [vmem:[#allocation7 + $0x18] sm:$0xff] }
 0x5de   :  { %4416 = vmatpush.bf16.msra.mxu2 %v6362_v47 }
 0x5df   :  { %v3464_v31 = vpack.c.bf16 %v10325_v13, %v10325_v13 }
 0x5f5   :  { %v2446_v37 = vpop.xlane.xlu0 %2445 }
 0x5f6   :  { %6858 = vrcp.f32 %v2446_v37  ;;  %v3296_v23 = vand.u32 2147483648, %v2446_v37  ;;  %v3294_v22 = vand.u32 2147483647, %v2446_v37  ;;  %vm3290_vm12 = vweird.f32 %v2446_v37 }
 0x5f7   :  { %v3776_v52 = vpop.f32.mrf.mxu1  ;;  %6860 = vrcp.f32 %v10267_v10 }
 0x5f8   :  { %v3297_v32 = vor.u32 1.1754944e-38, %v3296_v23  ;;  %vm3295_vm9 = vcmp.eq.f32.partialorder %v3294_v22, 8.507059e+37 }
 0x5fc   :  { %v6859_v17 = vpop.eup %6858 }
 0x5fd   :  { %v3286_v1 = vmul.f32 %v6859_v17, %v2446_v37  ;;  %v10274_v48 = vpop.xlane.xlu0 %2448  ;;  %v10286_v63 = vpop.eup %6860  ;;  %vm3291_vm0 = vweird.f32 %v6859_v17 }
 0x5fe   :  { %6862 = vrcp.f32 %v10274_v48  ;;  %v3342_v43 = vmul.f32 %v10286_v63, %v10267_v10  ;;  %vm3292_vm2 = vmor %vm3290_vm12, %vm3291_vm0  ;;  %v3310_v36 = vand.u32 2147483648, %v10274_v48  ;;  %vm3304_vm5 = vweird.f32 %v10274_v48 }
 0x5ff   :  { %v3287_v24 = vsub.f32 1.0, %v3286_v1  ;;  %v4007_v49 = vpop.f32.mrf.mxu0  ;;  %v3778_v5 = vpop.f32.mrf.mxu1  ;;  %v3308_v1 = vand.u32 2147483647, %v10274_v48 }
 0x600   :  { %v6533_v54 = vpack.i.bf16 %v3778_v5, %v3776_v52  ;;  %v3343_v2 = vsub.f32 1.0, %v3342_v43  ;;  %v3311_v53 = vor.u32 1.1754944e-38, %v3310_v36  ;;  %v6361_v43 = vld [vmem:[#allocation7 + $0x10] sm:$0xff] }
 0x601   :  { %v3288_v35 = vmul.f32 %v6859_v17, %v3287_v24  ;;  %vm3309_vm8 = vcmp.eq.f32.partialorder %v3308_v1, 8.507059e+37  ;;  %4417 = vmatpush.bf16.msra.mxu2 %v6361_v43  ;;  %v3350_v43 = vand.u32 2147483647, %v10267_v10 }
 0x602   :  { %v10290_v33 = vpop.xlane.xlu2 %2400  ;;  %6534 = vrot.lane.b32.xlu1 %v6533_v54, %s7141_s22  ;;  %v3344_v3 = vmul.f32 %v10286_v63, %v3343_v2 }
 0x603   :  { %v3289_v26 = vadd.f32 %v6859_v17, %v3288_v35  ;;  %6864 = vrcp.f32 %v10290_v33  ;;  %v3086_v59 = vand.u32 2147483648, %v10290_v33  ;;  %v3084_v23 = vand.u32 2147483647, %v10290_v33  ;;  %v10345_v35 = vpop.f32.mrf.mxu3 }
 0x604   :  { %v10299_v40 = vpop.eup %6862  ;;  %vm3080_vm14 = vweird.f32 %v10290_v33 }
 0x605   :  { %v3293_v62 = vsel %vm3292_vm2, %v6859_v17, %v3289_v26  ;;  %v3300_v38 = vmul.f32 %v10299_v40, %v10274_v48  ;;  %v10312_v45 = vpop.xlane.xlu0 %2451  ;;  %vm3305_vm11 = vweird.f32 %v10299_v40  ;;  %v4032_v48 = vunpack.c.l.b16 %v3477_v57 }
 0x606   :  { %v3298_v21 = vsel %vm3295_vm9, %v3297_v32, %v3293_v62  ;;  %6866 = vrcp.f32 %v10312_v45  ;;  %vm10337_vm7 = vmor %vm3304_vm5, %vm3305_vm11  ;;  %v3087_v26 = vor.u32 1.1754944e-38, %v3086_v59  ;;  %v3324_v54 = vand.u32 2147483648, %v10312_v45 }
 0x607   :  { %v3301_v28 = vsub.f32 1.0, %v3300_v38  ;;  %v4009_v55 = vpop.f32.mrf.mxu0  ;;  %v3414_v19 = vmul.f32 %v9883_v7, %v3298_v21  ;;  %v10320_v17 = vpop.f32.mrf.mxu1  ;;  %v3322_v38 = vand.u32 2147483647, %v10312_v45  ;;  %vm3085_vm6 = vcmp.eq.f32.partialorder %v3084_v23, 8.507059e+37 }
 0x608   :  { %v6483_v52 = vpack.i.bf16 %v4009_v55, %v4007_v49  ;;  %vm3318_vm10 = vweird.f32 %v10312_v45  ;;  %v3325_v50 = vor.u32 1.1754944e-38, %v3324_v54  ;;  %vm3347_vm9 = vweird.f32 %v10286_v63 }
 0x609   :  { %v6865_v37 = vpop.eup %6864  ;;  %v3302_v51 = vmul.f32 %v10299_v40, %v3301_v28  ;;  %v3478_v25 = vpack.c.bf16 %v3414_v19, %v3414_v19  ;;  %vm3323_vm2 = vcmp.eq.f32.partialorder %v3322_v38, 8.507059e+37 }
 0x60a   :  { %v3076_v18 = vmul.f32 %v6865_v37, %v10290_v33  ;;  %v10322_v34 = vpop.xlane.xlu2 %2454  ;;  %6484 = vrot.lane.b32.xlu0 %v6483_v52, %s7140_s2  ;;  %vm3081_vm4 = vweird.f32 %v6865_v37  ;;  %v6360_v52 = vld [vmem:[#allocation7 + $0x8] sm:$0xff] }
 0x60b   :  { %v3303_v7 = vadd.f32 %v10299_v40, %v3302_v51  ;;  %6868 = vrcp.f32 %v10322_v34  ;;  %v4033_v24 = vunpack.c.l.b16 %v3478_v25  ;;  %vm3082_vm15 = vmor %vm3080_vm14, %vm3081_vm4  ;;  %v3352_v25 = vand.u32 2147483648, %v10267_v10  ;;  %4418 = vmatpush.bf16.msra.mxu2 %v6360_v52 }
 0x60c   :  { %v6867_v44 = vpop.eup %6866  ;;  %v3077_v6 = vsub.f32 1.0, %v3076_v18  ;;  %vm3332_vm13 = vweird.f32 %v10322_v34  ;;  %v3336_v47 = vand.u32 2147483647, %v10322_v34 }
 0x60d   :  { %v3314_v49 = vmul.f32 %v6867_v44, %v10312_v45  ;;  %v10343_v16 = vpop.xlane.xlu0 %2406  ;;  %v3307_v22 = vsel %vm10337_vm7, %v10299_v40, %v3303_v7  ;;  %v4039_v11 = vpack.c.b16 %v4033_v24, %v4032_v48  ;;  %vm3319_vm0 = vweird.f32 %v6867_v44  ;;  %v6359_v24 = vld [vmem:[#allocation7] sm:$0xff] }
 0x60e   :  { %v3078_v4 = vmul.f32 %v6865_v37, %v3077_v6  ;;  %6870 = vrcp.f32 %v10343_v16  ;;  %v3312_v40 = vsel %vm3309_vm8, %v3311_v53, %v3307_v22  ;;  %vm3320_vm12 = vmor %vm3318_vm10, %vm3319_vm0  ;;  %vm3108_vm7 = vweird.f32 %v10343_v16 }
 0x60f   :  { %v3315_v5 = vsub.f32 1.0, %v3314_v49  ;;  %v4012_v27 = vpop.f32.mrf.mxu0  ;;  %v3783_v21 = vpop.f32.mrf.mxu1  ;;  %6044 = vmatmul.msk.bf16.gmra.mxu1 %vm1882_vm3, %v4039_v11  ;;  %v3415_v51 = vmul.f32 %v9937_v39, %v3312_v40  ;;  %v3345_v39 = vadd.f32 %v10286_v63, %v3344_v3  ;;  %v3114_v53 = vand.u32 2147483648, %v10343_v16  ;;  %4419 = vmatpush.bf16.msra.mxu2 %v6359_v24 }
 0x610   :  { %v3079_v30 = vadd.f32 %v6865_v37, %v3078_v4  ;;  %v6548_v55 = vpack.i.bf16 %v3783_v21, %v10320_v17  ;;  %v10373_v17 = vpop.f32.mrf.mxu3  ;;  %v3338_v4 = vand.u32 2147483648, %v10322_v34  ;;  %vm3346_vm8 = vweird.f32 %v10267_v10 }
 0x611   :  { %v10353_v32 = vpop.eup %6868  ;;  %v3316_v62 = vmul.f32 %v6867_v44, %v3315_v5  ;;  %v3479_v59 = vpack.c.bf16 %v3415_v51, %v3415_v51  ;;  %vm3337_vm0 = vcmp.eq.f32.partialorder %v3336_v47, 8.507059e+37 }
 0x612   :  { %v3083_v56 = vsel %vm3082_vm15, %v6865_v37, %v3079_v30  ;;  %v3328_v33 = vmul.f32 %v10353_v32, %v10322_v34  ;;  %6549 = vrot.lane.b32.xlu1 %v6548_v55, %s7141_s22  ;;  %vm3333_vm11 = vweird.f32 %v10353_v32  ;;  %vm10412_vm15 = vmor %vm3346_vm8, %vm3347_vm9  ;;  %v3339_v21 = vor.u32 1.1754944e-38, %v3338_v4 }
 0x613   :  { %v3088_v29 = vsel %vm3085_vm6, %v3087_v26, %v3083_v56  ;;  %v3317_v28 = vadd.f32 %v6867_v44, %v3316_v62  ;;  %vm10396_vm4 = vmor %vm3332_vm13, %vm3333_vm11  ;;  %v3112_v26 = vand.u32 2147483647, %v10343_v16  ;;  %v3353_v62 = vor.u32 1.1754944e-38, %v3352_v25 }
 0x614   :  { %v10364_v19 = vpop.eup %6870  ;;  %v3329_v37 = vsub.f32 1.0, %v3328_v33  ;;  %v3399_v2 = vmul.f32 %v10067_v42, %v3088_v29  ;;  %v3349_v33 = vsel %vm10412_vm15, %v10286_v63, %v3345_v39  ;;  %vm4323_vm11 = vcmask 785408  }
 0x615   :  { %v3321_v57 = vsel %vm3320_vm12, %v6867_v44, %v3317_v28  ;;  %v3104_v18 = vmul.f32 %v10364_v19, %v10343_v16  ;;  %v10371_v45 = vpop.xlane.xlu0 %2409  ;;  %v3881_v44 = vunpack.c.l.b16 %v3464_v31  ;;  %vm3109_vm5 = vweird.f32 %v10364_v19 }
 0x616   :  { %v3326_v13 = vsel %vm3323_vm2, %v3325_v50, %v3321_v57  ;;  %v3330_v42 = vmul.f32 %v10353_v32, %v3329_v37  ;;  %6872 = vrcp.f32 %v10371_v45  ;;  %v3463_v1 = vpack.c.bf16 %v3399_v2, %v3399_v2  ;;  %vm10405_vm14 = vmor %vm3108_vm7, %vm3109_vm5 }
 0x617   :  { %v3105_v7 = vsub.f32 1.0, %v3104_v18  ;;  %v4014_v36 = vpop.f32.mrf.mxu0  ;;  %v3416_v6 = vmul.f32 %v10081_v61, %v3326_v13  ;;  %v3786_v49 = vpop.f32.mrf.mxu1  ;;  %v3115_v31 = vor.u32 1.1754944e-38, %v3114_v53  ;;  %vm3113_vm6 = vcmp.eq.f32.partialorder %v3112_v26, 8.507059e+37 }
 0x618   :  { %v6498_v3 = vpack.i.bf16 %v4014_v36, %v4012_v27  ;;  %v3331_v23 = vadd.f32 %v10353_v32, %v3330_v42  ;;  %v3880_v48 = vunpack.c.l.b16 %v3463_v1  ;;  %v4034_v27 = vunpack.c.l.b16 %v3479_v59  ;;  %v10426_v28 = vpop.f32.mrf.mxu3 }
 0x619   :  { %v3106_v12 = vmul.f32 %v10364_v19, %v3105_v7  ;;  %v3480_v22 = vpack.c.bf16 %v3416_v6, %v3416_v6  ;;  %v3128_v55 = vand.u32 2147483648, %v10371_v45  ;;  %vm3351_vm12 = vcmp.eq.f32.partialorder %v3350_v43, 8.507059e+37 }
 0x61a   :  { %6499 = vrot.lane.b32.xlu0 %v6498_v3, %s7140_s2  ;;  %v3886_v54 = vpack.c.b16 %v3881_v44, %v3880_v48  ;;  %v3335_v38 = vsel %vm10396_vm4, %v10353_v32, %v3331_v23  ;;  %v3126_v32 = vand.u32 2147483647, %v10371_v45  ;;  %v3354_v63 = vsel %vm3351_vm12, %v3353_v62, %v3349_v33 }
 0x61b   :  { %v3107_v61 = vadd.f32 %v10364_v19, %v3106_v12  ;;  %v4035_v11 = vunpack.c.l.b16 %v3480_v22  ;;  %v3340_v50 = vsel %vm3337_vm0, %v3339_v21, %v3335_v38  ;;  %vm3122_vm2 = vweird.f32 %v10371_v45 }
 0x61c   :  { %v6873_v5 = vpop.eup %6872  ;;  %6037 = vmatmul.msk.bf16.gmra.mxu3 %vm1882_vm3, %v3886_v54  ;;  %v3129_v57 = vor.u32 1.1754944e-38, %v3128_v55  ;;  %v3417_v25 = vmul.f32 %v10093_v0, %v3340_v50  ;;  %vm3127_vm13 = vcmp.eq.f32.partialorder %v3126_v32, 8.507059e+37  ;;  %v3418_v39 = vmul.f32 %v9844_v14, %v3354_v63 }
 0x61d   :  { %v3118_v34 = vmul.f32 %v6873_v5, %v10371_v45  ;;  %v3111_v10 = vsel %vm10405_vm14, %v10364_v19, %v3107_v61  ;;  %v4040_v56 = vpack.c.b16 %v4035_v11, %v4034_v27  ;;  %vm3123_vm10 = vweird.f32 %v6873_v5 }
 0x61e   :  { %v3116_v19 = vsel %vm3113_vm6, %v3115_v31, %v3111_v10  ;;  %vm3124_vm9 = vmor %vm3122_vm2, %vm3123_vm10  ;;  %v3481_v36 = vpack.c.bf16 %v3417_v25, %v3417_v25  ;;  %v3482_v59 = vpack.c.bf16 %v3418_v39, %v3418_v39 }
 0x61f   :  { %v3119_v29 = vsub.f32 1.0, %v3118_v34  ;;  %v3788_v2 = vpop.f32.mrf.mxu1  ;;  %6045 = vmatmul.msk.bf16.gmra.mxu1 %vm1882_vm3, %v4040_v56  ;;  %v3401_v18 = vmul.f32 %v10098_v60, %v3116_v19 }
 0x620   :  { %v6563_v52 = vpack.i.bf16 %v3788_v2, %v3786_v49  ;;  %v10437_v45 = vpop.f32.mrf.mxu3  ;;  %v4036_v47 = vunpack.c.l.b16 %v3481_v36  ;;  %v4037_v23 = vunpack.c.l.b16 %v3482_v59  ;;  %v6465_v49 = vpop.permute.xlu2 %6464 }
 0x621   :  { %v3120_v37 = vmul.f32 %v6873_v5, %v3119_v29  ;;  %v3465_v1 = vpack.c.bf16 %v3401_v18, %v3401_v18  ;;  %v6467_v22 = vunpack.i.h.bf16 %v6465_v49  ;;  %v6466_v4 = vunpack.i.l.bf16 %v6465_v49 }
 0x622   :  { %6564 = vrot.lane.b32.xlu1 %v6563_v52, %s7141_s22  ;;  %v4041_v14 = vpack.c.b16 %v4037_v23, %v4036_v47 }
 0x623   :  { %v3121_v51 = vadd.f32 %v6873_v5, %v3120_v37  ;;  %v3882_v24 = vunpack.c.l.b16 %v3465_v1 }
 0x625   :  { %v3125_v13 = vsel %vm3124_vm9, %v6873_v5, %v3121_v51 }
 0x626   :  { %v3130_v42 = vsel %vm3127_vm13, %v3129_v57, %v3125_v13 }
 0x627   :  { %v3402_v7 = vmul.f32 %v10107_v9, %v3130_v42 }
 0x628   :  { %v6460_v6 = vpop.permute.xlu0 %6459  ;;  %v10445_v61 = vpop.f32.mrf.mxu3 }
 0x629   :  { %v3466_v44 = vpack.c.bf16 %v3402_v7, %v3402_v7  ;;  %v6462_v0 = vunpack.i.h.bf16 %v6460_v6  ;;  %v6461_v12 = vunpack.i.l.bf16 %v6460_v6  ;;  %v6480_v37 = vpop.permute.xlu2 %6479 }
 0x62a   :  { %v6482_v51 = vunpack.i.h.bf16 %v6480_v37  ;;  %v6481_v52 = vunpack.i.l.bf16 %v6480_v37 }
 0x62b   :  { %v3883_v60 = vunpack.c.l.b16 %v3466_v44  ;;  %v4292_v9 = vsel %vm1209_vm1, %v9813_v15, %v6462_v0  ;;  %v4291_v48 = vsel %vm1209_vm1, %v9799_v58, %v6461_v12 }
 0x62c   :  { %v4307_v5 = vsel %vm1882_vm3, %v4291_v48, %v6466_v4  ;;  %v4308_v30 = vsel %vm1882_vm3, %v4292_v9, %v6467_v22 }
 0x62d   :  { %v3887_v3 = vpack.c.b16 %v3883_v60, %v3882_v24  ;;  %v11442_v24 = vld [vmem:[#allocation24_spill] sm:$0xff] }
 0x62f   :  { %6038 = vmatmul.msk.bf16.gmra.mxu3 %vm1882_vm3, %v3887_v3  ;;  %6046 = vmatmul.msk.bf16.gmra.mxu1 %vm1882_vm3, %v4041_v14 }
 0x630   :  { %v10451_v58 = vpop.f32.mrf.mxu3  ;;  %v6475_v55 = vpop.permute.xlu0 %6474 }
 0x631   :  { %v6477_v50 = vunpack.i.h.bf16 %v6475_v55  ;;  %v6476_v19 = vunpack.i.l.bf16 %v6475_v55  ;;  %v6495_v6 = vpop.permute.xlu2 %6494 }
 0x632   :  { %v6470_v53 = vpop.permute.xlu1 %6469  ;;  %v6497_v47 = vunpack.i.h.bf16 %v6495_v6  ;;  %v6496_v0 = vunpack.i.l.bf16 %v6495_v6 }
 0x633   :  { %v6472_v26 = vunpack.i.h.bf16 %v6470_v53  ;;  %v6471_v54 = vunpack.i.l.bf16 %v6470_v53  ;;  %v4294_v2 = vsel %vm1209_vm1, %v9842_v41, %v6477_v50  ;;  %v4293_v63 = vsel %vm1209_vm1, %v9825_v46, %v6476_v19  ;;  %v11441_v46 = vld [vmem:[#allocation25_spill] sm:$0xff] }
 0x634   :  { %v4309_v13 = vsel %vm1882_vm3, %v4293_v63, %v6481_v52  ;;  %v4310_v42 = vsel %vm1882_vm3, %v4294_v2, %v6482_v51  ;;  %v11443_v2 = vld [vmem:[#allocation27_spill] sm:$0xff] }
 0x635   :  { %v4324_v27 = vsel %vm4323_vm11, %v4307_v5, %v6471_v54  ;;  %v4325_v15 = vsel %vm4323_vm11, %v4308_v30, %v6472_v26 }
 0x636   :  { %v4340_v11 = vpack.c.bf16 %v4325_v15, %v4324_v27 }
 0x638   :  { %4420 = vmatmul.bf16.vlgmr.msra.gmra.mxu2 %v4340_v11  ;;  %v10453_v43 = vpop.f32.mrf.mxu3 }
 0x639   :  { %v6510_v19 = vpop.permute.xlu2 %6509 }
 0x63a   :  { %v6490_v36 = vpop.permute.xlu1 %6489  ;;  %v6512_v51 = vunpack.i.h.bf16 %v6510_v19  ;;  %v6511_v52 = vunpack.i.l.bf16 %v6510_v19 }
 0x63b   :  { %v6492_v41 = vunpack.i.h.bf16 %v6490_v36  ;;  %v6491_v44 = vunpack.i.l.bf16 %v6490_v36 }
 0x63d   :  { %v4296_v59 = vsel %vm1209_vm1, %v11441_v46, %v6492_v41  ;;  %v4295_v60 = vsel %vm1209_vm1, %v11442_v24, %v6491_v44 }
 0x63e   :  { %v4311_v14 = vsel %vm1882_vm3, %v4295_v60, %v6496_v0  ;;  %v4312_v9 = vsel %vm1882_vm3, %v4296_v59, %v6497_v47 }
 0x648   :  { %v4017_v40 = vpop.f32.mrf.mxu0 }
 0x64d   :  { %v3925_v34 = vpop.f32.mrf.mxu3 }
 0x650   :  { %v4019_v16 = vpop.f32.mrf.mxu0 }
 0x651   :  { %v6513_v62 = vpack.i.bf16 %v4019_v16, %v4017_v40 }
 0x653   :  { %v4079_v38 = vpop.f32.mrf.mxu1  ;;  %6514 = vrot.lane.b32.xlu0 %v6513_v62, %s7140_s2 }
 0x655   :  { %v3927_v10 = vpop.f32.mrf.mxu3 }
 0x656   :  { %v6523_v56 = vpack.i.bf16 %v3927_v10, %v3925_v34  ;;  %v10482_v10 = vld [vmem:[%s11034_s5] ss:$0 sm:$0xff] }
 0x658   :  { %6524 = vrot.lane.b32.xlu2 %v6523_v56, %s7135_s15 }
 0x65b   :  { %v4081_v33 = vpop.f32.mrf.mxu1 }
 0x65c   :  { %v6528_v21 = vpack.i.bf16 %v4081_v33, %v4079_v38 }
 0x65d   :  { %v3930_v31 = vpop.f32.mrf.mxu3 }
 0x65e   :  { %6529 = vrot.lane.b32.xlu0 %v6528_v21, %s7140_s2  ;;  %v6906_v21 = vld [vmem:[#allocation2] sm:$0xff] }
 0x665   :  { %v3932_v29 = vpop.f32.mrf.mxu3 }
 0x666   :  { %v6538_v32 = vpack.i.bf16 %v3932_v29, %v3930_v31  ;;  %v6505_v29 = vpop.permute.xlu1 %6504 }
 0x667   :  { %v6507_v55 = vunpack.i.h.bf16 %v6505_v29  ;;  %v6506_v50 = vunpack.i.l.bf16 %v6505_v29 }
 0x668   :  { %6539 = vrot.lane.b32.xlu2 %v6538_v32, %s7135_s15 }
 0x669   :  { %v4298_v37 = vsel %vm1209_vm1, %v9982_v8, %v6507_v55  ;;  %v4297_v63 = vsel %vm1209_vm1, %v11443_v2, %v6506_v50 }
 0x66e   :  { %v6520_v36 = vpop.permute.xlu1 %6519 }
 0x66f   :  { %v6522_v44 = vunpack.i.h.bf16 %v6520_v36  ;;  %v6521_v6 = vunpack.i.l.bf16 %v6520_v36 }
 0x671   :  { %v4300_v47 = vsel %vm1209_vm1, %v10345_v35, %v6522_v44  ;;  %v4299_v0 = vsel %vm1209_vm1, %v10301_v20, %v6521_v6  ;;  %v6911_v6 = vld [vmem:[#allocation2 + $0x28] sm:$0xff] }
 0x676   :  { %v6535_v35 = vpop.permute.xlu1 %6534 }
 0x67c   :  { %v6485_v57 = vpop.permute.xlu0 %6484 }
 0x67d   :  { %v6487_v18 = vunpack.i.h.bf16 %v6485_v57  ;;  %v6486_v25 = vunpack.i.l.bf16 %v6485_v57 }
 0x67f   :  { %v4326_v39 = vsel %vm4323_vm11, %v4309_v13, %v6486_v25  ;;  %v4327_v7 = vsel %vm4323_vm11, %v4310_v42, %v6487_v18  ;;  %v4313_v13 = vsel %vm1882_vm3, %v4297_v63, %v6511_v52  ;;  %v4314_v42 = vsel %vm1882_vm3, %v4298_v37, %v6512_v51  ;;  %v6910_v63 = vld [vmem:[#allocation2 + $0x20] sm:$0xff] }
 0x680   :  { %v4341_v1 = vpack.c.bf16 %v4327_v7, %v4326_v39 }
 0x682   :  { %4425 = vmatmul.bf16.gmra.mxu2 %v4341_v1 }
 0x68c   :  { %v6500_v12 = vpop.permute.xlu0 %6499  ;;  %v4084_v49 = vpop.f32.mrf.mxu1 }
 0x68d   :  { %v6502_v3 = vunpack.i.h.bf16 %v6500_v12  ;;  %v6501_v23 = vunpack.i.l.bf16 %v6500_v12 }
 0x68f   :  { %v4328_v48 = vsel %vm4323_vm11, %v4311_v14, %v6501_v23  ;;  %v4329_v22 = vsel %vm4323_vm11, %v4312_v9, %v6502_v3 }
 0x690   :  { %v4342_v4 = vpack.c.bf16 %v4329_v22, %v4328_v48  ;;  %v6907_v48 = vld [vmem:[#allocation2 + $0x8] sm:$0xff] }
 0x692   :  { %4430 = vmatmul.bf16.gmra.mxu2 %v4342_v4 }
 0x694   :  { %v4086_v53 = vpop.f32.mrf.mxu1 }
 0x695   :  { %v6543_v5 = vpack.i.bf16 %v4086_v53, %v4084_v49 }
 0x697   :  { %6544 = vrot.lane.b32.xlu0 %v6543_v5, %s7140_s2  ;;  %v6908_v5 = vld [vmem:[#allocation2 + $0x10] sm:$0xff] }
 0x69c   :  { %v4089_v30 = vpop.f32.mrf.mxu1 }
 0x69f   :  { %v3935_v26 = vpop.f32.mrf.mxu3 }
 0x6a4   :  { %v4091_v54 = vpop.f32.mrf.mxu1 }
 0x6a5   :  { %v6558_v27 = vpack.i.bf16 %v4091_v54, %v4089_v30  ;;  %v6536_v54 = vunpack.i.l.bf16 %v6535_v35 }
 0x6a7   :  { %v3937_v15 = vpop.f32.mrf.mxu3  ;;  %6559 = vrot.lane.b32.xlu0 %v6558_v27, %s7140_s2 }
 0x6a8   :  { %v6553_v11 = vpack.i.bf16 %v3937_v15, %v3935_v26  ;;  %v6537_v26 = vunpack.i.h.bf16 %v6535_v35 }
 0x6aa   :  { %6554 = vrot.lane.b32.xlu2 %v6553_v11, %s7135_s15 }
 0x6ac   :  { %v4094_v40 = vpop.f32.mrf.mxu1 }
 0x6b2   :  { %v3940_v34 = vpop.f32.mrf.mxu3  ;;  %v6525_v8 = vpop.permute.xlu2 %6524 }
 0x6b3   :  { %v6527_v46 = vunpack.i.h.bf16 %v6525_v8  ;;  %v6526_v59 = vunpack.i.l.bf16 %v6525_v8 }
 0x6b4   :  { %v4096_v16 = vpop.f32.mrf.mxu1 }
 0x6b5   :  { %v6573_v62 = vpack.i.bf16 %v4096_v16, %v4094_v40  ;;  %v4316_v12 = vsel %vm1882_vm3, %v4300_v47, %v6527_v46  ;;  %v4315_v3 = vsel %vm1882_vm3, %v4299_v0, %v6526_v59  ;;  %v4301_v16 = vsel %vm1209_vm1, %v10373_v17, %v6536_v54  ;;  %v6550_v17 = vpop.permute.xlu1 %6549  ;;  %v11444_v54 = vld [vmem:[#allocation20_spill] sm:$0xff] }
 0x6b6   :  { %v6552_v52 = vunpack.i.h.bf16 %v6550_v17 }
 0x6b7   :  { %6574 = vrot.lane.b32.xlu0 %v6573_v62, %s7140_s2 }
 0x6ba   :  { %v3942_v38 = vpop.f32.mrf.mxu3 }
 0x6bb   :  { %v6568_v56 = vpack.i.bf16 %v3942_v38, %v3940_v34  ;;  %v4421_v33 = vpop.f32.mrf.mxu2  ;;  %v4302_v34 = vsel %vm1209_vm1, %v10426_v28, %v6537_v26 }
 0x6bc   :  { %v4461_v31 = vadd.f32 %v6906_v21, %v4421_v33 }
 0x6bd   :  { %6569 = vrot.lane.b32.xlu2 %v6568_v56, %s7135_s15 }
 0x6be   :  { %v10486_v32 = vadd.f32 %v10482_v10, %v4461_v31  ;;  %v6909_v31 = vld [vmem:[#allocation2 + $0x18] sm:$0xff] }
 0x6c0   :  { %4499 = vadd.xlane.f32.xlu1 %v10486_v32 }
 0x6c2   :  { %v6540_v53 = vpop.permute.xlu2 %6539 }
 0x6c3   :  { %v4423_v9 = vpop.f32.mrf.mxu2  ;;  %v6542_v15 = vunpack.i.h.bf16 %v6540_v53  ;;  %v6541_v11 = vunpack.i.l.bf16 %v6540_v53 }
 0x6c4   :  { %v4462_v22 = vadd.f32 %v6907_v48, %v4423_v9 }
 0x6c5   :  { %v6515_v57 = vpop.permute.xlu0 %6514  ;;  %v4318_v56 = vsel %vm1882_vm3, %v4302_v34, %v6542_v15  ;;  %v4317_v33 = vsel %vm1882_vm3, %v4301_v16, %v6541_v11 }
 0x6c6   :  { %v6517_v18 = vunpack.i.h.bf16 %v6515_v57  ;;  %v6516_v25 = vunpack.i.l.bf16 %v6515_v57  ;;  %v10506_v4 = vadd.f32 %v10482_v10, %v4462_v22  ;;  %v6551_v57 = vunpack.i.l.bf16 %v6550_v17 }
 0x6c8   :  { %v4330_v39 = vsel %vm4323_vm11, %v4313_v13, %v6516_v25  ;;  %v4331_v7 = vsel %vm4323_vm11, %v4314_v42, %v6517_v18 }
 0x6c9   :  { %v4343_v1 = vpack.c.bf16 %v4331_v7, %v4330_v39  ;;  %v4304_v39 = vsel %vm1209_vm1, %v10445_v61, %v6552_v52  ;;  %v4303_v7 = vsel %vm1209_vm1, %v10437_v45, %v6551_v57  ;;  %v6565_v45 = vpop.permute.xlu1 %6564 }
 0x6ca   :  { %v6567_v0 = vunpack.i.h.bf16 %v6565_v45 }
 0x6cb   :  { %4435 = vmatmul.bf16.gmra.mxu2 %v4343_v1 }
 0x6d0   :  { %v6530_v41 = vpop.permute.xlu0 %6529 }
 0x6d1   :  { %v6532_v24 = vunpack.i.h.bf16 %v6530_v41  ;;  %v6531_v60 = vunpack.i.l.bf16 %v6530_v41 }
 0x6d3   :  { %v4332_v23 = vsel %vm4323_vm11, %v4315_v3, %v6531_v60  ;;  %v4333_v49 = vsel %vm4323_vm11, %v4316_v12, %v6532_v24  ;;  %v6566_v12 = vunpack.i.l.bf16 %v6565_v45 }
 0x6d4   :  { %v4344_v14 = vpack.c.bf16 %v4333_v49, %v4332_v23 }
 0x6d5   :  { %v4305_v9 = vsel %vm1209_vm1, %v10451_v58, %v6566_v12 }
 0x6db   :  { %4440 = vmatmul.bf16.gmra.mxu2 %v4344_v14  ;;  %v4306_v14 = vsel %vm1209_vm1, %v10453_v43, %v6567_v0 }
 0x6e6   :  { %4501 = vadd.xlane.f32.xlu2 %v10506_v4 }
 0x704   :  { %v6555_v2 = vpop.permute.xlu2 %6554 }
 0x705   :  { %v4426_v20 = vpop.f32.mrf.mxu2  ;;  %v6557_v25 = vunpack.i.h.bf16 %v6555_v2  ;;  %v6556_v13 = vunpack.i.l.bf16 %v6555_v2 }
 0x706   :  { %v4463_v30 = vadd.f32 %v6908_v5, %v4426_v20 }
 0x707   :  { %v4320_v8 = vsel %vm1882_vm3, %v4304_v39, %v6557_v25  ;;  %v4319_v41 = vsel %vm1882_vm3, %v4303_v7, %v6556_v13  ;;  %v6915_v13 = vld [vmem:[#allocation2 + $0x48] sm:$0xff] }
 0x708   :  { %v10510_v27 = vadd.f32 %v10482_v10, %v4463_v30 }
 0x709   :  { %v6545_v40 = vpop.permute.xlu0 %6544 }
 0x70a   :  { %4503 = vadd.xlane.f32.xlu0 %v10510_v27  ;;  %v6547_v62 = vunpack.i.h.bf16 %v6545_v40  ;;  %v6546_v38 = vunpack.i.l.bf16 %v6545_v40  ;;  %v6912_v40 = vld [vmem:[#allocation2 + $0x30] sm:$0xff] }
 0x70c   :  { %v4334_v55 = vsel %vm4323_vm11, %v4317_v33, %v6546_v38  ;;  %v4335_v50 = vsel %vm4323_vm11, %v4318_v56, %v6547_v62  ;;  %v6913_v38 = vld [vmem:[#allocation2 + $0x38] sm:$0xff] }
 0x70d   :  { %v4428_v21 = vpop.f32.mrf.mxu2  ;;  %v4345_v19 = vpack.c.bf16 %v4335_v50, %v4334_v55 }
 0x70e   :  { %v4464_v29 = vadd.f32 %v6909_v31, %v4428_v21 }
 0x70f   :  { %4445 = vmatmul.bf16.gmra.mxu2 %v4345_v19  ;;  %v6914_v19 = vld [vmem:[#allocation2 + $0x40] sm:$0xff] }
 0x710   :  { %v10522_v37 = vadd.f32 %v10482_v10, %v4464_v29 }
 0x712   :  { %4505 = vadd.xlane.f32.xlu1 %v10522_v37 }
 0x715   :  { %v4431_v28 = vpop.f32.mrf.mxu2 }
 0x716   :  { %v4465_v51 = vadd.f32 %v6910_v63, %v4431_v28 }
 0x717   :  { %v6570_v61 = vpop.permute.xlu2 %6569 }
 0x718   :  { %v10526_v18 = vadd.f32 %v10482_v10, %v4465_v51  ;;  %v6572_v3 = vunpack.i.h.bf16 %v6570_v61  ;;  %v6571_v23 = vunpack.i.l.bf16 %v6570_v61 }
 0x719   :  { %v6560_v42 = vpop.permute.xlu0 %6559 }
 0x71a   :  { %4507 = vadd.xlane.f32.xlu2 %v10526_v18  ;;  %v6562_v1 = vunpack.i.h.bf16 %v6560_v42  ;;  %v6561_v36 = vunpack.i.l.bf16 %v6560_v42  ;;  %v4322_v35 = vsel %vm1882_vm3, %v4306_v14, %v6572_v3  ;;  %v4321_v20 = vsel %vm1882_vm3, %v4305_v9, %v6571_v23  ;;  %v6917_v23 = vld [vmem:[#allocation2 + $0x58] sm:$0xff] }
 0x71c   :  { %v4336_v59 = vsel %vm4323_vm11, %v4319_v41, %v6561_v36  ;;  %v4337_v24 = vsel %vm4323_vm11, %v4320_v8, %v6562_v1 }
 0x71d   :  { %v4433_v44 = vpop.f32.mrf.mxu2  ;;  %v4346_v60 = vpack.c.bf16 %v4337_v24, %v4336_v59  ;;  %v6916_v59 = vld [vmem:[#allocation2 + $0x50] sm:$0xff] }
 0x71e   :  { %v4466_v46 = vadd.f32 %v6911_v6, %v4433_v44 }
 0x71f   :  { %4450 = vmatmul.bf16.gmra.mxu2 %v4346_v60 }
 0x720   :  { %v10538_v47 = vadd.f32 %v10482_v10, %v4466_v46 }
 0x722   :  { %4509 = vadd.xlane.f32.xlu0 %v10538_v47 }
 0x729   :  { %v6575_v49 = vpop.permute.xlu0 %6574 }
 0x72a   :  { %v6577_v48 = vunpack.i.h.bf16 %v6575_v49  ;;  %v6576_v22 = vunpack.i.l.bf16 %v6575_v49 }
 0x72c   :  { %v4338_v53 = vsel %vm4323_vm11, %v4321_v20, %v6576_v22  ;;  %v4339_v5 = vsel %vm4323_vm11, %v4322_v35, %v6577_v48  ;;  %v6918_v48 = vld [vmem:[#allocation2 + $0x60] sm:$0xff] }
 0x72d   :  { %v4347_v30 = vpack.c.bf16 %v4339_v5, %v4338_v53  ;;  %v6137_v20 = vld [vmem:[#allocation11 + $0xe0] sm:$0xf]  ;;  %v6382_v53 = vld [vmem:[#allocation11 + $0xec] sm:$0xf0]  ;;  %v6381_v5 = vld [vmem:[#allocation11 + $0xe4] sm:$0xf] }
 0x72f   :  { %4455 = vmatmul.bf16.gmra.mxu2 %v4347_v30  ;;  %v6138_v30 = vor.u32 %v6382_v53, %v6137_v20 }
 0x731   :  { %4967 = vmatpush.bf16.msra.mxu3 %v6138_v30  ;;  %v6374_v30 = vld [vmem:[#allocation11 + $0x6c] sm:$0xf0] }
 0x733   :  { %v4500_v26 = vpop.xlane.xlu1 %4499 }
 0x734   :  { %v4531_v15 = vmul.f32 %v4500_v26, %v11444_v54  ;;  %v6139_v26 = vld [vmem:[#allocation11 + $0xf0] sm:$0xf0] }
 0x736   :  { %v10551_v43 = vsub.f32 %v10486_v32, %v4531_v15  ;;  %v6142_v15 = vor.u32 %v6381_v5, %v6139_v26  ;;  %v6105_v5 = vld [vmem:[#allocation11 + $0x60] sm:$0xf] }
 0x738   :  { %v4563_v58 = vmul.f32 %v10551_v43, %v10551_v43  ;;  %5016 = vmatpush.bf16.msrb.mxu0 %v6142_v15  ;;  %v6373_v15 = vld [vmem:[#allocation11 + $0x64] sm:$0xf] }
 0x73a   :  { %4579 = vadd.xlane.f32.xlu1 %v4563_v58 }
 0x74e   :  { %v4436_v11 = vpop.f32.mrf.mxu2 }
 0x74f   :  { %v4467_v34 = vadd.f32 %v6912_v40, %v4436_v11 }
 0x751   :  { %v10556_v16 = vadd.f32 %v10482_v10, %v4467_v34 }
 0x753   :  { %4511 = vadd.xlane.f32.xlu0 %v10556_v16 }
 0x756   :  { %v4438_v62 = vpop.f32.mrf.mxu2 }
 0x757   :  { %v4468_v56 = vadd.f32 %v6913_v38, %v4438_v62 }
 0x759   :  { %v4502_v33 = vpop.xlane.xlu2 %4501  ;;  %v10560_v21 = vadd.f32 %v10482_v10, %v4468_v56 }
 0x75a   :  { %v4532_v31 = vmul.f32 %v4502_v33, %v11444_v54 }
 0x75b   :  { %4513 = vadd.xlane.f32.xlu1 %v10560_v21 }
 0x75c   :  { %v10564_v29 = vsub.f32 %v10506_v4, %v4532_v31 }
 0x75e   :  { %v4564_v55 = vmul.f32 %v10564_v29, %v10564_v29  ;;  %v4441_v50 = vpop.f32.mrf.mxu2 }
 0x75f   :  { %v4469_v17 = vadd.f32 %v6914_v19, %v4441_v50  ;;  %v6380_v50 = vld [vmem:[#allocation11 + $0xcc] sm:$0xf0]  ;;  %v6379_v19 = vld [vmem:[#allocation11 + $0xc4] sm:$0xf] }
 0x760   :  { %4581 = vadd.xlane.f32.xlu2 %v4564_v55  ;;  %v6129_v55 = vld [vmem:[#allocation11 + $0xc0] sm:$0xf] }
 0x761   :  { %v10570_v28 = vadd.f32 %v10482_v10, %v4469_v17  ;;  %v6130_v17 = vor.u32 %v6380_v50, %v6129_v55  ;;  %v6106_v55 = vor.u32 %v6374_v30, %v6105_v5  ;;  %v6083_v5 = vld [vmem:[#allocation11 + $0x10] sm:$0xf0] }
 0x763   :  { %4515 = vadd.xlane.f32.xlu1 %v10570_v28  ;;  %4968 = vmatpush.bf16.msra.mxu3 %v6130_v17  ;;  %v6372_v17 = vld [vmem:[#allocation11 + $0x4c] sm:$0xf0] }
 0x766   :  { %v4443_v57 = vpop.f32.mrf.mxu2 }
 0x767   :  { %v4470_v42 = vadd.f32 %v6915_v13, %v4443_v57 }
 0x769   :  { %v10584_v1 = vadd.f32 %v10482_v10, %v4470_v42  ;;  %v6377_v42 = vld [vmem:[#allocation11 + $0xa4] sm:$0xf] }
 0x77d   :  { %v4504_v2 = vpop.xlane.xlu0 %4503 }
 0x77e   :  { %v4533_v63 = vmul.f32 %v4504_v2, %v11444_v54  ;;  %v6131_v2 = vld [vmem:[#allocation11 + $0xd0] sm:$0xf0] }
 0x77f   :  { %v6134_v13 = vor.u32 %v6379_v19, %v6131_v2  ;;  %v6097_v19 = vld [vmem:[#allocation11 + $0x40] sm:$0xf] }
 0x780   :  { %v10575_v51 = vsub.f32 %v10510_v27, %v4533_v63  ;;  %v6121_v63 = vld [vmem:[#allocation11 + $0xa0] sm:$0xf] }
 0x781   :  { %5017 = vmatpush.bf16.msrb.mxu0 %v6134_v13 }
 0x782   :  { %v4565_v52 = vmul.f32 %v10575_v51, %v10575_v51 }
 0x784   :  { %4583 = vadd.xlane.f32.xlu2 %v4565_v52  ;;  %v6378_v52 = vld [vmem:[#allocation11 + $0xac] sm:$0xf0] }
 0x785   :  { %v4506_v25 = vpop.xlane.xlu1 %4505 }
 0x786   :  { %v4534_v39 = vmul.f32 %v4506_v25, %v11444_v54 }
 0x788   :  { %v10581_v7 = vsub.f32 %v10522_v37, %v4534_v39  ;;  %v6123_v39 = vld [vmem:[#allocation11 + $0xb0] sm:$0xf0] }
 0x78a   :  { %v4566_v36 = vmul.f32 %v10581_v7, %v10581_v7 }
 0x78c   :  { %4585 = vadd.xlane.f32.xlu0 %v4566_v36  ;;  %4517 = vadd.xlane.f32.xlu2 %v10584_v1  ;;  %v6919_v36 = vld [vmem:[#allocation2 + $0x68] sm:$0xff] }
 0x78d   :  { %v4508_v8 = vpop.xlane.xlu2 %4507 }
 0x78e   :  { %v4535_v41 = vmul.f32 %v4508_v8, %v11444_v54 }
 0x790   :  { %v10591_v44 = vsub.f32 %v10526_v18, %v4535_v41 }
 0x792   :  { %v4567_v6 = vmul.f32 %v10591_v44, %v10591_v44  ;;  %v4446_v46 = vpop.f32.mrf.mxu2 }
 0x793   :  { %v4471_v24 = vadd.f32 %v6916_v59, %v4446_v46  ;;  %v6126_v46 = vor.u32 %v6377_v42, %v6123_v39  ;;  %v6113_v59 = vld [vmem:[#allocation11 + $0x80] sm:$0xf]  ;;  %v6098_v42 = vor.u32 %v6372_v17, %v6097_v19 }
 0x794   :  { %4587 = vadd.xlane.f32.xlu0 %v4567_v6  ;;  %v6122_v6 = vor.u32 %v6378_v52, %v6121_v63  ;;  %v6371_v63 = vld [vmem:[#allocation11 + $0x44] sm:$0xf]  ;;  %v6099_v52 = vld [vmem:[#allocation11 + $0x50] sm:$0xf0] }
 0x795   :  { %v4510_v60 = vpop.xlane.xlu0 %4509  ;;  %v10597_v61 = vadd.f32 %v10482_v10, %v4471_v24  ;;  %v6376_v24 = vld [vmem:[#allocation11 + $0x8c] sm:$0xf0]  ;;  %5018 = vmatpush.bf16.msrb.mxu0 %v6126_v46  ;;  %v6369_v46 = vld [vmem:[#allocation11 + $0x24] sm:$0xf] }
 0x796   :  { %v4536_v45 = vmul.f32 %v4510_v60, %v11444_v54  ;;  %4969 = vmatpush.bf16.msra.mxu3 %v6122_v6  ;;  %v6114_v20 = vor.u32 %v6376_v24, %v6113_v59  ;;  %v6091_v59 = vld [vmem:[#allocation11 + $0x30] sm:$0xf0] }
 0x797   :  { %4519 = vadd.xlane.f32.xlu2 %v10597_v61 }
 0x798   :  { %v10600_v0 = vsub.f32 %v10538_v47, %v4536_v45  ;;  %v6375_v45 = vld [vmem:[#allocation11 + $0x84] sm:$0xf] }
 0x79a   :  { %v4568_v12 = vmul.f32 %v10600_v0, %v10600_v0  ;;  %v4448_v3 = vpop.f32.mrf.mxu2  ;;  %4970 = vmatpush.bf16.msra.mxu3 %v6114_v20  ;;  %v6368_v20 = vld [vmem:[#allocation11 + $0xc] sm:$0xf0] }
 0x79b   :  { %v4472_v49 = vadd.f32 %v6917_v23, %v4448_v3 }
 0x79c   :  { %4589 = vadd.xlane.f32.xlu1 %v4568_v12  ;;  %v6115_v12 = vld [vmem:[#allocation11 + $0x90] sm:$0xf0] }
 0x79d   :  { %v10606_v14 = vadd.f32 %v10482_v10, %v4472_v49  ;;  %v6118_v53 = vor.u32 %v6375_v45, %v6115_v12  ;;  %v6921_v12 = vld [vmem:[#allocation2 + $0x78] sm:$0xff] }
 0x79e   :  { %4971 = vmatpush.bf16.msra.mxu3 %v6106_v55 }
 0x79f   :  { %4521 = vadd.xlane.f32.xlu0 %v10606_v14  ;;  %5019 = vmatpush.bf16.msrb.mxu0 %v6118_v53  ;;  %v6367_v53 = vld [vmem:[#allocation11 + $0x4] sm:$0xf] }
 0x7a2   :  { %v4451_v9 = vpop.f32.mrf.mxu2  ;;  %4972 = vmatpush.bf16.msra.mxu3 %v6098_v42 }
 0x7a3   :  { %v4473_v22 = vadd.f32 %v6918_v48, %v4451_v9 }
 0x7a5   :  { %v10610_v35 = vadd.f32 %v10482_v10, %v4473_v22 }
 0x7a7   :  { %4523 = vadd.xlane.f32.xlu0 %v10610_v35 }
 0x7aa   :  { %v4453_v38 = vpop.f32.mrf.mxu2 }
 0x7ab   :  { %v4474_v8 = vadd.f32 %v6919_v36, %v4453_v38  ;;  %v6102_v36 = vor.u32 %v6371_v63, %v6099_v52 }
 0x7ad   :  { %v4580_v58 = vpop.xlane.xlu1 %4579  ;;  %v10633_v9 = vadd.f32 %v10482_v10, %v4474_v8  ;;  %v6089_v8 = vld [vmem:[#allocation11 + $0x20] sm:$0xf] }
 0x7ae   :  { %v4611_v11 = vmul.f32 %v4580_v58, %v11444_v54  ;;  %v6107_v58 = vld [vmem:[#allocation11 + $0x70] sm:$0xf0] }
 0x7af   :  { %v6110_v50 = vor.u32 %v6373_v15, %v6107_v58 }
 0x7b0   :  { %v10614_v40 = vadd.f32 1e-05, %v4611_v11 }
 0x7b1   :  { %5020 = vmatpush.bf16.msrb.mxu0 %v6110_v50 }
 0x7b2   :  { %6874 = vrsqrt.f32 %v10614_v40  ;;  %v4456_v23 = vpop.f32.mrf.mxu2  ;;  %vm4649_vm3 = vweird.f32 %v10614_v40 }
 0x7b5   :  { %5021 = vmatpush.bf16.msrb.mxu0 %v6102_v36 }
 0x7b8   :  { %v10621_v33 = vpop.eup %6874 }
 0x7b9   :  { %v4644_v57 = vmul.f32 %v10621_v33, %v10614_v40  ;;  %vm4650_vm1 = vweird.f32 %v10621_v33  ;;  %v6086_v40 = vor.u32 %v6367_v53, %v6083_v5 }
 0x7ba   :  { %v4458_v39 = vpop.f32.mrf.mxu2  ;;  %vm4651_vm5 = vmor %vm4649_vm3, %vm4650_vm1 }
 0x7bb   :  { %v4645_v3 = vmul.f32 %v10621_v33, %v4644_v57 }
 0x7bd   :  { %v4646_v11 = vmul.f32 0.5, %v4645_v3  ;;  %v4476_v3 = vadd.f32 %v6921_v12, %v4458_v39 }
 0x7bf   :  { %v4647_v57 = vsub.f32 1.5, %v4646_v11  ;;  %v10658_v58 = vadd.f32 %v10482_v10, %v4476_v3 }
 0x7c1   :  { %v4648_v24 = vmul.f32 %v10621_v33, %v4647_v57 }
 0x7c3   :  { %v4652_v30 = vsel %vm4651_vm5, %v10621_v33, %v4648_v24 }
 0x7c6   :  { %v4512_v34 = vpop.xlane.xlu0 %4511 }
 0x7c7   :  { %v4537_v62 = vmul.f32 %v4512_v34, %v11444_v54 }
 0x7c9   :  { %v10619_v56 = vsub.f32 %v10556_v16, %v4537_v62  ;;  %v6920_v62 = vld [vmem:[#allocation2 + $0x70] sm:$0xff] }
 0x7ca   :  { %v4475_v38 = vadd.f32 %v6920_v62, %v4456_v23  ;;  %v10660_v62 = vld [vmem:[#allocation8] ss:$0 sm:$0xff] }
 0x7cb   :  { %v4569_v31 = vmul.f32 %v10619_v56, %v10619_v56 }
 0x7cd   :  { %4591 = vadd.xlane.f32.xlu1 %v4569_v31 }
 0x7ce   :  { %v4514_v25 = vpop.xlane.xlu1 %4513 }
 0x7cf   :  { %v4538_v41 = vmul.f32 %v4514_v25, %v11444_v54  ;;  %v10647_v25 = vadd.f32 %v10482_v10, %v4475_v38  ;;  %v4803_v38 = vmul.f32 %v4652_v30, %v10551_v43  ;;  %v10665_v10 = vld [vmem:[#allocation10] ss:$0 sm:$0xff] }
 0x7d1   :  { %v10629_v60 = vsub.f32 %v10560_v21, %v4538_v41  ;;  %v6370_v41 = vld [vmem:[#allocation11 + $0x2c] sm:$0xf0]  ;;  %v4822_v55 = vmul.f32 %v10660_v62, %v4803_v38 }
 0x7d2   :  { %v6090_v23 = vor.u32 %v6370_v41, %v6089_v8 }
 0x7d3   :  { %v4582_v49 = vpop.xlane.xlu2 %4581  ;;  %v4570_v22 = vmul.f32 %v10629_v60, %v10629_v60  ;;  %v4841_v17 = vadd.f32 %v10665_v10, %v4822_v55 }
 0x7d4   :  { %v4612_v48 = vmul.f32 %v4582_v49, %v11444_v54  ;;  %4973 = vmatpush.bf16.msra.mxu3 %v6090_v23 }
 0x7d5   :  { %4593 = vadd.xlane.f32.xlu2 %v4570_v22  ;;  %4525 = vadd.xlane.f32.xlu1 %v10633_v9  ;;  %v6081_v22 = vld [vmem:[#allocation11] sm:$0xf] }
 0x7d6   :  { %v10638_v26 = vadd.f32 1e-05, %v4612_v48  ;;  %v4516_v34 = vpop.xlane.xlu1 %4515  ;;  %v6094_v48 = vor.u32 %v6369_v46, %v6091_v59  ;;  %v6082_v11 = vor.u32 %v6368_v20, %v6081_v22 }
 0x7d7   :  { %v4539_v31 = vmul.f32 %v4516_v34, %v11444_v54 }
 0x7d8   :  { %6876 = vrsqrt.f32 %v10638_v26  ;;  %5022 = vmatpush.bf16.msrb.mxu0 %v6094_v48  ;;  %vm4659_vm4 = vweird.f32 %v10638_v26  ;;  %4974 = vmatpush.bf16.msra.mxu3 %v6082_v11 }
 0x7d9   :  { %v10644_v2 = vsub.f32 %v10570_v28, %v4539_v31 }
 0x7db   :  { %v4571_v13 = vmul.f32 %v10644_v2, %v10644_v2 }
 0x7dc   :  { %5023 = vmatpush.bf16.msrb.mxu0 %v6086_v40 }
 0x7dd   :  { %4595 = vadd.xlane.f32.xlu2 %v4571_v13  ;;  %4527 = vadd.xlane.f32.xlu1 %v10647_v25 }
 0x7de   :  { %v6877_v6 = vpop.eup %6876 }
 0x7df   :  { %v4654_v45 = vmul.f32 %v6877_v6, %v10638_v26  ;;  %vm4660_vm7 = vweird.f32 %v6877_v6 }
 0x7e0   :  { %vm4661_vm8 = vmor %vm4659_vm4, %vm4660_vm7 }
 0x7e1   :  { %v4655_v49 = vmul.f32 %v6877_v6, %v4654_v45 }
 0x7e3   :  { %v4656_v15 = vmul.f32 0.5, %v4655_v49 }
 0x7e5   :  { %v4657_v34 = vsub.f32 1.5, %v4656_v15  ;;  %4529 = vadd.xlane.f32.xlu2 %v10658_v58 }
 0x7e7   :  { %v4658_v31 = vmul.f32 %v6877_v6, %v4657_v34 }
 0x7e9   :  { %v4662_v33 = vsel %vm4661_vm8, %v6877_v6, %v4658_v31 }
 0x7ea   :  { %v4804_v50 = vmul.f32 %v4662_v33, %v10564_v29 }
 0x7ec   :  { %v4823_v19 = vmul.f32 %v10660_v62, %v4804_v50 }
 0x7ee   :  { %v4842_v43 = vadd.f32 %v10665_v10, %v4823_v19 }
 0x7f0   :  { %v10672_v63 = vpack.c.bf16 %v4842_v43, %v4841_v17 }
 0x7f2   :  { %4975 = vmatmul.bf16.vlgmr.msra.gmra.mxu3 %v10672_v63  ;;  %5024 = vmatmul.bf16.vlgmr.msrb.gmra.mxu0 %v10672_v63 }
 0x7f7   :  { %v4584_v26 = vpop.xlane.xlu2 %4583 }
 0x7f8   :  { %v4613_v52 = vmul.f32 %v4584_v26, %v11444_v54 }
 0x7fa   :  { %v4629_v57 = vadd.f32 1e-05, %v4613_v52 }
 0x7fc   :  { %6878 = vrsqrt.f32 %v4629_v57  ;;  %vm4669_vm15 = vweird.f32 %v4629_v57 }
 0x7ff   :  { %v4586_v13 = vpop.xlane.xlu0 %4585  ;;  %v4518_v42 = vpop.xlane.xlu2 %4517 }
 0x800   :  { %v4614_v29 = vmul.f32 %v4586_v13, %v11444_v54  ;;  %v4540_v39 = vmul.f32 %v4518_v42, %v11444_v54 }
 0x802   :  { %v6879_v36 = vpop.eup %6878  ;;  %v4630_v8 = vadd.f32 1e-05, %v4614_v29  ;;  %v10680_v41 = vsub.f32 %v10584_v1, %v4540_v39 }
 0x803   :  { %v4664_v6 = vmul.f32 %v6879_v36, %v4629_v57  ;;  %vm4670_vm14 = vweird.f32 %v6879_v36 }
 0x804   :  { %6880 = vrsqrt.f32 %v4630_v8  ;;  %v4572_v46 = vmul.f32 %v10680_v41, %v10680_v41  ;;  %vm4671_vm0 = vmor %vm4669_vm15, %vm4670_vm14  ;;  %vm4679_vm10 = vweird.f32 %v4630_v8 }
 0x805   :  { %v4665_v59 = vmul.f32 %v6879_v36, %v4664_v6 }
 0x806   :  { %4597 = vadd.xlane.f32.xlu0 %v4572_v46 }
 0x807   :  { %v4666_v24 = vmul.f32 0.5, %v4665_v59  ;;  %v4588_v45 = vpop.xlane.xlu0 %4587 }
 0x808   :  { %v4615_v12 = vmul.f32 %v4588_v45, %v11444_v54 }
 0x809   :  { %v4667_v3 = vsub.f32 1.5, %v4666_v24 }
 0x80a   :  { %v6881_v23 = vpop.eup %6880  ;;  %v4631_v49 = vadd.f32 1e-05, %v4615_v12  ;;  %v4520_v20 = vpop.xlane.xlu2 %4519 }
 0x80b   :  { %v4668_v48 = vmul.f32 %v6879_v36, %v4667_v3  ;;  %v4674_v22 = vmul.f32 %v6881_v23, %v4630_v8  ;;  %v4541_v5 = vmul.f32 %v4520_v20, %v11444_v54  ;;  %vm4680_vm6 = vweird.f32 %v6881_v23 }
 0x80c   :  { %6882 = vrsqrt.f32 %v4631_v49  ;;  %vm4681_vm12 = vmor %vm4679_vm10, %vm4680_vm6  ;;  %vm4689_vm9 = vweird.f32 %v4631_v49 }
 0x80d   :  { %v4675_v53 = vmul.f32 %v6881_v23, %v4674_v22  ;;  %v4672_v30 = vsel %vm4671_vm0, %v6879_v36, %v4668_v48  ;;  %v10687_v11 = vsub.f32 %v10597_v61, %v4541_v5 }
 0x80e   :  { %v4805_v55 = vmul.f32 %v4672_v30, %v10575_v51 }
 0x80f   :  { %v4676_v15 = vmul.f32 0.5, %v4675_v53  ;;  %v4590_v34 = vpop.xlane.xlu1 %4589  ;;  %v4573_v31 = vmul.f32 %v10687_v11, %v10687_v11 }
 0x810   :  { %v4616_v40 = vmul.f32 %v4590_v34, %v11444_v54  ;;  %v4824_v42 = vmul.f32 %v10660_v62, %v4805_v55 }
 0x811   :  { %v4677_v38 = vsub.f32 1.5, %v4676_v15  ;;  %4599 = vadd.xlane.f32.xlu0 %v4573_v31 }
 0x812   :  { %v6883_v33 = vpop.eup %6882  ;;  %v4632_v50 = vadd.f32 1e-05, %v4616_v40  ;;  %v4522_v43 = vpop.xlane.xlu0 %4521  ;;  %v4843_v46 = vadd.f32 %v10665_v10, %v4824_v42  ;;  %v6389_v42 = vld [vmem:[#allocation13 + $0x30] sm:$0xff] }
 0x813   :  { %v4678_v19 = vmul.f32 %v6881_v23, %v4677_v38  ;;  %v4684_v17 = vmul.f32 %v6883_v33, %v4631_v49  ;;  %v4542_v57 = vmul.f32 %v4522_v43, %v11444_v54  ;;  %vm4690_vm2 = vweird.f32 %v6883_v33 }
 0x814   :  { %6884 = vrsqrt.f32 %v4632_v50  ;;  %vm4691_vm13 = vmor %vm4689_vm9, %vm4690_vm2  ;;  %vm4699_vm1 = vweird.f32 %v4632_v50 }
 0x815   :  { %v4682_v26 = vsel %vm4681_vm12, %v6881_v23, %v4678_v19  ;;  %v4685_v52 = vmul.f32 %v6883_v33, %v4684_v17  ;;  %v10697_v39 = vsub.f32 %v10606_v14, %v4542_v57  ;;  %v6390_v17 = vld [vmem:[#allocation13 + $0x38] sm:$0xff] }
 0x816   :  { %v4806_v13 = vmul.f32 %v4682_v26, %v10581_v7  ;;  %5245 = vmatpush.bf16.msrb.mxu1 %v6390_v17  ;;  %v6393_v17 = vld [vmem:[#allocation13 + $0x50] sm:$0xff] }
 0x817   :  { %v4686_v29 = vmul.f32 0.5, %v4685_v52  ;;  %v4574_v8 = vmul.f32 %v10697_v39, %v10697_v39 }
 0x818   :  { %v4825_v51 = vmul.f32 %v10660_v62, %v4806_v13  ;;  %v6397_v13 = vld [vmem:[#allocation13 + $0x70] sm:$0xff] }
 0x819   :  { %v4687_v36 = vsub.f32 1.5, %v4686_v29  ;;  %4601 = vadd.xlane.f32.xlu1 %v4574_v8 }
 0x81a   :  { %v6885_v6 = vpop.eup %6884  ;;  %v4844_v59 = vadd.f32 %v10665_v10, %v4825_v51  ;;  %v4524_v45 = vpop.xlane.xlu0 %4523  ;;  %5246 = vmatpush.bf16.msrb.mxu1 %v6389_v42 }
 0x81b   :  { %v4688_v24 = vmul.f32 %v6883_v33, %v4687_v36  ;;  %v4694_v7 = vmul.f32 %v6885_v6, %v4632_v50  ;;  %v4543_v23 = vmul.f32 %v4524_v45, %v11444_v54  ;;  %vm4700_vm11 = vweird.f32 %v6885_v6 }
 0x81c   :  { %v10704_v12 = vpack.c.bf16 %v4844_v59, %v4843_v46  ;;  %vm4701_vm3 = vmor %vm4699_vm1, %vm4700_vm11  ;;  %v6396_v46 = vld [vmem:[#allocation13 + $0x68] sm:$0xff] }
 0x81d   :  { %v4695_v3 = vmul.f32 %v6885_v6, %v4694_v7  ;;  %v4692_v48 = vsel %vm4691_vm13, %v6883_v33, %v4688_v24  ;;  %v10710_v20 = vsub.f32 %v10610_v35, %v4543_v23  ;;  %v6388_v59 = vld [vmem:[#allocation13 + $0x28] sm:$0xff] }
 0x81e   :  { %4980 = vmatmul.bf16.gmra.mxu3 %v10704_v12  ;;  %5029 = vmatmul.bf16.gmra.mxu0 %v10704_v12  ;;  %v4807_v49 = vmul.f32 %v4692_v48, %v10591_v44  ;;  %v6395_v48 = vld [vmem:[#allocation13 + $0x60] sm:$0xff] }
 0x81f   :  { %v4696_v22 = vmul.f32 0.5, %v4695_v3  ;;  %v4575_v5 = vmul.f32 %v10710_v20, %v10710_v20  ;;  %5247 = vmatpush.bf16.msrb.mxu1 %v6388_v59 }
 0x820   :  { %v4826_v40 = vmul.f32 %v10660_v62, %v4807_v49 }
 0x821   :  { %v4697_v53 = vsub.f32 1.5, %v4696_v22  ;;  %4603 = vadd.xlane.f32.xlu2 %v4575_v5  ;;  %v6387_v22 = vld [vmem:[#allocation13 + $0x20] sm:$0xff] }
 0x822   :  { %v4845_v31 = vadd.f32 %v10665_v10, %v4826_v40  ;;  %v6394_v40 = vld [vmem:[#allocation13 + $0x58] sm:$0xff] }
 0x823   :  { %v4698_v30 = vmul.f32 %v6885_v6, %v4697_v53  ;;  %5248 = vmatpush.bf16.msrb.mxu1 %v6387_v22  ;;  %v6384_v22 = vld [vmem:[#allocation13 + $0x8] sm:$0xff] }
 0x825   :  { %v4702_v15 = vsel %vm4701_vm3, %v6885_v6, %v4698_v30 }
 0x826   :  { %v4808_v34 = vmul.f32 %v4702_v15, %v10600_v0  ;;  %v6398_v0 = vld [vmem:[#allocation13 + $0x78] sm:$0xff] }
 0x827   :  { %5294 = vmatpush.bf16.msrb.mxu2 %v6398_v0 }
 0x828   :  { %v4827_v38 = vmul.f32 %v10660_v62, %v4808_v34 }
 0x82a   :  { %v4846_v33 = vadd.f32 %v10665_v10, %v4827_v38 }
 0x82b   :  { %5295 = vmatpush.bf16.msrb.mxu2 %v6397_v13  ;;  %v6392_v13 = vld [vmem:[#allocation13 + $0x48] sm:$0xff] }
 0x82c   :  { %v10720_v55 = vpack.c.bf16 %v4846_v33, %v4845_v31  ;;  %v6386_v31 = vld [vmem:[#allocation13 + $0x18] sm:$0xff] }
 0x82d   :  { %5249 = vmatpush.bf16.msrb.mxu1 %v6386_v31 }
 0x82e   :  { %4985 = vmatmul.bf16.gmra.mxu3 %v10720_v55  ;;  %5034 = vmatmul.bf16.gmra.mxu0 %v10720_v55 }
 0x82f   :  { %5296 = vmatpush.bf16.msrb.mxu2 %v6396_v46 }
 0x833   :  { %5297 = vmatpush.bf16.msrb.mxu2 %v6395_v48 }
 0x837   :  { %5298 = vmatpush.bf16.msrb.mxu2 %v6394_v40 }
 0x83b   :  { %5299 = vmatpush.bf16.msrb.mxu2 %v6393_v17 }
 0x83f   :  { %5300 = vmatpush.bf16.msrb.mxu2 %v6392_v13 }
 0x840   :  { %v4592_v44 = vpop.xlane.xlu1 %4591 }
 0x841   :  { %v4617_v50 = vmul.f32 %v4592_v44, %v11444_v54 }
 0x843   :  { %v4633_v19 = vadd.f32 1e-05, %v4617_v50 }
 0x845   :  { %6886 = vrsqrt.f32 %v4633_v19  ;;  %vm4709_vm7 = vweird.f32 %v4633_v19 }
 0x848   :  { %v4594_v43 = vpop.xlane.xlu2 %4593  ;;  %v4526_v26 = vpop.xlane.xlu1 %4525 }
 0x849   :  { %v4618_v52 = vmul.f32 %v4594_v43, %v11444_v54  ;;  %v4544_v57 = vmul.f32 %v4526_v26, %v11444_v54 }
 0x84b   :  { %v6887_v29 = vpop.eup %6886  ;;  %v4634_v51 = vadd.f32 1e-05, %v4618_v52  ;;  %v10728_v36 = vsub.f32 %v10633_v9, %v4544_v57 }
 0x84c   :  { %v4704_v8 = vmul.f32 %v6887_v29, %v4633_v19  ;;  %vm4710_vm5 = vweird.f32 %v6887_v29 }
 0x84d   :  { %6888 = vrsqrt.f32 %v4634_v51  ;;  %v4576_v6 = vmul.f32 %v10728_v36, %v10728_v36  ;;  %vm4711_vm4 = vmor %vm4709_vm7, %vm4710_vm5  ;;  %vm4719_vm14 = vweird.f32 %v4634_v51 }
 0x84e   :  { %v4705_v24 = vmul.f32 %v6887_v29, %v4704_v8 }
 0x84f   :  { %4605 = vadd.xlane.f32.xlu0 %v4576_v6 }
 0x850   :  { %v4706_v7 = vmul.f32 0.5, %v4705_v24  ;;  %v4596_v45 = vpop.xlane.xlu2 %4595  ;;  %v4528_v3 = vpop.xlane.xlu1 %4527 }
 0x851   :  { %v4545_v23 = vmul.f32 %v4528_v3, %v11444_v54  ;;  %v6385_v3 = vld [vmem:[#allocation13 + $0x10] sm:$0xff] }
 0x852   :  { %v4707_v53 = vsub.f32 1.5, %v4706_v7  ;;  %5250 = vmatpush.bf16.msrb.mxu1 %v6385_v3 }
 0x853   :  { %v6889_v5 = vpop.eup %6888  ;;  %v10734_v49 = vsub.f32 %v10647_v25, %v4545_v23  ;;  %v6391_v23 = vld [vmem:[#allocation13 + $0x40] sm:$0xff] }
 0x854   :  { %v4708_v30 = vmul.f32 %v6887_v29, %v4707_v53  ;;  %v4714_v15 = vmul.f32 %v6889_v5, %v4634_v51  ;;  %vm4720_vm8 = vweird.f32 %v6889_v5  ;;  %5301 = vmatpush.bf16.msrb.mxu2 %v6391_v23 }
 0x855   :  { %v4577_v34 = vmul.f32 %v10734_v49, %v10734_v49  ;;  %vm4721_vm15 = vmor %vm4719_vm14, %vm4720_vm8 }
 0x856   :  { %v4715_v38 = vmul.f32 %v6889_v5, %v4714_v15  ;;  %v4712_v33 = vsel %vm4711_vm4, %v6887_v29, %v4708_v30  ;;  %5251 = vmatpush.bf16.msrb.mxu1 %v6384_v22  ;;  %v6383_v15 = vld [vmem:[#allocation13] sm:$0xff] }
 0x857   :  { %4607 = vadd.xlane.f32.xlu1 %v4577_v34  ;;  %v4809_v26 = vmul.f32 %v4712_v33, %v10619_v56  ;;  %v4619_v56 = vmul.f32 %v4596_v45, %v11444_v54 }
 0x858   :  { %v4716_v44 = vmul.f32 0.5, %v4715_v38  ;;  %v4530_v50 = vpop.xlane.xlu2 %4529 }
 0x859   :  { %v4546_v0 = vmul.f32 %v4530_v50, %v11444_v54  ;;  %v4828_v8 = vmul.f32 %v10660_v62, %v4809_v26  ;;  %v4635_v24 = vadd.f32 1e-05, %v4619_v56 }
 0x85a   :  { %v4717_v43 = vsub.f32 1.5, %v4716_v44  ;;  %5252 = vmatpush.bf16.msrb.mxu1 %v6383_v15 }
 0x85b   :  { %v10741_v52 = vsub.f32 %v10658_v58, %v4546_v0  ;;  %v4847_v46 = vadd.f32 %v10665_v10, %v4828_v8  ;;  %6890 = vrsqrt.f32 %v4635_v24  ;;  %vm4729_vm6 = vweird.f32 %v4635_v24 }
 0x85c   :  { %v4718_v19 = vmul.f32 %v6889_v5, %v4717_v43 }
 0x85d   :  { %v4578_v57 = vmul.f32 %v10741_v52, %v10741_v52 }
 0x85e   :  { %v4722_v42 = vsel %vm4721_vm15, %v6889_v5, %v4718_v19 }
 0x85f   :  { %v4810_v29 = vmul.f32 %v4722_v42, %v10629_v60  ;;  %4609 = vadd.xlane.f32.xlu2 %v4578_v57  ;;  %v4881_v60 = vld [vmem:[%s11038_s9] sm:$0x3] }
 0x860   :  { %v10758_v48 = vperm.slane %v4881_v60, 1  ;;  %v10761_v40 = vperm.slane %v4881_v60, 0 }
 0x861   :  { %v4829_v6 = vmul.f32 %v10660_v62, %v4810_v29  ;;  %v6891_v45 = vpop.eup %6890 }
 0x862   :  { %v4724_v53 = vmul.f32 %v6891_v45, %v4635_v24  ;;  %vm4730_vm0 = vweird.f32 %v6891_v45 }
 0x863   :  { %v4848_v51 = vadd.f32 %v10665_v10, %v4829_v6  ;;  %vm4731_vm10 = vmor %vm4729_vm6, %vm4730_vm0 }
 0x864   :  { %v4725_v31 = vmul.f32 %v6891_v45, %v4724_v53 }
 0x865   :  { %v10751_v59 = vpack.c.bf16 %v4848_v51, %v4847_v46 }
 0x866   :  { %v4726_v19 = vmul.f32 0.5, %v4725_v31 }
 0x867   :  { %4990 = vmatmul.bf16.gmra.mxu3 %v10751_v59  ;;  %5039 = vmatmul.bf16.gmra.mxu0 %v10751_v59 }
 0x868   :  { %v4727_v8 = vsub.f32 1.5, %v4726_v19 }
 0x86a   :  { %v4728_v46 = vmul.f32 %v6891_v45, %v4727_v8 }
 0x86c   :  { %v4732_v23 = vsel %vm4731_vm10, %v6891_v45, %v4728_v46 }
 0x86f   :  { %v5025_v7 = vpop.f32.mrf.mxu0 }
 0x870   :  { %v5026_v30 = vadd.f32 %v5025_v7, %v10758_v48 }
 0x872   :  { %v5066_v44 = vmax.f32 %v5026_v30, 0.0  ;;  %v4811_v30 = vmul.f32 %v4732_v23, %v10644_v2 }
 0x875   :  { %v4976_v5 = vpop.f32.mrf.mxu3 }
 0x876   :  { %v4977_v17 = vadd.f32 %v4976_v5, %v10761_v40 }
 0x877   :  { %v5027_v34 = vpop.f32.mrf.mxu0 }
 0x878   :  { %v5028_v38 = vadd.f32 %v5027_v34, %v10758_v48  ;;  %v5065_v42 = vmax.f32 %v4977_v17, 0.0 }
 0x879   :  { %v4598_v33 = vpop.xlane.xlu0 %4597 }
 0x87a   :  { %v5068_v50 = vmax.f32 %v5028_v38, 0.0  ;;  %v4620_v0 = vmul.f32 %v4598_v33, %v11444_v54  ;;  %v4830_v33 = vmul.f32 %v10660_v62, %v4811_v30 }
 0x87c   :  { %v5098_v43 = vpack.c.bf16 %v5068_v50, %v5066_v44  ;;  %v4636_v26 = vadd.f32 1e-05, %v4620_v0  ;;  %v4849_v2 = vadd.f32 %v10665_v10, %v4830_v33 }
 0x87d   :  { %v4978_v57 = vpop.f32.mrf.mxu3 }
 0x87e   :  { %6892 = vrsqrt.f32 %v4636_v26  ;;  %v4979_v13 = vadd.f32 %v4978_v57, %v10761_v40  ;;  %5302 = vmatmul.bf16.vlgmr.msrb.gmra.mxu2 %v5098_v43  ;;  %vm4739_vm2 = vweird.f32 %v4636_v26 }
 0x880   :  { %v5067_v29 = vmax.f32 %v4979_v13, 0.0 }
 0x882   :  { %v5097_v6 = vpack.c.bf16 %v5067_v29, %v5065_v42 }
 0x884   :  { %v6893_v56 = vpop.eup %6892  ;;  %5253 = vmatmul.bf16.vlgmr.msrb.gmra.mxu1 %v5097_v6  ;;  %v4600_v60 = vpop.xlane.xlu0 %4599 }
 0x885   :  { %v4734_v51 = vmul.f32 %v6893_v56, %v4636_v26  ;;  %v4621_v3 = vmul.f32 %v4600_v60, %v11444_v54  ;;  %vm4740_vm12 = vweird.f32 %v6893_v56 }
 0x886   :  { %vm4741_vm9 = vmor %vm4739_vm2, %vm4740_vm12 }
 0x887   :  { %v4735_v7 = vmul.f32 %v6893_v56, %v4734_v51  ;;  %v4637_v53 = vadd.f32 1e-05, %v4621_v3 }
 0x889   :  { %v4736_v22 = vmul.f32 0.5, %v4735_v7  ;;  %6894 = vrsqrt.f32 %v4637_v53  ;;  %vm4749_vm11 = vweird.f32 %v4637_v53 }
 0x88b   :  { %v4737_v5 = vsub.f32 1.5, %v4736_v22 }
 0x88c   :  { %v4602_v34 = vpop.xlane.xlu1 %4601 }
 0x88d   :  { %v4738_v15 = vmul.f32 %v6893_v56, %v4737_v5  ;;  %v4622_v31 = vmul.f32 %v4602_v34, %v11444_v54 }
 0x88f   :  { %v4742_v38 = vsel %vm4741_vm9, %v6893_v56, %v4738_v15  ;;  %v6895_v44 = vpop.eup %6894  ;;  %v4638_v45 = vadd.f32 1e-05, %v4622_v31 }
 0x890   :  { %v4812_v24 = vmul.f32 %v4742_v38, %v10680_v41  ;;  %v4744_v50 = vmul.f32 %v6895_v44, %v4637_v53  ;;  %vm4750_vm13 = vweird.f32 %v6895_v44 }
 0x891   :  { %6896 = vrsqrt.f32 %v4638_v45  ;;  %vm4751_vm1 = vmor %vm4749_vm11, %vm4750_vm13  ;;  %vm4759_vm5 = vweird.f32 %v4638_v45 }
 0x892   :  { %v4831_v0 = vmul.f32 %v10660_v62, %v4812_v24  ;;  %v4745_v17 = vmul.f32 %v6895_v44, %v4744_v50 }
 0x894   :  { %v4850_v43 = vadd.f32 %v10665_v10, %v4831_v0  ;;  %v4746_v26 = vmul.f32 0.5, %v4745_v17  ;;  %v4604_v24 = vpop.xlane.xlu2 %4603 }
 0x895   :  { %v4623_v17 = vmul.f32 %v4604_v24, %v11444_v54  ;;  %v6414_v24 = vld [vmem:[#allocation11 + $0xf4] sm:$0xf0] }
 0x896   :  { %v10775_v19 = vpack.c.bf16 %v4850_v43, %v4849_v2  ;;  %v4747_v57 = vsub.f32 1.5, %v4746_v26 }
 0x897   :  { %v6897_v41 = vpop.eup %6896 }
 0x898   :  { %4995 = vmatmul.bf16.gmra.mxu3 %v10775_v19  ;;  %5044 = vmatmul.bf16.gmra.mxu0 %v10775_v19  ;;  %v4748_v13 = vmul.f32 %v6895_v44, %v4747_v57  ;;  %v4754_v42 = vmul.f32 %v6897_v41, %v4638_v45  ;;  %vm4760_vm3 = vweird.f32 %v6897_v41  ;;  %v4639_v57 = vadd.f32 1e-05, %v4623_v17  ;;  %v6412_v17 = vld [vmem:[#allocation11 + $0xd4] sm:$0xf0] }
 0x899   :  { %vm4761_vm7 = vmor %vm4759_vm5, %vm4760_vm3 }
 0x89a   :  { %v4755_v8 = vmul.f32 %v6897_v41, %v4754_v42  ;;  %v4752_v6 = vsel %vm4751_vm1, %v6895_v44, %v4748_v13  ;;  %6898 = vrsqrt.f32 %v4639_v57  ;;  %vm4769_vm8 = vweird.f32 %v4639_v57 }
 0x89b   :  { %v5030_v29 = vpop.f32.mrf.mxu0  ;;  %v4813_v51 = vmul.f32 %v4752_v6, %v10687_v11 }
 0x89c   :  { %v4756_v56 = vmul.f32 0.5, %v4755_v8  ;;  %v5031_v3 = vadd.f32 %v5030_v29, %v10758_v48 }
 0x89d   :  { %v4832_v30 = vmul.f32 %v10660_v62, %v4813_v51 }
 0x89e   :  { %v4757_v46 = vsub.f32 1.5, %v4756_v56  ;;  %v5070_v15 = vmax.f32 %v5031_v3, 0.0 }
 0x89f   :  { %v4851_v44 = vadd.f32 %v10665_v10, %v4832_v30 }
 0x8a0   :  { %v4758_v7 = vmul.f32 %v6897_v41, %v4757_v46 }
 0x8a1   :  { %v4981_v60 = vpop.f32.mrf.mxu3 }
 0x8a2   :  { %v4762_v22 = vsel %vm4761_vm7, %v6897_v41, %v4758_v7  ;;  %v4982_v11 = vadd.f32 %v4981_v60, %v10761_v40  ;;  %v6899_v60 = vpop.eup %6898 }
 0x8a3   :  { %v5032_v23 = vpop.f32.mrf.mxu0  ;;  %v4814_v53 = vmul.f32 %v4762_v22, %v10697_v39  ;;  %v4764_v22 = vmul.f32 %v6899_v60, %v4639_v57  ;;  %vm4770_vm4 = vweird.f32 %v6899_v60 }
 0x8a4   :  { %v5033_v5 = vadd.f32 %v5032_v23, %v10758_v48  ;;  %v5069_v2 = vmax.f32 %v4982_v11, 0.0  ;;  %vm10803_vm14 = vmor %vm4769_vm8, %vm4770_vm4 }
 0x8a5   :  { %v4833_v38 = vmul.f32 %v10660_v62, %v4814_v53  ;;  %v4765_v53 = vmul.f32 %v6899_v60, %v4764_v22 }
 0x8a6   :  { %v5072_v34 = vmax.f32 %v5033_v5, 0.0 }
 0x8a7   :  { %v4852_v45 = vadd.f32 %v10665_v10, %v4833_v38 }
 0x8a8   :  { %v5100_v31 = vpack.c.bf16 %v5072_v34, %v5070_v15  ;;  %v4766_v34 = vmul.f32 0.5, %v4765_v53 }
 0x8a9   :  { %v4983_v33 = vpop.f32.mrf.mxu3  ;;  %v10789_v39 = vpack.c.bf16 %v4852_v45, %v4851_v44 }
 0x8aa   :  { %v4984_v50 = vadd.f32 %v4983_v33, %v10761_v40  ;;  %5307 = vmatmul.bf16.gmra.mxu2 %v5100_v31  ;;  %v4767_v11 = vsub.f32 1.5, %v4766_v34  ;;  %v6265_v31 = vld [vmem:[#allocation11 + $0xe8] sm:$0xf]  ;;  %v6413_v33 = vld [vmem:[#allocation11 + $0xec] sm:$0xf] }
 0x8ab   :  { %v5035_v0 = vpop.f32.mrf.mxu0  ;;  %5000 = vmatmul.bf16.gmra.mxu3 %v10789_v39  ;;  %5049 = vmatmul.bf16.gmra.mxu0 %v10789_v39  ;;  %v6266_v45 = vor.u32 %v6414_v24, %v6265_v31  ;;  %v6407_v24 = vld [vmem:[#allocation11 + $0x8c] sm:$0xf] }
 0x8ac   :  { %v5071_v43 = vmax.f32 %v4984_v50, 0.0  ;;  %v5036_v13 = vadd.f32 %v5035_v0, %v10758_v48  ;;  %v6267_v50 = vld [vmem:[#allocation11 + $0xf8] sm:$0xf0]  ;;  %v6257_v0 = vld [vmem:[#allocation11 + $0xc8] sm:$0xf] }
 0x8ad   :  { %5445 = vmatpush.bf16.msrb.mxu3 %v6266_v45 }
 0x8ae   :  { %v5099_v26 = vpack.c.bf16 %v5071_v43, %v5069_v2  ;;  %v5074_v8 = vmax.f32 %v5036_v13, 0.0  ;;  %v6270_v43 = vor.u32 %v6413_v33, %v6267_v50  ;;  %v6258_v13 = vor.u32 %v6412_v17, %v6257_v0  ;;  %v6243_v33 = vld [vmem:[#allocation11 + $0x98] sm:$0xf0] }
 0x8b0   :  { %5258 = vmatmul.bf16.gmra.mxu1 %v5099_v26  ;;  %v6411_v26 = vld [vmem:[#allocation11 + $0xcc] sm:$0xf]  ;;  %5494 = vmatpush.bf16.msra.mxu0 %v6270_v43  ;;  %v6233_v43 = vld [vmem:[#allocation11 + $0x68] sm:$0xf] }
 0x8b1   :  { %v4986_v41 = vpop.f32.mrf.mxu3  ;;  %5446 = vmatpush.bf16.msrb.mxu3 %v6258_v13  ;;  %v6235_v13 = vld [vmem:[#allocation11 + $0x78] sm:$0xf0] }
 0x8b2   :  { %v4987_v56 = vadd.f32 %v4986_v41, %v10761_v40  ;;  %v6259_v41 = vld [vmem:[#allocation11 + $0xd8] sm:$0xf0] }
 0x8b3   :  { %v5037_v42 = vpop.f32.mrf.mxu0 }
 0x8b4   :  { %v5038_v29 = vadd.f32 %v5037_v42, %v10758_v48  ;;  %v5073_v3 = vmax.f32 %v4987_v56, 0.0  ;;  %v6410_v56 = vld [vmem:[#allocation11 + $0xb4] sm:$0xf0] }
 0x8b6   :  { %v5076_v6 = vmax.f32 %v5038_v29, 0.0 }
 0x8b8   :  { %v5102_v46 = vpack.c.bf16 %v5076_v6, %v5074_v8  ;;  %v6262_v8 = vor.u32 %v6411_v26, %v6259_v41  ;;  %v6249_v6 = vld [vmem:[#allocation11 + $0xa8] sm:$0xf] }
 0x8b9   :  { %v4988_v51 = vpop.f32.mrf.mxu3  ;;  %v6250_v22 = vor.u32 %v6410_v56, %v6249_v6 }
 0x8ba   :  { %v4989_v7 = vadd.f32 %v4988_v51, %v10761_v40  ;;  %5312 = vmatmul.bf16.gmra.mxu2 %v5102_v46  ;;  %v4768_v46 = vmul.f32 %v6899_v60, %v4767_v11  ;;  %5495 = vmatpush.bf16.msra.mxu0 %v6262_v8 }
 0x8bb   :  { %5447 = vmatpush.bf16.msrb.mxu3 %v6250_v22  ;;  %v6403_v22 = vld [vmem:[#allocation11 + $0x4c] sm:$0xf] }
 0x8bc   :  { %v5075_v23 = vmax.f32 %v4989_v7, 0.0  ;;  %v6409_v7 = vld [vmem:[#allocation11 + $0xac] sm:$0xf]  ;;  %v4772_v34 = vsel %vm10803_vm14, %v6899_v60, %v4768_v46  ;;  %v6406_v60 = vld [vmem:[#allocation11 + $0x74] sm:$0xf0] }
 0x8bd   :  { %v4815_v0 = vmul.f32 %v4772_v34, %v10710_v20  ;;  %v6234_v6 = vor.u32 %v6406_v60, %v6233_v43  ;;  %v6209_v60 = vld [vmem:[#allocation11 + $0x8] sm:$0xf] }
 0x8be   :  { %v5101_v5 = vpack.c.bf16 %v5075_v23, %v5073_v3  ;;  %v6251_v3 = vld [vmem:[#allocation11 + $0xb8] sm:$0xf0] }
 0x8bf   :  { %v6254_v53 = vor.u32 %v6409_v7, %v6251_v3  ;;  %v4834_v46 = vmul.f32 %v10660_v62, %v4815_v0  ;;  %v6404_v7 = vld [vmem:[#allocation11 + $0x54] sm:$0xf0] }
 0x8c0   :  { %5263 = vmatmul.bf16.gmra.mxu1 %v5101_v5  ;;  %v6227_v5 = vld [vmem:[#allocation11 + $0x58] sm:$0xf0] }
 0x8c1   :  { %5496 = vmatpush.bf16.msra.mxu0 %v6254_v53 }
 0x8c2   :  { %v4606_v30 = vpop.xlane.xlu0 %4605 }
 0x8c3   :  { %v4624_v15 = vmul.f32 %v4606_v30, %v11444_v54  ;;  %v6241_v30 = vld [vmem:[#allocation11 + $0x88] sm:$0xf] }
 0x8c5   :  { %v4640_v38 = vadd.f32 1e-05, %v4624_v15  ;;  %v6408_v15 = vld [vmem:[#allocation11 + $0x94] sm:$0xf0] }
 0x8c6   :  { %v6242_v45 = vor.u32 %v6408_v15, %v6241_v30  ;;  %v4853_v15 = vadd.f32 %v10665_v10, %v4834_v46 }
 0x8c7   :  { %6900 = vrsqrt.f32 %v4640_v38  ;;  %vm4779_vm0 = vweird.f32 %v4640_v38 }
 0x8c8   :  { %5448 = vmatpush.bf16.msrb.mxu3 %v6242_v45  ;;  %v6219_v45 = vld [vmem:[#allocation11 + $0x38] sm:$0xf0] }
 0x8ca   :  { %v4608_v44 = vpop.xlane.xlu1 %4607 }
 0x8cb   :  { %v4625_v2 = vmul.f32 %v4608_v44, %v11444_v54 }
 0x8cc   :  { %5449 = vmatpush.bf16.msrb.mxu3 %v6234_v6 }
 0x8cd   :  { %v6901_v42 = vpop.eup %6900  ;;  %v10800_v29 = vadd.f32 1e-05, %v4625_v2  ;;  %v6246_v2 = vor.u32 %v6407_v24, %v6243_v33  ;;  %v6230_v33 = vor.u32 %v6403_v22, %v6227_v5 }
 0x8ce   :  { %v4774_v51 = vmul.f32 %v6901_v42, %v4640_v38  ;;  %vm4780_vm15 = vweird.f32 %v6901_v42 }
 0x8cf   :  { %6902 = vrsqrt.f32 %v10800_v29  ;;  %vm4781_vm6 = vmor %vm4779_vm0, %vm4780_vm15  ;;  %5497 = vmatpush.bf16.msra.mxu0 %v6246_v2  ;;  %vm4789_vm12 = vweird.f32 %v10800_v29 }
 0x8d0   :  { %v4775_v23 = vmul.f32 %v6901_v42, %v4774_v51  ;;  %v6225_v51 = vld [vmem:[#allocation11 + $0x48] sm:$0xf] }
 0x8d2   :  { %v4776_v11 = vmul.f32 0.5, %v4775_v23  ;;  %v4610_v31 = vpop.xlane.xlu2 %4609 }
 0x8d3   :  { %v4626_v57 = vmul.f32 %v4610_v31, %v11444_v54  ;;  %v6405_v54 = vld [vmem:[#allocation11 + $0x6c] sm:$0xf] }
 0x8d4   :  { %v4777_v44 = vsub.f32 1.5, %v4776_v11  ;;  %v6238_v38 = vor.u32 %v6405_v54, %v6235_v13  ;;  %v6402_v11 = vld [vmem:[#allocation11 + $0x34] sm:$0xf0]  ;;  %v6399_v13 = vld [vmem:[#allocation11 + $0xc] sm:$0xf] }
 0x8d5   :  { %v10810_v50 = vpop.eup %6902  ;;  %v10813_v17 = vadd.f32 1e-05, %v4626_v57 }
 0x8d6   :  { %v4778_v26 = vmul.f32 %v6901_v42, %v4777_v44  ;;  %v4784_v41 = vmul.f32 %v10810_v50, %v10800_v29  ;;  %5498 = vmatpush.bf16.msra.mxu0 %v6238_v38  ;;  %vm4790_vm10 = vweird.f32 %v10810_v50  ;;  %v6401_v44 = vld [vmem:[#allocation11 + $0x2c] sm:$0xf] }
 0x8d7   :  { %6904 = vrsqrt.f32 %v10813_v17  ;;  %vm10831_vm2 = vmor %vm4789_vm12, %vm4790_vm10  ;;  %v6222_v29 = vor.u32 %v6401_v44, %v6219_v45  ;;  %vm4799_vm13 = vweird.f32 %v10813_v17 }
 0x8d8   :  { %v4782_v8 = vsel %vm4781_vm6, %v6901_v42, %v4778_v26  ;;  %v4785_v20 = vmul.f32 %v10810_v50, %v4784_v41  ;;  %v6226_v42 = vor.u32 %v6404_v7, %v6225_v51  ;;  %v6400_v26 = vld [vmem:[#allocation11 + $0x14] sm:$0xf0] }
 0x8d9   :  { %v4816_v56 = vmul.f32 %v4782_v8, %v10728_v36  ;;  %v6217_v36 = vld [vmem:[#allocation11 + $0x28] sm:$0xf]  ;;  %v6211_v8 = vld [vmem:[#allocation11 + $0x18] sm:$0xf0] }
 0x8da   :  { %v4786_v3 = vmul.f32 0.5, %v4785_v20  ;;  %5450 = vmatpush.bf16.msrb.mxu3 %v6226_v42  ;;  %v6218_v2 = vor.u32 %v6402_v11, %v6217_v36  ;;  %5499 = vmatpush.bf16.msra.mxu0 %v6230_v33  ;;  %v6214_v51 = vor.u32 %v6399_v13, %v6211_v8 }
 0x8db   :  { %v4835_v23 = vmul.f32 %v10660_v62, %v4816_v56  ;;  %v6210_v56 = vor.u32 %v6400_v26, %v6209_v60 }
 0x8dc   :  { %v4787_v53 = vsub.f32 1.5, %v4786_v3 }
 0x8dd   :  { %v6905_v30 = vpop.eup %6904  ;;  %v4854_v34 = vadd.f32 %v10665_v10, %v4835_v23 }
 0x8de   :  { %v4788_v31 = vmul.f32 %v10810_v50, %v4787_v53  ;;  %v4794_v24 = vmul.f32 %v6905_v30, %v10813_v17  ;;  %vm4800_vm9 = vweird.f32 %v6905_v30  ;;  %5451 = vmatpush.bf16.msrb.mxu3 %v6218_v2  ;;  %5500 = vmatpush.bf16.msra.mxu0 %v6222_v29 }
 0x8df   :  { %v10828_v57 = vpack.c.bf16 %v4854_v34, %v4853_v15  ;;  %vm4801_vm11 = vmor %vm4799_vm13, %vm4800_vm9 }
 0x8e0   :  { %v4795_v0 = vmul.f32 %v6905_v30, %v4794_v24  ;;  %v4792_v41 = vsel %vm10831_vm2, %v10810_v50, %v4788_v31 }
 0x8e1   :  { %5005 = vmatmul.bf16.gmra.mxu3 %v10828_v57  ;;  %5054 = vmatmul.bf16.gmra.mxu0 %v10828_v57  ;;  %v4817_v46 = vmul.f32 %v4792_v41, %v10734_v49 }
 0x8e2   :  { %v4796_v54 = vmul.f32 0.5, %v4795_v0  ;;  %5452 = vmatpush.bf16.msrb.mxu3 %v6210_v56  ;;  %5501 = vmatpush.bf16.msra.mxu0 %v6214_v51 }
 0x8e3   :  { %v4836_v3 = vmul.f32 %v10660_v62, %v4817_v46 }
 0x8e4   :  { %v4797_v20 = vsub.f32 1.5, %v4796_v54  ;;  %v5040_v6 = vpop.f32.mrf.mxu0 }
 0x8e5   :  { %v5041_v22 = vadd.f32 %v5040_v6, %v10758_v48  ;;  %v4855_v17 = vadd.f32 %v10665_v10, %v4836_v3 }
 0x8e6   :  { %v4798_v38 = vmul.f32 %v6905_v30, %v4797_v20 }
 0x8e7   :  { %v5078_v15 = vmax.f32 %v5041_v22, 0.0 }
 0x8e8   :  { %v4802_v7 = vsel %vm4801_vm11, %v6905_v30, %v4798_v38 }
 0x8e9   :  { %v4818_v50 = vmul.f32 %v4802_v7, %v10741_v52 }
 0x8ea   :  { %v4991_v23 = vpop.f32.mrf.mxu3 }
 0x8eb   :  { %v4837_v5 = vmul.f32 %v10660_v62, %v4818_v50  ;;  %v4992_v52 = vadd.f32 %v4991_v23, %v10761_v40 }
 0x8ec   :  { %v5042_v53 = vpop.f32.mrf.mxu0 }
 0x8ed   :  { %v5043_v49 = vadd.f32 %v5042_v53, %v10758_v48  ;;  %v4856_v42 = vadd.f32 %v10665_v10, %v4837_v5  ;;  %v5077_v31 = vmax.f32 %v4992_v52, 0.0  ;;  %v10858_v10 = vld [vmem:[%s11040_s11] ss:$0 sm:$0xff] }
 0x8ef   :  { %v5080_v30 = vmax.f32 %v5043_v49, 0.0  ;;  %v10849_v34 = vpack.c.bf16 %v4856_v42, %v4855_v17 }
 0x8f1   :  { %5010 = vmatmul.bf16.gmra.mxu3 %v10849_v34  ;;  %5059 = vmatmul.bf16.gmra.mxu0 %v10849_v34  ;;  %v5104_v36 = vpack.c.bf16 %v5080_v30, %v5078_v15 }
 0x8f2   :  { %v4993_v11 = vpop.f32.mrf.mxu3 }
 0x8f3   :  { %v4994_v62 = vadd.f32 %v4993_v11, %v10761_v40  ;;  %5317 = vmatmul.bf16.gmra.mxu2 %v5104_v36 }
 0x8f5   :  { %v5079_v24 = vmax.f32 %v4994_v62, 0.0 }
 0x8f7   :  { %v5103_v33 = vpack.c.bf16 %v5079_v24, %v5077_v31 }
 0x8f9   :  { %5268 = vmatmul.bf16.gmra.mxu1 %v5103_v33 }
 0x901   :  { %v5254_v44 = vpop.f32.mrf.mxu1  ;;  %5453 = vmatmul.bf16.vlgmr.msrb.gmra.mxu3 %v10672_v63  ;;  %5502 = vmatmul.bf16.vlgmr.msra.gmra.mxu0 %v10672_v63  ;;  %v5303_v0 = vpop.f32.mrf.mxu2 }
 0x902   :  { %v5255_v45 = vadd.f32 %v10858_v10, %v5254_v44 }
 0x904   :  { %v10863_v2 = vadd.f32 %v5303_v0, %v5255_v45 }
 0x909   :  { %v10875_v56 = vpop.f32.mrf.mxu2 }
 0x911   :  { %5458 = vmatmul.bf16.gmra.mxu3 %v10704_v12  ;;  %5507 = vmatmul.bf16.gmra.mxu0 %v10704_v12  ;;  %v10873_v12 = vpop.f32.mrf.mxu1 }
 0x915   :  { %v5045_v43 = vpop.f32.mrf.mxu0 }
 0x916   :  { %v5046_v26 = vadd.f32 %v5045_v43, %v10758_v48  ;;  %v6430_v43 = vld [vmem:[#allocation13 + $0xf8] sm:$0xff] }
 0x917   :  { %5768 = vmatpush.bf16.msra.mxu2 %v6430_v43 }
 0x918   :  { %v5082_v29 = vmax.f32 %v5046_v26, 0.0  ;;  %v6422_v26 = vld [vmem:[#allocation13 + $0xb8] sm:$0xff] }
 0x919   :  { %5719 = vmatpush.bf16.msra.mxu1 %v6422_v26 }
 0x91b   :  { %v4996_v60 = vpop.f32.mrf.mxu3 }
 0x91c   :  { %v4997_v63 = vadd.f32 %v4996_v60, %v10761_v40  ;;  %v6429_v60 = vld [vmem:[#allocation13 + $0xf0] sm:$0xff] }
 0x91d   :  { %v5047_v41 = vpop.f32.mrf.mxu0  ;;  %5769 = vmatpush.bf16.msra.mxu2 %v6429_v60 }
 0x91e   :  { %v5048_v54 = vadd.f32 %v5047_v41, %v10758_v48  ;;  %v5081_v46 = vmax.f32 %v4997_v63, 0.0  ;;  %v6428_v41 = vld [vmem:[#allocation13 + $0xe8] sm:$0xff]  ;;  %v6426_v63 = vld [vmem:[#allocation13 + $0xd8] sm:$0xff] }
 0x920   :  { %v5084_v13 = vmax.f32 %v5048_v54, 0.0  ;;  %v6421_v54 = vld [vmem:[#allocation13 + $0xb0] sm:$0xff] }
 0x921   :  { %5463 = vmatmul.bf16.gmra.mxu3 %v10720_v55  ;;  %5512 = vmatmul.bf16.gmra.mxu0 %v10720_v55 }
 0x922   :  { %v5106_v8 = vpack.c.bf16 %v5084_v13, %v5082_v29  ;;  %5770 = vmatpush.bf16.msra.mxu2 %v6428_v41  ;;  %5720 = vmatpush.bf16.msra.mxu1 %v6421_v54  ;;  %v6427_v13 = vld [vmem:[#allocation13 + $0xe0] sm:$0xff] }
 0x923   :  { %v4998_v20 = vpop.f32.mrf.mxu3 }
 0x924   :  { %v4999_v6 = vadd.f32 %v4998_v20, %v10761_v40  ;;  %5322 = vmatmul.bf16.gmra.mxu2 %v5106_v8 }
 0x926   :  { %v5083_v38 = vmax.f32 %v4999_v6, 0.0  ;;  %5771 = vmatpush.bf16.msra.mxu2 %v6427_v13 }
 0x928   :  { %v5105_v51 = vpack.c.bf16 %v5083_v38, %v5081_v46  ;;  %v5050_v7 = vpop.f32.mrf.mxu0  ;;  %v6425_v46 = vld [vmem:[#allocation13 + $0xd0] sm:$0xff] }
 0x929   :  { %v5051_v5 = vadd.f32 %v5050_v7, %v10758_v48 }
 0x92a   :  { %5273 = vmatmul.bf16.gmra.mxu1 %v5105_v51  ;;  %5772 = vmatpush.bf16.msra.mxu2 %v6426_v63  ;;  %v6418_v51 = vld [vmem:[#allocation13 + $0x98] sm:$0xff] }
 0x92b   :  { %v5086_v17 = vmax.f32 %v5051_v5, 0.0 }
 0x92d   :  { %v5259_v50 = vpop.f32.mrf.mxu1  ;;  %v5308_v3 = vpop.f32.mrf.mxu2 }
 0x92e   :  { %v5260_v23 = vadd.f32 %v10858_v10, %v5259_v50  ;;  %v5001_v55 = vpop.f32.mrf.mxu3  ;;  %5773 = vmatpush.bf16.msra.mxu2 %v6425_v46 }
 0x92f   :  { %v5002_v52 = vadd.f32 %v5001_v55, %v10761_v40  ;;  %v6417_v55 = vld [vmem:[#allocation13 + $0x90] sm:$0xff] }
 0x930   :  { %v10878_v22 = vadd.f32 %v5308_v3, %v5260_v23  ;;  %v5052_v53 = vpop.f32.mrf.mxu0  ;;  %v6424_v23 = vld [vmem:[#allocation13 + $0xc8] sm:$0xff] }
 0x931   :  { %5468 = vmatmul.bf16.gmra.mxu3 %v10751_v59  ;;  %5517 = vmatmul.bf16.gmra.mxu0 %v10751_v59  ;;  %v5053_v49 = vadd.f32 %v5052_v53, %v10758_v48  ;;  %v5085_v31 = vmax.f32 %v5002_v52, 0.0 }
 0x932   :  { %5774 = vmatpush.bf16.msra.mxu2 %v6424_v23 }
 0x933   :  { %v5088_v42 = vmax.f32 %v5053_v49, 0.0 }
 0x935   :  { %v10884_v15 = vpop.f32.mrf.mxu1  ;;  %v10886_v30 = vpop.f32.mrf.mxu2  ;;  %v5108_v36 = vpack.c.bf16 %v5088_v42, %v5086_v17  ;;  %v6423_v42 = vld [vmem:[#allocation13 + $0xc0] sm:$0xff] }
 0x936   :  { %v5003_v11 = vpop.f32.mrf.mxu3  ;;  %5775 = vmatpush.bf16.msra.mxu2 %v6423_v42 }
 0x937   :  { %v5004_v62 = vadd.f32 %v5003_v11, %v10761_v40  ;;  %5327 = vmatmul.bf16.gmra.mxu2 %v5108_v36 }
 0x939   :  { %v5087_v24 = vmax.f32 %v5004_v62, 0.0 }
 0x93b   :  { %v5107_v33 = vpack.c.bf16 %v5087_v24, %v5085_v31  ;;  %v6416_v31 = vld [vmem:[#allocation13 + $0x88] sm:$0xff] }
 0x93d   :  { %v5264_v44 = vpop.f32.mrf.mxu1  ;;  %v5313_v45 = vpop.f32.mrf.mxu2  ;;  %5278 = vmatmul.bf16.gmra.mxu1 %v5107_v33  ;;  %v6415_v33 = vld [vmem:[#allocation13 + $0x80] sm:$0xff] }
 0x93e   :  { %v5265_v59 = vadd.f32 %v10858_v10, %v5264_v44 }
 0x940   :  { %v10891_v0 = vadd.f32 %v5313_v45, %v5265_v59 }
 0x941   :  { %5473 = vmatmul.bf16.gmra.mxu3 %v10775_v19  ;;  %5522 = vmatmul.bf16.gmra.mxu0 %v10775_v19  ;;  %v6420_v19 = vld [vmem:[#allocation13 + $0xa8] sm:$0xff] }
 0x942   :  { %5721 = vmatpush.bf16.msra.mxu1 %v6420_v19 }
 0x945   :  { %v10903_v49 = vpop.f32.mrf.mxu1  ;;  %v10905_v11 = vpop.f32.mrf.mxu2 }
 0x951   :  { %5478 = vmatmul.bf16.gmra.mxu3 %v10789_v39  ;;  %5527 = vmatmul.bf16.gmra.mxu0 %v10789_v39  ;;  %v6419_v39 = vld [vmem:[#allocation13 + $0xa0] sm:$0xff] }
 0x952   :  { %5722 = vmatpush.bf16.msra.mxu1 %v6419_v39  ;;  %v5359_v39 = vld [vmem:[%s11038_s9 + $0x2] sm:$0x3]  ;;  %s7142_s9 = smov [#allocation14]  }
 0x953   :  { %v10919_v46 = vperm.slane %v5359_v39, 1  ;;  %s5869_s0 = sshll.u32 %s7142_s9, 4  ;;  %s5870_s0 = int_to_ptr.vmem [resolvable:$true] %s5869_s0 }
 0x956   :  { %5723 = vmatpush.bf16.msra.mxu1 %v6418_v51 }
 0x95a   :  { %5724 = vmatpush.bf16.msra.mxu1 %v6417_v55 }
 0x95e   :  { %v5055_v29 = vpop.f32.mrf.mxu0  ;;  %5725 = vmatpush.bf16.msra.mxu1 %v6416_v31 }
 0x95f   :  { %v5056_v20 = vadd.f32 %v5055_v29, %v10758_v48 }
 0x961   :  { %5483 = vmatmul.bf16.gmra.mxu3 %v10828_v57  ;;  %5532 = vmatmul.bf16.gmra.mxu0 %v10828_v57  ;;  %v5090_v7 = vmax.f32 %v5056_v20, 0.0 }
 0x962   :  { %5726 = vmatpush.bf16.msra.mxu1 %v6415_v33 }
 0x964   :  { %v5006_v8 = vpop.f32.mrf.mxu3 }
 0x965   :  { %v5007_v57 = vadd.f32 %v5006_v8, %v10761_v40 }
 0x966   :  { %v5057_v6 = vpop.f32.mrf.mxu0 }
 0x967   :  { %v5058_v38 = vadd.f32 %v5057_v6, %v10758_v48  ;;  %v5089_v52 = vmax.f32 %v5007_v57, 0.0 }
 0x969   :  { %v5092_v50 = vmax.f32 %v5058_v38, 0.0 }
 0x96b   :  { %v5110_v3 = vpack.c.bf16 %v5092_v50, %v5090_v7  ;;  %v10922_v50 = vperm.slane %v5359_v39, 0 }
 0x96c   :  { %v5008_v5 = vpop.f32.mrf.mxu3 }
 0x96d   :  { %v5009_v53 = vadd.f32 %v5008_v5, %v10761_v40  ;;  %5332 = vmatmul.bf16.gmra.mxu2 %v5110_v3 }
 0x96e   :  { %v5060_v17 = vpop.f32.mrf.mxu0 }
 0x96f   :  { %v5091_v36 = vmax.f32 %v5009_v53, 0.0  ;;  %v5061_v44 = vadd.f32 %v5060_v17, %v10758_v48 }
 0x971   :  { %v5109_v62 = vpack.c.bf16 %v5091_v36, %v5089_v52  ;;  %5488 = vmatmul.bf16.gmra.mxu3 %v10849_v34  ;;  %5537 = vmatmul.bf16.gmra.mxu0 %v10849_v34  ;;  %v5094_v41 = vmax.f32 %v5061_v44, 0.0 }
 0x973   :  { %5283 = vmatmul.bf16.gmra.mxu1 %v5109_v62 }
 0x974   :  { %v5011_v24 = vpop.f32.mrf.mxu3 }
 0x975   :  { %v5012_v34 = vadd.f32 %v5011_v24, %v10761_v40 }
 0x976   :  { %v5062_v59 = vpop.f32.mrf.mxu0  ;;  %v5269_v45 = vpop.f32.mrf.mxu1 }
 0x977   :  { %v5063_v43 = vadd.f32 %v5062_v59, %v10758_v48  ;;  %v5270_v60 = vadd.f32 %v10858_v10, %v5269_v45  ;;  %v5318_v26 = vpop.f32.mrf.mxu2  ;;  %v5093_v8 = vmax.f32 %v5012_v34, 0.0 }
 0x979   :  { %v5096_v54 = vmax.f32 %v5063_v43, 0.0  ;;  %v10912_v29 = vadd.f32 %v5318_v26, %v5270_v60 }
 0x97b   :  { %v5112_v13 = vpack.c.bf16 %v5096_v54, %v5094_v41 }
 0x97c   :  { %v5013_v19 = vpop.f32.mrf.mxu3 }
 0x97d   :  { %v5014_v63 = vadd.f32 %v5013_v19, %v10761_v40  ;;  %5337 = vmatmul.bf16.gmra.mxu2 %v5112_v13 }
 0x97e   :  { %v5503_v48 = vpop.f32.mrf.mxu0  ;;  %v10931_v41 = vpop.f32.mrf.mxu1 }
 0x97f   :  { %v5095_v20 = vmax.f32 %v5014_v63, 0.0  ;;  %v5504_v51 = vadd.f32 %v5503_v48, %v10919_v46  ;;  %v10933_v34 = vpop.f32.mrf.mxu2 }
 0x981   :  { %v5111_v6 = vpack.c.bf16 %v5095_v20, %v5093_v8  ;;  %v5544_v57 = vmax.f32 %v5504_v51, 0.0 }
 0x983   :  { %5288 = vmatmul.bf16.gmra.mxu1 %v5111_v6 }
 0x984   :  { %v5454_v38 = vpop.f32.mrf.mxu3 }
 0x985   :  { %v5455_v23 = vadd.f32 %v5454_v38, %v10922_v50 }
 0x986   :  { %v5505_v7 = vpop.f32.mrf.mxu0 }
 0x987   :  { %v5506_v40 = vadd.f32 %v5505_v7, %v10919_v46  ;;  %v5543_v42 = vmax.f32 %v5455_v23, 0.0 }
 0x989   :  { %v5546_v3 = vmax.f32 %v5506_v40, 0.0 }
 0x98b   :  { %v5576_v55 = vpack.c.bf16 %v5546_v3, %v5544_v57 }
 0x98c   :  { %v5456_v5 = vpop.f32.mrf.mxu3 }
 0x98d   :  { %v5457_v53 = vadd.f32 %v5456_v5, %v10922_v50  ;;  %5776 = vmatmul.bf16.vlgmr.msra.gmra.mxu2 %v5576_v55 }
 0x98e   :  { %v5508_v17 = vpop.f32.mrf.mxu0 }
 0x98f   :  { %v5545_v52 = vmax.f32 %v5457_v53, 0.0  ;;  %v5509_v31 = vadd.f32 %v5508_v17, %v10919_v46 }
 0x991   :  { %v5575_v36 = vpack.c.bf16 %v5545_v52, %v5543_v42  ;;  %v5548_v44 = vmax.f32 %v5509_v31, 0.0 }
 0x993   :  { %5727 = vmatmul.bf16.vlgmr.msra.gmra.mxu1 %v5575_v36 }
 0x994   :  { %v5459_v62 = vpop.f32.mrf.mxu3 }
 0x995   :  { %v5460_v45 = vadd.f32 %v5459_v62, %v10922_v50 }
 0x996   :  { %v5510_v24 = vpop.f32.mrf.mxu0 }
 0x997   :  { %v5511_v33 = vadd.f32 %v5510_v24, %v10919_v46  ;;  %v5547_v13 = vmax.f32 %v5460_v45, 0.0 }
 0x999   :  { %v5550_v59 = vmax.f32 %v5511_v33, 0.0 }
 0x99b   :  { %v5578_v43 = vpack.c.bf16 %v5550_v59, %v5548_v44 }
 0x99c   :  { %v5461_v60 = vpop.f32.mrf.mxu3 }
 0x99d   :  { %v5462_v26 = vadd.f32 %v5461_v60, %v10922_v50  ;;  %5781 = vmatmul.bf16.gmra.mxu2 %v5578_v43 }
 0x99e   :  { %v5513_v54 = vpop.f32.mrf.mxu0 }
 0x99f   :  { %v5549_v19 = vmax.f32 %v5462_v26, 0.0  ;;  %v5514_v48 = vadd.f32 %v5513_v54, %v10919_v46 }
 0x9a1   :  { %v5577_v63 = vpack.c.bf16 %v5549_v19, %v5547_v13  ;;  %v5552_v7 = vmax.f32 %v5514_v48, 0.0 }
 0x9a3   :  { %5732 = vmatmul.bf16.gmra.mxu1 %v5577_v63 }
 0x9a4   :  { %v5464_v39 = vpop.f32.mrf.mxu3 }
 0x9a5   :  { %v5465_v3 = vadd.f32 %v5464_v39, %v10922_v50 }
 0x9a6   :  { %v5515_v8 = vpop.f32.mrf.mxu0 }
 0x9a7   :  { %v5274_v20 = vpop.f32.mrf.mxu1  ;;  %v5516_v6 = vadd.f32 %v5515_v8, %v10919_v46  ;;  %v5323_v51 = vpop.f32.mrf.mxu2  ;;  %v5551_v42 = vmax.f32 %v5465_v3, 0.0 }
 0x9a8   :  { %v5275_v38 = vadd.f32 %v10858_v10, %v5274_v20 }
 0x9a9   :  { %v5554_v40 = vmax.f32 %v5516_v6, 0.0 }
 0x9aa   :  { %v10938_v57 = vadd.f32 %v5323_v51, %v5275_v38 }
 0x9ab   :  { %v5580_v23 = vpack.c.bf16 %v5554_v40, %v5552_v7 }
 0x9ac   :  { %v5466_v55 = vpop.f32.mrf.mxu3 }
 0x9ad   :  { %v5467_v5 = vadd.f32 %v5466_v55, %v10922_v50  ;;  %5786 = vmatmul.bf16.gmra.mxu2 %v5580_v23 }
 0x9ae   :  { %v5518_v53 = vpop.f32.mrf.mxu0 }
 0x9af   :  { %v5276_v17 = vpop.f32.mrf.mxu1  ;;  %v5553_v52 = vmax.f32 %v5467_v5, 0.0  ;;  %v5325_v62 = vpop.f32.mrf.mxu2  ;;  %v5519_v44 = vadd.f32 %v5518_v53, %v10919_v46 }
 0x9b0   :  { %v5277_v36 = vadd.f32 %v10858_v10, %v5276_v17 }
 0x9b1   :  { %v5579_v31 = vpack.c.bf16 %v5553_v52, %v5551_v42  ;;  %v5556_v43 = vmax.f32 %v5519_v44, 0.0 }
 0x9b2   :  { %v10943_v24 = vadd.f32 %v5325_v62, %v5277_v36 }
 0x9b3   :  { %5737 = vmatmul.bf16.gmra.mxu1 %v5579_v31 }
 0x9b4   :  { %v5469_v33 = vpop.f32.mrf.mxu3 }
 0x9b5   :  { %v5470_v26 = vadd.f32 %v5469_v33, %v10922_v50 }
 0x9b6   :  { %v5520_v59 = vpop.f32.mrf.mxu0 }
 0x9b7   :  { %v5521_v45 = vadd.f32 %v5520_v59, %v10919_v46  ;;  %v5555_v6 = vmax.f32 %v5470_v26, 0.0 }
 0x9b9   :  { %v5558_v60 = vmax.f32 %v5521_v45, 0.0 }
 0x9ba   :  { %v5279_v13 = vpop.f32.mrf.mxu1  ;;  %v5328_v19 = vpop.f32.mrf.mxu2 }
 0x9bb   :  { %v5582_v54 = vpack.c.bf16 %v5558_v60, %v5556_v43  ;;  %v5280_v63 = vadd.f32 %v10858_v10, %v5279_v13 }
 0x9bc   :  { %v5471_v39 = vpop.f32.mrf.mxu3 }
 0x9bd   :  { %v5472_v48 = vadd.f32 %v5471_v39, %v10922_v50  ;;  %5791 = vmatmul.bf16.gmra.mxu2 %v5582_v54  ;;  %v10950_v8 = vadd.f32 %v5328_v19, %v5280_v63 }
 0x9be   :  { %v5523_v20 = vpop.f32.mrf.mxu0 }
 0x9bf   :  { %v5557_v38 = vmax.f32 %v5472_v48, 0.0  ;;  %v5524_v23 = vadd.f32 %v5523_v20, %v10919_v46 }
 0x9c1   :  { %v5581_v51 = vpack.c.bf16 %v5557_v38, %v5555_v6  ;;  %v5560_v42 = vmax.f32 %v5524_v23, 0.0 }
 0x9c2   :  { %v5281_v7 = vpop.f32.mrf.mxu1  ;;  %v5330_v55 = vpop.f32.mrf.mxu2 }
 0x9c3   :  { %5742 = vmatmul.bf16.gmra.mxu1 %v5581_v51  ;;  %v5282_v40 = vadd.f32 %v10858_v10, %v5281_v7 }
 0x9c4   :  { %v5474_v3 = vpop.f32.mrf.mxu3 }
 0x9c5   :  { %v10954_v5 = vadd.f32 %v5330_v55, %v5282_v40  ;;  %v5475_v36 = vadd.f32 %v5474_v3, %v10922_v50 }
 0x9c6   :  { %v5525_v53 = vpop.f32.mrf.mxu0 }
 0x9c7   :  { %v5526_v17 = vadd.f32 %v5525_v53, %v10919_v46  ;;  %v5559_v59 = vmax.f32 %v5475_v36, 0.0 }
 0x9c9   :  { %v5562_v52 = vmax.f32 %v5526_v17, 0.0 }
 0x9cb   :  { %v5584_v62 = vpack.c.bf16 %v5562_v52, %v5560_v42 }
 0x9cc   :  { %v5476_v31 = vpop.f32.mrf.mxu3 }
 0x9cd   :  { %v5477_v33 = vadd.f32 %v5476_v31, %v10922_v50  ;;  %5796 = vmatmul.bf16.gmra.mxu2 %v5584_v62 }
 0x9ce   :  { %v5528_v44 = vpop.f32.mrf.mxu0 }
 0x9cf   :  { %v5561_v45 = vmax.f32 %v5477_v33, 0.0  ;;  %v5529_v26 = vadd.f32 %v5528_v44, %v10919_v46 }
 0x9d1   :  { %v5583_v43 = vpack.c.bf16 %v5561_v45, %v5559_v59  ;;  %v5564_v19 = vmax.f32 %v5529_v26, 0.0 }
 0x9d3   :  { %5747 = vmatmul.bf16.gmra.mxu1 %v5583_v43 }
 0x9d4   :  { %v5479_v60 = vpop.f32.mrf.mxu3 }
 0x9d5   :  { %v5480_v39 = vadd.f32 %v5479_v60, %v10922_v50 }
 0x9d6   :  { %v5530_v54 = vpop.f32.mrf.mxu0 }
 0x9d7   :  { %v5531_v13 = vadd.f32 %v5530_v54, %v10919_v46  ;;  %v5563_v51 = vmax.f32 %v5480_v39, 0.0 }
 0x9d9   :  { %v5566_v63 = vmax.f32 %v5531_v13, 0.0 }
 0x9db   :  { %v5586_v48 = vpack.c.bf16 %v5566_v63, %v5564_v19 }
 0x9dc   :  { %v5481_v20 = vpop.f32.mrf.mxu3 }
 0x9dd   :  { %v5482_v6 = vadd.f32 %v5481_v20, %v10922_v50  ;;  %5801 = vmatmul.bf16.gmra.mxu2 %v5586_v48 }
 0x9de   :  { %v5533_v38 = vpop.f32.mrf.mxu0 }
 0x9df   :  { %v5565_v7 = vmax.f32 %v5482_v6, 0.0  ;;  %v5534_v23 = vadd.f32 %v5533_v38, %v10919_v46 }
 0x9e1   :  { %v5585_v40 = vpack.c.bf16 %v5565_v7, %v5563_v51  ;;  %v5568_v17 = vmax.f32 %v5534_v23, 0.0 }
 0x9e3   :  { %5752 = vmatmul.bf16.gmra.mxu1 %v5585_v40 }
 0x9e4   :  { %v5484_v3 = vpop.f32.mrf.mxu3 }
 0x9e5   :  { %v5485_v52 = vadd.f32 %v5484_v3, %v10922_v50 }
 0x9e6   :  { %v5535_v55 = vpop.f32.mrf.mxu0 }
 0x9e7   :  { %v5536_v53 = vadd.f32 %v5535_v55, %v10919_v46  ;;  %v5567_v44 = vmax.f32 %v5485_v52, 0.0 }
 0x9e9   :  { %v5570_v42 = vmax.f32 %v5536_v53, 0.0 }
 0x9eb   :  { %v5588_v36 = vpack.c.bf16 %v5570_v42, %v5568_v17 }
 0x9ec   :  { %v5486_v62 = vpop.f32.mrf.mxu3 }
 0x9ed   :  { %v5487_v31 = vadd.f32 %v5486_v62, %v10922_v50  ;;  %5806 = vmatmul.bf16.gmra.mxu2 %v5588_v36 }
 0x9ee   :  { %v5538_v33 = vpop.f32.mrf.mxu0 }
 0x9ef   :  { %v5569_v59 = vmax.f32 %v5487_v31, 0.0  ;;  %v5539_v19 = vadd.f32 %v5538_v33, %v10919_v46 }
 0x9f0   :  { %v5284_v45 = vpop.f32.mrf.mxu1  ;;  %v5333_v43 = vpop.f32.mrf.mxu2 }
 0x9f1   :  { %v5587_v60 = vpack.c.bf16 %v5569_v59, %v5567_v44  ;;  %v5285_v26 = vadd.f32 %v10858_v10, %v5284_v45  ;;  %v5572_v6 = vmax.f32 %v5539_v19, 0.0 }
 0x9f3   :  { %v10968_v54 = vadd.f32 %v5333_v43, %v5285_v26  ;;  %5757 = vmatmul.bf16.gmra.mxu1 %v5587_v60  ;;  %v5257_v26 = vadd.f32 %v10858_v10, %v10873_v12  ;;  %v5262_v12 = vadd.f32 %v10858_v10, %v10884_v15  ;;  %v5267_v15 = vadd.f32 %v10858_v10, %v10903_v49 }
 0x9f4   :  { %v5489_v13 = vpop.f32.mrf.mxu3  ;;  %v5272_v49 = vadd.f32 %v10858_v10, %v10931_v41 }
 0x9f5   :  { %v5490_v7 = vadd.f32 %v5489_v13, %v10922_v50 }
 0x9f6   :  { %v5540_v63 = vpop.f32.mrf.mxu0 }
 0x9f7   :  { %v5541_v39 = vadd.f32 %v5540_v63, %v10919_v46  ;;  %v5571_v53 = vmax.f32 %v5490_v7, 0.0 }
 0x9f8   :  { %v5286_v48 = vpop.f32.mrf.mxu1  ;;  %v5335_v20 = vpop.f32.mrf.mxu2 }
 0x9f9   :  { %v5574_v38 = vmax.f32 %v5541_v39, 0.0  ;;  %v5287_v51 = vadd.f32 %v10858_v10, %v5286_v48  ;;  %v5306_v39 = vadd.f32 %v10875_v56, %v5257_v26  ;;  %v5311_v56 = vadd.f32 %v10886_v30, %v5262_v12 }
 0x9fa   :  { %v5316_v30 = vadd.f32 %v10905_v11, %v5267_v15  ;;  %v5321_v11 = vadd.f32 %v10933_v34, %v5272_v49 }
 0x9fb   :  { %v5590_v40 = vpack.c.bf16 %v5574_v38, %v5572_v6  ;;  %v10974_v3 = vadd.f32 %v5335_v20, %v5287_v51 }
 0x9fc   :  { %v5491_v23 = vpop.f32.mrf.mxu3 }
 0x9fd   :  { %v5492_v55 = vadd.f32 %v5491_v23, %v10922_v50  ;;  %5811 = vmatmul.bf16.gmra.mxu2 %v5590_v40 }
 0x9ff   :  { %v5573_v17 = vmax.f32 %v5492_v55, 0.0 }
 0xa00   :  { %v5289_v42 = vpop.f32.mrf.mxu1  ;;  %v5338_v52 = vpop.f32.mrf.mxu2 }
 0xa01   :  { %v5589_v46 = vpack.c.bf16 %v5573_v17, %v5571_v53  ;;  %v5290_v36 = vadd.f32 %v10858_v10, %v5289_v42 }
 0xa03   :  { %v10978_v62 = vadd.f32 %v5338_v52, %v5290_v36  ;;  %5762 = vmatmul.bf16.gmra.mxu1 %v5589_v46 }
 0xa08   :  { %v5291_v31 = vpop.f32.mrf.mxu1  ;;  %v5340_v33 = vpop.f32.mrf.mxu2 }
 0xa09   :  { %v5292_v44 = vadd.f32 %v10858_v10, %v5291_v31 }
 0xa0b   :  { %v10981_v59 = vadd.f32 %v5340_v33, %v5292_v44 }
 0xa10   :  { %v5728_v45 = vpop.f32.mrf.mxu1  ;;  %v5777_v43 = vpop.f32.mrf.mxu2 }
 0xa11   :  { %v5778_v50 = vadd.f32 %v5777_v43, %v5728_v45 }
 0xa13   :  { %v5817_v60 = vadd.f32 %v5778_v50, %v10863_v2 }
 0xa15   :  { %v5833_v13 = vadd.f32 %v5817_v60, %v10486_v32 }
 0xa17   :  { %5849 = vst [vmem:[#allocation14] sm:$0xff] %v5833_v13 }
 0xa18   :  { %v5730_v19 = vpop.f32.mrf.mxu1  ;;  %v5779_v63 = vpop.f32.mrf.mxu2 }
 0xa19   :  { %v5780_v48 = vadd.f32 %v5779_v63, %v5730_v19 }
 0xa1b   :  { %v5818_v20 = vadd.f32 %v5780_v48, %v5306_v39 }
 0xa1d   :  { %v5834_v6 = vadd.f32 %v5818_v20, %v10506_v4 }
 0xa1f   :  { %5850 = vst [vmem:[#allocation14 + $0x8] sm:$0xff] %v5834_v6 }
 0xa20   :  { %v5733_v38 = vpop.f32.mrf.mxu1  ;;  %v5782_v51 = vpop.f32.mrf.mxu2 }
 0xa21   :  { %v5783_v7 = vadd.f32 %v5782_v51, %v5733_v38 }
 0xa23   :  { %v5819_v2 = vadd.f32 %v5783_v7, %v10878_v22 }
 0xa25   :  { %v5835_v32 = vadd.f32 %v5819_v2, %v10510_v27 }
 0xa27   :  { %5851 = vst [vmem:[#allocation14 + $0x10] sm:$0xff] %v5835_v32 }
 0xa28   :  { %v5735_v40 = vpop.f32.mrf.mxu1  ;;  %v5784_v23 = vpop.f32.mrf.mxu2 }
 0xa29   :  { %v5785_v55 = vadd.f32 %v5784_v23, %v5735_v40 }
 0xa2b   :  { %v5820_v53 = vadd.f32 %v5785_v55, %v5311_v56 }
 0xa2d   :  { %v5836_v4 = vadd.f32 %v5820_v53, %v10522_v37 }
 0xa2f   :  { %5852 = vst [vmem:[#allocation14 + $0x18] sm:$0xff] %v5836_v4 }
 0xa30   :  { %v5738_v17 = vpop.f32.mrf.mxu1  ;;  %v5787_v42 = vpop.f32.mrf.mxu2 }
 0xa31   :  { %v5788_v52 = vadd.f32 %v5787_v42, %v5738_v17 }
 0xa33   :  { %v5821_v22 = vadd.f32 %v5788_v52, %v10891_v0 }
 0xa35   :  { %v5837_v27 = vadd.f32 %v5821_v22, %v10526_v18 }
 0xa37   :  { %5853 = vst [vmem:[#allocation14 + $0x20] sm:$0xff] %v5837_v27 }
 0xa38   :  { %v5740_v46 = vpop.f32.mrf.mxu1  ;;  %v5789_v36 = vpop.f32.mrf.mxu2 }
 0xa39   :  { %v5790_v31 = vadd.f32 %v5789_v36, %v5740_v46 }
 0xa3b   :  { %v5822_v33 = vadd.f32 %v5790_v31, %v5316_v30 }
 0xa3d   :  { %v5838_v37 = vadd.f32 %v5822_v33, %v10538_v47 }
 0xa3f   :  { %5854 = vst [vmem:[#allocation14 + $0x28] sm:$0xff] %v5838_v37 }
 0xa40   :  { %v5743_v44 = vpop.f32.mrf.mxu1  ;;  %v5792_v45 = vpop.f32.mrf.mxu2 }
 0xa41   :  { %v5793_v43 = vadd.f32 %v5792_v45, %v5743_v44 }
 0xa43   :  { %v5823_v0 = vadd.f32 %v5793_v43, %v10912_v29 }
 0xa45   :  { %v5839_v18 = vadd.f32 %v5823_v0, %v10556_v16 }
 0xa47   :  { %5855 = vst [vmem:[#allocation14 + $0x30] sm:$0xff] %v5839_v18 }
 0xa48   :  { %v5745_v50 = vpop.f32.mrf.mxu1  ;;  %v5794_v60 = vpop.f32.mrf.mxu2 }
 0xa49   :  { %v5795_v26 = vadd.f32 %v5794_v60, %v5745_v50 }
 0xa4b   :  { %v5824_v13 = vadd.f32 %v5795_v26, %v5321_v11 }
 0xa4d   :  { %v5840_v47 = vadd.f32 %v5824_v13, %v10560_v21 }
 0xa4f   :  { %5856 = vst [vmem:[#allocation14 + $0x38] sm:$0xff] %v5840_v47 }
 0xa50   :  { %v5748_v19 = vpop.f32.mrf.mxu1  ;;  %v5797_v63 = vpop.f32.mrf.mxu2 }
 0xa51   :  { %v5798_v39 = vadd.f32 %v5797_v63, %v5748_v19 }
 0xa53   :  { %v5825_v29 = vadd.f32 %v5798_v39, %v10938_v57 }
 0xa55   :  { %v5841_v48 = vadd.f32 %v5825_v29, %v10570_v28 }
 0xa57   :  { %5857 = vst [vmem:[#allocation14 + $0x40] sm:$0xff] %v5841_v48 }
 0xa58   :  { %v5750_v10 = vpop.f32.mrf.mxu1  ;;  %v5799_v16 = vpop.f32.mrf.mxu2 }
 0xa59   :  { %v5800_v41 = vadd.f32 %v5799_v16, %v5750_v10 }
 0xa5b   :  { %v5826_v20 = vadd.f32 %v5800_v41, %v10943_v24 }
 0xa5d   :  { %v5842_v34 = vadd.f32 %v5826_v20, %v10584_v1 }
 0xa5f   :  { %5858 = vst [vmem:[#allocation14 + $0x48] sm:$0xff] %v5842_v34 }
 0xa60   :  { %v5753_v6 = vpop.f32.mrf.mxu1  ;;  %v5802_v38 = vpop.f32.mrf.mxu2 }
 0xa61   :  { %v5803_v21 = vadd.f32 %v5802_v38, %v5753_v6 }
 0xa63   :  { %v5827_v51 = vadd.f32 %v5803_v21, %v10950_v8 }
 0xa65   :  { %v5843_v7 = vadd.f32 %v5827_v51, %v10597_v61 }
 0xa67   :  { %5859 = vst [vmem:[#allocation14 + $0x50] sm:$0xff] %v5843_v7 }
 0xa68   :  { %v5755_v57 = vpop.f32.mrf.mxu1  ;;  %v5804_v2 = vpop.f32.mrf.mxu2 }
 0xa69   :  { %v5805_v28 = vadd.f32 %v5804_v2, %v5755_v57 }
 0xa6b   :  { %v5828_v12 = vadd.f32 %v5805_v28, %v10954_v5 }
 0xa6d   :  { %v5844_v32 = vadd.f32 %v5828_v12, %v10606_v14 }
 0xa6f   :  { %5860 = vst [vmem:[#allocation14 + $0x58] sm:$0xff] %v5844_v32 }
 0xa70   :  { %v5758_v24 = vpop.f32.mrf.mxu1  ;;  %v5807_v40 = vpop.f32.mrf.mxu2 }
 0xa71   :  { %v5808_v1 = vadd.f32 %v5807_v40, %v5758_v24 }
 0xa73   :  { %v5829_v23 = vadd.f32 %v5808_v1, %v10968_v54 }
 0xa75   :  { %v5845_v56 = vadd.f32 %v5829_v23, %v10610_v35 }
 0xa77   :  { %5861 = vst [vmem:[#allocation14 + $0x60] sm:$0xff] %v5845_v56 }
 0xa78   :  { %v5760_v8 = vpop.f32.mrf.mxu1  ;;  %v5809_v55 = vpop.f32.mrf.mxu2 }
 0xa79   :  { %v5810_v61 = vadd.f32 %v5809_v55, %v5760_v8 }
 0xa7b   :  { %v5830_v53 = vadd.f32 %v5810_v61, %v10974_v3 }
 0xa7d   :  { %v5846_v4 = vadd.f32 %v5830_v53, %v10633_v9 }
 0xa7f   :  { %5862 = vst [vmem:[#allocation14 + $0x68] sm:$0xff] %v5846_v4 }
 0xa80   :  { %v5763_v5 = vpop.f32.mrf.mxu1  ;;  %v5812_v17 = vpop.f32.mrf.mxu2 }
 0xa81   :  { %v5813_v14 = vadd.f32 %v5812_v17, %v5763_v5 }
 0xa83   :  { %v5831_v42 = vadd.f32 %v5813_v14, %v10978_v62 }
 0xa85   :  { %v5847_v52 = vadd.f32 %v5831_v42, %v10647_v25 }
 0xa87   :  { %5863 = vst [vmem:[#allocation14 + $0x70] sm:$0xff] %v5847_v52 }
 0xa88   :  { %v5765_v54 = vpop.f32.mrf.mxu1  ;;  %v5814_v22 = vpop.f32.mrf.mxu2 }
 0xa89   :  { %v5815_v35 = vadd.f32 %v5814_v22, %v5765_v54 }
 0xa8b   :  { %v5832_v9 = vadd.f32 %v5815_v35, %v10981_v59 }
 0xa8d   :  { %v5848_v3 = vadd.f32 %v5832_v9, %v10658_v58 }
 0xa8f   :  { %5864 = vst [vmem:[#allocation14 + $0x78] sm:$0xff] %v5848_v3 }
 0xa90   :  { %5877 = dma.vmem_to_hbm [thread:$0]  %s5870_s0, 2048, %s5872_s14, [#allocation4], %s7132_s25, %s7132_s25, %s7133_s26  }
 0xa91   :  { %7122 = dma.done.wait [#allocation4], 2048  }
 0xa92   :  { %7123 = vsyncadd [#allocation4], 4294965248 }
 0xa93   :  { %5882 = vsyncpa [#allocation3], 1 }
 0xa94   :  { %5883 = vsyncpa [#allocation6], 1 }
 0xa95   :  { %5884 = vsyncpa [#allocation9], 1 }
 0xa96   :  { %5885 = vsyncpa [#allocation12], 1 }
 0xa97   :  { %5886 = vsyncpa [#allocation4], 1 }

</bundles_post_ra>
